<compile_context>
chip_gen: v7x
topology: tpu7x:2x2x1
jax: 0.10.0
libtpu: 0.0.40
codegen_flags: <defaults>
</compile_context>

<pallas_src>
import functools

import jax
import jax.numpy as jnp
from jax.experimental import pallas as pl
from jax.experimental.pallas import tpu as pltpu


# ----------------------------------------------------------------------------
# Fused kernels (one grid step == one batch element)
# ----------------------------------------------------------------------------
def _attn_branch_kernel(x_ref, g_ref, beta_ref, wqkv_ref, bqkv_ref, wp_ref, bp_ref,
                        o_ref, *, heads, head_dim, scale, eps):
    """x + proj(MHSA(GroupNorm(x))) for one batch element, fully in VMEM."""
    x = x_ref[0].astype(jnp.float32)                          # (N, C)
    N = x.shape[0]
    C = heads * head_dim

    # ---- GroupNorm(num_groups=1), one-pass statistics ----
    inv_cnt = 1.0 / float(N * C)
    mean = jnp.sum(x) * inv_cnt
    var = jnp.sum(x * x) * inv_cnt - mean * mean
    xn = (x - mean) * jax.lax.rsqrt(var + eps)
    xn = xn * g_ref[...].astype(jnp.float32) + beta_ref[...].astype(jnp.float32)

    # ---- fused QKV projection: one (N, C) @ (C, 3C) MXU matmul ----
    qkv = jnp.dot(xn, wqkv_ref[...].astype(jnp.float32),
                  preferred_element_type=jnp.float32)
    qkv = qkv + bqkv_ref[...].astype(jnp.float32)             # (N, 3C)

    # ---- per-head attention, heads stay in-register (no HBM head transpose) ----
    # Output projection is folded in as a sum over heads:
    #   y = x + proj_b + sum_h O_h @ Wp[h]      (Wp passed as (heads, hd, C))
    y = x + bp_ref[...].astype(jnp.float32)
    for h in range(heads):
        lo = h * head_dim
        q = qkv[:, lo:lo + head_dim]                          # (N, hd)
        k = qkv[:, C + lo:C + lo + head_dim]                  # (N, hd)
        v = qkv[:, 2 * C + lo:2 * C + lo + head_dim]          # (N, hd)
        s = jnp.dot(q, k.T, preferred_element_type=jnp.float32) * scale   # (N, N)
        m = jnp.max(s, axis=-1, keepdims=True)
        p = jnp.exp(s - m)
        l = jnp.sum(p, axis=-1, keepdims=True)
        p = p * pl.reciprocal(l, approx=True)                 # EUP divide
        o = jnp.dot(p, v, preferred_element_type=jnp.float32)              # (N, hd)
        y = y + jnp.dot(o, wp_ref[h].astype(jnp.float32),
                        preferred_element_type=jnp.float32)                # (N, C)

    o_ref[0] = y.astype(o_ref.dtype)


def _conv_branch_kernel(x_ref, g_ref, beta_ref, w1_ref, dw_ref, w2_ref, o_ref,
                        *, H, W, ksize, eps):
    """x + pw2(SiLU(dwKxK(SiLU(pw1(GroupNorm(x)))))) for one batch element."""
    x = x_ref[0].astype(jnp.float32)                          # (N, C)
    N = x.shape[0]
    C = x.shape[1]

    # ---- GroupNorm(num_groups=1), one-pass statistics ----
    inv_cnt = 1.0 / float(N * C)
    mean = jnp.sum(x) * inv_cnt
    var = jnp.sum(x * x) * inv_cnt - mean * mean
    xn = (x - mean) * jax.lax.rsqrt(var + eps)
    xn = xn * g_ref[...].astype(jnp.float32) + beta_ref[...].astype(jnp.float32)

    # ---- pw1 (1x1 expand) + SiLU ----
    y = jnp.dot(xn, w1_ref[...].astype(jnp.float32),
                preferred_element_type=jnp.float32)           # (N, hidden)
    y = y * jax.nn.sigmoid(y)
    hidden = y.shape[-1]

    # ---- depthwise ksize x ksize "same" conv + SiLU, padding built in VMEM ----
    pad = (ksize - 1) // 2
    yimg = y.reshape(H, W, hidden)                            # layout-preserving reshape
    # W padding: place the image at a sublane-aligned offset (8) inside a wider
    # zero slab so the concatenation stays tile-aligned; the shifted reads below
    # start at columns (8 - pad + dx).
    wpad = 8
    zw = jnp.zeros((H, wpad, hidden), jnp.float32)
    yw = jnp.concatenate([zw, yimg, zw], axis=1)              # (H, W + 2*wpad, hidden)
    # H padding: leading-axis concat (free).
    zh = jnp.zeros((pad, W + 2 * wpad, hidden), jnp.float32)
    yp = jnp.concatenate([zh, yw, zh], axis=0)                # (H + 2*pad, W + 2*wpad, hidden)

    w = dw_ref[...].astype(jnp.float32)                       # (k, k, hidden)
    acc = jnp.zeros((H, W, hidden), jnp.float32)
    for dy in range(ksize):
        for dx in range(ksize):
            col0 = wpad - pad + dx
            acc = acc + yp[dy:dy + H, col0:col0 + W, :] * w[dy, dx]
    acc = acc * jax.nn.sigmoid(acc)

    # ---- pw2 (1x1 project) + residual ----
    z = jnp.dot(acc.reshape(N, hidden), w2_ref[...].astype(jnp.float32),
                preferred_element_type=jnp.float32) + x
    o_ref[0] = z.astype(o_ref.dtype)


# ----------------------------------------------------------------------------
# pallas_call wrappers (grid = (B,), one fused kernel per residual branch)
# ----------------------------------------------------------------------------
def attention_branch_pallas(x, gamma, beta, qkv_w, qkv_b, proj_w, proj_b,
                            *, heads, head_dim, eps=1e-5):
    B, N, C = x.shape
    assert C == heads * head_dim
    wp = proj_w.reshape(heads, head_dim, C)   # per-head slabs of the proj weight
    kern = functools.partial(_attn_branch_kernel, heads=heads, head_dim=head_dim,
                             scale=head_dim ** -0.5, eps=eps)
    return pl.pallas_call(
        kern,
        out_shape=jax.ShapeDtypeStruct((B, N, C), x.dtype),
        grid=(B,),
        in_specs=[
            pl.BlockSpec((1, N, C), lambda b: (b, 0, 0)),
            pl.BlockSpec((1, C), lambda b: (0, 0)),
            pl.BlockSpec((1, C), lambda b: (0, 0)),
            pl.BlockSpec((C, 3 * C), lambda b: (0, 0)),
            pl.BlockSpec((1, 3 * C), lambda b: (0, 0)),
            pl.BlockSpec((heads, head_dim, C), lambda b: (0, 0, 0)),
            pl.BlockSpec((1, C), lambda b: (0, 0)),
        ],
        out_specs=pl.BlockSpec((1, N, C), lambda b: (b, 0, 0)),
        compiler_params=pltpu.CompilerParams(dimension_semantics=("parallel",)),
    )(x, gamma, beta, qkv_w, qkv_b, wp, proj_b)


def conv_branch_pallas(x, gamma, beta, pw1_w, dw_w, pw2_w, *, H, W, kernel_size,
                       eps=1e-5):
    B, N, C = x.shape
    hidden = pw1_w.shape[1]
    assert (kernel_size - 1) // 2 <= 8, "in-kernel padding assumes pad <= 8"
    kern = functools.partial(_conv_branch_kernel, H=H, W=W, ksize=kernel_size, eps=eps)
    return pl.pallas_call(
        kern,
        out_shape=jax.ShapeDtypeStruct((B, N, C), x.dtype),
        grid=(B,),
        in_specs=[
            pl.BlockSpec((1, N, C), lambda b: (b, 0, 0)),
            pl.BlockSpec((1, C), lambda b: (0, 0)),
            pl.BlockSpec((1, C), lambda b: (0, 0)),
            pl.BlockSpec((C, hidden), lambda b: (0, 0)),
            pl.BlockSpec((kernel_size, kernel_size, hidden), lambda b: (0, 0, 0)),
            pl.BlockSpec((hidden, C), lambda b: (0, 0)),
        ],
        out_specs=pl.BlockSpec((1, N, C), lambda b: (b, 0, 0)),
        compiler_params=pltpu.CompilerParams(dimension_semantics=("parallel",)),
    )(x, gamma, beta, pw1_w, dw_w, pw2_w)


# ----------------------------------------------------------------------------
# Parameters + forward pass
# ----------------------------------------------------------------------------
def init_params(key, dim, head_dim, expansion=1, kernel_size=3):
    assert dim % head_dim == 0
    hidden = dim * expansion
    ks = jax.random.split(key, 5)

    def w(k, shape, fan_in):
        return jax.random.normal(k, shape, jnp.float32) * (fan_in ** -0.5)

    return dict(
        attn_norm_g=jnp.ones((1, dim), jnp.float32),
        attn_norm_b=jnp.zeros((1, dim), jnp.float32),
        qkv_w=w(ks[0], (dim, 3 * dim), dim),
        qkv_b=jnp.zeros((1, 3 * dim), jnp.float32),
        proj_w=w(ks[1], (dim, dim), dim),
        proj_b=jnp.zeros((1, dim), jnp.float32),
        conv_norm_g=jnp.ones((1, dim), jnp.float32),
        conv_norm_b=jnp.zeros((1, dim), jnp.float32),
        pw1_w=w(ks[2], (dim, hidden), dim),                        # 1x1 expand, no bias
        dw_w=w(ks[3], (kernel_size, kernel_size, hidden), kernel_size * kernel_size),
        pw2_w=w(ks[4], (hidden, dim), hidden),                     # 1x1 project, no bias
    )


def transformer_forward(x_nchw, params, *, head_dim, kernel_size=3, eps=1e-5):
    B, C, H, W = x_nchw.shape
    N = H * W
    heads = C // head_dim
    x = jnp.transpose(x_nchw, (0, 2, 3, 1)).reshape(B, N, C)

    # ---- Attention branch (single fused kernel) ----
    x1 = attention_branch_pallas(
        x, params["attn_norm_g"], params["attn_norm_b"],
        params["qkv_w"], params["qkv_b"], params["proj_w"], params["proj_b"],
        heads=heads, head_dim=head_dim, eps=eps)

    # ---- InvertedResidual branch (single fused kernel) ----
    out = conv_branch_pallas(
        x1, params["conv_norm_g"], params["conv_norm_b"],
        params["pw1_w"], params["dw_w"], params["pw2_w"],
        H=H, W=W, kernel_size=kernel_size, eps=eps)

    out = out.reshape(B, H, W, C)
    return jnp.transpose(out, (0, 3, 1, 2))


# ----------------------------------------------------------------------------
# Pure-JAX reference (numerical sanity check)
# ----------------------------------------------------------------------------
def transformer_reference(x_nchw, params, *, head_dim, kernel_size=3, eps=1e-5):
    B, C, H, W = x_nchw.shape
    N = H * W
    heads = C // head_dim
    x = jnp.transpose(x_nchw, (0, 2, 3, 1)).reshape(B, N, C)

    def gn(t, g, b):
        m = jnp.mean(t, axis=(1, 2), keepdims=True)
        v = jnp.mean((t - m) ** 2, axis=(1, 2), keepdims=True)
        return (t - m) * jax.lax.rsqrt(v + eps) * g + b

    xn = gn(x, params["attn_norm_g"], params["attn_norm_b"])
    qkv = xn @ params["qkv_w"] + params["qkv_b"]
    q, k, v = jnp.split(qkv, 3, axis=-1)
    sh = lambda t: t.reshape(B, N, heads, head_dim).transpose(0, 2, 1, 3)
    q, k, v = sh(q), sh(k), sh(v)
    s = jnp.einsum("bhnd,bhmd->bhnm", q, k) * head_dim ** -0.5
    p = jax.nn.softmax(s, axis=-1)
    o = jnp.einsum("bhnm,bhmd->bhnd", p, v).transpose(0, 2, 1, 3).reshape(B, N, C)
    x1 = x + (o @ params["proj_w"] + params["proj_b"])

    y = gn(x1, params["conv_norm_g"], params["conv_norm_b"])
    y = jax.nn.silu(y @ params["pw1_w"])
    hidden = y.shape[-1]
    yimg = y.reshape(B, H, W, hidden)
    pad = (kernel_size - 1) // 2
    yp = jnp.pad(yimg, ((0, 0), (pad, pad), (pad, pad), (0, 0)))
    acc = jnp.zeros_like(yimg)
    for dy in range(kernel_size):
        for dx in range(kernel_size):
            acc = acc + yp[:, dy:dy + H, dx:dx + W, :] * params["dw_w"][dy, dx]
    y = jax.nn.silu(acc).reshape(B, N, hidden)
    out = x1 + y @ params["pw2_w"]
    return jnp.transpose(out.reshape(B, H, W, C), (0, 3, 1, 2))


if __name__ == "__main__":
    key = jax.random.PRNGKey(0)
    B, dim, H, W = 2, 32, 16, 16
    head_dim = 8            # num_heads = 4
    kernel_size = 3

    x = jax.random.normal(jax.random.fold_in(key, 1), (B, dim, H, W), jnp.float32)
    params = init_params(jax.random.fold_in(key, 2), dim, head_dim,
                         expansion=1, kernel_size=kernel_size)

    out = transformer_forward(x, params, head_dim=head_dim, kernel_size=kernel_size)
    out = jax.block_until_ready(out)
    assert out.shape == x.shape and out.dtype == x.dtype

    ref = transformer_reference(x, params, head_dim=head_dim, kernel_size=kernel_size)
    # slightly looser tolerance: softmax denominator uses the EUP approx reciprocal
    assert jnp.allclose(out, ref, rtol=5e-3, atol=5e-3), "Pallas output mismatch vs reference"

    print("KERNEL_OK")
</pallas_src>

<mosaic_0001>
module attributes {stable_mosaic.version = 11 : i64} {
  func.func @_attn_branch_kernel(%arg0: i32, %arg1: memref<1x256x32xf32, #tpu.memory_space<vmem>>, %arg2: memref<1x32xf32, #tpu.memory_space<vmem>>, %arg3: memref<1x32xf32, #tpu.memory_space<vmem>>, %arg4: memref<32x96xf32, #tpu.memory_space<vmem>>, %arg5: memref<1x96xf32, #tpu.memory_space<vmem>>, %arg6: memref<4x8x32xf32, #tpu.memory_space<vmem>>, %arg7: memref<1x32xf32, #tpu.memory_space<vmem>>, %arg8: memref<1x256x32xf32, #tpu.memory_space<vmem>>) attributes {dimension_semantics = [#tpu.dimension_semantics<parallel>], iteration_bounds = array<i64: 2>, scalar_prefetch = 0 : i64, scratch_operands = 0 : i64, tpu.core_type = #tpu.core_type<tc>, window_params = [{transform_indices = @transform_0, window_bounds = array<i64: 1, 256, 32>}, {pipeline_mode = #tpu.pipeline_mode<synchronous>, transform_indices = @transform_1, window_bounds = array<i64: 1, 32>}, {pipeline_mode = #tpu.pipeline_mode<synchronous>, transform_indices = @transform_2, window_bounds = array<i64: 1, 32>}, {pipeline_mode = #tpu.pipeline_mode<synchronous>, transform_indices = @transform_3, window_bounds = array<i64: 32, 96>}, {pipeline_mode = #tpu.pipeline_mode<synchronous>, transform_indices = @transform_4, window_bounds = array<i64: 1, 96>}, {pipeline_mode = #tpu.pipeline_mode<synchronous>, transform_indices = @transform_5, window_bounds = array<i64: 4, 8, 32>}, {pipeline_mode = #tpu.pipeline_mode<synchronous>, transform_indices = @transform_6, window_bounds = array<i64: 1, 32>}, {transform_indices = @transform_7, window_bounds = array<i64: 1, 256, 32>}]} {
    %c0 = arith.constant 0 : index
    %c0_0 = arith.constant 0 : index
    %c0_1 = arith.constant 0 : index
    %0 = vector.load %arg1[%c0, %c0_0, %c0_1] : memref<1x256x32xf32, #tpu.memory_space<vmem>>, vector<1x256x32xf32>
    %1 = vector.shape_cast %0 : vector<1x256x32xf32> to vector<256x32xf32>
    %2 = vector.shape_cast %1 : vector<256x32xf32> to vector<1x256x32xf32>
    %cst = arith.constant dense<0.000000e+00> : vector<1xf32>
    %3 = vector.multi_reduction <add>, %2, %cst [1, 2] : vector<1x256x32xf32> to vector<1xf32>
    %4 = vector.shape_cast %3 : vector<1xf32> to vector<1x1x1xf32>
    %5 = vector.extract %4[0, 0, 0] : f32 from vector<1x1x1xf32>
    %cst_2 = arith.constant 1.22070313E-4 : f32
    %6 = arith.mulf %5, %cst_2 : f32
    %7 = arith.mulf %1, %1 : vector<256x32xf32>
    %8 = vector.shape_cast %7 : vector<256x32xf32> to vector<1x256x32xf32>
    %cst_3 = arith.constant dense<0.000000e+00> : vector<1xf32>
    %9 = vector.multi_reduction <add>, %8, %cst_3 [1, 2] : vector<1x256x32xf32> to vector<1xf32>
    %10 = vector.shape_cast %9 : vector<1xf32> to vector<1x1x1xf32>
    %11 = vector.extract %10[0, 0, 0] : f32 from vector<1x1x1xf32>
    %cst_4 = arith.constant 1.22070313E-4 : f32
    %12 = arith.mulf %11, %cst_4 : f32
    %13 = arith.mulf %6, %6 : f32
    %14 = arith.subf %12, %13 : f32
    %15 = vector.broadcast %6 : f32 to vector<256x32xf32>
    %16 = arith.subf %1, %15 : vector<256x32xf32>
    %cst_5 = arith.constant 9.99999974E-6 : f32
    %17 = arith.addf %14, %cst_5 : f32
    %18 = math.rsqrt %17 : f32
    %19 = vector.broadcast %18 : f32 to vector<256x32xf32>
    %20 = arith.mulf %16, %19 : vector<256x32xf32>
    %c0_6 = arith.constant 0 : index
    %c0_7 = arith.constant 0 : index
    %21 = vector.load %arg2[%c0_6, %c0_7] : memref<1x32xf32, #tpu.memory_space<vmem>>, vector<1x32xf32>
    %22 = vector.broadcast %21 : vector<1x32xf32> to vector<256x32xf32>
    %23 = arith.mulf %20, %22 : vector<256x32xf32>
    %c0_8 = arith.constant 0 : index
    %c0_9 = arith.constant 0 : index
    %24 = vector.load %arg3[%c0_8, %c0_9] : memref<1x32xf32, #tpu.memory_space<vmem>>, vector<1x32xf32>
    %25 = vector.broadcast %24 : vector<1x32xf32> to vector<256x32xf32>
    %26 = arith.addf %23, %25 : vector<256x32xf32>
    %c0_10 = arith.constant 0 : index
    %c0_11 = arith.constant 0 : index
    %27 = vector.load %arg4[%c0_10, %c0_11] : memref<32x96xf32, #tpu.memory_space<vmem>>, vector<32x96xf32>
    %cst_12 = arith.constant dense<0.000000e+00> : vector<256x96xf32>
    %28 = tpu.matmul %26, %27, %cst_12 {dimension_numbers = #tpu.dot_dimension_numbers<[1], [0], [0], [1], [0, 0, 1, 1], [], []>} : vector<256x32xf32>, vector<32x96xf32>, vector<256x96xf32> -> vector<256x96xf32>
    %c0_13 = arith.constant 0 : index
    %c0_14 = arith.constant 0 : index
    %29 = vector.load %arg5[%c0_13, %c0_14] : memref<1x96xf32, #tpu.memory_space<vmem>>, vector<1x96xf32>
    %30 = vector.broadcast %29 : vector<1x96xf32> to vector<256x96xf32>
    %31 = arith.addf %28, %30 : vector<256x96xf32>
    %c0_15 = arith.constant 0 : index
    %c0_16 = arith.constant 0 : index
    %32 = vector.load %arg7[%c0_15, %c0_16] : memref<1x32xf32, #tpu.memory_space<vmem>>, vector<1x32xf32>
    %33 = vector.broadcast %32 : vector<1x32xf32> to vector<256x32xf32>
    %34 = arith.addf %1, %33 : vector<256x32xf32>
    %35 = vector.extract_strided_slice %31 {offsets = [0, 0], sizes = [256, 8], strides = [1, 1]} : vector<256x96xf32> to vector<256x8xf32>
    %36 = vector.extract_strided_slice %31 {offsets = [0, 32], sizes = [256, 8], strides = [1, 1]} : vector<256x96xf32> to vector<256x8xf32>
    %37 = vector.extract_strided_slice %31 {offsets = [0, 64], sizes = [256, 8], strides = [1, 1]} : vector<256x96xf32> to vector<256x8xf32>
    %38 = tpu.transpose %36, [1, 0] : vector<256x8xf32> -> vector<8x256xf32>
    %cst_17 = arith.constant dense<0.000000e+00> : vector<256x256xf32>
    %39 = tpu.matmul %35, %38, %cst_17 {dimension_numbers = #tpu.dot_dimension_numbers<[1], [0], [0], [1], [0, 0, 1, 1], [], []>} : vector<256x8xf32>, vector<8x256xf32>, vector<256x256xf32> -> vector<256x256xf32>
    %cst_18 = arith.constant 0.353553385 : f32
    %40 = vector.broadcast %cst_18 : f32 to vector<256x256xf32>
    %41 = arith.mulf %39, %40 : vector<256x256xf32>
    %cst_19 = arith.constant dense<0xFF800000> : vector<256xf32>
    %42 = vector.multi_reduction <maximumf>, %41, %cst_19 [1] : vector<256x256xf32> to vector<256xf32>
    %43 = vector.shape_cast %42 : vector<256xf32> to vector<256x1xf32>
    %44 = vector.broadcast %43 : vector<256x1xf32> to vector<256x256xf32>
    %45 = arith.subf %41, %44 : vector<256x256xf32>
    %46 = math.exp %45 : vector<256x256xf32>
    %cst_20 = arith.constant dense<0.000000e+00> : vector<256xf32>
    %47 = vector.multi_reduction <add>, %46, %cst_20 [1] : vector<256x256xf32> to vector<256xf32>
    %48 = vector.shape_cast %47 : vector<256xf32> to vector<256x1xf32>
    %49 = tpu.reciprocal %48 {approx = true} : vector<256x1xf32> -> vector<256x1xf32>
    %50 = vector.broadcast %49 : vector<256x1xf32> to vector<256x256xf32>
    %51 = arith.mulf %46, %50 : vector<256x256xf32>
    %cst_21 = arith.constant dense<0.000000e+00> : vector<256x8xf32>
    %52 = tpu.matmul %51, %37, %cst_21 {dimension_numbers = #tpu.dot_dimension_numbers<[1], [0], [0], [1], [0, 0, 1, 1], [], []>} : vector<256x256xf32>, vector<256x8xf32>, vector<256x8xf32> -> vector<256x8xf32>
    %c0_22 = arith.constant 0 : index
    %c0_23 = arith.constant 0 : index
    %c0_24 = arith.constant 0 : index
    %53 = vector.load %arg6[%c0_22, %c0_23, %c0_24] : memref<4x8x32xf32, #tpu.memory_space<vmem>>, vector<1x8x32xf32>
    %54 = vector.shape_cast %53 : vector<1x8x32xf32> to vector<8x32xf32>
    %cst_25 = arith.constant dense<0.000000e+00> : vector<256x32xf32>
    %55 = tpu.matmul %52, %54, %cst_25 {dimension_numbers = #tpu.dot_dimension_numbers<[1], [0], [0], [1], [0, 0, 1, 1], [], []>} : vector<256x8xf32>, vector<8x32xf32>, vector<256x32xf32> -> vector<256x32xf32>
    %56 = arith.addf %34, %55 : vector<256x32xf32>
    %57 = vector.extract_strided_slice %31 {offsets = [0, 8], sizes = [256, 8], strides = [1, 1]} : vector<256x96xf32> to vector<256x8xf32>
    %58 = vector.extract_strided_slice %31 {offsets = [0, 40], sizes = [256, 8], strides = [1, 1]} : vector<256x96xf32> to vector<256x8xf32>
    %59 = vector.extract_strided_slice %31 {offsets = [0, 72], sizes = [256, 8], strides = [1, 1]} : vector<256x96xf32> to vector<256x8xf32>
    %60 = tpu.transpose %58, [1, 0] : vector<256x8xf32> -> vector<8x256xf32>
    %cst_26 = arith.constant dense<0.000000e+00> : vector<256x256xf32>
    %61 = tpu.matmul %57, %60, %cst_26 {dimension_numbers = #tpu.dot_dimension_numbers<[1], [0], [0], [1], [0, 0, 1, 1], [], []>} : vector<256x8xf32>, vector<8x256xf32>, vector<256x256xf32> -> vector<256x256xf32>
    %cst_27 = arith.constant 0.353553385 : f32
    %62 = vector.broadcast %cst_27 : f32 to vector<256x256xf32>
    %63 = arith.mulf %61, %62 : vector<256x256xf32>
    %cst_28 = arith.constant dense<0xFF800000> : vector<256xf32>
    %64 = vector.multi_reduction <maximumf>, %63, %cst_28 [1] : vector<256x256xf32> to vector<256xf32>
    %65 = vector.shape_cast %64 : vector<256xf32> to vector<256x1xf32>
    %66 = vector.broadcast %65 : vector<256x1xf32> to vector<256x256xf32>
    %67 = arith.subf %63, %66 : vector<256x256xf32>
    %68 = math.exp %67 : vector<256x256xf32>
    %cst_29 = arith.constant dense<0.000000e+00> : vector<256xf32>
    %69 = vector.multi_reduction <add>, %68, %cst_29 [1] : vector<256x256xf32> to vector<256xf32>
    %70 = vector.shape_cast %69 : vector<256xf32> to vector<256x1xf32>
    %71 = tpu.reciprocal %70 {approx = true} : vector<256x1xf32> -> vector<256x1xf32>
    %72 = vector.broadcast %71 : vector<256x1xf32> to vector<256x256xf32>
    %73 = arith.mulf %68, %72 : vector<256x256xf32>
    %cst_30 = arith.constant dense<0.000000e+00> : vector<256x8xf32>
    %74 = tpu.matmul %73, %59, %cst_30 {dimension_numbers = #tpu.dot_dimension_numbers<[1], [0], [0], [1], [0, 0, 1, 1], [], []>} : vector<256x256xf32>, vector<256x8xf32>, vector<256x8xf32> -> vector<256x8xf32>
    %c1 = arith.constant 1 : index
    %c0_31 = arith.constant 0 : index
    %c0_32 = arith.constant 0 : index
    %75 = vector.load %arg6[%c1, %c0_31, %c0_32] : memref<4x8x32xf32, #tpu.memory_space<vmem>>, vector<1x8x32xf32>
    %76 = vector.shape_cast %75 : vector<1x8x32xf32> to vector<8x32xf32>
    %cst_33 = arith.constant dense<0.000000e+00> : vector<256x32xf32>
    %77 = tpu.matmul %74, %76, %cst_33 {dimension_numbers = #tpu.dot_dimension_numbers<[1], [0], [0], [1], [0, 0, 1, 1], [], []>} : vector<256x8xf32>, vector<8x32xf32>, vector<256x32xf32> -> vector<256x32xf32>
    %78 = arith.addf %56, %77 : vector<256x32xf32>
    %79 = vector.extract_strided_slice %31 {offsets = [0, 16], sizes = [256, 8], strides = [1, 1]} : vector<256x96xf32> to vector<256x8xf32>
    %80 = vector.extract_strided_slice %31 {offsets = [0, 48], sizes = [256, 8], strides = [1, 1]} : vector<256x96xf32> to vector<256x8xf32>
    %81 = vector.extract_strided_slice %31 {offsets = [0, 80], sizes = [256, 8], strides = [1, 1]} : vector<256x96xf32> to vector<256x8xf32>
    %82 = tpu.transpose %80, [1, 0] : vector<256x8xf32> -> vector<8x256xf32>
    %cst_34 = arith.constant dense<0.000000e+00> : vector<256x256xf32>
    %83 = tpu.matmul %79, %82, %cst_34 {dimension_numbers = #tpu.dot_dimension_numbers<[1], [0], [0], [1], [0, 0, 1, 1], [], []>} : vector<256x8xf32>, vector<8x256xf32>, vector<256x256xf32> -> vector<256x256xf32>
    %cst_35 = arith.constant 0.353553385 : f32
    %84 = vector.broadcast %cst_35 : f32 to vector<256x256xf32>
    %85 = arith.mulf %83, %84 : vector<256x256xf32>
    %cst_36 = arith.constant dense<0xFF800000> : vector<256xf32>
    %86 = vector.multi_reduction <maximumf>, %85, %cst_36 [1] : vector<256x256xf32> to vector<256xf32>
    %87 = vector.shape_cast %86 : vector<256xf32> to vector<256x1xf32>
    %88 = vector.broadcast %87 : vector<256x1xf32> to vector<256x256xf32>
    %89 = arith.subf %85, %88 : vector<256x256xf32>
    %90 = math.exp %89 : vector<256x256xf32>
    %cst_37 = arith.constant dense<0.000000e+00> : vector<256xf32>
    %91 = vector.multi_reduction <add>, %90, %cst_37 [1] : vector<256x256xf32> to vector<256xf32>
    %92 = vector.shape_cast %91 : vector<256xf32> to vector<256x1xf32>
    %93 = tpu.reciprocal %92 {approx = true} : vector<256x1xf32> -> vector<256x1xf32>
    %94 = vector.broadcast %93 : vector<256x1xf32> to vector<256x256xf32>
    %95 = arith.mulf %90, %94 : vector<256x256xf32>
    %cst_38 = arith.constant dense<0.000000e+00> : vector<256x8xf32>
    %96 = tpu.matmul %95, %81, %cst_38 {dimension_numbers = #tpu.dot_dimension_numbers<[1], [0], [0], [1], [0, 0, 1, 1], [], []>} : vector<256x256xf32>, vector<256x8xf32>, vector<256x8xf32> -> vector<256x8xf32>
    %c2 = arith.constant 2 : index
    %c0_39 = arith.constant 0 : index
    %c0_40 = arith.constant 0 : index
    %97 = vector.load %arg6[%c2, %c0_39, %c0_40] : memref<4x8x32xf32, #tpu.memory_space<vmem>>, vector<1x8x32xf32>
    %98 = vector.shape_cast %97 : vector<1x8x32xf32> to vector<8x32xf32>
    %cst_41 = arith.constant dense<0.000000e+00> : vector<256x32xf32>
    %99 = tpu.matmul %96, %98, %cst_41 {dimension_numbers = #tpu.dot_dimension_numbers<[1], [0], [0], [1], [0, 0, 1, 1], [], []>} : vector<256x8xf32>, vector<8x32xf32>, vector<256x32xf32> -> vector<256x32xf32>
    %100 = arith.addf %78, %99 : vector<256x32xf32>
    %101 = vector.extract_strided_slice %31 {offsets = [0, 24], sizes = [256, 8], strides = [1, 1]} : vector<256x96xf32> to vector<256x8xf32>
    %102 = vector.extract_strided_slice %31 {offsets = [0, 56], sizes = [256, 8], strides = [1, 1]} : vector<256x96xf32> to vector<256x8xf32>
    %103 = vector.extract_strided_slice %31 {offsets = [0, 88], sizes = [256, 8], strides = [1, 1]} : vector<256x96xf32> to vector<256x8xf32>
    %104 = tpu.transpose %102, [1, 0] : vector<256x8xf32> -> vector<8x256xf32>
    %cst_42 = arith.constant dense<0.000000e+00> : vector<256x256xf32>
    %105 = tpu.matmul %101, %104, %cst_42 {dimension_numbers = #tpu.dot_dimension_numbers<[1], [0], [0], [1], [0, 0, 1, 1], [], []>} : vector<256x8xf32>, vector<8x256xf32>, vector<256x256xf32> -> vector<256x256xf32>
    %cst_43 = arith.constant 0.353553385 : f32
    %106 = vector.broadcast %cst_43 : f32 to vector<256x256xf32>
    %107 = arith.mulf %105, %106 : vector<256x256xf32>
    %cst_44 = arith.constant dense<0xFF800000> : vector<256xf32>
    %108 = vector.multi_reduction <maximumf>, %107, %cst_44 [1] : vector<256x256xf32> to vector<256xf32>
    %109 = vector.shape_cast %108 : vector<256xf32> to vector<256x1xf32>
    %110 = vector.broadcast %109 : vector<256x1xf32> to vector<256x256xf32>
    %111 = arith.subf %107, %110 : vector<256x256xf32>
    %112 = math.exp %111 : vector<256x256xf32>
    %cst_45 = arith.constant dense<0.000000e+00> : vector<256xf32>
    %113 = vector.multi_reduction <add>, %112, %cst_45 [1] : vector<256x256xf32> to vector<256xf32>
    %114 = vector.shape_cast %113 : vector<256xf32> to vector<256x1xf32>
    %115 = tpu.reciprocal %114 {approx = true} : vector<256x1xf32> -> vector<256x1xf32>
    %116 = vector.broadcast %115 : vector<256x1xf32> to vector<256x256xf32>
    %117 = arith.mulf %112, %116 : vector<256x256xf32>
    %cst_46 = arith.constant dense<0.000000e+00> : vector<256x8xf32>
    %118 = tpu.matmul %117, %103, %cst_46 {dimension_numbers = #tpu.dot_dimension_numbers<[1], [0], [0], [1], [0, 0, 1, 1], [], []>} : vector<256x256xf32>, vector<256x8xf32>, vector<256x8xf32> -> vector<256x8xf32>
    %c3 = arith.constant 3 : index
    %c0_47 = arith.constant 0 : index
    %c0_48 = arith.constant 0 : index
    %119 = vector.load %arg6[%c3, %c0_47, %c0_48] : memref<4x8x32xf32, #tpu.memory_space<vmem>>, vector<1x8x32xf32>
    %120 = vector.shape_cast %119 : vector<1x8x32xf32> to vector<8x32xf32>
    %cst_49 = arith.constant dense<0.000000e+00> : vector<256x32xf32>
    %121 = tpu.matmul %118, %120, %cst_49 {dimension_numbers = #tpu.dot_dimension_numbers<[1], [0], [0], [1], [0, 0, 1, 1], [], []>} : vector<256x8xf32>, vector<8x32xf32>, vector<256x32xf32> -> vector<256x32xf32>
    %122 = arith.addf %100, %121 : vector<256x32xf32>
    %c0_50 = arith.constant 0 : index
    %c0_51 = arith.constant 0 : index
    %c0_52 = arith.constant 0 : index
    %123 = vector.load %arg8[%c0_50, %c0_51, %c0_52] : memref<1x256x32xf32, #tpu.memory_space<vmem>>, vector<1x256x32xf32>
    %124 = vector.shape_cast %123 : vector<1x256x32xf32> to vector<256x32xf32>
    %125 = vector.shape_cast %122 : vector<256x32xf32> to vector<1x256x32xf32>
    tpu.vector_store %arg8[%c0_50, %c0_51, %c0_52], %125 {strides = array<i32>} : memref<1x256x32xf32, #tpu.memory_space<vmem>>, vector<1x256x32xf32>,
    return
  }
  func.func @transform_0(%arg0: i32) -> (i32, i32, i32) {
    %c0_i32 = arith.constant 0 : i32
    %c0_i32_0 = arith.constant 0 : i32
    %c0_i32_1 = arith.constant 0 : i32
    return %arg0, %c0_i32, %c0_i32_0 : i32, i32, i32
  }
  func.func @transform_1(%arg0: i32) -> (i32, i32) {
    %c0_i32 = arith.constant 0 : i32
    %c0_i32_0 = arith.constant 0 : i32
    %c0_i32_1 = arith.constant 0 : i32
    return %c0_i32, %c0_i32_0 : i32, i32
  }
  func.func @transform_2(%arg0: i32) -> (i32, i32) {
    %c0_i32 = arith.constant 0 : i32
    %c0_i32_0 = arith.constant 0 : i32
    %c0_i32_1 = arith.constant 0 : i32
    return %c0_i32, %c0_i32_0 : i32, i32
  }
  func.func @transform_3(%arg0: i32) -> (i32, i32) {
    %c0_i32 = arith.constant 0 : i32
    %c0_i32_0 = arith.constant 0 : i32
    %c0_i32_1 = arith.constant 0 : i32
    return %c0_i32, %c0_i32_0 : i32, i32
  }
  func.func @transform_4(%arg0: i32) -> (i32, i32) {
    %c0_i32 = arith.constant 0 : i32
    %c0_i32_0 = arith.constant 0 : i32
    %c0_i32_1 = arith.constant 0 : i32
    return %c0_i32, %c0_i32_0 : i32, i32
  }
  func.func @transform_5(%arg0: i32) -> (i32, i32, i32) {
    %c0_i32 = arith.constant 0 : i32
    %c0_i32_0 = arith.constant 0 : i32
    %c0_i32_1 = arith.constant 0 : i32
    %c0_i32_2 = arith.constant 0 : i32
    return %c0_i32, %c0_i32_0, %c0_i32_1 : i32, i32, i32
  }
  func.func @transform_6(%arg0: i32) -> (i32, i32) {
    %c0_i32 = arith.constant 0 : i32
    %c0_i32_0 = arith.constant 0 : i32
    %c0_i32_1 = arith.constant 0 : i32
    return %c0_i32, %c0_i32_0 : i32, i32
  }
  func.func @transform_7(%arg0: i32) -> (i32, i32, i32) {
    %c0_i32 = arith.constant 0 : i32
    %c0_i32_0 = arith.constant 0 : i32
    %c0_i32_1 = arith.constant 0 : i32
    return %arg0, %c0_i32, %c0_i32_0 : i32, i32, i32
  }
}

</mosaic_0001>

<bundles_post_ra>
// kernel: tpu_custom_call.1
= control target key start
LH: loop header
LB: loop body
LE: loop exit
PB: predicated region body
PF: predicated region fallthrough
CT: control target
= control target key end

     0   :  { %s11322_s24 = smov 0   ;;  %s16797_s0 = inlined_call_operand.vmem [shape: f32[2,256,32], index: 0, kind: input, shape index: {}]   ;;  %s16798_s1 = inlined_call_operand.vmem [shape: f32[1,32], index: 1, kind: input, shape index: {}]   ;;  %s16799_s2 = inlined_call_operand.vmem [shape: f32[1,32], index: 2, kind: input, shape index: {}]   ;;  %s16800_s3 = inlined_call_operand.vmem [shape: f32[32,96], index: 3, kind: input, shape index: {}]   ;;  %s16801_s4 = inlined_call_operand.vmem [shape: f32[1,96], index: 4, kind: input, shape index: {}]   ;;  %s16802_s5 = inlined_call_operand.vmem [shape: f32[4,8,32], index: 5, kind: input, shape index: {}]   ;;  %s16803_s6 = inlined_call_operand.vmem [shape: f32[1,32], index: 6, kind: input, shape index: {}]   ;;  %s16804_s7 = inlined_call_operand.vmem [shape: f32[2,256,32], index: 7, kind: output, shape index: {}]  }
   0x1 LB: > { %s7998_s25 = sadd.s32 4294967295, %s11268_s24   ;;  %p8002_p0 = scmp.ge.s32.totalorder %s11268_s24, 1  ;;  %s11268_s24 = sphi %s11322_s24, %s17_s24  }
   0x2   : > { %p237_p1 = scmp.lt.s32.totalorder %s11268_s24, 3 }
   0x4   : > { %p238_p2 = pnand %p8002_p0, %p237_p1 }
   0x6   : > { %241 = sbr.rel (%p238_p2) target bundleno = 4245 (0x1095), region = 48 }
   0xd   : > { %p269_p3 = scmp.lt.s32.totalorder %s7998_s25, 1  ;;  %vm311_vm0 = vcmask 261120   ;;  %vm1107_vm1 = vcmask 64512   ;;  %s11271_s10 = smov 112  }
   0xe   : > { %s11272_s11 = smov 120   ;;  %s11273_s12 = smov 64   ;;  %vm12434_vm2 = vmpackc.low %vm1107_vm1, %vm1107_vm1 }
   0xf   : > { %s18243_s25 = smov (!%p269_p3, %s7998_s25), 1  ;;  %s11274_s13 = smov 96  }
  0x10   : > { %s8432_s26 = sshll.u32 %s18243_s25, 8  ;;  %s11275_s14 = smov 88  }
  0x11   : > { %s11338_s29 = scalar_lea.vmem %s16797_s0, %s8432_s26  ;;  %s11280_s23 = smov 48  }
  0x12   : > { %v11341_v0 = vld [vmem:[%s11338_s29] sm:$0xff]  ;;  %v11344_v1 = vld [vmem:[%s11338_s29 + $0x8] sm:$0xff]  ;;  %v11347_v2 = vld [vmem:[%s11338_s29 + $0x10] sm:$0xff]  ;;  %s11281_s27 = smov 40  }
  0x13   : > { %v11350_v3 = vld [vmem:[%s11338_s29 + $0x18] sm:$0xff]  ;;  %v312_v4 = vsel %vm311_vm0, %v11341_v0, 0.0  ;;  %v313_v5 = vsel %vm311_vm0, %v11344_v1, 0.0  ;;  %v315_v6 = vsel %vm311_vm0, %v11347_v2, 0.0  ;;  %v11359_v7 = vld [vmem:[%s11338_s29 + $0x20] sm:$0xff]  ;;  %v11364_v10 = vld [vmem:[%s11338_s29 + $0x28] sm:$0xff]  ;;  %v385_v29 = vmul.f32 %v11341_v0, %v11341_v0 }
  0x14   : > { %v314_v8 = vadd.f32 %v313_v5, %v312_v4  ;;  %v317_v9 = vsel %vm311_vm0, %v11350_v3, 0.0  ;;  %v319_v12 = vsel %vm311_vm0, %v11359_v7, 0.0  ;;  %v11369_v13 = vld [vmem:[%s11338_s29 + $0x30] sm:$0xff]  ;;  %v321_v15 = vsel %vm311_vm0, %v11364_v10, 0.0  ;;  %v11374_v16 = vld [vmem:[%s11338_s29 + $0x38] sm:$0xff]  ;;  %v11379_v19 = vld [vmem:[%s11338_s29 + $0x40] sm:$0xff] }
  0x15   : > { %v323_v18 = vsel %vm311_vm0, %v11369_v13, 0.0  ;;  %v325_v21 = vsel %vm311_vm0, %v11374_v16, 0.0  ;;  %v11384_v22 = vld [vmem:[%s11338_s29 + $0x48] sm:$0xff]  ;;  %v327_v24 = vsel %vm311_vm0, %v11379_v19, 0.0  ;;  %v11389_v25 = vld [vmem:[%s11338_s29 + $0x50] sm:$0xff]  ;;  %v11392_v27 = vld [vmem:[%s11338_s29 + $0x58] sm:$0xff]  ;;  %v386_v30 = vmul.f32 %v11344_v1, %v11344_v1 }
  0x16   : > { %v316_v11 = vadd.f32 %v315_v6, %v314_v8  ;;  %v329_v28 = vsel %vm311_vm0, %v11384_v22, 0.0  ;;  %v387_v31 = vmul.f32 %v11347_v2, %v11347_v2  ;;  %v331_v33 = vsel %vm311_vm0, %v11389_v25, 0.0  ;;  %v11407_v35 = vld [vmem:[%s11338_s29 + $0x60] sm:$0xff]  ;;  %v11417_v42 = vld [vmem:[%s11338_s29 + $0x68] sm:$0xff]  ;;  %v11425_v48 = vld [vmem:[%s11338_s29 + $0x70] sm:$0xff] }
  0x17   : > { %v388_v34 = vmul.f32 %v11350_v3, %v11350_v3  ;;  %v333_v37 = vsel %vm311_vm0, %v11392_v27, 0.0  ;;  %v389_v38 = vmul.f32 %v11359_v7, %v11359_v7  ;;  %v417_v39 = vsel %vm311_vm0, %v385_v29, 0.0  ;;  %v11433_v54 = vld [vmem:[%s11338_s29 + $0x78] sm:$0xff]  ;;  %v11441_v60 = vld [vmem:[%s11338_s29 + $0x80] sm:$0xff]  ;;  %v11449_v6 = vld [vmem:[%s11338_s29 + $0x88] sm:$0xff] }
  0x18   : > { %v318_v14 = vadd.f32 %v317_v9, %v316_v11  ;;  %v418_v40 = vsel %vm311_vm0, %v386_v30, 0.0  ;;  %v420_v41 = vsel %vm311_vm0, %v387_v31, 0.0  ;;  %v335_v45 = vsel %vm311_vm0, %v11407_v35, 0.0 }
  0x19   : > { %v419_v44 = vadd.f32 %v418_v40, %v417_v39  ;;  %v390_v46 = vmul.f32 %v11364_v10, %v11364_v10  ;;  %v422_v47 = vsel %vm311_vm0, %v388_v34, 0.0  ;;  %v337_v51 = vsel %vm311_vm0, %v11417_v42, 0.0  ;;  %v11481_v39 = vld [vmem:[%s11338_s29 + $0xa8] sm:$0xff] }
  0x1a   : > { %v320_v17 = vadd.f32 %v319_v12, %v318_v14  ;;  %v391_v52 = vmul.f32 %v11369_v13, %v11369_v13  ;;  %v424_v53 = vsel %vm311_vm0, %v389_v38, 0.0  ;;  %v339_v57 = vsel %vm311_vm0, %v11425_v48, 0.0 }
  0x1b   : > { %v421_v50 = vadd.f32 %v420_v41, %v419_v44  ;;  %v392_v58 = vmul.f32 %v11374_v16, %v11374_v16  ;;  %v426_v59 = vsel %vm311_vm0, %v390_v46, 0.0  ;;  %v341_v63 = vsel %vm311_vm0, %v11433_v54, 0.0  ;;  %v11489_v46 = vld [vmem:[%s11338_s29 + $0xb0] sm:$0xff] }
  0x1c   : > { %v322_v20 = vadd.f32 %v321_v15, %v320_v17  ;;  %v393_v4 = vmul.f32 %v11379_v19, %v11379_v19  ;;  %v428_v5 = vsel %vm311_vm0, %v391_v52, 0.0  ;;  %v343_v11 = vsel %vm311_vm0, %v11441_v60, 0.0  ;;  %v11457_v15 = vld [vmem:[%s11338_s29 + $0x90] sm:$0xff] }
  0x1d   : > { %v423_v56 = vadd.f32 %v422_v47, %v421_v50  ;;  %v394_v12 = vmul.f32 %v11384_v22, %v11384_v22  ;;  %v430_v14 = vsel %vm311_vm0, %v392_v58, 0.0  ;;  %v347_v29 = vsel %vm311_vm0, %v11457_v15, 0.0 }
  0x1e   : > { %v324_v23 = vadd.f32 %v323_v18, %v322_v20  ;;  %v345_v20 = vsel %vm311_vm0, %v11449_v6, 0.0  ;;  %v396_v30 = vmul.f32 %v11392_v27, %v11392_v27  ;;  %v398_v44 = vmul.f32 %v11417_v42, %v11417_v42 }
  0x1f   : > { %v425_v62 = vadd.f32 %v424_v53, %v423_v56  ;;  %v434_v31 = vsel %vm311_vm0, %v394_v12, 0.0  ;;  %v353_v50 = vsel %vm311_vm0, %v11481_v39, 0.0  ;;  %v11497_v53 = vld [vmem:[%s11338_s29 + $0xb8] sm:$0xff]  ;;  %v400_v58 = vmul.f32 %v11433_v54, %v11433_v54 }
  0x20   : > { %v326_v26 = vadd.f32 %v325_v21, %v324_v23  ;;  %v395_v21 = vmul.f32 %v11389_v25, %v11389_v25  ;;  %v432_v23 = vsel %vm311_vm0, %v393_v4, 0.0  ;;  %v357_v4 = vsel %vm311_vm0, %v11497_v53, 0.0 }
  0x21   : > { %v427_v9 = vadd.f32 %v426_v59, %v425_v62  ;;  %v442_v59 = vsel %vm311_vm0, %v398_v44, 0.0 }
  0x22   : > { %v328_v32 = vadd.f32 %v327_v24, %v326_v26  ;;  %v11465_v24 = vld [vmem:[%s11338_s29 + $0x98] sm:$0xff]  ;;  %v436_v38 = vsel %vm311_vm0, %v395_v21, 0.0 }
  0x23   : > { %v429_v18 = vadd.f32 %v428_v5, %v427_v9  ;;  %v401_v5 = vmul.f32 %v11441_v60, %v11441_v60  ;;  %v11513_v9 = vld [vmem:[%s11338_s29 + $0xc8] sm:$0xff] }
  0x24   : > { %v330_v36 = vadd.f32 %v329_v28, %v328_v32  ;;  %v11473_v32 = vld [vmem:[%s11338_s29 + $0xa0] sm:$0xff] }
  0x25   : > { %v431_v28 = vadd.f32 %v430_v14, %v429_v18  ;;  %v446_v18 = vsel %vm311_vm0, %v400_v58, 0.0  ;;  %v405_v44 = vmul.f32 %v11473_v32, %v11473_v32 }
  0x26   : > { %v332_v43 = vadd.f32 %v331_v33, %v330_v36  ;;  %v349_v36 = vsel %vm311_vm0, %v11465_v24, 0.0 }
  0x27   : > { %v433_v34 = vadd.f32 %v432_v23, %v431_v28  ;;  %v403_v28 = vmul.f32 %v11457_v15, %v11457_v15 }
  0x28   : > { %v334_v49 = vadd.f32 %v333_v37, %v332_v43  ;;  %v397_v37 = vmul.f32 %v11407_v35, %v11407_v35  ;;  %v351_v43 = vsel %vm311_vm0, %v11473_v32, 0.0 }
  0x29   : > { %v435_v41 = vadd.f32 %v434_v31, %v433_v34 }
  0x2a   : > { %v336_v55 = vadd.f32 %v335_v45, %v334_v49  ;;  %v438_v45 = vsel %vm311_vm0, %v396_v30, 0.0  ;;  %v440_v52 = vsel %vm311_vm0, %v397_v37, 0.0  ;;  %v11529_v30 = vld [vmem:[%s11338_s29 + $0xd8] sm:$0xff] }
  0x2b   : > { %v437_v49 = vadd.f32 %v436_v38, %v435_v41  ;;  %v11537_v38 = vld [vmem:[%s11338_s29 + $0xe0] sm:$0xff] }
  0x2c   : > { %v338_v61 = vadd.f32 %v337_v51, %v336_v55  ;;  %v399_v51 = vmul.f32 %v11425_v48, %v11425_v48 }
  0x2d   : > { %v439_v56 = vadd.f32 %v438_v45, %v437_v49  ;;  %v452_v45 = vsel %vm311_vm0, %v403_v28, 0.0 }
  0x2e   : > { %v340_v8 = vadd.f32 %v339_v57, %v338_v61  ;;  %v355_v57 = vsel %vm311_vm0, %v11489_v46, 0.0  ;;  %v11505_v61 = vld [vmem:[%s11338_s29 + $0xc0] sm:$0xff] }
  0x2f   : > { %v359_v14 = vsel %vm311_vm0, %v11505_v61, 0.0 }
  0x30   : > { %v342_v17 = vadd.f32 %v341_v63, %v340_v8  ;;  %v441_v63 = vadd.f32 %v440_v52, %v439_v56  ;;  %v444_v8 = vsel %vm311_vm0, %v399_v51, 0.0  ;;  %v367_v51 = vsel %vm311_vm0, %v11537_v38, 0.0  ;;  %v11553_v56 = vld [vmem:[%s11338_s29 + $0xf0] sm:$0xff] }
  0x31   : > { %v406_v52 = vmul.f32 %v11481_v39, %v11481_v39 }
  0x32   : > { %v344_v26 = vadd.f32 %v343_v11, %v342_v17  ;;  %v443_v12 = vadd.f32 %v442_v59, %v441_v63  ;;  %v402_v17 = vmul.f32 %v11449_v6, %v11449_v6  ;;  %v456_v63 = vsel %vm311_vm0, %v405_v44, 0.0 }
  0x34   : > { %v346_v33 = vadd.f32 %v345_v20, %v344_v26  ;;  %v11521_v20 = vld [vmem:[%s11338_s29 + $0xd0] sm:$0xff]  ;;  %v445_v23 = vadd.f32 %v444_v8, %v443_v12  ;;  %v361_v26 = vsel %vm311_vm0, %v11513_v9, 0.0  ;;  %v450_v37 = vsel %vm311_vm0, %v402_v17, 0.0 }
  0x35   : > { %v363_v34 = vsel %vm311_vm0, %v11521_v20, 0.0  ;;  %v408_v12 = vmul.f32 %v11497_v53, %v11497_v53 }
  0x36   : > { %v348_v40 = vadd.f32 %v347_v29, %v346_v33  ;;  %v448_v29 = vsel %vm311_vm0, %v401_v5, 0.0  ;;  %v447_v33 = vadd.f32 %v446_v18, %v445_v23  ;;  %v409_v23 = vmul.f32 %v11505_v61, %v11505_v61 }
  0x38   : > { %v350_v47 = vadd.f32 %v349_v36, %v348_v40  ;;  %v404_v36 = vmul.f32 %v11465_v24, %v11465_v24  ;;  %v449_v41 = vadd.f32 %v448_v29, %v447_v33  ;;  %v462_v33 = vsel %vm311_vm0, %v408_v12, 0.0 }
  0x3a   : > { %v352_v55 = vadd.f32 %v351_v43, %v350_v47  ;;  %v365_v43 = vsel %vm311_vm0, %v11529_v30, 0.0  ;;  %v11545_v47 = vld [vmem:[%s11338_s29 + $0xe8] sm:$0xff] }
  0x3b   : > { %v369_v59 = vsel %vm311_vm0, %v11545_v47, 0.0 }
  0x3c   : > { %v354_v62 = vadd.f32 %v353_v50, %v352_v55  ;;  %v451_v50 = vadd.f32 %v450_v37, %v449_v41  ;;  %v454_v55 = vsel %vm311_vm0, %v404_v36, 0.0  ;;  %v411_v37 = vmul.f32 %v11521_v20, %v11521_v20 }
  0x3e   : > { %v356_v11 = vadd.f32 %v355_v57, %v354_v62  ;;  %v453_v58 = vadd.f32 %v452_v45, %v451_v50  ;;  %v407_v62 = vmul.f32 %v11489_v46, %v11489_v46  ;;  %v468_v50 = vsel %vm311_vm0, %v411_v37, 0.0  ;;  %v641_v37 = vld [vmem:[%s16800_s3 + $0x8] sm:$0xff] }
  0x40   : > { %v358_v21 = vadd.f32 %v357_v4, %v356_v11  ;;  %v11561_v4 = vld [vmem:[%s11338_s29 + $0xf8] sm:$0xff]  ;;  %v455_v8 = vadd.f32 %v454_v55, %v453_v58  ;;  %v371_v11 = vsel %vm311_vm0, %v11553_v56, 0.0  ;;  %v415_v58 = vmul.f32 %v11553_v56, %v11553_v56 }
  0x42   : > { %v360_v31 = vadd.f32 %v359_v14, %v358_v21  ;;  %v458_v14 = vsel %vm311_vm0, %v406_v52, 0.0  ;;  %v457_v18 = vadd.f32 %v456_v63, %v455_v8  ;;  %v373_v21 = vsel %vm311_vm0, %v11561_v4, 0.0 }
  0x43   : > { %v414_v52 = vmul.f32 %v11545_v47, %v11545_v47  ;;  %v416_v63 = vmul.f32 %v11561_v4, %v11561_v4 }
  0x44   : > { %v362_v40 = vadd.f32 %v361_v26, %v360_v31  ;;  %v460_v26 = vsel %vm311_vm0, %v407_v62, 0.0  ;;  %v459_v29 = vadd.f32 %v458_v14, %v457_v18  ;;  %v410_v31 = vmul.f32 %v11513_v9, %v11513_v9 }
  0x45   : > { %v478_v14 = vsel %vm311_vm0, %v416_v63, 0.0 }
  0x46   : > { %v364_v49 = vadd.f32 %v363_v34, %v362_v40  ;;  %v461_v36 = vadd.f32 %v460_v26, %v459_v29  ;;  %v464_v40 = vsel %vm311_vm0, %v409_v23, 0.0  ;;  %v466_v44 = vsel %vm311_vm0, %v410_v31, 0.0 }
  0x48   : > { %v366_v57 = vadd.f32 %v365_v43, %v364_v49  ;;  %v463_v41 = vadd.f32 %v462_v33, %v461_v36  ;;  %v412_v43 = vmul.f32 %v11529_v30, %v11529_v30  ;;  %v413_v49 = vmul.f32 %v11537_v38, %v11537_v38  ;;  %v640_v36 = vld [vmem:[%s16800_s3] sm:$0xff] }
  0x4a   : > { %v368_v5 = vadd.f32 %v367_v51, %v366_v57  ;;  %v465_v45 = vadd.f32 %v464_v40, %v463_v41  ;;  %v470_v55 = vsel %vm311_vm0, %v412_v43, 0.0  ;;  %v9242_v41 = vpack.c.bf16 %v641_v37, %v640_v36 }
  0x4c   : > { %v370_v17 = vadd.f32 %v369_v59, %v368_v5  ;;  %v467_v51 = vadd.f32 %v466_v44, %v465_v45  ;;  %v472_v59 = vsel %vm311_vm0, %v413_v49, 0.0  ;;  %v474_v5 = vsel %vm311_vm0, %v414_v52, 0.0  ;;  %9243 = vmatprep.subr.bf16.mxu0 %v9242_v41  ;;  %v642_v44 = vld [vmem:[%s16800_s3 + $0x10] sm:$0xff]  ;;  %v643_v45 = vld [vmem:[%s16800_s3 + $0x18] sm:$0xff] }
  0x4d   : > { %9245 = vmatpush3.bf16.msra.mxu0 %v9242_v41 }
  0x4e   : > { %v372_v28 = vadd.f32 %v371_v11, %v370_v17  ;;  %v469_v57 = vadd.f32 %v468_v50, %v467_v51  ;;  %v476_v11 = vsel %vm311_vm0, %v415_v58, 0.0  ;;  %v9246_v50 = vpack.c.bf16 %v643_v45, %v642_v44 }
  0x50   : > { %v374_v34 = vadd.f32 %v373_v21, %v372_v28  ;;  %v471_v62 = vadd.f32 %v470_v55, %v469_v57  ;;  %9247 = vmatprep.subr.bf16.mxu0 %v9246_v50 }
  0x51   : > { %9249 = vmatpush3.bf16.msra.mxu0 %v9246_v50 }
  0x52   : > { %375 = vadd.xlane.f32.xlu0 %v374_v34  ;;  %v473_v8 = vadd.f32 %v472_v59, %v471_v62 }
  0x54   : > { %v475_v12 = vadd.f32 %v474_v5, %v473_v8 }
  0x56   : > { %v477_v17 = vadd.f32 %v476_v11, %v475_v12  ;;  %v11621_v11 = vld [vmem:[%s16798_s1] ss:$0 sm:$0xff] }
  0x58   : > { %v479_v18 = vadd.f32 %v478_v14, %v477_v17 }
  0x5a   : > { %480 = vadd.xlane.f32.xlu0 %v479_v18 }
  0xdf   : > { %v376_v21 = vpop.xlane.xlu0 %375 }
  0xe0   : > { %v377_v23 = vrot.slane %v376_v21, 4 }
  0xe2   : > { %v378_v26 = vadd.f32 %v377_v23, %v376_v21 }
  0xe4   : > { %v379_v28 = vrot.slane %v378_v26, 2 }
  0xe6   : > { %v380_v29 = vadd.f32 %v379_v28, %v378_v26 }
  0xe7   : > { %v481_v34 = vpop.xlane.xlu0 %480 }
  0xe8   : > { %v381_v31 = vrot.slane %v380_v29, 1  ;;  %v482_v40 = vrot.slane %v481_v34, 4 }
  0xea   : > { %v382_v33 = vadd.f32 %v381_v31, %v380_v29  ;;  %v483_v43 = vadd.f32 %v482_v40, %v481_v34 }
  0xec   : > { %9794 = vpush %v382_v33  ;;  %v484_v49 = vrot.slane %v483_v43, 2 }
  0xee   : > { %v485_v51 = vadd.f32 %v484_v49, %v483_v43 }
  0xf0   : > { %v486_v52 = vrot.slane %v485_v51, 1 }
  0xf2   : > { %v487_v55 = vadd.f32 %v486_v52, %v485_v51 }
  0xf4   : > { %9796 = vpush %v487_v55 }
 0x11d   : > { %s9795_s15 = spop %9794 }
 0x11e   : > { %s384_s16 = smul.f32 0.00012207031, %s9795_s15  ;;  %s11276_s15 = smov 80  }
 0x120   : > { %s490_s17 = smul.f32 %s384_s16, %s384_s16  ;;  %v11608_v59 = vstv %s384_s16  ;;  %s11277_s16 = smov 56  }
 0x121   : > { %v493_v62 = vsub.f32 %v11341_v0, %v11608_v59  ;;  %v494_v63 = vsub.f32 %v11344_v1, %v11608_v59  ;;  %v495_v5 = vsub.f32 %v11347_v2, %v11608_v59  ;;  %v496_v12 = vsub.f32 %v11350_v3, %v11608_v59  ;;  %v11633_v2 = vld [vmem:[%s16799_s2] ss:$0 sm:$0xff] }
 0x122   : > { %v497_v1 = vsub.f32 %v11359_v7, %v11608_v59  ;;  %v498_v28 = vsub.f32 %v11364_v10, %v11608_v59  ;;  %v499_v31 = vsub.f32 %v11369_v13, %v11608_v59  ;;  %v500_v10 = vsub.f32 %v11374_v16, %v11608_v59 }
 0x123   : > { %v501_v13 = vsub.f32 %v11379_v19, %v11608_v59  ;;  %v502_v16 = vsub.f32 %v11384_v22, %v11608_v59  ;;  %v503_v19 = vsub.f32 %v11389_v25, %v11608_v59  ;;  %v504_v22 = vsub.f32 %v11392_v27, %v11608_v59 }
 0x124   : > { %v505_v25 = vsub.f32 %v11407_v35, %v11608_v59  ;;  %v506_v27 = vsub.f32 %v11417_v42, %v11608_v59  ;;  %v507_v35 = vsub.f32 %v11425_v48, %v11608_v59  ;;  %v508_v42 = vsub.f32 %v11433_v54, %v11608_v59 }
 0x125   : > { %s9797_s18 = spop %9796  ;;  %v509_v48 = vsub.f32 %v11441_v60, %v11608_v59  ;;  %v510_v54 = vsub.f32 %v11449_v6, %v11608_v59  ;;  %v511_v60 = vsub.f32 %v11457_v15, %v11608_v59  ;;  %v512_v6 = vsub.f32 %v11465_v24, %v11608_v59 }
 0x126   : > { %s489_s19 = smul.f32 0.00012207031, %s9797_s18  ;;  %v513_v15 = vsub.f32 %v11473_v32, %v11608_v59  ;;  %v514_v24 = vsub.f32 %v11481_v39, %v11608_v59  ;;  %v515_v32 = vsub.f32 %v11489_v46, %v11608_v59  ;;  %v516_v39 = vsub.f32 %v11497_v53, %v11608_v59  ;;  %s11279_s18 = smov 104  }
 0x127   : > { %v517_v46 = vsub.f32 %v11505_v61, %v11608_v59  ;;  %v518_v53 = vsub.f32 %v11513_v9, %v11608_v59  ;;  %v519_v61 = vsub.f32 %v11521_v20, %v11608_v59  ;;  %v520_v9 = vsub.f32 %v11529_v30, %v11608_v59 }
 0x128   : > { %s491_s20 = ssub.f32 %s489_s19, %s490_s17  ;;  %v521_v20 = vsub.f32 %v11537_v38, %v11608_v59  ;;  %v522_v30 = vsub.f32 %v11545_v47, %v11608_v59  ;;  %v523_v38 = vsub.f32 %v11553_v56, %v11608_v59  ;;  %v524_v47 = vsub.f32 %v11561_v4, %v11608_v59  ;;  %s11278_s17 = smov 72  }
 0x12a   : > { %s525_s21 = sadd.f32 1e-05, %s491_s20 }
 0x12c   : > { %v526_v57 = vstv %s525_s21 }
 0x12d   : > { %10460 = vrsqrt.f32 %v526_v57 }
 0x137   : > { %v10461_v58 = vpop.eup %10460 }
 0x138   : > { %9798 = vpush %v10461_v58 }
 0x169   : > { %s9799_s22 = spop %9798 }
 0x16a   : > { %v11616_v8 = vstv %s9799_s22 }
 0x16b   : > { %v530_v14 = vmul.f32 %v11616_v8, %v493_v62  ;;  %v531_v0 = vmul.f32 %v11616_v8, %v494_v63  ;;  %v532_v17 = vmul.f32 %v11616_v8, %v495_v5  ;;  %v533_v18 = vmul.f32 %v11616_v8, %v496_v12 }
 0x16c   : > { %v534_v26 = vmul.f32 %v11616_v8, %v497_v1  ;;  %v535_v34 = vmul.f32 %v11616_v8, %v498_v28  ;;  %v536_v40 = vmul.f32 %v11616_v8, %v499_v31  ;;  %v537_v44 = vmul.f32 %v11616_v8, %v500_v10 }
 0x16d   : > { %v569_v21 = vmul.f32 %v11621_v11, %v530_v14  ;;  %v570_v3 = vmul.f32 %v11621_v11, %v531_v0  ;;  %v571_v23 = vmul.f32 %v11621_v11, %v532_v17  ;;  %v572_v33 = vmul.f32 %v11621_v11, %v533_v18 }
 0x16e   : > { %v573_v37 = vmul.f32 %v11621_v11, %v534_v26  ;;  %v574_v43 = vmul.f32 %v11621_v11, %v535_v34  ;;  %v575_v49 = vmul.f32 %v11621_v11, %v536_v40  ;;  %v538_v50 = vmul.f32 %v11616_v8, %v501_v13 }
 0x16f   : > { %v608_v7 = vadd.f32 %v11633_v2, %v569_v21  ;;  %v609_v29 = vadd.f32 %v11633_v2, %v570_v3  ;;  %v610_v36 = vadd.f32 %v11633_v2, %v571_v23  ;;  %v611_v41 = vadd.f32 %v11633_v2, %v572_v33 }
 0x170   : > { %v612_v45 = vadd.f32 %v11633_v2, %v573_v37  ;;  %v613_v51 = vadd.f32 %v11633_v2, %v574_v43  ;;  %v576_v52 = vmul.f32 %v11621_v11, %v537_v44  ;;  %v539_v55 = vmul.f32 %v11616_v8, %v502_v16 }
 0x171   : > { %8994 = vmatprep.mubr.msk.f32.mxu0 %vm311_vm0, %v608_v7  ;;  %v614_v57 = vadd.f32 %v11633_v2, %v575_v49  ;;  %v577_v58 = vmul.f32 %v11621_v11, %v538_v50  ;;  %v540_v62 = vmul.f32 %v11616_v8, %v503_v19  ;;  %v541_v12 = vmul.f32 %v11616_v8, %v504_v22 }
 0x172   : > { %8995 = vmatmul.mubr.msk.f32.vlgmr.msra.gmra.mrb[0].mxu0 %vm311_vm0, %v609_v29  ;;  %v615_v63 = vadd.f32 %v11633_v2, %v576_v52  ;;  %v578_v5 = vmul.f32 %v11621_v11, %v539_v55  ;;  %v542_v17 = vmul.f32 %v11616_v8, %v505_v25  ;;  %v543_v21 = vmul.f32 %v11616_v8, %v506_v27 }
 0x173   : > { %8997 = vmatprep.mubr.msk.f32.mxu0 %vm311_vm0, %v610_v36  ;;  %v616_v14 = vadd.f32 %v11633_v2, %v577_v58  ;;  %v579_v0 = vmul.f32 %v11621_v11, %v540_v62  ;;  %v580_v18 = vmul.f32 %v11621_v11, %v541_v12  ;;  %v544_v26 = vmul.f32 %v11616_v8, %v507_v35 }
 0x174   : > { %v617_v1 = vadd.f32 %v11633_v2, %v578_v5  ;;  %v581_v23 = vmul.f32 %v11621_v11, %v542_v17  ;;  %v582_v7 = vmul.f32 %v11621_v11, %v543_v21  ;;  %v545_v29 = vmul.f32 %v11616_v8, %v508_v42 }
 0x175   : > { %v618_v3 = vadd.f32 %v11633_v2, %v579_v0  ;;  %v619_v28 = vadd.f32 %v11633_v2, %v580_v18  ;;  %v583_v33 = vmul.f32 %v11621_v11, %v544_v26  ;;  %v546_v34 = vmul.f32 %v11616_v8, %v509_v48 }
 0x176   : > { %8998 = vmatmul.mubr.msk.f32.gmra.mrb[2].mxu0 %vm311_vm0, %v611_v41  ;;  %v620_v31 = vadd.f32 %v11633_v2, %v581_v23  ;;  %v621_v36 = vadd.f32 %v11633_v2, %v582_v7  ;;  %v584_v37 = vmul.f32 %v11621_v11, %v545_v29  ;;  %v547_v40 = vmul.f32 %v11616_v8, %v510_v54 }
 0x177   : > { %9000 = vmatprep.mubr.msk.f32.mxu0 %vm311_vm0, %v612_v45  ;;  %v622_v10 = vadd.f32 %v11633_v2, %v583_v33  ;;  %v585_v13 = vmul.f32 %v11621_v11, %v546_v34  ;;  %v548_v41 = vmul.f32 %v11616_v8, %v511_v60  ;;  %v549_v45 = vmul.f32 %v11616_v8, %v512_v6 }
 0x178   : > { %v623_v43 = vadd.f32 %v11633_v2, %v584_v37  ;;  %v586_v44 = vmul.f32 %v11621_v11, %v547_v40  ;;  %v550_v16 = vmul.f32 %v11616_v8, %v513_v15  ;;  %v551_v52 = vmul.f32 %v11616_v8, %v514_v24 }
 0x179   : > { %v624_v49 = vadd.f32 %v11633_v2, %v585_v13  ;;  %v587_v50 = vmul.f32 %v11621_v11, %v548_v41  ;;  %v552_v58 = vmul.f32 %v11616_v8, %v515_v32  ;;  %v553_v25 = vmul.f32 %v11616_v8, %v516_v39 }
 0x17a   : > { %9001 = vmatmul.mubr.msk.f32.gmra.mrb[4].mxu0 %vm311_vm0, %v613_v51  ;;  %v625_v19 = vadd.f32 %v11633_v2, %v586_v44  ;;  %v588_v51 = vmul.f32 %v11621_v11, %v549_v45  ;;  %v590_v22 = vmul.f32 %v11621_v11, %v551_v52  ;;  %v554_v12 = vmul.f32 %v11616_v8, %v517_v46 }
 0x17b   : > { %9003 = vmatprep.mubr.msk.f32.mxu0 %vm311_vm0, %v614_v57  ;;  %v626_v55 = vadd.f32 %v11633_v2, %v587_v50  ;;  %v589_v57 = vmul.f32 %v11621_v11, %v550_v16  ;;  %v591_v5 = vmul.f32 %v11621_v11, %v552_v58  ;;  %v592_v0 = vmul.f32 %v11621_v11, %v553_v25 }
 0x17c   : > { %v627_v62 = vadd.f32 %v11633_v2, %v588_v51  ;;  %v555_v17 = vmul.f32 %v11616_v8, %v518_v53  ;;  %v593_v35 = vmul.f32 %v11621_v11, %v554_v12  ;;  %v558_v42 = vmul.f32 %v11616_v8, %v521_v20 }
 0x17d   : > { %v630_v27 = vadd.f32 %v11633_v2, %v591_v5  ;;  %v631_v18 = vadd.f32 %v11633_v2, %v592_v0  ;;  %v559_v7 = vmul.f32 %v11616_v8, %v522_v30  ;;  %v560_v33 = vmul.f32 %v11616_v8, %v523_v38 }
 0x17e   : > { %9004 = vmatmul.mubr.msk.f32.gmra.mrb[6].mxu0 %vm311_vm0, %v615_v63  ;;  %v628_v63 = vadd.f32 %v11633_v2, %v589_v57  ;;  %v594_v21 = vmul.f32 %v11621_v11, %v555_v17  ;;  %v632_v23 = vadd.f32 %v11633_v2, %v593_v35  ;;  %v561_v56 = vmul.f32 %v11616_v8, %v524_v47 }
 0x17f   : > { %9006 = vmatprep.mubr.msk.f32.mxu0 %vm311_vm0, %v616_v14  ;;  %v629_v14 = vadd.f32 %v11633_v2, %v590_v22  ;;  %v598_v54 = vmul.f32 %v11621_v11, %v559_v7  ;;  %v16805_v40 = vmov 0.0|0.0  }
 0x180   : > { %v633_v48 = vadd.f32 %v11633_v2, %v594_v21  ;;  %v600_v59 = vmul.f32 %v11621_v11, %v561_v56  ;;  %9298 = vmatprep.subr.bf16.mxu0 %v16805_v40 }
 0x181   : > { %v637_v4 = vadd.f32 %v11633_v2, %v598_v54 }
 0x182   : > { %9007 = vmatmul.mubr.msk.f32.gmra.mrb[8].mxu0 %vm311_vm0, %v617_v1  ;;  %v556_v1 = vmul.f32 %v11616_v8, %v519_v61 }
 0x183   : > { %9009 = vmatprep.mubr.msk.f32.mxu0 %vm311_vm0, %v618_v3  ;;  %v557_v3 = vmul.f32 %v11616_v8, %v520_v9  ;;  %v639_v8 = vadd.f32 %v11633_v2, %v600_v59 }
 0x184   : > { %v595_v26 = vmul.f32 %v11621_v11, %v556_v1 }
 0x186   : > { %9010 = vmatmul.mubr.msk.f32.gmra.mrb[10].mxu0 %vm311_vm0, %v619_v28  ;;  %v596_v28 = vmul.f32 %v11621_v11, %v557_v3  ;;  %v634_v29 = vadd.f32 %v11633_v2, %v595_v26 }
 0x187   : > { %9012 = vmatprep.mubr.msk.f32.mxu0 %vm311_vm0, %v620_v31  ;;  %v597_v31 = vmul.f32 %v11621_v11, %v558_v42 }
 0x188   : > { %v635_v34 = vadd.f32 %v11633_v2, %v596_v28 }
 0x189   : > { %v636_v60 = vadd.f32 %v11633_v2, %v597_v31 }
 0x18a   : > { %9013 = vmatmul.mubr.msk.f32.gmra.mrb[12].mxu0 %vm311_vm0, %v621_v36  ;;  %v599_v36 = vmul.f32 %v11621_v11, %v560_v33 }
 0x18b   : > { %9015 = vmatprep.mubr.msk.f32.mxu0 %vm311_vm0, %v622_v10  ;;  %v11818_v10 = vld [vmem:[%s16801_s4] ss:$0 sm:$0xff] }
 0x18c   : > { %v638_v37 = vadd.f32 %v11633_v2, %v599_v36 }
 0x18e   : > { %9016 = vmatmul.mubr.msk.f32.gmra.mrb[14].mxu0 %vm311_vm0, %v623_v43 }
 0x18f   : > { %9018 = vmatprep.mubr.msk.f32.mxu0 %vm311_vm0, %v624_v49 }
 0x192   : > { %9019 = vmatmul.mubr.msk.f32.gmra.mrb[16].mxu0 %vm311_vm0, %v625_v19 }
 0x193   : > { %9021 = vmatprep.mubr.msk.f32.mxu0 %vm311_vm0, %v626_v55 }
 0x196   : > { %9022 = vmatmul.mubr.msk.f32.gmra.mrb[18].mxu0 %vm311_vm0, %v627_v62 }
 0x197   : > { %9024 = vmatprep.mubr.msk.f32.mxu0 %vm311_vm0, %v628_v63 }
 0x19a   : > { %9025 = vmatmul.mubr.msk.f32.gmra.mrb[20].mxu0 %vm311_vm0, %v629_v14 }
 0x19b   : > { %9027 = vmatprep.mubr.msk.f32.mxu0 %vm311_vm0, %v630_v27 }
 0x19e   : > { %9028 = vmatmul.mubr.msk.f32.gmra.mrb[22].mxu0 %vm311_vm0, %v631_v18 }
 0x19f   : > { %9030 = vmatprep.mubr.msk.f32.mxu0 %vm311_vm0, %v632_v23 }
 0x1a2   : > { %9031 = vmatmul.mubr.msk.f32.gmra.mrb[24].mxu0 %vm311_vm0, %v633_v48 }
 0x1a3   : > { %9033 = vmatprep.mubr.msk.f32.mxu0 %vm311_vm0, %v634_v29 }
 0x1a6   : > { %9034 = vmatmul.mubr.msk.f32.gmra.mrb[26].mxu0 %vm311_vm0, %v635_v34 }
 0x1a7   : > { %9036 = vmatprep.mubr.msk.f32.mxu0 %vm311_vm0, %v636_v60 }
 0x1aa   : > { %9037 = vmatmul.mubr.msk.f32.gmra.mrb[28].mxu0 %vm311_vm0, %v637_v4 }
 0x1ab   : > { %9039 = vmatprep.mubr.msk.f32.mxu0 %vm311_vm0, %v638_v37 }
 0x1ae   : > { %9040 = vmatmul.mubr.msk.f32.gmra.mrb[30].mxu0 %vm311_vm0, %v639_v8 }
 0x245   : > { %v8996_v13 = vpop.f32.mrb[0].mxu0 }
 0x246   : > { %v11821_v11 = vadd.f32 %v8996_v13, %v11818_v10  ;;  %v813_v41 = vpop.f32.mrb[1].mxu0 }
 0x247   : > { %v11824_v6 = vadd.f32 %v11818_v10, %v813_v41 }
 0x248   : > { %4447 = vrot.lane.b32.xlu1 %v11821_v11, %s11271_s10  ;;  %2714 = vrot.lane.b32.xlu0 %v11821_v11, %s11272_s11 }
 0x249   : > { %v8999_v2 = vpop.f32.mrb[2].mxu0  ;;  %8502 = vmatprep.mubr.msk.f32.mxu1 %vm1107_vm1, %v11824_v6  ;;  %v11834_v15 = vpack.i.bf16 %v11821_v11, %v11824_v6 }
 0x24a   : > { %v823_v43 = vpop.f32.mrb[3].mxu0  ;;  %v11863_v52 = vadd.f32 %v8999_v2, %v11818_v10 }
 0x24b   : > { %17222 = vst [vmem:[#allocation2_spill] sm:$0xff] %v11834_v15  ;;  %v11866_v55 = vadd.f32 %v11818_v10, %v823_v43 }
 0x24c   : > { %9826 = vrot.lane.b32.xlu0 %v11834_v15, %s11273_s12  ;;  %9821 = vrot.lane.b32.xlu1 %v11834_v15, %s11274_s13 }
 0x24d   : > { %v9002_v44 = vpop.f32.mrb[4].mxu0  ;;  %v11883_v25 = vpack.i.bf16 %v11863_v52, %v11866_v55 }
 0x24e   : > { %v833_v45 = vpop.f32.mrb[5].mxu0  ;;  %v11913_v35 = vadd.f32 %v9002_v44, %v11818_v10 }
 0x24f   : > { %17228 = vst [vmem:[#allocation8_spill] sm:$0xff] %v11883_v25  ;;  %v11916_v9 = vadd.f32 %v11818_v10, %v833_v45 }
 0x250   : > { %2712 = vrot.lane.b32.xlu0 %v11824_v6, %s11272_s11  ;;  %9831 = vrot.lane.b32.xlu1 %v11834_v15, %s11275_s14  ;;  %17234 = vst [vmem:[#allocation14_spill] sm:$0xff] %v11913_v35 }
 0x251   : > { %v11844_v49 = vpop.f32.mrb[6].mxu0  ;;  %17235 = vst [vmem:[#allocation15_spill] sm:$0xff] %v11916_v9  ;;  %v11933_v42 = vpack.i.bf16 %v11913_v35, %v11916_v9 }
 0x252   : > { %v11846_v50 = vpop.f32.mrb[7].mxu0  ;;  %v11984_v13 = vadd.f32 %v11844_v49, %v11818_v10 }
 0x253   : > { %17239 = vst [vmem:[#allocation19_spill] sm:$0xff] %v11933_v42  ;;  %v11988_v41 = vadd.f32 %v11818_v10, %v11846_v50 }
 0x254   : > { %9836 = vrot.lane.b32.xlu0 %v11834_v15, %s11276_s15  ;;  %9841 = vrot.lane.b32.xlu1 %v11834_v15, %s11277_s16  ;;  %17249 = vst [vmem:[#allocation29_spill] sm:$0xff] %v11984_v13 }
 0x255   : > { %v9008_v16 = vpop.f32.mrb[8].mxu0  ;;  %17250 = vst [vmem:[#allocation30_spill] sm:$0xff] %v11988_v41  ;;  %v12002_v45 = vpack.i.bf16 %v11984_v13, %v11988_v41 }
 0x256   : > { %v11853_v24 = vadd.f32 %v9008_v16, %v11818_v10  ;;  %v853_v32 = vpop.f32.mrb[9].mxu0 }
 0x257   : > { %v11856_v19 = vadd.f32 %v11818_v10, %v853_v32  ;;  %17253 = vst [vmem:[#allocation33_spill] sm:$0xff] %v12002_v45 }
 0x258   : > { %17223 = vst [vmem:[#allocation3_spill] sm:$0xff] %v11853_v24  ;;  %4445 = vrot.lane.b32.xlu0 %v11824_v6, %s11271_s10  ;;  %9846 = vrot.lane.b32.xlu1 %v11834_v15, %s11278_s17 }
 0x259   : > { %17224 = vst [vmem:[#allocation4_spill] sm:$0xff] %v11856_v19  ;;  %v9011_v51 = vpop.f32.mrb[10].mxu0 }
 0x25a   : > { %v11869_v57 = vadd.f32 %v9011_v51, %v11818_v10  ;;  %v863_v58 = vpop.f32.mrb[11].mxu0 }
 0x25b   : > { %v11872_v39 = vadd.f32 %v11818_v10, %v863_v58 }
 0x25c   : > { %17225 = vst [vmem:[#allocation5_spill] sm:$0xff] %v11869_v57  ;;  %4451 = vrot.lane.b32.xlu0 %v11863_v52, %s11271_s10  ;;  %2718 = vrot.lane.b32.xlu1 %v11863_v52, %s11272_s11 }
 0x25d   : > { %17226 = vst [vmem:[#allocation6_spill] sm:$0xff] %v11872_v39  ;;  %v9014_v46 = vpop.f32.mrb[12].mxu0  ;;  %v12042_v49 = vpack.i.bf16 %v11869_v57, %v11872_v39 }
 0x25e   : > { %v11879_v62 = vadd.f32 %v9014_v46, %v11818_v10  ;;  %v873_v22 = vpop.f32.mrb[13].mxu0 }
 0x25f   : > { %v11886_v63 = vadd.f32 %v11818_v10, %v873_v22  ;;  %17255 = vst [vmem:[#allocation35_spill] sm:$0xff] %v12042_v49 }
 0x260   : > { %17227 = vst [vmem:[#allocation7_spill] sm:$0xff] %v11879_v62  ;;  %2716 = vrot.lane.b32.xlu0 %v11866_v55, %s11272_s11  ;;  %9851 = vrot.lane.b32.xlu1 %v11883_v25, %s11274_s13 }
 0x261   : > { %17229 = vst [vmem:[#allocation9_spill] sm:$0xff] %v11886_v63  ;;  %v9017_v5 = vpop.f32.mrb[14].mxu0  ;;  %v12070_v32 = vpack.i.bf16 %v11879_v62, %v11886_v63 }
 0x262   : > { %v11893_v12 = vadd.f32 %v9017_v5, %v11818_v10  ;;  %v883_v53 = vpop.f32.mrb[15].mxu0 }
 0x263   : > { %v11896_v61 = vadd.f32 %v11818_v10, %v883_v53  ;;  %17258 = vst [vmem:[#allocation38_spill] sm:$0xff] %v12070_v32 }
 0x264   : > { %17230 = vst [vmem:[#allocation10_spill] sm:$0xff] %v11893_v12  ;;  %9866 = vrot.lane.b32.xlu0 %v11883_v25, %s11276_s15  ;;  %9856 = vrot.lane.b32.xlu1 %v11883_v25, %s11273_s12 }
 0x265   : > { %17231 = vst [vmem:[#allocation11_spill] sm:$0xff] %v11896_v61  ;;  %v9020_v14 = vpop.f32.mrb[16].mxu0 }
 0x266   : > { %v11903_v0 = vadd.f32 %v9020_v14, %v11818_v10  ;;  %v893_v17 = vpop.f32.mrb[17].mxu0 }
 0x267   : > { %v11906_v27 = vadd.f32 %v11818_v10, %v893_v17 }
 0x268   : > { %17232 = vst [vmem:[#allocation12_spill] sm:$0xff] %v11903_v0  ;;  %4449 = vrot.lane.b32.xlu0 %v11866_v55, %s11271_s10  ;;  %9861 = vrot.lane.b32.xlu1 %v11883_v25, %s11275_s14 }
 0x269   : > { %17233 = vst [vmem:[#allocation13_spill] sm:$0xff] %v11906_v27  ;;  %v9023_v1 = vpop.f32.mrb[18].mxu0 }
 0x26a   : > { %v11919_v20 = vadd.f32 %v9023_v1, %v11818_v10  ;;  %v903_v18 = vpop.f32.mrb[19].mxu0 }
 0x26b   : > { %v11922_v21 = vadd.f32 %v11818_v10, %v903_v18 }
 0x26c   : > { %17236 = vst [vmem:[#allocation16_spill] sm:$0xff] %v11919_v20  ;;  %9871 = vrot.lane.b32.xlu0 %v11883_v25, %s11277_s16  ;;  %9876 = vrot.lane.b32.xlu1 %v11883_v25, %s11278_s17 }
 0x26d   : > { %17237 = vst [vmem:[#allocation17_spill] sm:$0xff] %v11922_v21  ;;  %v9026_v3 = vpop.f32.mrb[20].mxu0 }
 0x26e   : > { %v11929_v23 = vadd.f32 %v9026_v3, %v11818_v10  ;;  %v913_v26 = vpop.f32.mrb[21].mxu0 }
 0x26f   : > { %v11936_v30 = vadd.f32 %v11818_v10, %v913_v26  ;;  %v12108_v26 = vpack.i.bf16 %v11893_v12, %v11896_v61 }
 0x270   : > { %17238 = vst [vmem:[#allocation18_spill] sm:$0xff] %v11929_v23  ;;  %2722 = vrot.lane.b32.xlu0 %v11913_v35, %s11272_s11  ;;  %9881 = vrot.lane.b32.xlu1 %v11933_v42, %s11274_s13 }
 0x271   : > { %17240 = vst [vmem:[#allocation20_spill] sm:$0xff] %v11936_v30  ;;  %v9029_v38 = vpop.f32.mrb[22].mxu0  ;;  %17265 = vst [vmem:[#allocation45_spill] sm:$0xff] %v12108_v26 }
 0x272   : > { %v11943_v48 = vadd.f32 %v9029_v38, %v11818_v10  ;;  %v923_v28 = vpop.f32.mrb[23].mxu0 }
 0x273   : > { %v11946_v7 = vadd.f32 %v11818_v10, %v923_v28 }
 0x274   : > { %17241 = vst [vmem:[#allocation21_spill] sm:$0xff] %v11943_v48  ;;  %4455 = vrot.lane.b32.xlu0 %v11913_v35, %s11271_s10  ;;  %9886 = vrot.lane.b32.xlu1 %v11933_v42, %s11273_s12 }
 0x275   : > { %17242 = vst [vmem:[#allocation22_spill] sm:$0xff] %v11946_v7  ;;  %v9032_v29 = vpop.f32.mrb[24].mxu0 }
 0x276   : > { %v11953_v31 = vadd.f32 %v9032_v29, %v11818_v10  ;;  %v933_v33 = vpop.f32.mrb[25].mxu0 }
 0x277   : > { %v11956_v47 = vadd.f32 %v11818_v10, %v933_v33 }
 0x278   : > { %17243 = vst [vmem:[#allocation23_spill] sm:$0xff] %v11953_v31  ;;  %2720 = vrot.lane.b32.xlu0 %v11916_v9, %s11272_s11  ;;  %9891 = vrot.lane.b32.xlu1 %v11933_v42, %s11275_s14 }
 0x279   : > { %17244 = vst [vmem:[#allocation24_spill] sm:$0xff] %v11956_v47  ;;  %v9035_v56 = vpop.f32.mrb[26].mxu0 }
 0x27a   : > { %v11963_v34 = vadd.f32 %v9035_v56, %v11818_v10  ;;  %v943_v54 = vpop.f32.mrb[27].mxu0 }
 0x27b   : > { %v11966_v60 = vadd.f32 %v11818_v10, %v943_v54 }
 0x27c   : > { %17245 = vst [vmem:[#allocation25_spill] sm:$0xff] %v11963_v34  ;;  %9896 = vrot.lane.b32.xlu0 %v11933_v42, %s11276_s15  ;;  %4453 = vrot.lane.b32.xlu1 %v11916_v9, %s11271_s10 }
 0x27d   : > { %17246 = vst [vmem:[#allocation26_spill] sm:$0xff] %v11966_v60  ;;  %v9038_v36 = vpop.f32.mrb[28].mxu0 }
 0x27e   : > { %v11973_v4 = vadd.f32 %v9038_v36, %v11818_v10  ;;  %v953_v59 = vpop.f32.mrb[29].mxu0 }
 0x27f   : > { %v11976_v37 = vadd.f32 %v11818_v10, %v953_v59 }
 0x280   : > { %17247 = vst [vmem:[#allocation27_spill] sm:$0xff] %v11973_v4  ;;  %9906 = vrot.lane.b32.xlu0 %v11933_v42, %s11278_s17  ;;  %9901 = vrot.lane.b32.xlu1 %v11933_v42, %s11277_s16 }
 0x281   : > { %17248 = vst [vmem:[#allocation28_spill] sm:$0xff] %v11976_v37  ;;  %v9041_v8 = vpop.f32.mrb[30].mxu0 }
 0x282   : > { %v11991_v2 = vadd.f32 %v9041_v8, %v11818_v10  ;;  %v963_v43 = vpop.f32.mrb[31].mxu0 }
 0x283   : > { %v11994_v44 = vadd.f32 %v11818_v10, %v963_v43  ;;  %v12026_v10 = vpack.i.bf16 %v11853_v24, %v11856_v19 }
 0x284   : > { %17251 = vst [vmem:[#allocation31_spill] sm:$0xff] %v11991_v2  ;;  %2726 = vrot.lane.b32.xlu0 %v11984_v13, %s11272_s11  ;;  %4459 = vrot.lane.b32.xlu1 %v11984_v13, %s11271_s10 }
 0x285   : > { %17252 = vst [vmem:[#allocation32_spill] sm:$0xff] %v11994_v44  ;;  %17254 = vst [vmem:[#allocation34_spill] sm:$0xff] %v12026_v10 }
 0x288   : > { %9916 = vrot.lane.b32.xlu0 %v12002_v45, %s11273_s12  ;;  %9911 = vrot.lane.b32.xlu1 %v12002_v45, %s11274_s13 }
 0x28c   : > { %2724 = vrot.lane.b32.xlu0 %v11988_v41, %s11272_s11  ;;  %9921 = vrot.lane.b32.xlu1 %v12002_v45, %s11275_s14 }
 0x290   : > { %9926 = vrot.lane.b32.xlu0 %v12002_v45, %s11276_s15  ;;  %9931 = vrot.lane.b32.xlu1 %v12002_v45, %s11277_s16 }
 0x294   : > { %4457 = vrot.lane.b32.xlu0 %v11988_v41, %s11271_s10  ;;  %9936 = vrot.lane.b32.xlu1 %v12002_v45, %s11278_s17 }
 0x298   : > { %2730 = vrot.lane.b32.xlu0 %v11853_v24, %s11272_s11  ;;  %4463 = vrot.lane.b32.xlu1 %v11853_v24, %s11271_s10 }
 0x29c   : > { %9941 = vrot.lane.b32.xlu0 %v12026_v10, %s11274_s13  ;;  %9946 = vrot.lane.b32.xlu1 %v12026_v10, %s11273_s12 }
 0x2a0   : > { %9961 = vrot.lane.b32.xlu0 %v12026_v10, %s11277_s16  ;;  %9951 = vrot.lane.b32.xlu1 %v12026_v10, %s11275_s14 }
 0x2a4   : > { %2734 = vrot.lane.b32.xlu0 %v11869_v57, %s11272_s11  ;;  %2728 = vrot.lane.b32.xlu1 %v11856_v19, %s11272_s11 }
 0x2a8   : > { %9966 = vrot.lane.b32.xlu0 %v12042_v49, %s11274_s13  ;;  %9956 = vrot.lane.b32.xlu1 %v12026_v10, %s11276_s15 }
 0x2ac   : > { %9976 = vrot.lane.b32.xlu0 %v12042_v49, %s11275_s14  ;;  %4461 = vrot.lane.b32.xlu1 %v11856_v19, %s11271_s10 }
 0x2b0   : > { %9981 = vrot.lane.b32.xlu0 %v12042_v49, %s11276_s15  ;;  %4467 = vrot.lane.b32.xlu1 %v11869_v57, %s11271_s10 }
 0x2b4   : > { %2738 = vrot.lane.b32.xlu0 %v11879_v62, %s11272_s11  ;;  %9971 = vrot.lane.b32.xlu1 %v12042_v49, %s11273_s12 }
 0x2b8   : > { %4471 = vrot.lane.b32.xlu0 %v11879_v62, %s11271_s10  ;;  %2732 = vrot.lane.b32.xlu1 %v11872_v39, %s11272_s11 }
 0x2ba   : > { %v12064_v50 = vpop.permute.xlu1 %4447  ;;  %v12066_v16 = vpop.permute.xlu0 %2714 }
 0x2bb   : > { %17256 = vst [vmem:[#allocation36_spill] sm:$0xff] %v12064_v50  ;;  %17257 = vst [vmem:[#allocation37_spill] sm:$0xff] %v12066_v16 }
 0x2bc   : > { %9991 = vrot.lane.b32.xlu0 %v12070_v32, %s11274_s13  ;;  %4465 = vrot.lane.b32.xlu1 %v11872_v39, %s11271_s10 }
 0x2be   : > { %v9827_v51 = vpop.permute.xlu0 %9826  ;;  %v12076_v58 = vpop.permute.xlu1 %9821 }
 0x2bf   : > { %v9829_v46 = vunpack.i.h.bf16 %v9827_v51  ;;  %v9828_v22 = vunpack.i.l.bf16 %v9827_v51 }
 0x2c0   : > { %9996 = vrot.lane.b32.xlu0 %v12070_v32, %s11273_s12  ;;  %9986 = vrot.lane.b32.xlu1 %v12042_v49, %s11277_s16 }
 0x2c1   : > { %v12082_v5 = vpack.c.bf16 %v9829_v46, %v9828_v22 }
 0x2c2   : > { %v12084_v53 = vpop.permute.xlu0 %2712  ;;  %v12086_v14 = vpop.permute.xlu1 %9831 }
 0x2c3   : > { %17259 = vst [vmem:[#allocation39_spill] sm:$0xff] %v12084_v53  ;;  %17260 = vst [vmem:[#allocation40_spill] sm:$0xff] %v12086_v14  ;;  %9300 = vmatpush1.bf16.msra.mxu0 %v12082_v5  ;;  %v12328_v53 = vpack.i.bf16 %v11953_v31, %v11956_v47  ;;  %v9823_v14 = vunpack.i.l.bf16 %v12076_v58 }
 0x2c4   : > { %10001 = vrot.lane.b32.xlu0 %v12070_v32, %s11275_s14  ;;  %2736 = vrot.lane.b32.xlu1 %v11886_v63, %s11272_s11 }
 0x2c5   : > { %9301 = vmatprep.subr.bf16.mxu0 %v16805_v40  ;;  %17309 = vst [vmem:[#allocation88_spill] sm:$0xff] %v12328_v53 }
 0x2c6   : > { %v12094_v17 = vpop.permute.xlu0 %9836  ;;  %v12096_v1 = vpop.permute.xlu1 %9841 }
 0x2c7   : > { %17261 = vst [vmem:[#allocation41_spill] sm:$0xff] %v12094_v17  ;;  %17262 = vst [vmem:[#allocation42_spill] sm:$0xff] %v12096_v1 }
 0x2c8   : > { %10006 = vrot.lane.b32.xlu0 %v12070_v32, %s11276_s15  ;;  %4469 = vrot.lane.b32.xlu1 %v11886_v63, %s11271_s10 }
 0x2ca   : > { %v12102_v18 = vpop.permute.xlu0 %4445  ;;  %v12104_v3 = vpop.permute.xlu1 %9846 }
 0x2cb   : > { %17263 = vst [vmem:[#allocation43_spill] sm:$0xff] %v12102_v18  ;;  %17264 = vst [vmem:[#allocation44_spill] sm:$0xff] %v12104_v3 }
 0x2cc   : > { %10016 = vrot.lane.b32.xlu0 %v12108_v26, %s11274_s13  ;;  %10011 = vrot.lane.b32.xlu1 %v12070_v32, %s11277_s16 }
 0x2ce   : > { %v12114_v38 = vpop.permute.xlu0 %4451  ;;  %v12116_v28 = vpop.permute.xlu1 %2718 }
 0x2cf   : > { %17266 = vst [vmem:[#allocation46_spill] sm:$0xff] %v12114_v38  ;;  %17267 = vst [vmem:[#allocation47_spill] sm:$0xff] %v12116_v28 }
 0x2d0   : > { %10021 = vrot.lane.b32.xlu0 %v12108_v26, %s11273_s12  ;;  %2742 = vrot.lane.b32.xlu1 %v11893_v12, %s11272_s11 }
 0x2d2   : > { %v12122_v29 = vpop.permute.xlu0 %2716  ;;  %v12124_v33 = vpop.permute.xlu1 %9851 }
 0x2d3   : > { %17268 = vst [vmem:[#allocation48_spill] sm:$0xff] %v12122_v29 }
 0x2d4   : > { %10026 = vrot.lane.b32.xlu0 %v12108_v26, %s11275_s14  ;;  %4475 = vrot.lane.b32.xlu1 %v11893_v12, %s11271_s10 }
 0x2d6   : > { %v12130_v56 = vpop.permute.xlu0 %9866  ;;  %v9857_v54 = vpop.permute.xlu1 %9856 }
 0x2d7   : > { %17269 = vst [vmem:[#allocation49_spill] sm:$0xff] %v12130_v56  ;;  %v9859_v36 = vunpack.i.h.bf16 %v9857_v54  ;;  %v9858_v59 = vunpack.i.l.bf16 %v9857_v54  ;;  %v12154_v54 = vpack.i.bf16 %v11903_v0, %v11906_v27 }
 0x2d8   : > { %10031 = vrot.lane.b32.xlu0 %v12108_v26, %s11276_s15  ;;  %2740 = vrot.lane.b32.xlu1 %v11896_v61, %s11272_s11 }
 0x2d9   : > { %v12136_v8 = vpack.c.bf16 %v9859_v36, %v9858_v59  ;;  %17274 = vst [vmem:[#allocation54_spill] sm:$0xff] %v12154_v54 }
 0x2da   : > { %v12138_v43 = vpop.permute.xlu0 %4449  ;;  %v12140_v51 = vpop.permute.xlu1 %9861 }
 0x2db   : > { %17270 = vst [vmem:[#allocation50_spill] sm:$0xff] %v12138_v43  ;;  %17271 = vst [vmem:[#allocation51_spill] sm:$0xff] %v12140_v51  ;;  %9303 = vmatpush1.bf16.msra.mxu0 %v12136_v8 }
 0x2dc   : > { %4473 = vrot.lane.b32.xlu0 %v11896_v61, %s11271_s10  ;;  %2746 = vrot.lane.b32.xlu1 %v11903_v0, %s11272_s11 }
 0x2dd   : > { %9304 = vmatprep.subr.bf16.mxu0 %v16805_v40 }
 0x2de   : > { %v12148_v46 = vpop.permute.xlu0 %9871  ;;  %v12150_v22 = vpop.permute.xlu1 %9876 }
 0x2df   : > { %17272 = vst [vmem:[#allocation52_spill] sm:$0xff] %v12148_v46  ;;  %17273 = vst [vmem:[#allocation53_spill] sm:$0xff] %v12150_v22 }
 0x2e0   : > { %10036 = vrot.lane.b32.xlu0 %v12108_v26, %s11277_s16  ;;  %10041 = vrot.lane.b32.xlu1 %v12154_v54, %s11274_s13 }
 0x2e2   : > { %v12160_v36 = vpop.permute.xlu0 %2722  ;;  %v12162_v59 = vpop.permute.xlu1 %9881 }
 0x2e3   : > { %17275 = vst [vmem:[#allocation55_spill] sm:$0xff] %v12160_v36 }
 0x2e4   : > { %4479 = vrot.lane.b32.xlu0 %v11903_v0, %s11271_s10  ;;  %2744 = vrot.lane.b32.xlu1 %v11906_v27, %s11272_s11 }
 0x2e6   : > { %v12168_v40 = vpop.permute.xlu0 %4455  ;;  %v9887_v45 = vpop.permute.xlu1 %9886 }
 0x2e7   : > { %17276 = vst [vmem:[#allocation56_spill] sm:$0xff] %v12168_v40  ;;  %v9889_v42 = vunpack.i.h.bf16 %v9887_v45  ;;  %v9888_v15 = vunpack.i.l.bf16 %v9887_v45  ;;  %v17279_v45 = vmov 0.0|0.0  }
 0x2e8   : > { %10046 = vrot.lane.b32.xlu0 %v12154_v54, %s11273_s12  ;;  %10061 = vrot.lane.b32.xlu1 %v12154_v54, %s11278_s17 }
 0x2e9   : > { %v12174_v25 = vpack.c.bf16 %v9889_v42, %v9888_v15 }
 0x2ea   : > { %v12176_v38 = vpop.permute.xlu0 %2720  ;;  %v12178_v43 = vpop.permute.xlu1 %9891 }
 0x2eb   : > { %17277 = vst [vmem:[#allocation57_spill] sm:$0xff] %v12176_v38  ;;  %17278 = vst [vmem:[#allocation58_spill] sm:$0xff] %v12178_v43  ;;  %9306 = vmatpush1.bf16.msra.mxu0 %v12174_v25 }
 0x2ec   : > { %10051 = vrot.lane.b32.xlu0 %v12154_v54, %s11275_s14  ;;  %10066 = vrot.lane.b32.xlu1 %v12154_v54, %s11277_s16 }
 0x2ed   : > { %9307 = vmatprep.subr.bf16.mxu0 %v17279_v45 }
 0x2ee   : > { %v12186_v40 = vpop.permute.xlu0 %9896  ;;  %v12188_v22 = vpop.permute.xlu1 %4453 }
 0x2ef   : > { %17280 = vst [vmem:[#allocation59_spill] sm:$0xff] %v12186_v40  ;;  %17281 = vst [vmem:[#allocation60_spill] sm:$0xff] %v12188_v22 }
 0x2f0   : > { %10056 = vrot.lane.b32.xlu0 %v12154_v54, %s11276_s15  ;;  %2750 = vrot.lane.b32.xlu1 %v11919_v20, %s11272_s11 }
 0x2f2   : > { %v12194_v15 = vpop.permute.xlu0 %9906  ;;  %v12196_v42 = vpop.permute.xlu1 %9901 }
 0x2f3   : > { %17282 = vst [vmem:[#allocation61_spill] sm:$0xff] %v12194_v15  ;;  %17283 = vst [vmem:[#allocation62_spill] sm:$0xff] %v12196_v42  ;;  %v12214_v15 = vpack.i.bf16 %v11919_v20, %v11922_v21 }
 0x2f4   : > { %4477 = vrot.lane.b32.xlu0 %v11906_v27, %s11271_s10  ;;  %2748 = vrot.lane.b32.xlu1 %v11922_v21, %s11272_s11 }
 0x2f5   : > { %17286 = vst [vmem:[#allocation65_spill] sm:$0xff] %v12214_v15 }
 0x2f6   : > { %v12202_v50 = vpop.permute.xlu0 %2726  ;;  %v12204_v18 = vpop.permute.xlu1 %4459 }
 0x2f7   : > { %17284 = vst [vmem:[#allocation63_spill] sm:$0xff] %v12202_v50  ;;  %17285 = vst [vmem:[#allocation64_spill] sm:$0xff] %v12204_v18 }
 0x2f8   : > { %4483 = vrot.lane.b32.xlu0 %v11919_v20, %s11271_s10  ;;  %4481 = vrot.lane.b32.xlu1 %v11922_v21, %s11271_s10 }
 0x2fa   : > { %v9917_v54 = vpop.permute.xlu0 %9916  ;;  %v12210_v22 = vpop.permute.xlu1 %9911 }
 0x2fb   : > { %v9919_v3 = vunpack.i.h.bf16 %v9917_v54  ;;  %v9918_v42 = vunpack.i.l.bf16 %v9917_v54 }
 0x2fc   : > { %10071 = vrot.lane.b32.xlu0 %v12214_v15, %s11274_s13  ;;  %10096 = vrot.lane.b32.xlu1 %v12214_v15, %s11277_s16 }
 0x2fd   : > { %v12220_v18 = vpack.c.bf16 %v9919_v3, %v9918_v42 }
 0x2fe   : > { %v12222_v46 = vpop.permute.xlu0 %2724  ;;  %v12224_v1 = vpop.permute.xlu1 %9921 }
 0x2ff   : > { %17287 = vst [vmem:[#allocation66_spill] sm:$0xff] %v12222_v46  ;;  %17288 = vst [vmem:[#allocation67_spill] sm:$0xff] %v12224_v1  ;;  %9309 = vmatpush1.bf16.msra.mxu0 %v12220_v18  ;;  %v12246_v46 = vpack.i.bf16 %v11929_v23, %v11936_v30 }
 0x300   : > { %10076 = vrot.lane.b32.xlu0 %v12214_v15, %s11273_s12  ;;  %2754 = vrot.lane.b32.xlu1 %v11929_v23, %s11272_s11 }
 0x301   : > { %9310 = vmatprep.subr.bf16.mxu0 %v17279_v45  ;;  %17293 = vst [vmem:[#allocation72_spill] sm:$0xff] %v12246_v46 }
 0x302   : > { %v12232_v54 = vpop.permute.xlu0 %9926  ;;  %v12234_v50 = vpop.permute.xlu1 %9931 }
 0x303   : > { %17289 = vst [vmem:[#allocation68_spill] sm:$0xff] %v12232_v54  ;;  %17290 = vst [vmem:[#allocation69_spill] sm:$0xff] %v12234_v50 }
 0x304   : > { %10081 = vrot.lane.b32.xlu0 %v12214_v15, %s11275_s14  ;;  %4487 = vrot.lane.b32.xlu1 %v11929_v23, %s11271_s10 }
 0x306   : > { %v12240_v3 = vpop.permute.xlu0 %4457  ;;  %v12242_v42 = vpop.permute.xlu1 %9936 }
 0x307   : > { %17291 = vst [vmem:[#allocation70_spill] sm:$0xff] %v12240_v3  ;;  %17292 = vst [vmem:[#allocation71_spill] sm:$0xff] %v12242_v42 }
 0x308   : > { %10086 = vrot.lane.b32.xlu0 %v12214_v15, %s11276_s15  ;;  %10101 = vrot.lane.b32.xlu1 %v12246_v46, %s11274_s13 }
 0x30a   : > { %v12252_v50 = vpop.permute.xlu0 %2730  ;;  %v12254_v54 = vpop.permute.xlu1 %4463 }
 0x30b   : > { %17294 = vst [vmem:[#allocation73_spill] sm:$0xff] %v12252_v50  ;;  %17295 = vst [vmem:[#allocation74_spill] sm:$0xff] %v12254_v54 }
 0x30c   : > { %10091 = vrot.lane.b32.xlu0 %v12214_v15, %s11278_s17  ;;  %10106 = vrot.lane.b32.xlu1 %v12246_v46, %s11273_s12 }
 0x30e   : > { %v12260_v3 = vpop.permute.xlu0 %9941  ;;  %v9947_v42 = vpop.permute.xlu1 %9946 }
 0x30f   : > { %v9949_v36 = vunpack.i.h.bf16 %v9947_v42  ;;  %v9948_v38 = vunpack.i.l.bf16 %v9947_v42 }
 0x310   : > { %10111 = vrot.lane.b32.xlu0 %v12246_v46, %s11275_s14  ;;  %2752 = vrot.lane.b32.xlu1 %v11936_v30, %s11272_s11 }
 0x311   : > { %v12266_v50 = vpack.c.bf16 %v9949_v36, %v9948_v38 }
 0x312   : > { %v12268_v54 = vpop.permute.xlu0 %9961  ;;  %v12270_v40 = vpop.permute.xlu1 %9951 }
 0x313   : > { %17296 = vst [vmem:[#allocation75_spill] sm:$0xff] %v12268_v54  ;;  %17297 = vst [vmem:[#allocation76_spill] sm:$0xff] %v12270_v40  ;;  %9312 = vmatpush1.bf16.msra.mxu0 %v12266_v50  ;;  %v12292_v54 = vpack.i.bf16 %v11943_v48, %v11946_v7  ;;  %v12358_v40 = vpack.i.bf16 %v11963_v34, %v11966_v60 }
 0x314   : > { %10116 = vrot.lane.b32.xlu0 %v12246_v46, %s11276_s15  ;;  %10121 = vrot.lane.b32.xlu1 %v12246_v46, %s11278_s17 }
 0x315   : > { %9313 = vmatprep.subr.bf16.mxu0 %v17279_v45  ;;  %17301 = vst [vmem:[#allocation80_spill] sm:$0xff] %v12292_v54  ;;  %17314 = vst [vmem:[#allocation93_spill] sm:$0xff] %v12358_v40 }
 0x316   : > { %v12278_v42 = vpop.permute.xlu0 %2734  ;;  %v12280_v15 = vpop.permute.xlu1 %2728 }
 0x317   : > { %17298 = vst [vmem:[#allocation77_spill] sm:$0xff] %v12278_v42  ;;  %17299 = vst [vmem:[#allocation78_spill] sm:$0xff] %v12280_v15 }
 0x318   : > { %4485 = vrot.lane.b32.xlu0 %v11936_v30, %s11271_s10  ;;  %10126 = vrot.lane.b32.xlu1 %v12246_v46, %s11277_s16 }
 0x31a   : > { %v12286_v38 = vpop.permute.xlu0 %9966  ;;  %v12288_v36 = vpop.permute.xlu1 %9956 }
 0x31b   : > { %17300 = vst [vmem:[#allocation79_spill] sm:$0xff] %v12288_v36 }
 0x31c   : > { %2758 = vrot.lane.b32.xlu0 %v11943_v48, %s11272_s11  ;;  %10131 = vrot.lane.b32.xlu1 %v12292_v54, %s11274_s13 }
 0x31e   : > { %v12298_v42 = vpop.permute.xlu0 %9976  ;;  %v12300_v15 = vpop.permute.xlu1 %4461 }
 0x31f   : > { %17302 = vst [vmem:[#allocation81_spill] sm:$0xff] %v12298_v42  ;;  %17303 = vst [vmem:[#allocation82_spill] sm:$0xff] %v12300_v15 }
 0x320   : > { %10136 = vrot.lane.b32.xlu0 %v12292_v54, %s11273_s12  ;;  %2756 = vrot.lane.b32.xlu1 %v11946_v7, %s11272_s11 }
 0x322   : > { %v12306_v46 = vpop.permute.xlu0 %9981  ;;  %v12308_v36 = vpop.permute.xlu1 %4467 }
 0x323   : > { %17304 = vst [vmem:[#allocation83_spill] sm:$0xff] %v12306_v46  ;;  %17305 = vst [vmem:[#allocation84_spill] sm:$0xff] %v12308_v36 }
 0x324   : > { %10141 = vrot.lane.b32.xlu0 %v12292_v54, %s11275_s14  ;;  %10151 = vrot.lane.b32.xlu1 %v12292_v54, %s11278_s17 }
 0x326   : > { %v12314_v28 = vpop.permute.xlu0 %2738  ;;  %v9972_v29 = vpop.permute.xlu1 %9971 }
 0x327   : > { %17306 = vst [vmem:[#allocation85_spill] sm:$0xff] %v12314_v28  ;;  %v9974_v15 = vunpack.i.h.bf16 %v9972_v29  ;;  %v9973_v56 = vunpack.i.l.bf16 %v9972_v29 }
 0x328   : > { %10146 = vrot.lane.b32.xlu0 %v12292_v54, %s11276_s15  ;;  %2762 = vrot.lane.b32.xlu1 %v11953_v31, %s11272_s11 }
 0x329   : > { %v12320_v46 = vpack.c.bf16 %v9974_v15, %v9973_v56 }
 0x32a   : > { %v12322_v36 = vpop.permute.xlu0 %4471  ;;  %v12324_v16 = vpop.permute.xlu1 %2732 }
 0x32b   : > { %17307 = vst [vmem:[#allocation86_spill] sm:$0xff] %v12322_v36  ;;  %17308 = vst [vmem:[#allocation87_spill] sm:$0xff] %v12324_v16  ;;  %9315 = vmatpush1.bf16.msra.mxu0 %v12320_v46 }
 0x32c   : > { %4489 = vrot.lane.b32.xlu0 %v11946_v7, %s11271_s10  ;;  %10156 = vrot.lane.b32.xlu1 %v12328_v53, %s11274_s13 }
 0x32d   : > { %9316 = vmatprep.subr.bf16.mxu0 %v17279_v45 }
 0x32e   : > { %v12336_v29 = vpop.permute.xlu0 %9991  ;;  %v12338_v56 = vpop.permute.xlu1 %4465 }
 0x32f   : > { %17310 = vst [vmem:[#allocation89_spill] sm:$0xff] %v12338_v56 }
 0x330   : > { %10166 = vrot.lane.b32.xlu0 %v12328_v53, %s11275_s14  ;;  %10161 = vrot.lane.b32.xlu1 %v12328_v53, %s11273_s12 }
 0x332   : > { %v9997_v15 = vpop.permute.xlu0 %9996  ;;  %v12344_v36 = vpop.permute.xlu1 %9986 }
 0x333   : > { %17311 = vst [vmem:[#allocation90_spill] sm:$0xff] %v12344_v36  ;;  %v9999_v28 = vunpack.i.h.bf16 %v9997_v15  ;;  %v9998_v16 = vunpack.i.l.bf16 %v9997_v15 }
 0x334   : > { %10171 = vrot.lane.b32.xlu0 %v12328_v53, %s11276_s15  ;;  %2760 = vrot.lane.b32.xlu1 %v11956_v47, %s11272_s11 }
 0x335   : > { %v12350_v17 = vpack.c.bf16 %v9999_v28, %v9998_v16 }
 0x336   : > { %v12352_v56 = vpop.permute.xlu0 %10001  ;;  %v12354_v42 = vpop.permute.xlu1 %2736 }
 0x337   : > { %17312 = vst [vmem:[#allocation91_spill] sm:$0xff] %v12352_v56  ;;  %17313 = vst [vmem:[#allocation92_spill] sm:$0xff] %v12354_v42  ;;  %9318 = vmatpush1.bf16.msra.mxu0 %v12350_v17 }
 0x338   : > { %10181 = vrot.lane.b32.xlu0 %v12358_v40, %s11273_s12  ;;  %2766 = vrot.lane.b32.xlu1 %v11963_v34, %s11272_s11 }
 0x339   : > { %9319 = vmatprep.subr.bf16.mxu0 %v17279_v45 }
 0x33a   : > { %v12366_v16 = vpop.permute.xlu0 %10006  ;;  %v12368_v28 = vpop.permute.xlu1 %4469 }
 0x33b   : > { %17315 = vst [vmem:[#allocation94_spill] sm:$0xff] %v12366_v16  ;;  %17316 = vst [vmem:[#allocation95_spill] sm:$0xff] %v12368_v28  ;;  %v12386_v28 = vpack.i.bf16 %v11973_v4, %v11976_v37 }
 0x33c   : > { %10186 = vrot.lane.b32.xlu0 %v12358_v40, %s11275_s14  ;;  %10176 = vrot.lane.b32.xlu1 %v12358_v40, %s11274_s13 }
 0x33d   : > { %17319 = vst [vmem:[#allocation98_spill] sm:$0xff] %v12386_v28 }
 0x33e   : > { %v12374_v15 = vpop.permute.xlu0 %10016  ;;  %v12376_v36 = vpop.permute.xlu1 %10011 }
 0x33f   : > { %17317 = vst [vmem:[#allocation96_spill] sm:$0xff] %v12376_v36 }
 0x340   : > { %10191 = vrot.lane.b32.xlu0 %v12358_v40, %s11276_s15  ;;  %2764 = vrot.lane.b32.xlu1 %v11966_v60, %s11272_s11 }
 0x342   : > { %v10022_v42 = vpop.permute.xlu0 %10021  ;;  %v12382_v16 = vpop.permute.xlu1 %2742 }
 0x343   : > { %17318 = vst [vmem:[#allocation97_spill] sm:$0xff] %v12382_v16  ;;  %v10024_v56 = vunpack.i.h.bf16 %v10022_v42  ;;  %v10023_v1 = vunpack.i.l.bf16 %v10022_v42 }
 0x344   : > { %2770 = vrot.lane.b32.xlu0 %v11973_v4, %s11272_s11  ;;  %10196 = vrot.lane.b32.xlu1 %v12386_v28, %s11274_s13 }
 0x345   : > { %v12392_v36 = vpack.c.bf16 %v10024_v56, %v10023_v1 }
 0x346   : > { %v12394_v43 = vpop.permute.xlu0 %10026  ;;  %v12396_v51 = vpop.permute.xlu1 %4475 }
 0x347   : > { %17320 = vst [vmem:[#allocation99_spill] sm:$0xff] %v12394_v43  ;;  %17321 = vst [vmem:[#allocation100_spill] sm:$0xff] %v12396_v51  ;;  %9321 = vmatpush1.bf16.msra.mxu0 %v12392_v36  ;;  %v12418_v51 = vpack.i.bf16 %v11991_v2, %v11994_v44  ;;  %v9824_v43 = vunpack.i.h.bf16 %v12076_v58 }
 0x348   : > { %10206 = vrot.lane.b32.xlu0 %v12386_v28, %s11275_s14  ;;  %10201 = vrot.lane.b32.xlu1 %v12386_v28, %s11273_s12 }
 0x349   : > { %9322 = vmatprep.subr.bf16.mxu0 %v17279_v45  ;;  %17326 = vst [vmem:[#allocation105_spill] sm:$0xff] %v12418_v51  ;;  %v9253_v58 = vpack.c.bf16 %v9824_v43, %v9823_v14 }
 0x34a   : > { %v12404_v42 = vpop.permute.xlu0 %10031  ;;  %v12406_v16 = vpop.permute.xlu1 %2740 }
 0x34b   : > { %17322 = vst [vmem:[#allocation101_spill] sm:$0xff] %v12404_v42  ;;  %17323 = vst [vmem:[#allocation102_spill] sm:$0xff] %v12406_v16 }
 0x34c   : > { %10211 = vrot.lane.b32.xlu0 %v12386_v28, %s11276_s15  ;;  %2768 = vrot.lane.b32.xlu1 %v11976_v37, %s11272_s11 }
 0x34e   : > { %v12412_v1 = vpop.permute.xlu0 %4473  ;;  %v12414_v56 = vpop.permute.xlu1 %2746 }
 0x34f   : > { %17324 = vst [vmem:[#allocation103_spill] sm:$0xff] %v12412_v1  ;;  %17325 = vst [vmem:[#allocation104_spill] sm:$0xff] %v12414_v56  ;;  %v17328_v56 = vmov 0 }
 0x350   : > { %2774 = vrot.lane.b32.xlu0 %v11991_v2, %s11272_s11  ;;  %10216 = vrot.lane.b32.xlu1 %v12418_v51, %s11274_s13  ;;  %v17329_v56 = vsel %vm12434_vm2, 4294967295, %v17328_v56 }
 0x351   : > { %17330 = vst [vmem:[#allocation107_spill] sm:$0xff] %v17329_v56 }
 0x352   : > { %v12424_v16 = vpop.permute.xlu0 %10036  ;;  %v10042_v42 = vpop.permute.xlu1 %10041 }
 0x353   : > { %17327 = vst [vmem:[#allocation106_spill] sm:$0xff] %v12424_v16  ;;  %v10044_v1 = vunpack.i.h.bf16 %v10042_v42  ;;  %v10043_v7 = vunpack.i.l.bf16 %v10042_v42 }
 0x354   : > { %10221 = vrot.lane.b32.xlu0 %v12418_v51, %s11273_s12  ;;  %10236 = vrot.lane.b32.xlu1 %v12292_v54, %s11277_s16 }
 0x355   : > { %v9250_v16 = vpack.c.bf16 %v10044_v1, %v10043_v7 }
 0x356   : > { %v12438_v23 = vpop.permute.xlu0 %4479  ;;  %v12440_v30 = vpop.permute.xlu1 %2744 }
 0x357   : > { %17331 = vst [vmem:[#allocation108_spill] sm:$0xff] %v12438_v23  ;;  %17332 = vst [vmem:[#allocation109_spill] sm:$0xff] %v12440_v30  ;;  %9252 = vmatprep.subr.msk.bf16.mxu1 %vm12434_vm2, %v9250_v16 }
 0x358   : > { %10226 = vrot.lane.b32.xlu0 %v12418_v51, %s11275_s14  ;;  %10241 = vrot.lane.b32.xlu1 %v12026_v10, %s11278_s17  ;;  %s16668_s14 = scalar_lea.vmem %s16804_s7, %s8432_s26 }
 0x359   : > { %9255 = vmatpush3.bf16.xpose.msk.msra.mxu1 %vm12434_vm2, %v9253_v58 }
 0x35a   : > { %v10047_v42 = vpop.permute.xlu0 %10046  ;;  %v12450_v54 = vpop.permute.xlu1 %10061 }
 0x35b   : > { %17333 = vst [vmem:[#allocation110_spill] sm:$0xff] %v12450_v54  ;;  %v10049_v7 = vunpack.i.h.bf16 %v10047_v42  ;;  %v10048_v1 = vunpack.i.l.bf16 %v10047_v42 }
 0x35c   : > { %4491 = vrot.lane.b32.xlu0 %v11943_v48, %s11271_s10  ;;  %10246 = vrot.lane.b32.xlu1 %v12328_v53, %s11277_s16 }
 0x35d   : > { %v12456_v14 = vpack.c.bf16 %v10049_v7, %v10048_v1 }
 0x35e   : > { %v12458_v43 = vpop.permute.xlu0 %10051  ;;  %v12460_v16 = vpop.permute.xlu1 %10066 }
 0x35f   : > { %17334 = vst [vmem:[#allocation111_spill] sm:$0xff] %v12460_v16  ;;  %9324 = vmatpush1.bf16.msra.mxu0 %v12456_v14  ;;  %v9853_v16 = vunpack.i.l.bf16 %v12124_v33 }
 0x360   : > { %10231 = vrot.lane.b32.xlu0 %v12328_v53, %s11278_s17  ;;  %10256 = vrot.lane.b32.xlu1 %v12358_v40, %s11277_s16 }
 0x361   : > { %9325 = vmatprep.subr.bf16.mxu0 %v17279_v45 }
 0x362   : > { %v12468_v58 = vpop.permute.xlu0 %10056  ;;  %v12470_v42 = vpop.permute.xlu1 %2750 }
 0x363   : > { %17335 = vst [vmem:[#allocation112_spill] sm:$0xff] %v12468_v58  ;;  %17336 = vst [vmem:[#allocation113_spill] sm:$0xff] %v12470_v42 }
 0x364   : > { %4493 = vrot.lane.b32.xlu0 %v11956_v47, %s11271_s10  ;;  %10261 = vrot.lane.b32.xlu1 %v12042_v49, %s11278_s17 }
 0x366   : > { %v12476_v7 = vpop.permute.xlu0 %4477  ;;  %v12478_v1 = vpop.permute.xlu1 %2748 }
 0x367   : > { %17337 = vst [vmem:[#allocation114_spill] sm:$0xff] %v12476_v7  ;;  %17338 = vst [vmem:[#allocation115_spill] sm:$0xff] %v12478_v1  ;;  %v9854_v7 = vunpack.i.h.bf16 %v12124_v33 }
 0x368   : > { %4495 = vrot.lane.b32.xlu0 %v11953_v31, %s11271_s10  ;;  %10266 = vrot.lane.b32.xlu1 %v12386_v28, %s11277_s16 }
 0x36a   : > { %v12484_v53 = vpop.permute.xlu0 %4483  ;;  %v12486_v10 = vpop.permute.xlu1 %4481 }
 0x36b   : > { %17339 = vst [vmem:[#allocation116_spill] sm:$0xff] %v12484_v53  ;;  %17340 = vst [vmem:[#allocation117_spill] sm:$0xff] %v12486_v10 }
 0x36c   : > { %10251 = vrot.lane.b32.xlu0 %v12358_v40, %s11278_s17  ;;  %10276 = vrot.lane.b32.xlu1 %v12070_v32, %s11278_s17  ;;  %v9259_v32 = vpack.c.bf16 %v9854_v7, %v9853_v16 }
 0x36e   : > { %v10072_v49 = vpop.permute.xlu0 %10071  ;;  %v12492_v23 = vpop.permute.xlu1 %10096 }
 0x36f   : > { %17341 = vst [vmem:[#allocation118_spill] sm:$0xff] %v12492_v23  ;;  %v10074_v42 = vunpack.i.h.bf16 %v10072_v49  ;;  %v10073_v1 = vunpack.i.l.bf16 %v10072_v49 }
 0x370   : > { %4497 = vrot.lane.b32.xlu0 %v11966_v60, %s11271_s10  ;;  %2772 = vrot.lane.b32.xlu1 %v11994_v44, %s11272_s11 }
 0x371   : > { %v9256_v53 = vpack.c.bf16 %v10074_v42, %v10073_v1 }
 0x372   : > { %v10077_v40 = vpop.permute.xlu0 %10076  ;;  %v12500_v10 = vpop.permute.xlu1 %2754 }
 0x373   : > { %17342 = vst [vmem:[#allocation119_spill] sm:$0xff] %v12500_v10  ;;  %v10079_v30 = vunpack.i.h.bf16 %v10077_v40  ;;  %v10078_v54 = vunpack.i.l.bf16 %v10077_v40  ;;  %9258 = vmatprep.subr.msk.bf16.mxu1 %vm12434_vm2, %v9256_v53  ;;  %v9884_v53 = vunpack.i.h.bf16 %v12162_v59 }
 0x374   : > { %4499 = vrot.lane.b32.xlu0 %v11963_v34, %s11271_s10  ;;  %10281 = vrot.lane.b32.xlu1 %v12418_v51, %s11276_s15 }
 0x375   : > { %v12508_v49 = vpack.c.bf16 %v10079_v30, %v10078_v54  ;;  %9261 = vmatpush3.bf16.xpose.msk.msra.mxu1 %vm12434_vm2, %v9259_v32  ;;  %v9883_v32 = vunpack.i.l.bf16 %v12162_v59 }
 0x376   : > { %v12512_v33 = vpop.permute.xlu0 %10081  ;;  %v12514_v42 = vpop.permute.xlu1 %4487 }
 0x377   : > { %17343 = vst [vmem:[#allocation120_spill] sm:$0xff] %v12512_v33  ;;  %17344 = vst [vmem:[#allocation121_spill] sm:$0xff] %v12514_v42  ;;  %9327 = vmatpush1.bf16.msra.mxu0 %v12508_v49  ;;  %v9265_v42 = vpack.c.bf16 %v9884_v53, %v9883_v32  ;;  %v9914_v53 = vunpack.i.h.bf16 %v12210_v22  ;;  %v9913_v32 = vunpack.i.l.bf16 %v12210_v22 }
 0x378   : > { %10271 = vrot.lane.b32.xlu0 %v12386_v28, %s11278_s17  ;;  %10286 = vrot.lane.b32.xlu1 %v12418_v51, %s11277_s16 }
 0x379   : > { %9328 = vmatprep.subr.bf16.mxu0 %v17279_v45 }
 0x37a   : > { %v12522_v40 = vpop.permute.xlu0 %10086  ;;  %v10102_v30 = vpop.permute.xlu1 %10101 }
 0x37b   : > { %17345 = vst [vmem:[#allocation122_spill] sm:$0xff] %v12522_v40  ;;  %v10104_v54 = vunpack.i.h.bf16 %v10102_v30  ;;  %v10103_v16 = vunpack.i.l.bf16 %v10102_v30 }
 0x37c   : > { %4501 = vrot.lane.b32.xlu0 %v11976_v37, %s11271_s10  ;;  %4503 = vrot.lane.b32.xlu1 %v11973_v4, %s11271_s10 }
 0x37d   : > { %v9262_v7 = vpack.c.bf16 %v10104_v54, %v10103_v16 }
 0x37e   : > { %v12530_v1 = vpop.permute.xlu0 %10091  ;;  %v10107_v28 = vpop.permute.xlu1 %10106 }
 0x37f   : > { %17346 = vst [vmem:[#allocation123_spill] sm:$0xff] %v12530_v1  ;;  %v10109_v23 = vunpack.i.h.bf16 %v10107_v28  ;;  %v10108_v10 = vunpack.i.l.bf16 %v10107_v28  ;;  %9264 = vmatprep.subr.msk.bf16.mxu1 %vm12434_vm2, %v9262_v7 }
 0x380   : > { %10291 = vrot.lane.b32.xlu0 %v12418_v51, %s11278_s17  ;;  %4507 = vrot.lane.b32.xlu1 %v11991_v2, %s11271_s10 }
 0x381   : > { %v12538_v59 = vpack.c.bf16 %v10109_v23, %v10108_v10  ;;  %9267 = vmatpush3.bf16.xpose.msk.msra.mxu1 %vm12434_vm2, %v9265_v42 }
 0x382   : > { %v12542_v30 = vpop.permute.xlu0 %10111  ;;  %v12544_v54 = vpop.permute.xlu1 %2752 }
 0x383   : > { %17347 = vst [vmem:[#allocation124_spill] sm:$0xff] %v12542_v30  ;;  %17348 = vst [vmem:[#allocation125_spill] sm:$0xff] %v12544_v54  ;;  %9330 = vmatpush1.bf16.msra.mxu0 %v12538_v59  ;;  %v9271_v54 = vpack.c.bf16 %v9914_v53, %v9913_v32 }
 0x384   : > { %4505 = vrot.lane.b32.xlu0 %v11994_v44, %s11271_s10  ;;  %6180 = vrot.lane.b32.xlu1 %v11821_v11, %s11279_s18 }
 0x385   : > { %9331 = vmatprep.subr.bf16.mxu0 %v17279_v45 }
 0x386   : > { %v12552_v23 = vpop.permute.xlu0 %10116  ;;  %v12554_v10 = vpop.permute.xlu1 %10121 }
 0x387   : > { %17349 = vst [vmem:[#allocation126_spill] sm:$0xff] %v12552_v23  ;;  %17350 = vst [vmem:[#allocation127_spill] sm:$0xff] %v12554_v10 }
 0x388   : > { %10296 = vrot.lane.b32.xlu0 %v12108_v26, %s11278_s17 }
 0x38a   : > { %v12558_v28 = vpop.permute.xlu0 %4485  ;;  %v12560_v42 = vpop.permute.xlu1 %10126 }
 0x38b   : > { %17351 = vst [vmem:[#allocation128_spill] sm:$0xff] %v12558_v28  ;;  %17352 = vst [vmem:[#allocation129_spill] sm:$0xff] %v12560_v42 }
 0x38c   : > { %6178 = vrot.lane.b32.xlu0 %v11824_v6, %s11279_s18 }
 0x38e   : > { %v12566_v16 = vpop.permute.xlu0 %2758  ;;  %v10132_v7 = vpop.permute.xlu1 %10131 }
 0x38f   : > { %17353 = vst [vmem:[#allocation130_spill] sm:$0xff] %v12566_v16  ;;  %v10134_v51 = vunpack.i.h.bf16 %v10132_v7  ;;  %v10133_v1 = vunpack.i.l.bf16 %v10132_v7 }
 0x391   : > { %v9268_v10 = vpack.c.bf16 %v10134_v51, %v10133_v1 }
 0x392   : > { %v10137_v23 = vpop.permute.xlu0 %10136  ;;  %v12568_v26 = vpop.permute.xlu1 %2756 }
 0x393   : > { %17354 = vst [vmem:[#allocation131_spill] sm:$0xff] %v12568_v26  ;;  %v10139_v28 = vunpack.i.h.bf16 %v10137_v23  ;;  %v10138_v40 = vunpack.i.l.bf16 %v10137_v23  ;;  %9270 = vmatprep.subr.msk.bf16.mxu1 %vm12434_vm2, %v9268_v10  ;;  %v9944_v23 = vunpack.i.h.bf16 %v12260_v3  ;;  %v9943_v10 = vunpack.i.l.bf16 %v12260_v3 }
 0x394   : > { %9273 = vmatpush3.bf16.xpose.msk.msra.mxu1 %vm12434_vm2, %v9271_v54 }
 0x395   : > { %v12574_v42 = vpack.c.bf16 %v10139_v28, %v10138_v40  ;;  %v9277_v7 = vpack.c.bf16 %v9944_v23, %v9943_v10 }
 0x396   : > { %v12576_v22 = vpop.permute.xlu0 %10141  ;;  %v12578_v16 = vpop.permute.xlu1 %10151 }
 0x397   : > { %17355 = vst [vmem:[#allocation132_spill] sm:$0xff] %v12576_v22  ;;  %17356 = vst [vmem:[#allocation133_spill] sm:$0xff] %v12578_v16  ;;  %9333 = vmatpush1.bf16.msra.mxu0 %v12574_v42 }
 0x398   : > { %9334 = vmatprep.subr.bf16.mxu0 %v17279_v45 }
 0x39a   : > { %v12582_v51 = vpop.permute.xlu0 %10146  ;;  %v12584_v1 = vpop.permute.xlu1 %2762 }
 0x39b   : > { %17357 = vst [vmem:[#allocation134_spill] sm:$0xff] %v12582_v51  ;;  %17358 = vst [vmem:[#allocation135_spill] sm:$0xff] %v12584_v1 }
 0x39e   : > { %v12588_v53 = vpop.permute.xlu0 %4489  ;;  %v10157_v40 = vpop.permute.xlu1 %10156 }
 0x39f   : > { %17359 = vst [vmem:[#allocation136_spill] sm:$0xff] %v12588_v53  ;;  %v10159_v54 = vunpack.i.h.bf16 %v10157_v40  ;;  %v10158_v28 = vunpack.i.l.bf16 %v10157_v40 }
 0x3a1   : > { %v9274_v32 = vpack.c.bf16 %v10159_v54, %v10158_v28  ;;  %v9969_v28 = vunpack.i.h.bf16 %v12286_v38 }
 0x3a2   : > { %v12590_v16 = vpop.permute.xlu0 %10166  ;;  %v10162_v26 = vpop.permute.xlu1 %10161 }
 0x3a3   : > { %17360 = vst [vmem:[#allocation137_spill] sm:$0xff] %v12590_v16  ;;  %v10164_v58 = vunpack.i.h.bf16 %v10162_v26  ;;  %v10163_v22 = vunpack.i.l.bf16 %v10162_v26  ;;  %9276 = vmatprep.subr.msk.bf16.mxu1 %vm12434_vm2, %v9274_v32 }
 0x3a4   : > { %9279 = vmatpush3.bf16.xpose.msk.msra.mxu1 %vm12434_vm2, %v9277_v7 }
 0x3a5   : > { %v12596_v1 = vpack.c.bf16 %v10164_v58, %v10163_v22  ;;  %v9968_v58 = vunpack.i.l.bf16 %v12286_v38  ;;  %v9994_v38 = vunpack.i.h.bf16 %v12336_v29 }
 0x3a6   : > { %v12598_v3 = vpop.permute.xlu0 %10171  ;;  %v12600_v53 = vpop.permute.xlu1 %2760 }
 0x3a7   : > { %17361 = vst [vmem:[#allocation138_spill] sm:$0xff] %v12598_v3  ;;  %17362 = vst [vmem:[#allocation139_spill] sm:$0xff] %v12600_v53  ;;  %9336 = vmatpush1.bf16.msra.mxu0 %v12596_v1  ;;  %v9283_v51 = vpack.c.bf16 %v9969_v28, %v9968_v58 }
 0x3a8   : > { %9337 = vmatprep.subr.bf16.mxu0 %v17279_v45 }
 0x3aa   : > { %v10182_v23 = vpop.permute.xlu0 %10181  ;;  %v12604_v10 = vpop.permute.xlu1 %2766 }
 0x3ab   : > { %17363 = vst [vmem:[#allocation140_spill] sm:$0xff] %v12604_v10  ;;  %v10184_v26 = vunpack.i.h.bf16 %v10182_v23  ;;  %v10183_v40 = vunpack.i.l.bf16 %v10182_v23 }
 0x3ad   : > { %v12606_v54 = vpack.c.bf16 %v10184_v26, %v10183_v40  ;;  %v9993_v26 = vunpack.i.l.bf16 %v12336_v29 }
 0x3ae   : > { %v12610_v22 = vpop.permute.xlu0 %10186  ;;  %v10177_v32 = vpop.permute.xlu1 %10176 }
 0x3af   : > { %17364 = vst [vmem:[#allocation141_spill] sm:$0xff] %v12610_v22  ;;  %v10179_v7 = vunpack.i.h.bf16 %v10177_v32  ;;  %v10178_v53 = vunpack.i.l.bf16 %v10177_v32  ;;  %9339 = vmatpush1.bf16.msra.mxu0 %v12606_v54  ;;  %v9289_v58 = vpack.c.bf16 %v9994_v38, %v9993_v26 }
 0x3b0   : > { %9340 = vmatprep.subr.bf16.mxu0 %v17279_v45 }
 0x3b1   : > { %v9280_v3 = vpack.c.bf16 %v10179_v7, %v10178_v53 }
 0x3b2   : > { %v12614_v10 = vpop.permute.xlu0 %10191  ;;  %v12616_v23 = vpop.permute.xlu1 %2764 }
 0x3b3   : > { %17365 = vst [vmem:[#allocation142_spill] sm:$0xff] %v12614_v10  ;;  %17366 = vst [vmem:[#allocation143_spill] sm:$0xff] %v12616_v23  ;;  %9282 = vmatprep.subr.msk.bf16.mxu1 %vm12434_vm2, %v9280_v3 }
 0x3b4   : > { %9285 = vmatpush3.bf16.xpose.msk.msra.mxu1 %vm12434_vm2, %v9283_v51 }
 0x3b6   : > { %v12624_v40 = vpop.permute.xlu0 %2770  ;;  %v10197_v32 = vpop.permute.xlu1 %10196 }
 0x3b7   : > { %17367 = vst [vmem:[#allocation144_spill] sm:$0xff] %v12624_v40  ;;  %v10199_v22 = vunpack.i.h.bf16 %v10197_v32  ;;  %v10198_v53 = vunpack.i.l.bf16 %v10197_v32 }
 0x3b9   : > { %v9286_v28 = vpack.c.bf16 %v10199_v22, %v10198_v53  ;;  %v10019_v22 = vunpack.i.h.bf16 %v12374_v15 }
 0x3ba   : > { %v12626_v7 = vpop.permute.xlu0 %10206  ;;  %v10202_v23 = vpop.permute.xlu1 %10201 }
 0x3bb   : > { %17368 = vst [vmem:[#allocation145_spill] sm:$0xff] %v12626_v7  ;;  %v10204_v10 = vunpack.i.h.bf16 %v10202_v23  ;;  %v10203_v16 = vunpack.i.l.bf16 %v10202_v23  ;;  %9288 = vmatprep.subr.msk.bf16.mxu1 %vm12434_vm2, %v9286_v28  ;;  %v10018_v23 = vunpack.i.l.bf16 %v12374_v15 }
 0x3bc   : > { %9291 = vmatpush3.bf16.xpose.msk.msra.mxu1 %vm12434_vm2, %v9289_v58  ;;  %v10053_v58 = vunpack.i.l.bf16 %v12458_v43 }
 0x3bd   : > { %v12632_v51 = vpack.c.bf16 %v10204_v10, %v10203_v16  ;;  %v9295_v16 = vpack.c.bf16 %v10019_v22, %v10018_v23  ;;  %v10054_v10 = vunpack.i.h.bf16 %v12458_v43 }
 0x3be   : > { %v12634_v29 = vpop.permute.xlu0 %10211  ;;  %v12636_v3 = vpop.permute.xlu1 %2768 }
 0x3bf   : > { %17369 = vst [vmem:[#allocation146_spill] sm:$0xff] %v12634_v29  ;;  %17370 = vst [vmem:[#allocation147_spill] sm:$0xff] %v12636_v3  ;;  %9342 = vmatpush1.bf16.msra.mxu0 %v12632_v51 }
 0x3c0   : > { %9343 = vmatprep.subr.bf16.mxu0 %v17279_v45 }
 0x3c2   : > { %v12642_v38 = vpop.permute.xlu0 %2774  ;;  %v10217_v26 = vpop.permute.xlu1 %10216 }
 0x3c3   : > { %17371 = vst [vmem:[#allocation148_spill] sm:$0xff] %v12642_v38  ;;  %v10219_v32 = vunpack.i.h.bf16 %v10217_v26  ;;  %v10218_v53 = vunpack.i.l.bf16 %v10217_v26  ;;  %v9346_v26 = vpack.c.bf16 %v10054_v10, %v10053_v58 }
 0x3c5   : > { %v9292_v28 = vpack.c.bf16 %v10219_v32, %v10218_v53 }
 0x3c6   : > { %v10222_v40 = vpop.permute.xlu0 %10221 }
 0x3c7   : > { %v10224_v3 = vunpack.i.h.bf16 %v10222_v40  ;;  %v10223_v29 = vunpack.i.l.bf16 %v10222_v40  ;;  %9294 = vmatprep.subr.msk.bf16.mxu1 %vm12434_vm2, %v9292_v28 }
 0x3c8   : > { %9297 = vmatpush3.bf16.xpose.msk.msra.mxu1 %vm12434_vm2, %v9295_v16 }
 0x3c9   : > { %v12650_v15 = vpack.c.bf16 %v10224_v3, %v10223_v29  ;;  %9634 = vmatprep.subr.bf16.mxu1 %v17279_v45 }
 0x3cb   : > { %9345 = vmatpush1.bf16.msra.mxu0 %v12650_v15 }
 0x3cc   : > { %9348 = vmatprep.subr.msk.bf16.mxu0 %vm12434_vm2, %v9346_v26 }
 0x3cf   : > { %8503 = vmatmul.mubr.msk.f32.vlgmr.msra.gmra.mrb[0].mxu1 %vm1107_vm1, %v11824_v6  ;;  %v17373_v6 = vld [vmem:[#allocation18_spill] sm:$0xff] }
 0x3d0   : > { %8504 = vmatprep.mubr.msk.f32.mxu1 %vm1107_vm1, %v11821_v11  ;;  %9650 = vmatpush1.bf16.msra.mxu1 %v12082_v5 }
 0x3d1   : > { %9635 = vmatprep.subr.bf16.mxu1 %v17279_v45 }
 0x3d3   : > { %8505 = vmatmul.mubr.msk.f32.gmra.mrb[2].mxu1 %vm1107_vm1, %v11821_v11  ;;  %v17372_v11 = vld [vmem:[#allocation20_spill] sm:$0xff] }
 0x3d4   : > { %8506 = vmatprep.mubr.msk.f32.mxu1 %vm1107_vm1, %v11866_v55  ;;  %9651 = vmatpush1.bf16.msra.mxu1 %v12136_v8 }
 0x3d5   : > { %9636 = vmatprep.subr.bf16.mxu1 %v17279_v45 }
 0x3d7   : > { %8507 = vmatmul.mubr.msk.f32.gmra.mrb[4].mxu1 %vm1107_vm1, %v11866_v55 }
 0x3d8   : > { %8508 = vmatprep.mubr.msk.f32.mxu1 %vm1107_vm1, %v11863_v52  ;;  %9652 = vmatpush1.bf16.msra.mxu1 %v12174_v25  ;;  %v17374_v25 = vld [vmem:[#allocation22_spill] sm:$0xff] }
 0x3d9   : > { %9637 = vmatprep.subr.bf16.mxu1 %v17279_v45 }
 0x3db   : > { %8509 = vmatmul.mubr.msk.f32.gmra.mrb[6].mxu1 %vm1107_vm1, %v11863_v52 }
 0x3dc   : > { %8510 = vmatprep.mubr.msk.f32.mxu1 %vm1107_vm1, %v11916_v9  ;;  %9653 = vmatpush1.bf16.msra.mxu1 %v12220_v18 }
 0x3dd   : > { %9638 = vmatprep.subr.bf16.mxu1 %v17279_v45 }
 0x3df   : > { %8511 = vmatmul.mubr.msk.f32.gmra.mrb[8].mxu1 %vm1107_vm1, %v11916_v9 }
 0x3e0   : > { %8512 = vmatprep.mubr.msk.f32.mxu1 %vm1107_vm1, %v11913_v35  ;;  %9654 = vmatpush1.bf16.msra.mxu1 %v12266_v50 }
 0x3e1   : > { %9639 = vmatprep.subr.bf16.mxu1 %v17279_v45 }
 0x3e3   : > { %8513 = vmatmul.mubr.msk.f32.gmra.mrb[10].mxu1 %vm1107_vm1, %v11913_v35 }
 0x3e4   : > { %8514 = vmatprep.mubr.msk.f32.mxu1 %vm1107_vm1, %v11988_v41  ;;  %9655 = vmatpush1.bf16.msra.mxu1 %v12320_v46 }
 0x3e5   : > { %9640 = vmatprep.subr.bf16.mxu1 %v17279_v45 }
 0x3e7   : > { %8515 = vmatmul.mubr.msk.f32.gmra.mrb[12].mxu1 %vm1107_vm1, %v11988_v41 }
 0x3e8   : > { %8516 = vmatprep.mubr.msk.f32.mxu1 %vm1107_vm1, %v11984_v13  ;;  %9656 = vmatpush1.bf16.msra.mxu1 %v12350_v17 }
 0x3e9   : > { %9641 = vmatprep.subr.bf16.mxu1 %v17279_v45 }
 0x3eb   : > { %8517 = vmatmul.mubr.msk.f32.gmra.mrb[14].mxu1 %vm1107_vm1, %v11984_v13 }
 0x3ec   : > { %8518 = vmatprep.mubr.msk.f32.mxu1 %vm1107_vm1, %v11856_v19  ;;  %9657 = vmatpush1.bf16.msra.mxu1 %v12392_v36 }
 0x3ed   : > { %9642 = vmatprep.subr.bf16.mxu1 %v17279_v45 }
 0x3ef   : > { %8519 = vmatmul.mubr.msk.f32.gmra.mrb[16].mxu1 %vm1107_vm1, %v11856_v19 }
 0x3f0   : > { %8520 = vmatprep.mubr.msk.f32.mxu1 %vm1107_vm1, %v11853_v24  ;;  %9658 = vmatpush1.bf16.msra.mxu1 %v12456_v14 }
 0x3f1   : > { %9643 = vmatprep.subr.bf16.mxu1 %v17279_v45 }
 0x3f3   : > { %8521 = vmatmul.mubr.msk.f32.gmra.mrb[18].mxu1 %vm1107_vm1, %v11853_v24 }
 0x3f4   : > { %8522 = vmatprep.mubr.msk.f32.mxu1 %vm1107_vm1, %v11872_v39  ;;  %9659 = vmatpush1.bf16.msra.mxu1 %v12508_v49 }
 0x3f5   : > { %9644 = vmatprep.subr.bf16.mxu1 %v17279_v45 }
 0x3f7   : > { %8523 = vmatmul.mubr.msk.f32.gmra.mrb[20].mxu1 %vm1107_vm1, %v11872_v39 }
 0x3f8   : > { %8524 = vmatprep.mubr.msk.f32.mxu1 %vm1107_vm1, %v11869_v57  ;;  %9660 = vmatpush1.bf16.msra.mxu1 %v12538_v59 }
 0x3f9   : > { %9645 = vmatprep.subr.bf16.mxu1 %v17279_v45 }
 0x3fb   : > { %8525 = vmatmul.mubr.msk.f32.gmra.mrb[22].mxu1 %vm1107_vm1, %v11869_v57 }
 0x3fc   : > { %8526 = vmatprep.mubr.msk.f32.mxu1 %vm1107_vm1, %v11886_v63  ;;  %9661 = vmatpush1.bf16.msra.mxu1 %v12574_v42 }
 0x3fd   : > { %9646 = vmatprep.subr.bf16.mxu1 %v17279_v45 }
 0x3ff   : > { %8527 = vmatmul.mubr.msk.f32.gmra.mrb[24].mxu1 %vm1107_vm1, %v11886_v63 }
 0x400   : > { %8528 = vmatprep.mubr.msk.f32.mxu1 %vm1107_vm1, %v11879_v62  ;;  %9662 = vmatpush1.bf16.msra.mxu1 %v12596_v1 }
 0x401   : > { %9647 = vmatprep.subr.bf16.mxu1 %v17279_v45 }
 0x403   : > { %8529 = vmatmul.mubr.msk.f32.gmra.mrb[26].mxu1 %vm1107_vm1, %v11879_v62 }
 0x404   : > { %8530 = vmatprep.mubr.msk.f32.mxu1 %vm1107_vm1, %v11896_v61  ;;  %9663 = vmatpush1.bf16.msra.mxu1 %v12606_v54 }
 0x405   : > { %9648 = vmatprep.subr.bf16.mxu1 %v17279_v45 }
 0x407   : > { %8531 = vmatmul.mubr.msk.f32.gmra.mrb[28].mxu1 %vm1107_vm1, %v11896_v61 }
 0x408   : > { %8532 = vmatprep.mubr.msk.f32.mxu1 %vm1107_vm1, %v11893_v12  ;;  %9664 = vmatpush1.bf16.msra.mxu1 %v12632_v51 }
 0x409   : > { %9649 = vmatprep.subr.bf16.mxu1 %v17279_v45 }
 0x40b   : > { %8533 = vmatmul.mubr.msk.f32.gmra.mrb[30].mxu1 %vm1107_vm1, %v11893_v12  ;;  %v12927_v12 = vpop.permute.xlu1 %10236 }
 0x40c   : > { %8534 = vmatprep.mubr.msk.f32.mxu1 %vm1107_vm1, %v11906_v27  ;;  %9665 = vmatpush1.bf16.msra.mxu1 %v12650_v15  ;;  %17376 = vst [vmem:[#allocation150_spill] sm:$0xff] %v12927_v12 }
 0x40f   : > { %8535 = vmatmul.mubr.msk.f32.gmra.mrb[32].mxu1 %vm1107_vm1, %v11906_v27  ;;  %v12941_v19 = vpop.permute.xlu1 %10241 }
 0x410   : > { %8536 = vmatprep.mubr.msk.f32.mxu1 %vm1107_vm1, %v11903_v0  ;;  %17378 = vst [vmem:[#allocation152_spill] sm:$0xff] %v12941_v19 }
 0x413   : > { %8537 = vmatmul.mubr.msk.f32.gmra.mrb[34].mxu1 %vm1107_vm1, %v11903_v0 }
 0x414   : > { %8538 = vmatprep.mubr.msk.f32.mxu1 %vm1107_vm1, %v11922_v21 }
 0x417   : > { %8539 = vmatmul.mubr.msk.f32.gmra.mrb[36].mxu1 %vm1107_vm1, %v11922_v21 }
 0x418   : > { %8540 = vmatprep.mubr.msk.f32.mxu1 %vm1107_vm1, %v11919_v20 }
 0x41b   : > { %8541 = vmatmul.mubr.msk.f32.gmra.mrb[38].mxu1 %vm1107_vm1, %v11919_v20 }
 0x41c   : > { %8542 = vmatprep.mubr.msk.f32.mxu1 %vm1107_vm1, %v17372_v11 }
 0x41f   : > { %8543 = vmatmul.mubr.msk.f32.gmra.mrb[40].mxu1 %vm1107_vm1, %v17372_v11 }
 0x420   : > { %8544 = vmatprep.mubr.msk.f32.mxu1 %vm1107_vm1, %v17373_v6 }
 0x423   : > { %8545 = vmatmul.mubr.msk.f32.gmra.mrb[42].mxu1 %vm1107_vm1, %v17373_v6 }
 0x424   : > { %8546 = vmatprep.mubr.msk.f32.mxu1 %vm1107_vm1, %v17374_v25 }
 0x427   : > { %8547 = vmatmul.mubr.msk.f32.gmra.mrb[44].mxu1 %vm1107_vm1, %v17374_v25 }
 0x428   : > { %8548 = vmatprep.mubr.msk.f32.mxu1 %vm1107_vm1, %v11943_v48 }
 0x42b   : > { %8549 = vmatmul.mubr.msk.f32.gmra.mrb[46].mxu1 %vm1107_vm1, %v11943_v48 }
 0x42c   : > { %8550 = vmatprep.mubr.msk.f32.mxu1 %vm1107_vm1, %v11956_v47 }
 0x42f   : > { %8551 = vmatmul.mubr.msk.f32.gmra.mrb[48].mxu1 %vm1107_vm1, %v11956_v47 }
 0x430   : > { %8552 = vmatprep.mubr.msk.f32.mxu1 %vm1107_vm1, %v11953_v31 }
 0x433   : > { %8553 = vmatmul.mubr.msk.f32.gmra.mrb[50].mxu1 %vm1107_vm1, %v11953_v31 }
 0x434   : > { %8554 = vmatprep.mubr.msk.f32.mxu1 %vm1107_vm1, %v11966_v60 }
 0x437   : > { %8555 = vmatmul.mubr.msk.f32.gmra.mrb[52].mxu1 %vm1107_vm1, %v11966_v60 }
 0x438   : > { %8556 = vmatprep.mubr.msk.f32.mxu1 %vm1107_vm1, %v11963_v34 }
 0x43b   : > { %8557 = vmatmul.mubr.msk.f32.gmra.mrb[54].mxu1 %vm1107_vm1, %v11963_v34 }
 0x43c   : > { %8558 = vmatprep.mubr.msk.f32.mxu1 %vm1107_vm1, %v11976_v37 }
 0x43f   : > { %8559 = vmatmul.mubr.msk.f32.gmra.mrb[56].mxu1 %vm1107_vm1, %v11976_v37 }
 0x440   : > { %8560 = vmatprep.mubr.msk.f32.mxu1 %vm1107_vm1, %v11973_v4 }
 0x443   : > { %8561 = vmatmul.mubr.msk.f32.gmra.mrb[58].mxu1 %vm1107_vm1, %v11973_v4 }
 0x444   : > { %8562 = vmatprep.mubr.msk.f32.mxu1 %vm1107_vm1, %v11994_v44 }
 0x447   : > { %8563 = vmatmul.mubr.msk.f32.gmra.mrb[60].mxu1 %vm1107_vm1, %v11994_v44 }
 0x448   : > { %8564 = vmatprep.mubr.msk.f32.mxu1 %vm1107_vm1, %v11991_v2 }
 0x44b   : > { %8565 = vmatmul.mubr.msk.f32.gmra.mrb[62].mxu1 %vm1107_vm1, %v11991_v2 }
 0x4a2   : > { %v1302_v50 = vpop.f32.mrb[0].mxu1 }
 0x4a3   : > { %v12813_v5 = vmul.f32 0.35355338, %v1302_v50  ;;  %v1304_v17 = vpop.f32.mrb[1].mxu1 }
 0x4a4   : > { %v12815_v18 = vmul.f32 0.35355338, %v1304_v17 }
 0x4a6   : > { %v1557_v8 = vmax.f32 %v12813_v5, %v12815_v18  ;;  %v1308_v46 = vpop.f32.mrb[2].mxu1 }
 0x4a7   : > { %v12819_v36 = vmul.f32 0.35355338, %v1308_v46  ;;  %v1310_v14 = vpop.f32.mrb[3].mxu1 }
 0x4a8   : > { %v12821_v43 = vmul.f32 0.35355338, %v1310_v14  ;;  %1558 = vmax.xlane.f32.xlu1 %v1557_v8 }
 0x4aa   : > { %v1560_v49 = vmax.f32 %v12819_v36, %v12821_v43  ;;  %v1314_v59 = vpop.f32.mrb[4].mxu1 }
 0x4ab   : > { %v12825_v42 = vmul.f32 0.35355338, %v1314_v59  ;;  %v1316_v1 = vpop.f32.mrb[5].mxu1 }
 0x4ac   : > { %v12827_v54 = vmul.f32 0.35355338, %v1316_v1  ;;  %1561 = vmax.xlane.f32.xlu0 %v1560_v49 }
 0x4ae   : > { %v1563_v40 = vmax.f32 %v12825_v42, %v12827_v54  ;;  %v1320_v51 = vpop.f32.mrb[6].mxu1 }
 0x4af   : > { %v12831_v29 = vmul.f32 0.35355338, %v1320_v51  ;;  %v1322_v3 = vpop.f32.mrb[7].mxu1 }
 0x4b0   : > { %v12833_v22 = vmul.f32 0.35355338, %v1322_v3  ;;  %1564 = vmax.xlane.f32.xlu0 %v1563_v40 }
 0x4b2   : > { %v1566_v23 = vmax.f32 %v12831_v29, %v12833_v22  ;;  %v1326_v32 = vpop.f32.mrb[8].mxu1 }
 0x4b3   : > { %v12837_v53 = vmul.f32 0.35355338, %v1326_v32  ;;  %v1328_v28 = vpop.f32.mrb[9].mxu1 }
 0x4b4   : > { %v12839_v16 = vmul.f32 0.35355338, %v1328_v28  ;;  %1567 = vmax.xlane.f32.xlu1 %v1566_v23 }
 0x4b6   : > { %v1569_v10 = vmax.f32 %v12837_v53, %v12839_v16  ;;  %v1332_v58 = vpop.f32.mrb[10].mxu1 }
 0x4b7   : > { %v12843_v15 = vmul.f32 0.35355338, %v1332_v58  ;;  %v1334_v26 = vpop.f32.mrb[11].mxu1 }
 0x4b8   : > { %v12845_v50 = vmul.f32 0.35355338, %v1334_v26  ;;  %1570 = vmax.xlane.f32.xlu0 %v1569_v10 }
 0x4ba   : > { %v1572_v17 = vmax.f32 %v12843_v15, %v12845_v50  ;;  %v1338_v8 = vpop.f32.mrb[12].mxu1 }
 0x4bb   : > { %v12849_v46 = vmul.f32 0.35355338, %v1338_v8  ;;  %v1340_v14 = vpop.f32.mrb[13].mxu1 }
 0x4bc   : > { %v12851_v49 = vmul.f32 0.35355338, %v1340_v14  ;;  %1573 = vmax.xlane.f32.xlu1 %v1572_v17 }
 0x4be   : > { %v1575_v59 = vmax.f32 %v12849_v46, %v12851_v49  ;;  %v1344_v1 = vpop.f32.mrb[14].mxu1 }
 0x4bf   : > { %v12855_v40 = vmul.f32 0.35355338, %v1344_v1  ;;  %v1346_v51 = vpop.f32.mrb[15].mxu1 }
 0x4c0   : > { %v12857_v3 = vmul.f32 0.35355338, %v1346_v51  ;;  %1576 = vmax.xlane.f32.xlu0 %v1575_v59 }
 0x4c2   : > { %v1578_v23 = vmax.f32 %v12855_v40, %v12857_v3  ;;  %v1350_v32 = vpop.f32.mrb[16].mxu1 }
 0x4c3   : > { %v12861_v28 = vmul.f32 0.35355338, %v1350_v32  ;;  %v1352_v10 = vpop.f32.mrb[17].mxu1 }
 0x4c4   : > { %v12863_v58 = vmul.f32 0.35355338, %v1352_v10  ;;  %1579 = vmax.xlane.f32.xlu1 %v1578_v23 }
 0x4c6   : > { %v1581_v26 = vmax.f32 %v12861_v28, %v12863_v58  ;;  %v1356_v17 = vpop.f32.mrb[18].mxu1 }
 0x4c7   : > { %v12867_v8 = vmul.f32 0.35355338, %v1356_v17  ;;  %v1358_v14 = vpop.f32.mrb[19].mxu1 }
 0x4c8   : > { %v12869_v1 = vmul.f32 0.35355338, %v1358_v14  ;;  %1582 = vmax.xlane.f32.xlu0 %v1581_v26 }
 0x4ca   : > { %v1584_v59 = vmax.f32 %v12867_v8, %v12869_v1  ;;  %v1362_v51 = vpop.f32.mrb[20].mxu1 }
 0x4cb   : > { %v12873_v32 = vmul.f32 0.35355338, %v1362_v51  ;;  %v1364_v44 = vpop.f32.mrb[21].mxu1 }
 0x4cc   : > { %v12875_v10 = vmul.f32 0.35355338, %v1364_v44  ;;  %1585 = vmax.xlane.f32.xlu1 %v1584_v59 }
 0x4ce   : > { %v1587_v23 = vmax.f32 %v12873_v32, %v12875_v10  ;;  %v1368_v4 = vpop.f32.mrb[22].mxu1 }
 0x4cf   : > { %v12879_v17 = vmul.f32 0.35355338, %v1368_v4  ;;  %v1370_v37 = vpop.f32.mrb[23].mxu1 }
 0x4d0   : > { %v12881_v14 = vmul.f32 0.35355338, %v1370_v37  ;;  %1588 = vmax.xlane.f32.xlu0 %v1587_v23 }
 0x4d2   : > { %v1590_v26 = vmax.f32 %v12879_v17, %v12881_v14  ;;  %v1374_v34 = vpop.f32.mrb[24].mxu1 }
 0x4d3   : > { %v12885_v51 = vmul.f32 0.35355338, %v1374_v34  ;;  %v1376_v31 = vpop.f32.mrb[25].mxu1 }
 0x4d4   : > { %v12887_v44 = vmul.f32 0.35355338, %v1376_v31  ;;  %1591 = vmax.xlane.f32.xlu1 %v1590_v26 }
 0x4d6   : > { %v1593_v59 = vmax.f32 %v12885_v51, %v12887_v44  ;;  %v1380_v47 = vpop.f32.mrb[26].mxu1 }
 0x4d7   : > { %v12891_v4 = vmul.f32 0.35355338, %v1380_v47  ;;  %v1382_v48 = vpop.f32.mrb[27].mxu1 }
 0x4d8   : > { %v12893_v37 = vmul.f32 0.35355338, %v1382_v48  ;;  %1594 = vmax.xlane.f32.xlu0 %v1593_v59 }
 0x4da   : > { %v1596_v23 = vmax.f32 %v12891_v4, %v12893_v37  ;;  %v1386_v2 = vpop.f32.mrb[28].mxu1 }
 0x4db   : > { %v12897_v34 = vmul.f32 0.35355338, %v1386_v2  ;;  %v1388_v25 = vpop.f32.mrb[29].mxu1 }
 0x4dc   : > { %v12899_v31 = vmul.f32 0.35355338, %v1388_v25  ;;  %1597 = vmax.xlane.f32.xlu1 %v1596_v23 }
 0x4de   : > { %v1599_v26 = vmax.f32 %v12897_v34, %v12899_v31  ;;  %v1392_v60 = vpop.f32.mrb[30].mxu1 }
 0x4df   : > { %v12903_v47 = vmul.f32 0.35355338, %v1392_v60  ;;  %v1394_v11 = vpop.f32.mrb[31].mxu1 }
 0x4e0   : > { %v12905_v48 = vmul.f32 0.35355338, %v1394_v11  ;;  %1600 = vmax.xlane.f32.xlu1 %v1599_v26  ;;  %v12919_v26 = vpop.permute.xlu0 %10226 }
 0x4e1   : > { %17375 = vst [vmem:[#allocation149_spill] sm:$0xff] %v12919_v26 }
 0x4e2   : > { %v1602_v59 = vmax.f32 %v12903_v47, %v12905_v48  ;;  %v1398_v6 = vpop.f32.mrb[32].mxu1 }
 0x4e3   : > { %v12909_v2 = vmul.f32 0.35355338, %v1398_v6  ;;  %v1400_v21 = vpop.f32.mrb[33].mxu1 }
 0x4e4   : > { %v12911_v25 = vmul.f32 0.35355338, %v1400_v21  ;;  %1603 = vmax.xlane.f32.xlu0 %v1602_v59  ;;  %v12933_v62 = vpop.permute.xlu0 %4491 }
 0x4e5   : > { %17377 = vst [vmem:[#allocation151_spill] sm:$0xff] %v12933_v62 }
 0x4e6   : > { %v1605_v23 = vmax.f32 %v12909_v2, %v12911_v25  ;;  %v1404_v20 = vpop.f32.mrb[34].mxu1 }
 0x4e7   : > { %v12915_v60 = vmul.f32 0.35355338, %v1404_v20  ;;  %v1406_v27 = vpop.f32.mrb[35].mxu1 }
 0x4e8   : > { %v12917_v11 = vmul.f32 0.35355338, %v1406_v27  ;;  %1606 = vmax.xlane.f32.xlu1 %v1605_v23 }
 0x4ea   : > { %v1608_v6 = vmax.f32 %v12915_v60, %v12917_v11  ;;  %v1410_v0 = vpop.f32.mrb[36].mxu1 }
 0x4eb   : > { %v12923_v61 = vmul.f32 0.35355338, %v1410_v0  ;;  %v1412_v21 = vpop.f32.mrb[37].mxu1 }
 0x4ec   : > { %v12925_v59 = vmul.f32 0.35355338, %v1412_v21  ;;  %1609 = vmax.xlane.f32.xlu1 %v1608_v6 }
 0x4ee   : > { %v1611_v20 = vmax.f32 %v12923_v61, %v12925_v59  ;;  %v1416_v27 = vpop.f32.mrb[38].mxu1 }
 0x4ef   : > { %v12931_v63 = vmul.f32 0.35355338, %v1416_v27  ;;  %v1418_v23 = vpop.f32.mrb[39].mxu1  ;;  %v12945_v27 = vpop.permute.xlu0 %10231 }
 0x4f0   : > { %v12935_v39 = vmul.f32 0.35355338, %v1418_v23  ;;  %1612 = vmax.xlane.f32.xlu0 %v1611_v20  ;;  %17379 = vst [vmem:[#allocation153_spill] sm:$0xff] %v12945_v27 }
 0x4f2   : > { %v1614_v0 = vmax.f32 %v12931_v63, %v12935_v39  ;;  %v1422_v21 = vpop.f32.mrb[40].mxu1 }
 0x4f3   : > { %v12939_v57 = vmul.f32 0.35355338, %v1422_v21  ;;  %v1424_v6 = vpop.f32.mrb[41].mxu1  ;;  %v12953_v21 = vpop.permute.xlu1 %10246 }
 0x4f4   : > { %v12943_v24 = vmul.f32 0.35355338, %v1424_v6  ;;  %1615 = vmax.xlane.f32.xlu1 %v1614_v0  ;;  %17380 = vst [vmem:[#allocation154_spill] sm:$0xff] %v12953_v21  ;;  %v12959_v27 = vpop.permute.xlu0 %4493 }
 0x4f5   : > { %17381 = vst [vmem:[#allocation155_spill] sm:$0xff] %v12959_v27 }
 0x4f6   : > { %v1617_v41 = vmax.f32 %v12939_v57, %v12943_v24  ;;  %v1428_v23 = vpop.f32.mrb[42].mxu1 }
 0x4f7   : > { %v12949_v13 = vmul.f32 0.35355338, %v1428_v23  ;;  %v1430_v20 = vpop.f32.mrb[43].mxu1  ;;  %v12967_v21 = vpop.permute.xlu1 %10256 }
 0x4f8   : > { %v12951_v62 = vmul.f32 0.35355338, %v1430_v20  ;;  %1618 = vmax.xlane.f32.xlu1 %v1617_v41  ;;  %17382 = vst [vmem:[#allocation156_spill] sm:$0xff] %v12967_v21 }
 0x4fa   : > { %v1620_v19 = vmax.f32 %v12949_v13, %v12951_v62  ;;  %v1434_v6 = vpop.f32.mrb[44].mxu1 }
 0x4fb   : > { %v12957_v38 = vmul.f32 0.35355338, %v1434_v6  ;;  %v1436_v0 = vpop.f32.mrb[45].mxu1  ;;  %v12971_v6 = vpop.permute.xlu0 %4495 }
 0x4fc   : > { %v12961_v12 = vmul.f32 0.35355338, %v1436_v0  ;;  %1621 = vmax.xlane.f32.xlu1 %v1620_v19  ;;  %17383 = vst [vmem:[#allocation157_spill] sm:$0xff] %v12971_v6 }
 0x4fe   : > { %v1623_v23 = vmax.f32 %v12957_v38, %v12961_v12  ;;  %v1440_v20 = vpop.f32.mrb[46].mxu1 }
 0x4ff   : > { %v12965_v45 = vmul.f32 0.35355338, %v1440_v20  ;;  %v1442_v41 = vpop.f32.mrb[47].mxu1  ;;  %v12979_v20 = vpop.permute.xlu1 %10261 }
 0x500   : > { %v12969_v26 = vmul.f32 0.35355338, %v1442_v41  ;;  %1624 = vmax.xlane.f32.xlu1 %v1623_v23  ;;  %17386 = vst [vmem:[#allocation160_spill] sm:$0xff] %v12979_v20  ;;  %v12985_v6 = vpop.permute.xlu0 %10251 }
 0x501   : > { %17388 = vst [vmem:[#allocation162_spill] sm:$0xff] %v12985_v6 }
 0x502   : > { %v1626_v27 = vmax.f32 %v12965_v45, %v12969_v26  ;;  %v1446_v0 = vpop.f32.mrb[48].mxu1 }
 0x503   : > { %v12975_v7 = vmul.f32 0.35355338, %v1446_v0  ;;  %v1448_v19 = vpop.f32.mrb[49].mxu1  ;;  %v12993_v20 = vpop.permute.xlu1 %10266 }
 0x504   : > { %v12977_v30 = vmul.f32 0.35355338, %v1448_v19  ;;  %1627 = vmax.xlane.f32.xlu0 %v1626_v27  ;;  %17391 = vst [vmem:[#allocation165_spill] sm:$0xff] %v12993_v20 }
 0x505   : > { %17384 = vst [vmem:[#allocation158_spill] sm:$0xff] %v12975_v7 }
 0x506   : > { %17385 = vst [vmem:[#allocation159_spill] sm:$0xff] %v12977_v30  ;;  %v1629_v21 = vmax.f32 %v12975_v7, %v12977_v30  ;;  %v1452_v41 = vpop.f32.mrb[50].mxu1 }
 0x507   : > { %v12983_v56 = vmul.f32 0.35355338, %v1452_v41  ;;  %v1454_v23 = vpop.f32.mrb[51].mxu1  ;;  %v12997_v41 = vpop.permute.xlu0 %4497 }
 0x508   : > { %v12987_v33 = vmul.f32 0.35355338, %v1454_v23  ;;  %1630 = vmax.xlane.f32.xlu0 %v1629_v21  ;;  %17393 = vst [vmem:[#allocation167_spill] sm:$0xff] %v12997_v41 }
 0x509   : > { %17387 = vst [vmem:[#allocation161_spill] sm:$0xff] %v12983_v56 }
 0x50a   : > { %17389 = vst [vmem:[#allocation163_spill] sm:$0xff] %v12987_v33  ;;  %v1632_v0 = vmax.f32 %v12983_v56, %v12987_v33  ;;  %v1458_v19 = vpop.f32.mrb[52].mxu1 }
 0x50b   : > { %v12991_v9 = vmul.f32 0.35355338, %v1458_v19  ;;  %v1460_v27 = vpop.f32.mrb[53].mxu1  ;;  %v13005_v19 = vpop.permute.xlu1 %10276 }
 0x50c   : > { %v12995_v35 = vmul.f32 0.35355338, %v1460_v27  ;;  %1633 = vmax.xlane.f32.xlu0 %v1632_v0  ;;  %17396 = vst [vmem:[#allocation170_spill] sm:$0xff] %v13005_v19  ;;  %v13011_v41 = vpop.permute.xlu0 %4499 }
 0x50d   : > { %17390 = vst [vmem:[#allocation164_spill] sm:$0xff] %v12991_v9  ;;  %17398 = vst [vmem:[#allocation172_spill] sm:$0xff] %v13011_v41 }
 0x50e   : > { %17392 = vst [vmem:[#allocation166_spill] sm:$0xff] %v12995_v35  ;;  %v1635_v6 = vmax.f32 %v12991_v9, %v12995_v35  ;;  %v1464_v23 = vpop.f32.mrb[54].mxu1 }
 0x50f   : > { %v13001_v30 = vmul.f32 0.35355338, %v1464_v23  ;;  %v1466_v21 = vpop.f32.mrb[55].mxu1  ;;  %v13019_v19 = vpop.permute.xlu1 %2772 }
 0x510   : > { %v13003_v7 = vmul.f32 0.35355338, %v1466_v21  ;;  %1636 = vmax.xlane.f32.xlu0 %v1635_v6  ;;  %17400 = vst [vmem:[#allocation174_spill] sm:$0xff] %v13019_v19 }
 0x511   : > { %17394 = vst [vmem:[#allocation168_spill] sm:$0xff] %v13001_v30 }
 0x512   : > { %17395 = vst [vmem:[#allocation169_spill] sm:$0xff] %v13003_v7  ;;  %v1638_v20 = vmax.f32 %v13001_v30, %v13003_v7  ;;  %v1470_v27 = vpop.f32.mrb[56].mxu1 }
 0x513   : > { %v13009_v33 = vmul.f32 0.35355338, %v1470_v27  ;;  %v1472_v0 = vpop.f32.mrb[57].mxu1  ;;  %v13023_v27 = vpop.permute.xlu0 %10271 }
 0x514   : > { %v13013_v56 = vmul.f32 0.35355338, %v1472_v0  ;;  %1639 = vmax.xlane.f32.xlu0 %v1638_v20  ;;  %17401 = vst [vmem:[#allocation175_spill] sm:$0xff] %v13023_v27 }
 0x515   : > { %17397 = vst [vmem:[#allocation171_spill] sm:$0xff] %v13009_v33 }
 0x516   : > { %17399 = vst [vmem:[#allocation173_spill] sm:$0xff] %v13013_v56  ;;  %v1641_v23 = vmax.f32 %v13009_v33, %v13013_v56  ;;  %v1476_v21 = vpop.f32.mrb[58].mxu1 }
 0x517   : > { %v13017_v35 = vmul.f32 0.35355338, %v1476_v21  ;;  %v1478_v6 = vpop.f32.mrb[59].mxu1  ;;  %v13031_v21 = vpop.permute.xlu1 %10281 }
 0x518   : > { %v13021_v9 = vmul.f32 0.35355338, %v1478_v6  ;;  %1642 = vmax.xlane.f32.xlu0 %v1641_v23  ;;  %17404 = vst [vmem:[#allocation178_spill] sm:$0xff] %v13031_v21  ;;  %v13037_v27 = vpop.permute.xlu0 %4501 }
 0x519   : > { %17406 = vst [vmem:[#allocation180_spill] sm:$0xff] %v13037_v27 }
 0x51a   : > { %v1644_v41 = vmax.f32 %v13017_v35, %v13021_v9  ;;  %v1482_v0 = vpop.f32.mrb[60].mxu1 }
 0x51b   : > { %v13027_v7 = vmul.f32 0.35355338, %v1482_v0  ;;  %v1484_v20 = vpop.f32.mrb[61].mxu1 }
 0x51c   : > { %v13029_v30 = vmul.f32 0.35355338, %v1484_v20  ;;  %1645 = vmax.xlane.f32.xlu0 %v1644_v41  ;;  %v13043_v20 = vpop.permute.xlu1 %10286  ;;  %v13045_v41 = vpop.permute.xlu0 %10291 }
 0x51d   : > { %17402 = vst [vmem:[#allocation176_spill] sm:$0xff] %v13027_v7  ;;  %17408 = vst [vmem:[#allocation182_spill] sm:$0xff] %v13043_v20 }
 0x51e   : > { %17403 = vst [vmem:[#allocation177_spill] sm:$0xff] %v13029_v30  ;;  %v1647_v19 = vmax.f32 %v13027_v7, %v13029_v30  ;;  %v1488_v6 = vpop.f32.mrb[62].mxu1  ;;  %17409 = vst [vmem:[#allocation183_spill] sm:$0xff] %v13045_v41 }
 0x51f   : > { %v13035_v56 = vmul.f32 0.35355338, %v1488_v6  ;;  %v1490_v23 = vpop.f32.mrb[63].mxu1 }
 0x520   : > { %v13039_v33 = vmul.f32 0.35355338, %v1490_v23  ;;  %1648 = vmax.xlane.f32.xlu1 %v1647_v19  ;;  %v13047_v21 = vpop.permute.xlu1 %4503  ;;  %v13049_v30 = vpop.permute.xlu0 %4505 }
 0x521   : > { %17405 = vst [vmem:[#allocation179_spill] sm:$0xff] %v13035_v56  ;;  %17410 = vst [vmem:[#allocation184_spill] sm:$0xff] %v13047_v21 }
 0x522   : > { %17407 = vst [vmem:[#allocation181_spill] sm:$0xff] %v13039_v33  ;;  %v1650_v0 = vmax.f32 %v13035_v56, %v13039_v33  ;;  %17411 = vst [vmem:[#allocation185_spill] sm:$0xff] %v13049_v30 }
 0x524   : > { %1651 = vmax.xlane.f32.xlu0 %v1650_v0  ;;  %v13051_v6 = vpop.permute.xlu1 %4507  ;;  %v13055_v23 = vpop.permute.xlu0 %10296 }
 0x525   : > { %17412 = vst [vmem:[#allocation186_spill] sm:$0xff] %v13051_v6  ;;  %17413 = vst [vmem:[#allocation187_spill] sm:$0xff] %v13055_v23 }
 0x528   : > { %v13057_v19 = vpop.permute.xlu1 %6180  ;;  %v13059_v27 = vpop.permute.xlu0 %6178 }
 0x529   : > { %17414 = vst [vmem:[#allocation188_spill] sm:$0xff] %v13057_v19  ;;  %17415 = vst [vmem:[#allocation189_spill] sm:$0xff] %v13059_v27 }
 0x531   : > { %6184 = vrot.lane.b32.xlu1 %v11863_v52, %s11279_s18 }
 0x535   : > { %v1559_v33 = vpop.xlane.xlu1 %1558 }
 0x536   : > { %v1653_v21 = vsub.f32 %v12813_v5, %v1559_v33  ;;  %v1654_v30 = vsub.f32 %v12815_v18, %v1559_v33 }
 0x538   : > { %v1717_v41 = vmul.f32 1.442695, %v1653_v21  ;;  %v1719_v20 = vmul.f32 1.442695, %v1654_v30 }
 0x539   : > { %v1562_v0 = vpop.xlane.xlu0 %1561 }
 0x53a   : > { %6182 = vrot.lane.b32.xlu0 %v11866_v55, %s11279_s18  ;;  %v1655_v6 = vsub.f32 %v12819_v36, %v1562_v0  ;;  %v1656_v52 = vsub.f32 %v12821_v43, %v1562_v0  ;;  %10462 = vpow2.f32 %v1717_v41 }
 0x53b   : > { %10464 = vpow2.f32 %v1719_v20 }
 0x53c   : > { %v1721_v19 = vmul.f32 1.442695, %v1655_v6  ;;  %v1723_v56 = vmul.f32 1.442695, %v1656_v52 }
 0x53d   : > { %v1565_v23 = vpop.xlane.xlu0 %1564 }
 0x53e   : > { %v1657_v27 = vsub.f32 %v12825_v42, %v1565_v23  ;;  %v1658_v55 = vsub.f32 %v12827_v54, %v1565_v23  ;;  %10466 = vpow2.f32 %v1721_v19 }
 0x53f   : > { %10468 = vpow2.f32 %v1723_v56 }
 0x540   : > { %v1725_v5 = vmul.f32 1.442695, %v1657_v27  ;;  %v1727_v18 = vmul.f32 1.442695, %v1658_v55 }
 0x541   : > { %v1568_v7 = vpop.xlane.xlu1 %1567 }
 0x542   : > { %v1659_v33 = vsub.f32 %v12831_v29, %v1568_v7  ;;  %v1660_v30 = vsub.f32 %v12833_v22, %v1568_v7  ;;  %10470 = vpow2.f32 %v1725_v5 }
 0x543   : > { %10472 = vpow2.f32 %v1727_v18 }
 0x544   : > { %v1729_v43 = vmul.f32 1.442695, %v1659_v33  ;;  %v1731_v42 = vmul.f32 1.442695, %v1660_v30  ;;  %v13073_v54 = vpop.eup %10462 }
 0x545   : > { %v1571_v36 = vpop.xlane.xlu0 %1570  ;;  %v13075_v6 = vpop.eup %10464 }
 0x546   : > { %v1661_v21 = vsub.f32 %v12837_v53, %v1571_v36  ;;  %v1662_v20 = vsub.f32 %v12839_v16, %v1571_v36  ;;  %10474 = vpow2.f32 %v1729_v43  ;;  %v1845_v53 = vadd.f32 %v13075_v6, %v13073_v54 }
 0x547   : > { %10476 = vpow2.f32 %v1731_v42 }
 0x548   : > { %v1733_v29 = vmul.f32 1.442695, %v1661_v21  ;;  %v1735_v7 = vmul.f32 1.442695, %v1662_v20  ;;  %v13079_v23 = vpop.eup %10466 }
 0x549   : > { %v1574_v41 = vpop.xlane.xlu1 %1573  ;;  %v13083_v16 = vpop.eup %10468 }
 0x54a   : > { %v1663_v56 = vsub.f32 %v12843_v15, %v1574_v41  ;;  %v1664_v22 = vsub.f32 %v12845_v50, %v1574_v41  ;;  %10478 = vpow2.f32 %v1733_v29  ;;  %v1848_v50 = vadd.f32 %v13083_v16, %v13079_v23 }
 0x54b   : > { %10480 = vpow2.f32 %v1735_v7 }
 0x54c   : > { %v1737_v19 = vmul.f32 1.442695, %v1663_v56  ;;  %v1739_v52 = vmul.f32 1.442695, %v1664_v22  ;;  %v13087_v5 = vpop.eup %10470 }
 0x54d   : > { %v1577_v27 = vpop.xlane.xlu0 %1576  ;;  %v13091_v33 = vpop.eup %10472 }
 0x54e   : > { %v1665_v0 = vsub.f32 %v12849_v46, %v1577_v27  ;;  %v1666_v15 = vsub.f32 %v12851_v49, %v1577_v27  ;;  %10482 = vpow2.f32 %v1737_v19  ;;  %v1851_v49 = vadd.f32 %v13091_v33, %v13087_v5 }
 0x54f   : > { %10484 = vpow2.f32 %v1739_v52 }
 0x550   : > { %v1741_v18 = vmul.f32 1.442695, %v1665_v0  ;;  %v1743_v46 = vmul.f32 1.442695, %v1666_v15  ;;  %v13095_v21 = vpop.eup %10474 }
 0x551   : > { %v1580_v55 = vpop.xlane.xlu1 %1579  ;;  %v13099_v42 = vpop.eup %10476 }
 0x552   : > { %v1667_v30 = vsub.f32 %v12855_v40, %v1580_v55  ;;  %v1668_v36 = vsub.f32 %v12857_v3, %v1580_v55  ;;  %10486 = vpow2.f32 %v1741_v18  ;;  %v1854_v3 = vadd.f32 %v13099_v42, %v13095_v21 }
 0x553   : > { %10488 = vpow2.f32 %v1743_v46 }
 0x554   : > { %v1745_v20 = vmul.f32 1.442695, %v1667_v30  ;;  %v1747_v40 = vmul.f32 1.442695, %v1668_v36  ;;  %v13103_v7 = vpop.eup %10478 }
 0x555   : > { %1846 = vadd.xlane.f32.xlu1 %v1845_v53  ;;  %v1583_v43 = vpop.xlane.xlu0 %1582  ;;  %v13107_v22 = vpop.eup %10480 }
 0x556   : > { %v1669_v41 = vsub.f32 %v12861_v28, %v1583_v43  ;;  %v1670_v29 = vsub.f32 %v12863_v58, %v1583_v43  ;;  %10490 = vpow2.f32 %v1745_v20  ;;  %v1857_v58 = vadd.f32 %v13107_v22, %v13103_v7 }
 0x557   : > { %10492 = vpow2.f32 %v1747_v40 }
 0x558   : > { %v1749_v27 = vmul.f32 1.442695, %v1669_v41  ;;  %v1751_v28 = vmul.f32 1.442695, %v1670_v29  ;;  %v13111_v52 = vpop.eup %10482 }
 0x559   : > { %1849 = vadd.xlane.f32.xlu1 %v1848_v50  ;;  %v1586_v56 = vpop.xlane.xlu1 %1585  ;;  %v13115_v15 = vpop.eup %10484 }
 0x55a   : > { %v1671_v53 = vsub.f32 %v12867_v8, %v1586_v56  ;;  %v1672_v19 = vsub.f32 %v12869_v1, %v1586_v56  ;;  %10494 = vpow2.f32 %v1749_v27  ;;  %v1860_v1 = vadd.f32 %v13115_v15, %v13111_v52 }
 0x55b   : > { %10496 = vpow2.f32 %v1751_v28 }
 0x55c   : > { %v1753_v55 = vmul.f32 1.442695, %v1671_v53  ;;  %v1755_v8 = vmul.f32 1.442695, %v1672_v19  ;;  %v13119_v46 = vpop.eup %10486 }
 0x55d   : > { %1852 = vadd.xlane.f32.xlu1 %v1851_v49  ;;  %v1589_v0 = vpop.xlane.xlu0 %1588  ;;  %v13123_v36 = vpop.eup %10488 }
 0x55e   : > { %v1673_v50 = vsub.f32 %v12873_v32, %v1589_v0  ;;  %v1674_v30 = vsub.f32 %v12875_v10, %v1589_v0  ;;  %10498 = vpow2.f32 %v1753_v55  ;;  %v1863_v10 = vadd.f32 %v13123_v36, %v13119_v46 }
 0x55f   : > { %10500 = vpow2.f32 %v1755_v8 }
 0x560   : > { %v1757_v49 = vmul.f32 1.442695, %v1673_v50  ;;  %v1759_v41 = vmul.f32 1.442695, %v1674_v30  ;;  %v13127_v29 = vpop.eup %10490 }
 0x561   : > { %1855 = vadd.xlane.f32.xlu1 %v1854_v3  ;;  %v1592_v18 = vpop.xlane.xlu1 %1591  ;;  %v13131_v56 = vpop.eup %10492 }
 0x562   : > { %v1675_v43 = vsub.f32 %v12879_v17, %v1592_v18  ;;  %v1676_v20 = vsub.f32 %v12881_v14, %v1592_v18  ;;  %10502 = vpow2.f32 %v1757_v49 }
 0x563   : > { %10504 = vpow2.f32 %v1759_v41 }
 0x564   : > { %v1761_v3 = vmul.f32 1.442695, %v1675_v43  ;;  %v1763_v27 = vmul.f32 1.442695, %v1676_v20  ;;  %v13137_v0 = vpop.eup %10494 }
 0x565   : > { %1858 = vadd.xlane.f32.xlu1 %v1857_v58  ;;  %v1595_v40 = vpop.xlane.xlu0 %1594  ;;  %v1866_v58 = vadd.f32 %v13131_v56, %v13127_v29  ;;  %v13141_v55 = vpop.eup %10496 }
 0x566   : > { %v1677_v17 = vsub.f32 %v12885_v51, %v1595_v40  ;;  %v1678_v14 = vsub.f32 %v12887_v44, %v1595_v40  ;;  %10506 = vpow2.f32 %v1761_v3 }
 0x567   : > { %10508 = vpow2.f32 %v1763_v27 }
 0x568   : > { %v1765_v8 = vmul.f32 1.442695, %v1677_v17  ;;  %v13145_v30 = vpop.eup %10498 }
 0x569   : > { %v1598_v32 = vpop.xlane.xlu1 %1597  ;;  %1861 = vadd.xlane.f32.xlu1 %v1860_v1  ;;  %v1869_v1 = vadd.f32 %v13141_v55, %v13137_v0  ;;  %v13149_v43 = vpop.eup %10500 }
 0x56a   : > { %v1679_v50 = vsub.f32 %v12891_v4, %v1598_v32  ;;  %v1680_v44 = vsub.f32 %v12893_v37, %v1598_v32  ;;  %v1872_v3 = vadd.f32 %v13149_v43, %v13145_v30 }
 0x56c   : > { %v1769_v49 = vmul.f32 1.442695, %v1679_v50  ;;  %v1771_v4 = vmul.f32 1.442695, %v1680_v44 }
 0x56d   : > { %v1601_v53 = vpop.xlane.xlu1 %1600  ;;  %1864 = vadd.xlane.f32.xlu1 %v1863_v10  ;;  %v13155_v10 = vpop.eup %10502 }
 0x56e   : > { %v1681_v28 = vsub.f32 %v12897_v34, %v1601_v53  ;;  %v1682_v19 = vsub.f32 %v12899_v31, %v1601_v53  ;;  %v1767_v34 = vmul.f32 1.442695, %v1678_v14  ;;  %v13159_v27 = vpop.eup %10504 }
 0x570   : > { %v1773_v51 = vmul.f32 1.442695, %v1681_v28  ;;  %v1775_v18 = vmul.f32 1.442695, %v1682_v19  ;;  %v13161_v28 = vpop.eup %10506 }
 0x571   : > { %1867 = vadd.xlane.f32.xlu1 %v1866_v58  ;;  %v1604_v31 = vpop.xlane.xlu0 %1603  ;;  %v13165_v19 = vpop.eup %10508  ;;  %v1875_v58 = vadd.f32 %v13159_v27, %v13155_v10 }
 0x572   : > { %10510 = vpow2.f32 %v1773_v51  ;;  %v1683_v20 = vsub.f32 %v12903_v47, %v1604_v31  ;;  %v1684_v37 = vsub.f32 %v12905_v48, %v1604_v31 }
 0x573   : > { %10512 = vpow2.f32 %v1775_v18 }
 0x574   : > { %10514 = vpow2.f32 %v1765_v8  ;;  %v1777_v47 = vmul.f32 1.442695, %v1683_v20  ;;  %v1779_v48 = vmul.f32 1.442695, %v1684_v37 }
 0x575   : > { %v1607_v41 = vpop.xlane.xlu1 %1606  ;;  %1870 = vadd.xlane.f32.xlu1 %v1869_v1  ;;  %10516 = vpow2.f32 %v1767_v34  ;;  %v1878_v1 = vadd.f32 %v13165_v19, %v13161_v28 }
 0x576   : > { %v1685_v32 = vsub.f32 %v12909_v2, %v1607_v41  ;;  %v1686_v40 = vsub.f32 %v12911_v25, %v1607_v41  ;;  %10518 = vpow2.f32 %v1769_v49 }
 0x577   : > { %10520 = vpow2.f32 %v1771_v4 }
 0x578   : > { %v1781_v17 = vmul.f32 1.442695, %v1685_v32  ;;  %v1783_v53 = vmul.f32 1.442695, %v1686_v40 }
 0x579   : > { %v1610_v14 = vpop.xlane.xlu1 %1609  ;;  %1873 = vadd.xlane.f32.xlu1 %v1872_v3 }
 0x57a   : > { %10522 = vpow2.f32 %v1781_v17  ;;  %v1687_v2 = vsub.f32 %v12915_v60, %v1610_v14  ;;  %v1688_v25 = vsub.f32 %v12917_v11, %v1610_v14 }
 0x57b   : > { %10524 = vpow2.f32 %v1783_v53 }
 0x57c   : > { %v13169_v50 = vpop.eup %10510  ;;  %v1785_v51 = vmul.f32 1.442695, %v1687_v2  ;;  %10526 = vpow2.f32 %v1777_v47  ;;  %v1787_v8 = vmul.f32 1.442695, %v1688_v25 }
 0x57d   : > { %v13171_v18 = vpop.eup %10512  ;;  %v1613_v44 = vpop.xlane.xlu0 %1612  ;;  %1876 = vadd.xlane.f32.xlu1 %v1875_v58  ;;  %10528 = vpow2.f32 %v1779_v48 }
 0x57e   : > { %v1689_v60 = vsub.f32 %v12923_v61, %v1613_v44  ;;  %v1690_v11 = vsub.f32 %v12925_v59, %v1613_v44  ;;  %v1887_v34 = vadd.f32 %v13171_v18, %v13169_v50  ;;  %v13177_v31 = vpop.eup %10514  ;;  %10530 = vpow2.f32 %v1785_v51 }
 0x57f   : > { %v13181_v49 = vpop.eup %10516  ;;  %10532 = vpow2.f32 %v1787_v8 }
 0x580   : > { %v1789_v4 = vmul.f32 1.442695, %v1689_v60  ;;  %v1791_v20 = vmul.f32 1.442695, %v1690_v11  ;;  %1888 = vadd.xlane.f32.xlu0 %v1887_v34  ;;  %v13183_v61 = vpop.eup %10518  ;;  %v1881_v40 = vadd.f32 %v13181_v49, %v13177_v31 }
 0x581   : > { %v1616_v41 = vpop.xlane.xlu1 %1615  ;;  %1879 = vadd.xlane.f32.xlu1 %v1878_v1  ;;  %v13187_v32 = vpop.eup %10520 }
 0x582   : > { %10534 = vpow2.f32 %v1789_v4  ;;  %v1691_v59 = vsub.f32 %v12931_v63, %v1616_v41  ;;  %v1692_v37 = vsub.f32 %v12935_v39, %v1616_v41  ;;  %v1884_v25 = vadd.f32 %v13187_v32, %v13183_v61 }
 0x583   : > { %10536 = vpow2.f32 %v1791_v20 }
 0x584   : > { %v13191_v3 = vpop.eup %10522  ;;  %v1793_v17 = vmul.f32 1.442695, %v1691_v59  ;;  %v1795_v53 = vmul.f32 1.442695, %v1692_v37 }
 0x585   : > { %v13193_v47 = vpop.eup %10524  ;;  %v1619_v14 = vpop.xlane.xlu1 %1618  ;;  %1882 = vadd.xlane.f32.xlu1 %v1881_v40 }
 0x586   : > { %10538 = vpow2.f32 %v1793_v17  ;;  %v1693_v48 = vsub.f32 %v12939_v57, %v1619_v14  ;;  %v1694_v63 = vsub.f32 %v12943_v24, %v1619_v14  ;;  %v1893_v39 = vadd.f32 %v13193_v47, %v13191_v3  ;;  %v13199_v2 = vpop.eup %10526 }
 0x587   : > { %10540 = vpow2.f32 %v1795_v53  ;;  %v13203_v58 = vpop.eup %10528 }
 0x588   : > { %v1797_v51 = vmul.f32 1.442695, %v1693_v48  ;;  %v1799_v8 = vmul.f32 1.442695, %v1694_v63  ;;  %1894 = vadd.xlane.f32.xlu0 %v1893_v39  ;;  %v13205_v60 = vpop.eup %10530  ;;  %v1890_v34 = vadd.f32 %v13203_v58, %v13199_v2 }
 0x589   : > { %v1622_v44 = vpop.xlane.xlu1 %1621  ;;  %1885 = vadd.xlane.f32.xlu1 %v1884_v25  ;;  %v13209_v11 = vpop.eup %10532 }
 0x58a   : > { %10542 = vpow2.f32 %v1797_v51  ;;  %v1695_v24 = vsub.f32 %v12949_v13, %v1622_v44  ;;  %v1696_v57 = vsub.f32 %v12951_v62, %v1622_v44  ;;  %v1896_v40 = vadd.f32 %v13209_v11, %v13205_v60 }
 0x58b   : > { %10544 = vpow2.f32 %v1799_v8 }
 0x58c   : > { %v13213_v1 = vpop.eup %10534  ;;  %v1801_v4 = vmul.f32 1.442695, %v1695_v24  ;;  %v1803_v20 = vmul.f32 1.442695, %v1696_v57  ;;  %v17416_v57 = vld [vmem:[#allocation158_spill] sm:$0xff] }
 0x58d   : > { %v13215_v41 = vpop.eup %10536  ;;  %v1625_v59 = vpop.xlane.xlu1 %1624  ;;  %1891 = vadd.xlane.f32.xlu1 %v1890_v34 }
 0x58e   : > { %10546 = vpow2.f32 %v1801_v4  ;;  %v1697_v37 = vsub.f32 %v12957_v38, %v1625_v59  ;;  %v1698_v13 = vsub.f32 %v12961_v12, %v1625_v59  ;;  %v1899_v62 = vadd.f32 %v13215_v41, %v13213_v1  ;;  %v17417_v4 = vld [vmem:[#allocation159_spill] sm:$0xff] }
 0x58f   : > { %10548 = vpow2.f32 %v1803_v20 }
 0x590   : > { %v13223_v17 = vpop.eup %10538  ;;  %v1805_v53 = vmul.f32 1.442695, %v1697_v37  ;;  %v1807_v14 = vmul.f32 1.442695, %v1698_v13  ;;  %1900 = vadd.xlane.f32.xlu0 %v1899_v62 }
 0x591   : > { %v13225_v48 = vpop.eup %10540  ;;  %v1628_v63 = vpop.xlane.xlu0 %1627  ;;  %1897 = vadd.xlane.f32.xlu1 %v1896_v40  ;;  %v17418_v40 = vld [vmem:[#allocation161_spill] sm:$0xff] }
 0x592   : > { %10550 = vpow2.f32 %v1805_v53  ;;  %v1699_v38 = vsub.f32 %v12965_v45, %v1628_v63  ;;  %v1700_v12 = vsub.f32 %v12969_v26, %v1628_v63  ;;  %v1902_v39 = vadd.f32 %v13225_v48, %v13223_v17 }
 0x593   : > { %10552 = vpow2.f32 %v1807_v14  ;;  %v17419_v14 = vld [vmem:[#allocation163_spill] sm:$0xff] }
 0x594   : > { %v13231_v25 = vpop.eup %10542  ;;  %v1809_v51 = vmul.f32 1.442695, %v1699_v38  ;;  %v1811_v8 = vmul.f32 1.442695, %v1700_v12 }
 0x595   : > { %v13233_v44 = vpop.eup %10544  ;;  %v1631_v24 = vpop.xlane.xlu0 %1630  ;;  %1903 = vadd.xlane.f32.xlu1 %v1902_v39 }
 0x596   : > { %10554 = vpow2.f32 %v1809_v51  ;;  %v1701_v34 = vsub.f32 %v17416_v57, %v1631_v24  ;;  %v1702_v20 = vsub.f32 %v17417_v4, %v1631_v24  ;;  %v1905_v45 = vadd.f32 %v13233_v44, %v13231_v25  ;;  %v17422_v57 = vld [vmem:[#allocation164_spill] sm:$0xff]  ;;  %v17423_v4 = vld [vmem:[#allocation166_spill] sm:$0xff] }
 0x597   : > { %10556 = vpow2.f32 %v1811_v8 }
 0x598   : > { %v13239_v26 = vpop.eup %10546  ;;  %v1813_v59 = vmul.f32 1.442695, %v1701_v34  ;;  %v1815_v37 = vmul.f32 1.442695, %v1702_v20  ;;  %1906 = vadd.xlane.f32.xlu0 %v1905_v45 }
 0x599   : > { %v13241_v13 = vpop.eup %10548  ;;  %v1634_v62 = vpop.xlane.xlu0 %1633 }
 0x59a   : > { %10558 = vpow2.f32 %v1813_v59  ;;  %v1703_v53 = vsub.f32 %v17418_v40, %v1634_v62  ;;  %v1704_v63 = vsub.f32 %v17419_v14, %v1634_v62  ;;  %v1908_v38 = vadd.f32 %v13241_v13, %v13239_v26  ;;  %v17424_v14 = vld [vmem:[#allocation168_spill] sm:$0xff] }
 0x59b   : > { %10560 = vpow2.f32 %v1815_v37 }
 0x59c   : > { %v13247_v12 = vpop.eup %10550  ;;  %v1817_v39 = vmul.f32 1.442695, %v1703_v53  ;;  %v1819_v51 = vmul.f32 1.442695, %v1704_v63  ;;  %1909 = vadd.xlane.f32.xlu1 %v1908_v38  ;;  %v17425_v38 = vld [vmem:[#allocation169_spill] sm:$0xff] }
 0x59d   : > { %17420 = vst [vmem:[#allocation158_spill] sm:$0xff] %v13247_v12  ;;  %v13249_v8 = vpop.eup %10552  ;;  %v1637_v24 = vpop.xlane.xlu0 %1636 }
 0x59e   : > { %17421 = vst [vmem:[#allocation159_spill] sm:$0xff] %v13249_v8  ;;  %10562 = vpow2.f32 %v1817_v39  ;;  %v1705_v34 = vsub.f32 %v17422_v57, %v1637_v24  ;;  %v1706_v20 = vsub.f32 %v17423_v4, %v1637_v24  ;;  %v1911_v45 = vadd.f32 %v13249_v8, %v13247_v12 }
 0x59f   : > { %10564 = vpow2.f32 %v1819_v51 }
 0x5a0   : > { %v13255_v59 = vpop.eup %10554  ;;  %v1821_v37 = vmul.f32 1.442695, %v1705_v34  ;;  %v1823_v62 = vmul.f32 1.442695, %v1706_v20  ;;  %1912 = vadd.xlane.f32.xlu1 %v1911_v45  ;;  %v17427_v45 = vld [vmem:[#allocation171_spill] sm:$0xff] }
 0x5a1   : > { %v13257_v40 = vpop.eup %10556  ;;  %v1640_v53 = vpop.xlane.xlu0 %1639 }
 0x5a2   : > { %10566 = vpow2.f32 %v1821_v37  ;;  %v1707_v63 = vsub.f32 %v17424_v14, %v1640_v53  ;;  %v1708_v39 = vsub.f32 %v17425_v38, %v1640_v53  ;;  %v1914_v24 = vadd.f32 %v13257_v40, %v13255_v59  ;;  %v17428_v37 = vld [vmem:[#allocation173_spill] sm:$0xff] }
 0x5a3   : > { %10568 = vpow2.f32 %v1823_v62 }
 0x5a4   : > { %v13263_v57 = vpop.eup %10558  ;;  %v1825_v51 = vmul.f32 1.442695, %v1707_v63  ;;  %v1827_v4 = vmul.f32 1.442695, %v1708_v39  ;;  %1915 = vadd.xlane.f32.xlu0 %v1914_v24 }
 0x5a5   : > { %17426 = vst [vmem:[#allocation161_spill] sm:$0xff] %v13263_v57  ;;  %v13265_v34 = vpop.eup %10560  ;;  %v1643_v20 = vpop.xlane.xlu0 %1642 }
 0x5a6   : > { %10570 = vpow2.f32 %v1825_v51  ;;  %v1709_v12 = vsub.f32 %v17427_v45, %v1643_v20  ;;  %v1710_v8 = vsub.f32 %v17428_v37, %v1643_v20  ;;  %v1917_v53 = vadd.f32 %v13265_v34, %v13263_v57 }
 0x5a7   : > { %10572 = vpow2.f32 %v1827_v4 }
 0x5a8   : > { %v13271_v14 = vpop.eup %10562  ;;  %v1829_v62 = vmul.f32 1.442695, %v1709_v12  ;;  %v1831_v38 = vmul.f32 1.442695, %v1710_v8  ;;  %1918 = vadd.xlane.f32.xlu1 %v1917_v53 }
 0x5a9   : > { %17429 = vst [vmem:[#allocation163_spill] sm:$0xff] %v13271_v14  ;;  %v13273_v63 = vpop.eup %10564  ;;  %v1646_v39 = vpop.xlane.xlu0 %1645 }
 0x5aa   : > { %17430 = vst [vmem:[#allocation164_spill] sm:$0xff] %v13273_v63  ;;  %10574 = vpow2.f32 %v1829_v62  ;;  %v1711_v24 = vsub.f32 %v13017_v35, %v1646_v39  ;;  %v1712_v51 = vsub.f32 %v13021_v9, %v1646_v39  ;;  %v1920_v20 = vadd.f32 %v13273_v63, %v13271_v14  ;;  %v17444_v63 = vld [vmem:[#allocation181_spill] sm:$0xff] }
 0x5ab   : > { %10576 = vpow2.f32 %v1831_v38 }
 0x5ac   : > { %v13279_v45 = vpop.eup %10566  ;;  %v1833_v4 = vmul.f32 1.442695, %v1711_v24  ;;  %v1835_v37 = vmul.f32 1.442695, %v1712_v51  ;;  %1921 = vadd.xlane.f32.xlu0 %v1920_v20 }
 0x5ad   : > { %17431 = vst [vmem:[#allocation166_spill] sm:$0xff] %v13279_v45  ;;  %v13281_v12 = vpop.eup %10568 }
 0x5ae   : > { %17432 = vst [vmem:[#allocation168_spill] sm:$0xff] %v13281_v12  ;;  %10578 = vpow2.f32 %v1833_v4  ;;  %v1923_v8 = vadd.f32 %v13281_v12, %v13279_v45  ;;  %v17439_v4 = vld [vmem:[#allocation14_spill] sm:$0xff] }
 0x5af   : > { %10580 = vpow2.f32 %v1835_v37  ;;  %v1649_v37 = vpop.xlane.xlu1 %1648 }
 0x5b0   : > { %v13285_v53 = vpop.eup %10570  ;;  %1924 = vadd.xlane.f32.xlu1 %v1923_v8  ;;  %v17440_v8 = vld [vmem:[#allocation15_spill] sm:$0xff] }
 0x5b1   : > { %17433 = vst [vmem:[#allocation169_spill] sm:$0xff] %v13285_v53  ;;  %v13287_v35 = vpop.eup %10572 }
 0x5b2   : > { %17434 = vst [vmem:[#allocation171_spill] sm:$0xff] %v13287_v35  ;;  %v1926_v9 = vadd.f32 %v13287_v35, %v13285_v53  ;;  %v17442_v35 = vld [vmem:[#allocation177_spill] sm:$0xff] }
 0x5b4   : > { %v13291_v62 = vpop.eup %10574  ;;  %1927 = vadd.xlane.f32.xlu0 %v1926_v9  ;;  %v17441_v9 = vld [vmem:[#allocation176_spill] sm:$0xff] }
 0x5b5   : > { %17435 = vst [vmem:[#allocation173_spill] sm:$0xff] %v13291_v62  ;;  %v13293_v38 = vpop.eup %10576  ;;  %v1713_v53 = vsub.f32 %v17441_v9, %v1649_v37 }
 0x5b6   : > { %17436 = vst [vmem:[#allocation190_spill] sm:$0xff] %v13293_v38  ;;  %v1929_v39 = vadd.f32 %v13293_v38, %v13291_v62  ;;  %v1714_v62 = vsub.f32 %v17442_v35, %v1649_v37  ;;  %v1652_v38 = vpop.xlane.xlu0 %1651  ;;  %v17449_v37 = vld [vmem:[#allocation120_spill] sm:$0xff] }
 0x5b7   : > { %v1837_v45 = vmul.f32 1.442695, %v1713_v53  ;;  %v1716_v57 = vsub.f32 %v17444_v63, %v1652_v38 }
 0x5b8   : > { %v13297_v24 = vpop.eup %10578  ;;  %1930 = vadd.xlane.f32.xlu1 %v1929_v39  ;;  %v17443_v39 = vld [vmem:[#allocation179_spill] sm:$0xff]  ;;  %v1839_v14 = vmul.f32 1.442695, %v1714_v62 }
 0x5b9   : > { %17437 = vst [vmem:[#allocation191_spill] sm:$0xff] %v13297_v24  ;;  %v13299_v51 = vpop.eup %10580  ;;  %v1715_v12 = vsub.f32 %v17443_v39, %v1652_v38  ;;  %10582 = vpow2.f32 %v1837_v45  ;;  %v10084_v39 = vunpack.i.h.bf16 %v17449_v37 }
 0x5ba   : > { %17438 = vst [vmem:[#allocation192_spill] sm:$0xff] %v13299_v51  ;;  %v1932_v20 = vadd.f32 %v13299_v51, %v13297_v24  ;;  %10584 = vpow2.f32 %v1839_v14  ;;  %v13311_v24 = vpop.permute.xlu1 %6184 }
 0x5bb   : > { %17445 = vst [vmem:[#allocation14_spill] sm:$0xff] %v13311_v24 }
 0x5bc   : > { %1933 = vadd.xlane.f32.xlu0 %v1932_v20  ;;  %v1841_v20 = vmul.f32 1.442695, %v1715_v12 }
 0x5be   : > { %10586 = vpow2.f32 %v1841_v20  ;;  %v10083_v20 = vunpack.i.l.bf16 %v17449_v37 }
 0x5c3   : > { %v13313_v51 = vpop.eup %10582 }
 0x5c4   : > { %17446 = vst [vmem:[#allocation15_spill] sm:$0xff] %v13313_v51  ;;  %v13315_v53 = vpop.eup %10584 }
 0x5c5   : > { %17447 = vst [vmem:[#allocation176_spill] sm:$0xff] %v13315_v53  ;;  %v1935_v14 = vadd.f32 %v13315_v53, %v13313_v51  ;;  %v9352_v53 = vpack.c.bf16 %v10084_v39, %v10083_v20  ;;  %v17452_v39 = vld [vmem:[#allocation124_spill] sm:$0xff] }
 0x5c6   : > { %v10114_v20 = vunpack.i.h.bf16 %v17452_v39 }
 0x5c8   : > { %v13317_v62 = vpop.eup %10586 }
 0x5c9   : > { %6188 = vrot.lane.b32.xlu1 %v17439_v4, %s11279_s18  ;;  %v1843_v4 = vmul.f32 1.442695, %v1716_v57  ;;  %v17448_v57 = vld [vmem:[#allocation40_spill] sm:$0xff] }
 0x5ca   : > { %v9834_v45 = vunpack.i.h.bf16 %v17448_v57  ;;  %v9833_v12 = vunpack.i.l.bf16 %v17448_v57  ;;  %v17578_v57 = vld [vmem:[#allocation117_spill] sm:$0xff] }
 0x5cb   : > { %10588 = vpow2.f32 %v1843_v4 }
 0x5cc   : > { %v9349_v24 = vpack.c.bf16 %v9834_v45, %v9833_v12 }
 0x5d2   : > { %6186 = vrot.lane.b32.xlu0 %v17440_v8, %s11279_s18 }
 0x5d5   : > { %v13321_v63 = vpop.eup %10588 }
 0x5e2   : > { %v1847_v8 = vpop.xlane.xlu1 %1846 }
 0x5e3   : > { %10590 = vrcp.f32 %v1847_v8 }
 0x5e6   : > { %v1850_v9 = vpop.xlane.xlu1 %1849 }
 0x5e7   : > { %10592 = vrcp.f32 %v1850_v9 }
 0x5ea   : > { %v1853_v35 = vpop.xlane.xlu1 %1852 }
 0x5eb   : > { %10594 = vrcp.f32 %v1853_v35  ;;  %v1938_v35 = vadd.f32 %v13321_v63, %v13317_v62 }
 0x5ed   : > { %v10591_v38 = vpop.eup %10590  ;;  %1936 = vadd.xlane.f32.xlu1 %v1935_v14 }
 0x5ee   : > { %v1856_v4 = vpop.xlane.xlu1 %1855  ;;  %v1974_v8 = vmul.f32 %v10591_v38, %v13075_v6  ;;  %v1973_v9 = vmul.f32 %v10591_v38, %v13073_v54  ;;  %v17451_v54 = vld [vmem:[#allocation51_spill] sm:$0xff] }
 0x5ef   : > { %10596 = vrcp.f32 %v1856_v4  ;;  %v9864_v38 = vunpack.i.h.bf16 %v17451_v54  ;;  %v9863_v45 = vunpack.i.l.bf16 %v17451_v54  ;;  %v10113_v4 = vunpack.i.l.bf16 %v17452_v39  ;;  %v17454_v54 = vld [vmem:[#allocation132_spill] sm:$0xff] }
 0x5f0   : > { %2197 = vmatprep.mubr.f32.mxu0 %v1974_v8 }
 0x5f1   : > { %v10593_v51 = vpop.eup %10592  ;;  %1939 = vadd.xlane.f32.xlu1 %v1938_v35  ;;  %2198 = vmatmul.mubr.f32.vlgmr.msra.gmra.mrb[32].mxu0 %v1973_v9  ;;  %v9358_v8 = vpack.c.bf16 %v10114_v20, %v10113_v4 }
 0x5f2   : > { %9351 = vmatpush3.bf16.xpose.msk.msra.mxu0 %vm12434_vm2, %v9349_v24  ;;  %v1859_v37 = vpop.xlane.xlu1 %1858  ;;  %v1976_v14 = vmul.f32 %v10593_v51, %v13083_v16  ;;  %v1975_v6 = vmul.f32 %v10593_v51, %v13079_v23  ;;  %v9355_v51 = vpack.c.bf16 %v9864_v38, %v9863_v45  ;;  %v10144_v38 = vunpack.i.h.bf16 %v17454_v54 }
 0x5f3   : > { %9354 = vmatprep.subr.msk.bf16.mxu0 %vm12434_vm2, %v9352_v53  ;;  %10598 = vrcp.f32 %v1859_v37  ;;  %v10143_v45 = vunpack.i.l.bf16 %v17454_v54 }
 0x5f4   : > { %2202 = vmatprep.mubr.f32.mxu0 %v1976_v14 }
 0x5f5   : > { %v10595_v12 = vpop.eup %10594  ;;  %2203 = vmatmul.mubr.f32.gmra.mrb[34].mxu0 %v1975_v6  ;;  %v9364_v4 = vpack.c.bf16 %v10144_v38, %v10143_v45 }
 0x5f6   : > { %v1862_v24 = vpop.xlane.xlu1 %1861  ;;  %v1978_v16 = vmul.f32 %v10595_v12, %v13091_v33  ;;  %v1977_v23 = vmul.f32 %v10595_v12, %v13087_v5  ;;  %v17453_v33 = vld [vmem:[#allocation58_spill] sm:$0xff] }
 0x5f7   : > { %10600 = vrcp.f32 %v1862_v24  ;;  %v9894_v5 = vunpack.i.h.bf16 %v17453_v33  ;;  %v9893_v14 = vunpack.i.l.bf16 %v17453_v33 }
 0x5f8   : > { %2207 = vmatprep.mubr.f32.mxu0 %v1978_v16 }
 0x5f9   : > { %v10597_v53 = vpop.eup %10596  ;;  %2208 = vmatmul.mubr.f32.gmra.mrb[36].mxu0 %v1977_v23  ;;  %v9361_v39 = vpack.c.bf16 %v9894_v5, %v9893_v14 }
 0x5fa   : > { %9357 = vmatpush3.bf16.xpose.msk.msra.mxu0 %vm12434_vm2, %v9355_v51  ;;  %v1865_v9 = vpop.xlane.xlu1 %1864  ;;  %v1980_v35 = vmul.f32 %v10597_v53, %v13099_v42  ;;  %v1979_v37 = vmul.f32 %v10597_v53, %v13095_v21 }
 0x5fb   : > { %9360 = vmatprep.subr.msk.bf16.mxu0 %vm12434_vm2, %v9358_v8  ;;  %10602 = vrcp.f32 %v1865_v9  ;;  %v17456_v8 = vld [vmem:[#allocation137_spill] sm:$0xff] }
 0x5fc   : > { %2212 = vmatprep.mubr.f32.mxu0 %v1980_v35  ;;  %v10169_v9 = vunpack.i.h.bf16 %v17456_v8  ;;  %v10168_v35 = vunpack.i.l.bf16 %v17456_v8 }
 0x5fd   : > { %v10599_v6 = vpop.eup %10598  ;;  %2213 = vmatmul.mubr.f32.gmra.mrb[38].mxu0 %v1979_v37 }
 0x5fe   : > { %v1868_v12 = vpop.xlane.xlu1 %1867  ;;  %v1982_v42 = vmul.f32 %v10599_v6, %v13107_v22  ;;  %v1981_v21 = vmul.f32 %v10599_v6, %v13103_v7  ;;  %v17455_v22 = vld [vmem:[#allocation67_spill] sm:$0xff]  ;;  %v9370_v14 = vpack.c.bf16 %v10169_v9, %v10168_v35  ;;  %v17460_v35 = vld [vmem:[#allocation145_spill] sm:$0xff] }
 0x5ff   : > { %10604 = vrcp.f32 %v1868_v12  ;;  %v9924_v7 = vunpack.i.h.bf16 %v17455_v22  ;;  %v9923_v51 = vunpack.i.l.bf16 %v17455_v22 }
 0x600   : > { %2217 = vmatprep.mubr.f32.mxu0 %v1982_v42  ;;  %v17458_v42 = vld [vmem:[#allocation141_spill] sm:$0xff] }
 0x601   : > { %v10601_v20 = vpop.eup %10600  ;;  %2218 = vmatmul.mubr.f32.gmra.mrb[40].mxu0 %v1981_v21  ;;  %v9367_v33 = vpack.c.bf16 %v9924_v7, %v9923_v51  ;;  %v10189_v21 = vunpack.i.h.bf16 %v17458_v42 }
 0x602   : > { %9363 = vmatpush3.bf16.xpose.msk.msra.mxu0 %vm12434_vm2, %v9361_v39  ;;  %v1871_v24 = vpop.xlane.xlu1 %1870  ;;  %v1984_v16 = vmul.f32 %v10601_v20, %v13115_v15  ;;  %v1983_v23 = vmul.f32 %v10601_v20, %v13111_v52  ;;  %v10188_v39 = vunpack.i.l.bf16 %v17458_v42 }
 0x603   : > { %9366 = vmatprep.subr.msk.bf16.mxu0 %vm12434_vm2, %v9364_v4  ;;  %10606 = vrcp.f32 %v1871_v24  ;;  %v13379_v4 = vpop.permute.xlu0 %6182 }
 0x604   : > { %2222 = vmatprep.mubr.f32.mxu0 %v1984_v16 }
 0x605   : > { %v10603_v53 = vpop.eup %10602  ;;  %2223 = vmatmul.mubr.f32.gmra.mrb[42].mxu0 %v1983_v23  ;;  %v9376_v23 = vpack.c.bf16 %v10189_v21, %v10188_v39 }
 0x606   : > { %v1874_v37 = vpop.xlane.xlu1 %1873  ;;  %v1986_v15 = vmul.f32 %v10603_v53, %v13123_v36  ;;  %v1985_v52 = vmul.f32 %v10603_v53, %v13119_v46  ;;  %v17457_v36 = vld [vmem:[#allocation76_spill] sm:$0xff] }
 0x607   : > { %10608 = vrcp.f32 %v1874_v37  ;;  %v9954_v46 = vunpack.i.h.bf16 %v17457_v36  ;;  %v9953_v45 = vunpack.i.l.bf16 %v17457_v36  ;;  %v10209_v37 = vunpack.i.h.bf16 %v17460_v35 }
 0x608   : > { %2227 = vmatprep.mubr.f32.mxu0 %v1986_v15  ;;  %v10208_v15 = vunpack.i.l.bf16 %v17460_v35 }
 0x609   : > { %v10605_v5 = vpop.eup %10604  ;;  %2228 = vmatmul.mubr.f32.gmra.mrb[44].mxu0 %v1985_v52  ;;  %v9373_v24 = vpack.c.bf16 %v9954_v46, %v9953_v45 }
 0x60a   : > { %9369 = vmatpush3.bf16.xpose.msk.msra.mxu0 %vm12434_vm2, %v9367_v33  ;;  %v1877_v6 = vpop.xlane.xlu1 %1876  ;;  %v1988_v54 = vmul.f32 %v10605_v5, %v13131_v56  ;;  %v1987_v38 = vmul.f32 %v10605_v5, %v13127_v29 }
 0x60b   : > { %9372 = vmatprep.subr.msk.bf16.mxu0 %vm12434_vm2, %v9370_v14  ;;  %10610 = vrcp.f32 %v1877_v6  ;;  %v9382_v14 = vpack.c.bf16 %v10209_v37, %v10208_v15 }
 0x60c   : > { %2232 = vmatprep.mubr.f32.mxu0 %v1988_v54 }
 0x60d   : > { %v10607_v12 = vpop.eup %10606  ;;  %2233 = vmatmul.mubr.f32.gmra.mrb[46].mxu0 %v1987_v38  ;;  %v1889_v53 = vpop.xlane.xlu0 %1888 }
 0x60e   : > { %v1880_v20 = vpop.xlane.xlu1 %1879  ;;  %v1990_v56 = vmul.f32 %v10607_v12, %v13141_v55  ;;  %v1989_v29 = vmul.f32 %v10607_v12, %v13137_v0  ;;  %v17459_v0 = vld [vmem:[#allocation81_spill] sm:$0xff] }
 0x60f   : > { %10612 = vrcp.f32 %v1880_v20  ;;  %v9979_v55 = vunpack.i.h.bf16 %v17459_v0  ;;  %v9978_v8 = vunpack.i.l.bf16 %v17459_v0  ;;  %v17462_v12 = vld [vmem:[#allocation149_spill] sm:$0xff]  ;;  %v17464_v0 = vld [vmem:[#allocation112_spill] sm:$0xff] }
 0x610   : > { %2237 = vmatprep.mubr.f32.mxu0 %v1990_v56  ;;  %v10229_v42 = vunpack.i.h.bf16 %v17462_v12  ;;  %v10228_v21 = vunpack.i.l.bf16 %v17462_v12 }
 0x611   : > { %v10609_v16 = vpop.eup %10608  ;;  %2238 = vmatmul.mubr.f32.gmra.mrb[48].mxu0 %v1989_v29  ;;  %v9379_v33 = vpack.c.bf16 %v9979_v55, %v9978_v8  ;;  %v10059_v55 = vunpack.i.h.bf16 %v17464_v0  ;;  %v10058_v8 = vunpack.i.l.bf16 %v17464_v0 }
 0x612   : > { %9375 = vmatpush3.bf16.xpose.msk.msra.mxu0 %vm12434_vm2, %v9373_v24  ;;  %v1883_v22 = vpop.xlane.xlu1 %1882  ;;  %v1992_v7 = vmul.f32 %v10609_v16, %v13149_v43  ;;  %v1991_v51 = vmul.f32 %v10609_v16, %v13145_v30  ;;  %v9388_v24 = vpack.c.bf16 %v10229_v42, %v10228_v21 }
 0x613   : > { %9378 = vmatprep.subr.msk.bf16.mxu0 %vm12434_vm2, %v9376_v23  ;;  %10614 = vrcp.f32 %v1883_v22  ;;  %v9442_v15 = vpack.c.bf16 %v10059_v55, %v10058_v8  ;;  %v17472_v55 = vld [vmem:[#allocation171_spill] sm:$0xff] }
 0x614   : > { %2242 = vmatprep.mubr.f32.mxu0 %v1992_v7  ;;  %10616 = vrcp.f32 %v1889_v53 }
 0x615   : > { %v10611_v9 = vpop.eup %10610  ;;  %2243 = vmatmul.mubr.f32.gmra.mrb[50].mxu0 %v1991_v51  ;;  %v1895_v46 = vpop.xlane.xlu0 %1894 }
 0x616   : > { %v1886_v43 = vpop.xlane.xlu1 %1885  ;;  %v1994_v30 = vmul.f32 %v10611_v9, %v13159_v27  ;;  %v1993_v52 = vmul.f32 %v10611_v9, %v13155_v10  ;;  %v17461_v27 = vld [vmem:[#allocation91_spill] sm:$0xff] }
 0x617   : > { %10618 = vrcp.f32 %v1886_v43  ;;  %v10004_v10 = vunpack.i.h.bf16 %v17461_v27  ;;  %v10003_v36 = vunpack.i.l.bf16 %v17461_v27 }
 0x618   : > { %2247 = vmatprep.mubr.f32.mxu0 %v1994_v30 }
 0x619   : > { %v10613_v5 = vpop.eup %10612  ;;  %2248 = vmatmul.mubr.f32.gmra.mrb[52].mxu0 %v1993_v52  ;;  %v9385_v20 = vpack.c.bf16 %v10004_v10, %v10003_v36 }
 0x61a   : > { %9381 = vmatpush3.bf16.xpose.msk.msra.mxu0 %vm12434_vm2, %v9379_v33  ;;  %v1892_v6 = vpop.xlane.xlu1 %1891  ;;  %v1996_v54 = vmul.f32 %v10613_v5, %v13165_v19  ;;  %v1995_v38 = vmul.f32 %v10613_v5, %v13161_v28 }
 0x61b   : > { %9384 = vmatprep.subr.msk.bf16.mxu0 %vm12434_vm2, %v9382_v14  ;;  %10620 = vrcp.f32 %v1892_v6 }
 0x61c   : > { %2252 = vmatprep.mubr.f32.mxu0 %v1996_v54  ;;  %10622 = vrcp.f32 %v1895_v46 }
 0x61d   : > { %v10615_v45 = vpop.eup %10614  ;;  %2253 = vmatmul.mubr.f32.gmra.mrb[54].mxu0 %v1995_v38  ;;  %v1901_v7 = vpop.xlane.xlu0 %1900 }
 0x61e   : > { %v1998_v19 = vmul.f32 %v10615_v45, %v13181_v49  ;;  %v1997_v28 = vmul.f32 %v10615_v45, %v13177_v31  ;;  %v10617_v39 = vpop.eup %10616  ;;  %v1898_v56 = vpop.xlane.xlu1 %1897  ;;  %v17463_v31 = vld [vmem:[#allocation99_spill] sm:$0xff] }
 0x61f   : > { %10624 = vrcp.f32 %v1898_v56  ;;  %v10029_v49 = vunpack.i.h.bf16 %v17463_v31  ;;  %v10028_v22 = vunpack.i.l.bf16 %v17463_v31  ;;  %v2002_v51 = vmul.f32 %v10617_v39, %v13171_v18  ;;  %v17468_v31 = vld [vmem:[#allocation164_spill] sm:$0xff] }
 0x620   : > { %2257 = vmatprep.mubr.f32.mxu0 %v1998_v19  ;;  %10626 = vrcp.f32 %v1901_v7 }
 0x621   : > { %v10619_v29 = vpop.eup %10618  ;;  %2258 = vmatmul.mubr.f32.gmra.mrb[56].mxu0 %v1997_v28 }
 0x622   : > { %9387 = vmatpush3.bf16.xpose.msk.msra.mxu0 %vm12434_vm2, %v9385_v20  ;;  %v2000_v16 = vmul.f32 %v10619_v29, %v13187_v32  ;;  %v1999_v23 = vmul.f32 %v10619_v29, %v13183_v61  ;;  %v2001_v61 = vmul.f32 %v10617_v39, %v13169_v50  ;;  %v9391_v32 = vpack.c.bf16 %v10029_v49, %v10028_v22  ;;  %v1904_v9 = vpop.xlane.xlu1 %1903  ;;  %v17469_v22 = vld [vmem:[#allocation163_spill] sm:$0xff] }
 0x623   : > { %9390 = vmatprep.subr.msk.bf16.mxu0 %vm12434_vm2, %v9388_v24  ;;  %10628 = vrcp.f32 %v1904_v9  ;;  %v17467_v24 = vld [vmem:[#allocation161_spill] sm:$0xff] }
 0x624   : > { %2262 = vmatprep.mubr.f32.mxu0 %v2000_v16 }
 0x625   : > { %v10621_v53 = vpop.eup %10620  ;;  %2263 = vmatmul.mubr.f32.gmra.mrb[58].mxu0 %v1999_v23  ;;  %v1907_v43 = vpop.xlane.xlu0 %1906 }
 0x626   : > { %2267 = vmatprep.mubr.f32.mxu0 %v2002_v51  ;;  %v2004_v35 = vmul.f32 %v10621_v53, %v13203_v58  ;;  %v10623_v37 = vpop.eup %10622  ;;  %v2003_v18 = vmul.f32 %v10621_v53, %v13199_v2  ;;  %10630 = vrcp.f32 %v1907_v43  ;;  %v17470_v51 = vld [vmem:[#allocation168_spill] sm:$0xff] }
 0x627   : > { %v2006_v50 = vmul.f32 %v10623_v37, %v13193_v47  ;;  %v2005_v58 = vmul.f32 %v10623_v37, %v13191_v3 }
 0x629   : > { %2268 = vmatmul.mubr.f32.gmra.mrb[60].mxu0 %v2001_v61  ;;  %v10625_v30 = vpop.eup %10624  ;;  %v1910_v52 = vpop.xlane.xlu1 %1909 }
 0x62a   : > { %9393 = vmatpush3.bf16.xpose.msk.msra.mxu0 %vm12434_vm2, %v9391_v32  ;;  %2272 = vmatprep.mubr.f32.mxu0 %v2004_v35  ;;  %v2008_v33 = vmul.f32 %v10625_v30, %v13209_v11  ;;  %v10627_v5 = vpop.eup %10626  ;;  %10632 = vrcp.f32 %v1910_v52  ;;  %v2007_v14 = vmul.f32 %v10625_v30, %v13205_v60  ;;  %v17473_v32 = vld [vmem:[#allocation169_spill] sm:$0xff]  ;;  %v17474_v35 = vld [vmem:[#allocation190_spill] sm:$0xff]  ;;  %v17477_v52 = vld [vmem:[#allocation191_spill] sm:$0xff] }
 0x62b   : > { %9444 = vmatprep.subr.msk.bf16.mxu0 %vm12434_vm2, %v9442_v15  ;;  %v2010_v2 = vmul.f32 %v10627_v5, %v13215_v41  ;;  %v2009_v47 = vmul.f32 %v10627_v5, %v13213_v1 }
 0x62d   : > { %2273 = vmatmul.mubr.f32.gmra.mrb[62].mxu0 %v2003_v18  ;;  %v1913_v6 = vpop.xlane.xlu1 %1912  ;;  %v10629_v54 = vpop.eup %10628  ;;  %v17475_v18 = vld [vmem:[#allocation173_spill] sm:$0xff] }
 0x62e   : > { %2277 = vmatprep.mubr.f32.mxu0 %v2006_v50  ;;  %10634 = vrcp.f32 %v1913_v6  ;;  %v2012_v3 = vmul.f32 %v10629_v54, %v13225_v48  ;;  %v2011_v11 = vmul.f32 %v10629_v54, %v13223_v17  ;;  %v17465_v17 = vld [vmem:[#allocation159_spill] sm:$0xff]  ;;  %v17476_v50 = vld [vmem:[#allocation192_spill] sm:$0xff] }
 0x630   : > { %v10631_v27 = vpop.eup %10630 }
 0x631   : > { %2278 = vmatmul.mubr.f32.gmra.mrb[64].mxu0 %v2005_v58  ;;  %v1916_v38 = vpop.xlane.xlu0 %1915  ;;  %v2014_v60 = vmul.f32 %v10631_v27, %v13233_v44  ;;  %v2013_v41 = vmul.f32 %v10631_v27, %v13231_v25  ;;  %v17466_v44 = vld [vmem:[#allocation158_spill] sm:$0xff] }
 0x632   : > { %2282 = vmatprep.mubr.f32.mxu0 %v2008_v33  ;;  %10636 = vrcp.f32 %v1916_v38  ;;  %v13440_v25 = vld [vmem:[%s16802_s5] sm:$0xff] }
 0x633   : > { %9042 = vmatprep.subr.mxu1 %v13440_v25 }
 0x634   : > { %v10633_v36 = vpop.eup %10632 }
 0x635   : > { %2283 = vmatmul.mubr.f32.gmra.mrb[66].mxu0 %v2007_v14  ;;  %v1919_v10 = vpop.xlane.xlu1 %1918  ;;  %v2016_v1 = vmul.f32 %v10633_v36, %v13241_v13  ;;  %v2015_v48 = vmul.f32 %v10633_v36, %v13239_v26 }
 0x636   : > { %2287 = vmatprep.mubr.f32.mxu0 %v2010_v2  ;;  %10638 = vrcp.f32 %v1919_v10  ;;  %v17478_v2 = vld [vmem:[#allocation176_spill] sm:$0xff] }
 0x638   : > { %v10635_v45 = vpop.eup %10634 }
 0x639   : > { %2288 = vmatmul.mubr.f32.gmra.mrb[68].mxu0 %v2009_v47  ;;  %v1922_v46 = vpop.xlane.xlu0 %1921  ;;  %v2018_v42 = vmul.f32 %v10635_v45, %v17465_v17  ;;  %v2017_v19 = vmul.f32 %v10635_v45, %v17466_v44  ;;  %v17479_v47 = vld [vmem:[#allocation15_spill] sm:$0xff]  ;;  %v17483_v17 = vld [vmem:[#allocation37_spill] sm:$0xff]  ;;  %v17486_v44 = vld [vmem:[#allocation126_spill] sm:$0xff] }
 0x63a   : > { %2292 = vmatprep.mubr.f32.mxu0 %v2012_v3  ;;  %10640 = vrcp.f32 %v1922_v46  ;;  %v17480_v3 = vld [vmem:[#allocation41_spill] sm:$0xff]  ;;  %v17482_v46 = vld [vmem:[#allocation39_spill] sm:$0xff] }
 0x63b   : > { %v9839_v27 = vunpack.i.h.bf16 %v17480_v3 }
 0x63c   : > { %v10637_v21 = vpop.eup %10636 }
 0x63d   : > { %2293 = vmatmul.mubr.f32.gmra.mrb[70].mxu0 %v2011_v11  ;;  %v1925_v12 = vpop.xlane.xlu1 %1924  ;;  %v2020_v28 = vmul.f32 %v10637_v21, %v13257_v40  ;;  %v2019_v39 = vmul.f32 %v10637_v21, %v13255_v59  ;;  %v9838_v11 = vunpack.i.l.bf16 %v17480_v3  ;;  %v17485_v21 = vmov 0.0|0.0  }
 0x63e   : > { %2297 = vmatprep.mubr.f32.mxu0 %v2014_v60  ;;  %10642 = vrcp.f32 %v1925_v12  ;;  %v17481_v60 = vld [vmem:[#allocation122_spill] sm:$0xff] }
 0x63f   : > { %v10089_v36 = vunpack.i.h.bf16 %v17481_v60 }
 0x640   : > { %v10639_v26 = vpop.eup %10638 }
 0x641   : > { %2298 = vmatmul.mubr.f32.gmra.mrb[72].mxu0 %v2013_v41  ;;  %v1928_v13 = vpop.xlane.xlu0 %1927  ;;  %v2022_v56 = vmul.f32 %v10639_v26, %v13265_v34  ;;  %v2021_v16 = vmul.f32 %v10639_v26, %v17467_v24  ;;  %v17471_v34 = vld [vmem:[#allocation166_spill] sm:$0xff]  ;;  %v10088_v41 = vunpack.i.l.bf16 %v17481_v60 }
 0x642   : > { %2302 = vmatprep.mubr.f32.mxu0 %v2016_v1  ;;  %10644 = vrcp.f32 %v1928_v13  ;;  %v10118_v13 = vunpack.i.l.bf16 %v17486_v44  ;;  %v17490_v24 = vld [vmem:[#allocation134_spill] sm:$0xff] }
 0x643   : > { %v9448_v12 = vpack.c.bf16 %v10089_v36, %v10088_v41  ;;  %v17506_v41 = vld [vmem:[#allocation178_spill] sm:$0xff] }
 0x644   : > { %v10641_v29 = vpop.eup %10640 }
 0x645   : > { %2303 = vmatmul.mubr.f32.gmra.mrb[74].mxu0 %v2015_v48  ;;  %v1931_v20 = vpop.xlane.xlu1 %1930  ;;  %v2024_v40 = vmul.f32 %v10641_v29, %v17468_v31  ;;  %v2023_v7 = vmul.f32 %v10641_v29, %v17469_v22  ;;  %v9445_v48 = vpack.c.bf16 %v9839_v27, %v9838_v11  ;;  %v17491_v31 = vld [vmem:[#allocation57_spill] sm:$0xff]  ;;  %v17492_v22 = vld [vmem:[#allocation55_spill] sm:$0xff] }
 0x646   : > { %2307 = vmatprep.mubr.f32.mxu0 %v2018_v42  ;;  %10646 = vrcp.f32 %v1931_v20  ;;  %v17489_v20 = vld [vmem:[#allocation59_spill] sm:$0xff]  ;;  %v17504_v11 = vld [vmem:[#allocation77_spill] sm:$0xff] }
 0x647   : > { %v9898_v29 = vunpack.i.l.bf16 %v17489_v20 }
 0x648   : > { %v10643_v49 = vpop.eup %10642 }
 0x649   : > { %2308 = vmatmul.mubr.f32.gmra.mrb[76].mxu0 %v2017_v19  ;;  %v1934_v23 = vpop.xlane.xlu0 %1933  ;;  %v2026_v59 = vmul.f32 %v10643_v49, %v17470_v51  ;;  %v2025_v0 = vmul.f32 %v10643_v49, %v17471_v34  ;;  %v13457_v33 = vpop.permute.xlu1 %6188  ;;  %v10119_v19 = vunpack.i.h.bf16 %v17486_v44  ;;  %v17510_v44 = vld [vmem:[#allocation110_spill] sm:$0xff] }
 0x64a   : > { %2312 = vmatprep.mubr.f32.mxu0 %v2020_v28  ;;  %10648 = vrcp.f32 %v1934_v23  ;;  %v17487_v28 = vld [vmem:[#allocation48_spill] sm:$0xff]  ;;  %v10148_v23 = vunpack.i.l.bf16 %v17490_v24 }
 0x64c   : > { %v10645_v53 = vpop.eup %10644 }
 0x64d   : > { %2313 = vmatmul.mubr.f32.gmra.mrb[78].mxu0 %v2019_v39  ;;  %v2028_v8 = vmul.f32 %v10645_v53, %v17472_v55  ;;  %v2027_v9 = vmul.f32 %v10645_v53, %v17473_v32  ;;  %v9454_v39 = vpack.c.bf16 %v10119_v19, %v10118_v13  ;;  %v17494_v53 = vld [vmem:[#allocation138_spill] sm:$0xff]  ;;  %v17496_v32 = vld [vmem:[#allocation63_spill] sm:$0xff]  ;;  %v10064_v19 = vunpack.i.h.bf16 %v17510_v44 }
 0x64e   : > { %2317 = vmatprep.mubr.f32.mxu0 %v2022_v56  ;;  %v9899_v56 = vunpack.i.h.bf16 %v17489_v20  ;;  %v10174_v34 = vunpack.i.h.bf16 %v17494_v53  ;;  %v17495_v55 = vld [vmem:[#allocation66_spill] sm:$0xff]  ;;  %v10063_v13 = vunpack.i.l.bf16 %v17510_v44  ;;  %v17527_v44 = vld [vmem:[#allocation131_spill] sm:$0xff] }
 0x650   : > { %v10647_v61 = vpop.eup %10646 }
 0x651   : > { %2318 = vmatmul.mubr.f32.gmra.mrb[80].mxu0 %v2021_v16  ;;  %v2030_v37 = vmul.f32 %v10647_v61, %v17474_v35  ;;  %v2029_v43 = vmul.f32 %v10647_v61, %v17475_v18  ;;  %v10149_v16 = vunpack.i.h.bf16 %v17490_v24 }
 0x652   : > { %2322 = vmatprep.mubr.f32.mxu0 %v2024_v40  ;;  %v9457_v40 = vpack.c.bf16 %v9899_v56, %v9898_v29  ;;  %v9538_v29 = vpack.c.bf16 %v10064_v19, %v10063_v13  ;;  %v17528_v13 = vld [vmem:[#allocation111_spill] sm:$0xff] }
 0x653   : > { %v9460_v49 = vpack.c.bf16 %v10149_v16, %v10148_v23  ;;  %v17513_v16 = vld [vmem:[#allocation97_spill] sm:$0xff] }
 0x654   : > { %v10649_v15 = vpop.eup %10648 }
 0x655   : > { %2323 = vmatmul.mubr.f32.gmra.mrb[82].mxu0 %v2023_v7  ;;  %v2032_v30 = vmul.f32 %v10649_v15, %v17476_v50  ;;  %v2031_v58 = vmul.f32 %v10649_v15, %v17477_v52  ;;  %v17493_v7 = vld [vmem:[#allocation68_spill] sm:$0xff]  ;;  %v17498_v15 = vld [vmem:[#allocation142_spill] sm:$0xff] }
 0x656   : > { %2327 = vmatprep.mubr.f32.mxu0 %v2026_v59  ;;  %v9929_v51 = vunpack.i.h.bf16 %v17493_v7  ;;  %v9928_v59 = vunpack.i.l.bf16 %v17493_v7  ;;  %v10194_v18 = vunpack.i.h.bf16 %v17498_v15  ;;  %v17499_v50 = vld [vmem:[#allocation78_spill] sm:$0xff] }
 0x659   : > { %2328 = vmatmul.mubr.f32.gmra.mrb[84].mxu0 %v2025_v0  ;;  %v10173_v0 = vunpack.i.l.bf16 %v17494_v53  ;;  %v17516_v53 = vld [vmem:[#allocation62_spill] sm:$0xff] }
 0x65a   : > { %2332 = vmatprep.mubr.f32.mxu0 %v2028_v8  ;;  %v9463_v8 = vpack.c.bf16 %v9929_v51, %v9928_v59  ;;  %v17515_v51 = vld [vmem:[#allocation109_spill] sm:$0xff] }
 0x65b   : > { %v9466_v61 = vpack.c.bf16 %v10174_v34, %v10173_v0  ;;  %v9904_v34 = vunpack.i.h.bf16 %v17516_v53  ;;  %v9903_v0 = vunpack.i.l.bf16 %v17516_v53 }
 0x65d   : > { %2333 = vmatmul.mubr.f32.gmra.mrb[86].mxu0 %v2027_v9  ;;  %v17497_v9 = vld [vmem:[#allocation79_spill] sm:$0xff] }
 0x65e   : > { %2337 = vmatprep.mubr.f32.mxu0 %v2030_v37  ;;  %v9959_v35 = vunpack.i.h.bf16 %v17497_v9  ;;  %v9958_v37 = vunpack.i.l.bf16 %v17497_v9  ;;  %v17518_v9 = vld [vmem:[#allocation69_spill] sm:$0xff] }
 0x661   : > { %2338 = vmatmul.mubr.f32.gmra.mrb[88].mxu0 %v2029_v43  ;;  %v10193_v43 = vunpack.i.l.bf16 %v17498_v15 }
 0x662   : > { %2342 = vmatprep.mubr.f32.mxu0 %v2032_v30  ;;  %v9469_v30 = vpack.c.bf16 %v9959_v35, %v9958_v37  ;;  %v9934_v35 = vunpack.i.h.bf16 %v17518_v9  ;;  %v9933_v37 = vunpack.i.l.bf16 %v17518_v9 }
 0x663   : > { %v9472_v52 = vpack.c.bf16 %v10194_v18, %v10193_v43  ;;  %v17519_v43 = vld [vmem:[#allocation115_spill] sm:$0xff] }
 0x665   : > { %2343 = vmatmul.mubr.f32.gmra.mrb[90].mxu0 %v2031_v58  ;;  %v17500_v58 = vld [vmem:[#allocation73_spill] sm:$0xff] }
 0x67a   : > { %v1937_v5 = vpop.xlane.xlu1 %1936 }
 0x67b   : > { %10650 = vrcp.f32 %v1937_v5  ;;  %v17501_v5 = vld [vmem:[#allocation83_spill] sm:$0xff] }
 0x67e   : > { %v1940_v14 = vpop.xlane.xlu1 %1939 }
 0x67f   : > { %10652 = vrcp.f32 %v1940_v14  ;;  %v9984_v14 = vunpack.i.h.bf16 %v17501_v5 }
 0x685   : > { %v10651_v6 = vpop.eup %10650 }
 0x686   : > { %v2034_v54 = vmul.f32 %v10651_v6, %v17478_v2  ;;  %v2033_v38 = vmul.f32 %v10651_v6, %v17479_v47  ;;  %v9983_v6 = vunpack.i.l.bf16 %v17501_v5  ;;  %v17502_v2 = vld [vmem:[#allocation146_spill] sm:$0xff] }
 0x687   : > { %v10213_v47 = vunpack.i.l.bf16 %v17502_v2 }
 0x688   : > { %2347 = vmatprep.mubr.f32.mxu0 %v2034_v54  ;;  %v10214_v54 = vunpack.i.h.bf16 %v17502_v2  ;;  %v9475_v3 = vpack.c.bf16 %v9984_v14, %v9983_v6  ;;  %v17521_v6 = vld [vmem:[#allocation113_spill] sm:$0xff] }
 0x689   : > { %v10653_v10 = vpop.eup %10652  ;;  %2348 = vmatmul.mubr.f32.gmra.mrb[92].mxu0 %v2033_v38  ;;  %v17503_v38 = vld [vmem:[#allocation87_spill] sm:$0xff] }
 0x68a   : > { %8631 = vmatprep.mubr.msk.f32.mxu0 %vm1107_vm1, %v17482_v46  ;;  %v2036_v1 = vmul.f32 %v10653_v10, %v13321_v63  ;;  %v2035_v45 = vmul.f32 %v10653_v10, %v13317_v62  ;;  %v17484_v63 = vld [vmem:[#allocation49_spill] sm:$0xff]  ;;  %v9478_v27 = vpack.c.bf16 %v10214_v54, %v10213_v47  ;;  %v17505_v10 = vld [vmem:[#allocation94_spill] sm:$0xff] }
 0x68b   : > { %v9869_v62 = vunpack.i.h.bf16 %v17484_v63  ;;  %v9868_v42 = vunpack.i.l.bf16 %v17484_v63  ;;  %v10009_v60 = vunpack.i.h.bf16 %v17505_v10  ;;  %v10008_v36 = vunpack.i.l.bf16 %v17505_v10  ;;  %v17509_v63 = vld [vmem:[#allocation101_spill] sm:$0xff]  ;;  %v17522_v54 = vld [vmem:[#allocation90_spill] sm:$0xff] }
 0x68c   : > { %2352 = vmatprep.mubr.f32.mxu1 %v2036_v1  ;;  %v10283_v1 = vunpack.i.l.bf16 %v17506_v41  ;;  %v9989_v47 = vunpack.i.h.bf16 %v17522_v54 }
 0x68d   : > { %2353 = vmatmul.mubr.f32.vlgmr.msra.gmra.mrb[64].mxu1 %v2035_v45  ;;  %8632 = vmatmul.mubr.msk.f32.vlgmr.msra.gmra.mrb[94].mxu0 %vm1107_vm1, %v17482_v46  ;;  %v9451_v26 = vpack.c.bf16 %v9869_v62, %v9868_v42  ;;  %v10284_v46 = vunpack.i.h.bf16 %v17506_v41  ;;  %v17507_v45 = vld [vmem:[#allocation92_spill] sm:$0xff]  ;;  %v10034_v62 = vunpack.i.h.bf16 %v17509_v63  ;;  %v10033_v42 = vunpack.i.l.bf16 %v17509_v63 }
 0x68e   : > { %9447 = vmatpush3.bf16.xpose.msk.msra.mxu0 %vm12434_vm2, %v9445_v48  ;;  %8633 = vmatprep.mubr.msk.f32.mxu0 %vm1107_vm1, %v17483_v17  ;;  %v9481_v48 = vpack.c.bf16 %v10009_v60, %v10008_v36  ;;  %v17524_v60 = vld [vmem:[#allocation96_spill] sm:$0xff] }
 0x68f   : > { %9450 = vmatprep.subr.msk.bf16.mxu0 %vm12434_vm2, %v9448_v12  ;;  %9043 = vmatpush3.msra.mxu1 %v13440_v25  ;;  %v17488_v25 = vld [vmem:[#allocation47_spill] sm:$0xff]  ;;  %v9484_v12 = vpack.c.bf16 %v10284_v46, %v10283_v1  ;;  %v9487_v20 = vpack.c.bf16 %v10034_v62, %v10033_v42  ;;  %v10014_v36 = vunpack.i.h.bf16 %v17524_v60  ;;  %v10013_v41 = vunpack.i.l.bf16 %v17524_v60 }
 0x690   : > { %9394 = vmatprep.subr.bf16.mxu1 %v17485_v21 }
 0x691   : > { %8634 = vmatmul.mubr.msk.f32.gmra.mrb[96].mxu0 %vm1107_vm1, %v17483_v17  ;;  %v17508_v17 = vld [vmem:[#allocation85_spill] sm:$0xff] }
 0x692   : > { %8635 = vmatprep.mubr.msk.f32.mxu0 %vm1107_vm1, %v17487_v28 }
 0x695   : > { %8636 = vmatmul.mubr.msk.f32.gmra.mrb[98].mxu0 %vm1107_vm1, %v17487_v28  ;;  %v17511_v28 = vld [vmem:[#allocation102_spill] sm:$0xff] }
 0x696   : > { %9453 = vmatpush3.bf16.xpose.msk.msra.mxu0 %vm12434_vm2, %v9451_v26  ;;  %8637 = vmatprep.mubr.msk.f32.mxu0 %vm1107_vm1, %v17488_v25  ;;  %v17512_v26 = vld [vmem:[#allocation42_spill] sm:$0xff] }
 0x697   : > { %9456 = vmatprep.subr.msk.bf16.mxu0 %vm12434_vm2, %v9454_v39  ;;  %v9844_v39 = vunpack.i.h.bf16 %v17512_v26 }
 0x699   : > { %8638 = vmatmul.mubr.msk.f32.gmra.mrb[100].mxu0 %vm1107_vm1, %v17488_v25  ;;  %v9843_v25 = vunpack.i.l.bf16 %v17512_v26  ;;  %v10068_v26 = vunpack.i.l.bf16 %v17528_v13 }
 0x69a   : > { %8639 = vmatprep.mubr.msk.f32.mxu0 %vm1107_vm1, %v17491_v31 }
 0x69b   : > { %v9395_v23 = vpack.c.bf16 %v9844_v39, %v9843_v25 }
 0x69d   : > { %8640 = vmatmul.mubr.msk.f32.gmra.mrb[102].mxu0 %vm1107_vm1, %v17491_v31  ;;  %v17514_v31 = vld [vmem:[#allocation52_spill] sm:$0xff] }
 0x69e   : > { %9459 = vmatpush3.bf16.xpose.msk.msra.mxu0 %vm12434_vm2, %v9457_v40  ;;  %8641 = vmatprep.mubr.msk.f32.mxu0 %vm1107_vm1, %v17492_v22  ;;  %v9874_v40 = vunpack.i.h.bf16 %v17514_v31 }
 0x69f   : > { %9462 = vmatprep.subr.msk.bf16.mxu0 %vm12434_vm2, %v9460_v49  ;;  %v9873_v49 = vunpack.i.l.bf16 %v17514_v31 }
 0x6a1   : > { %8642 = vmatmul.mubr.msk.f32.gmra.mrb[104].mxu0 %vm1107_vm1, %v17492_v22  ;;  %v9398_v59 = vpack.c.bf16 %v9874_v40, %v9873_v49  ;;  %v17531_v40 = vld [vmem:[#allocation139_spill] sm:$0xff] }
 0x6a2   : > { %8643 = vmatprep.mubr.msk.f32.mxu0 %vm1107_vm1, %v17495_v55 }
 0x6a5   : > { %8644 = vmatmul.mubr.msk.f32.gmra.mrb[106].mxu0 %vm1107_vm1, %v17495_v55 }
 0x6a6   : > { %9465 = vmatpush3.bf16.xpose.msk.msra.mxu0 %vm12434_vm2, %v9463_v8  ;;  %8645 = vmatprep.mubr.msk.f32.mxu0 %vm1107_vm1, %v17496_v32 }
 0x6a7   : > { %9468 = vmatprep.subr.msk.bf16.mxu0 %vm12434_vm2, %v9466_v61  ;;  %v17517_v61 = vld [vmem:[#allocation104_spill] sm:$0xff] }
 0x6a9   : > { %8646 = vmatmul.mubr.msk.f32.gmra.mrb[108].mxu0 %vm1107_vm1, %v17496_v32  ;;  %v9401_v32 = vpack.c.bf16 %v9904_v34, %v9903_v0  ;;  %v17533_v34 = vld [vmem:[#allocation135_spill] sm:$0xff] }
 0x6aa   : > { %8647 = vmatprep.mubr.msk.f32.mxu0 %vm1107_vm1, %v17499_v50 }
 0x6ad   : > { %8648 = vmatmul.mubr.msk.f32.gmra.mrb[110].mxu0 %vm1107_vm1, %v17499_v50  ;;  %v9404_v50 = vpack.c.bf16 %v9934_v35, %v9933_v37  ;;  %v17535_v35 = vld [vmem:[#allocation143_spill] sm:$0xff] }
 0x6ae   : > { %9471 = vmatpush3.bf16.xpose.msk.msra.mxu0 %vm12434_vm2, %v9469_v30  ;;  %8649 = vmatprep.mubr.msk.f32.mxu0 %vm1107_vm1, %v17500_v58  ;;  %v17520_v30 = vld [vmem:[#allocation75_spill] sm:$0xff] }
 0x6af   : > { %9474 = vmatprep.subr.msk.bf16.mxu0 %vm12434_vm2, %v9472_v52  ;;  %v9964_v52 = vunpack.i.h.bf16 %v17520_v30 }
 0x6b1   : > { %8650 = vmatmul.mubr.msk.f32.gmra.mrb[112].mxu0 %vm1107_vm1, %v17500_v58  ;;  %v9963_v58 = vunpack.i.l.bf16 %v17520_v30 }
 0x6b2   : > { %8651 = vmatprep.mubr.msk.f32.mxu0 %vm1107_vm1, %v17503_v38 }
 0x6b3   : > { %v9407_v2 = vpack.c.bf16 %v9964_v52, %v9963_v58  ;;  %v17537_v52 = vld [vmem:[#allocation140_spill] sm:$0xff] }
 0x6b5   : > { %8652 = vmatmul.mubr.msk.f32.gmra.mrb[114].mxu0 %vm1107_vm1, %v17503_v38  ;;  %v9988_v38 = vunpack.i.l.bf16 %v17522_v54 }
 0x6b6   : > { %9477 = vmatpush3.bf16.xpose.msk.msra.mxu0 %vm12434_vm2, %v9475_v3  ;;  %8653 = vmatprep.mubr.msk.f32.mxu0 %vm1107_vm1, %v17504_v11 }
 0x6b7   : > { %9480 = vmatprep.subr.msk.bf16.mxu0 %vm12434_vm2, %v9478_v27  ;;  %v9410_v10 = vpack.c.bf16 %v9989_v47, %v9988_v38  ;;  %v17539_v47 = vld [vmem:[#allocation147_spill] sm:$0xff] }
 0x6b9   : > { %8654 = vmatmul.mubr.msk.f32.gmra.mrb[116].mxu0 %vm1107_vm1, %v17504_v11  ;;  %v17523_v11 = vld [vmem:[#allocation125_spill] sm:$0xff] }
 0x6ba   : > { %8655 = vmatprep.mubr.msk.f32.mxu0 %vm1107_vm1, %v17507_v45 }
 0x6bd   : > { %8656 = vmatmul.mubr.msk.f32.gmra.mrb[118].mxu0 %vm1107_vm1, %v17507_v45  ;;  %v17525_v45 = vld [vmem:[#allocation119_spill] sm:$0xff] }
 0x6be   : > { %9483 = vmatpush3.bf16.xpose.msk.msra.mxu0 %vm12434_vm2, %v9481_v48  ;;  %8657 = vmatprep.mubr.msk.f32.mxu0 %vm1107_vm1, %v17508_v17  ;;  %v9413_v48 = vpack.c.bf16 %v10014_v36, %v10013_v41  ;;  %v17541_v36 = vld [vmem:[#allocation144_spill] sm:$0xff] }
 0x6bf   : > { %9486 = vmatprep.subr.msk.bf16.mxu0 %vm12434_vm2, %v9484_v12  ;;  %v17526_v12 = vld [vmem:[#allocation106_spill] sm:$0xff] }
 0x6c0   : > { %v10038_v63 = vunpack.i.l.bf16 %v17526_v12 }
 0x6c1   : > { %8658 = vmatmul.mubr.msk.f32.gmra.mrb[120].mxu0 %vm1107_vm1, %v17508_v17  ;;  %v10039_v17 = vunpack.i.h.bf16 %v17526_v12 }
 0x6c2   : > { %8659 = vmatprep.mubr.msk.f32.mxu0 %vm1107_vm1, %v17511_v28 }
 0x6c3   : > { %v9416_v19 = vpack.c.bf16 %v10039_v17, %v10038_v63  ;;  %v17543_v17 = vld [vmem:[#allocation174_spill] sm:$0xff] }
 0x6c4   : > { %v2199_v56 = vpop.f32.mrb[32].mxu0 }
 0x6c5   : > { %8660 = vmatmul.mubr.msk.f32.gmra.mrb[122].mxu0 %vm1107_vm1, %v17511_v28  ;;  %v2201_v24 = vpop.f32.mrb[33].mxu0  ;;  %9044 = vmatprep.mubr.msk.f32.mxu1 %vm1107_vm1, %v2199_v56  ;;  %v10069_v28 = vunpack.i.h.bf16 %v17528_v13 }
 0x6c6   : > { %9489 = vmatpush3.bf16.xpose.msk.msra.mxu0 %vm12434_vm2, %v9487_v20  ;;  %8661 = vmatprep.mubr.msk.f32.mxu0 %vm1107_vm1, %v17513_v16  ;;  %v17529_v20 = vld [vmem:[#allocation130_spill] sm:$0xff] }
 0x6c7   : > { %9540 = vmatprep.subr.msk.bf16.mxu0 %vm12434_vm2, %v9538_v29  ;;  %v9419_v56 = vpack.c.bf16 %v10069_v28, %v10068_v26  ;;  %v17530_v29 = vld [vmem:[#allocation118_spill] sm:$0xff] }
 0x6c8   : > { %v2204_v22 = vpop.f32.mrb[34].mxu0  ;;  %v10099_v24 = vunpack.i.h.bf16 %v17530_v29 }
 0x6c9   : > { %8662 = vmatmul.mubr.msk.f32.gmra.mrb[124].mxu0 %vm1107_vm1, %v17513_v16  ;;  %v2206_v7 = vpop.f32.mrb[35].mxu0  ;;  %9045 = vmatmul.mubr.msk.f32.vlgmr.msra.gmra.mrb[66].mxu1 %vm1107_vm1, %v2204_v22  ;;  %v10098_v16 = vunpack.i.l.bf16 %v17530_v29  ;;  %v17532_v22 = vld [vmem:[#allocation129_spill] sm:$0xff]  ;;  %v17547_v29 = vld [vmem:[#allocation43_spill] sm:$0xff] }
 0x6ca   : > { %8663 = vmatprep.mubr.msk.f32.mxu0 %vm1107_vm1, %v17515_v51  ;;  %9396 = vmatpush1.bf16.msra.mxu1 %v9395_v23  ;;  %v10129_v7 = vunpack.i.h.bf16 %v17532_v22 }
 0x6cb   : > { %9397 = vmatprep.subr.bf16.mxu1 %v17485_v21  ;;  %v9422_v49 = vpack.c.bf16 %v10099_v24, %v10098_v16 }
 0x6cc   : > { %v2209_v55 = vpop.f32.mrb[36].mxu0 }
 0x6cd   : > { %8664 = vmatmul.mubr.msk.f32.gmra.mrb[126].mxu0 %vm1107_vm1, %v17515_v51  ;;  %v2211_v8 = vpop.f32.mrb[37].mxu0  ;;  %9047 = vmatprep.mubr.msk.f32.mxu1 %vm1107_vm1, %v2209_v55  ;;  %v10128_v51 = vunpack.i.l.bf16 %v17532_v22  ;;  %v17534_v55 = vld [vmem:[#allocation150_spill] sm:$0xff] }
 0x6ce   : > { %8665 = vmatprep.mubr.msk.f32.mxu0 %vm1107_vm1, %v17517_v61  ;;  %9399 = vmatpush1.bf16.msra.mxu1 %v9398_v59  ;;  %v10239_v8 = vunpack.i.h.bf16 %v17534_v55 }
 0x6cf   : > { %9400 = vmatprep.subr.bf16.mxu1 %v17485_v21  ;;  %v9425_v0 = vpack.c.bf16 %v10129_v7, %v10128_v51 }
 0x6d0   : > { %v2214_v15 = vpop.f32.mrb[38].mxu0 }
 0x6d1   : > { %8666 = vmatmul.mubr.msk.f32.gmra.mrb[128].mxu0 %vm1107_vm1, %v17517_v61  ;;  %v2216_v18 = vpop.f32.mrb[39].mxu0  ;;  %9048 = vmatmul.mubr.msk.f32.gmra.mrb[68].mxu1 %vm1107_vm1, %v2214_v15  ;;  %v10238_v61 = vunpack.i.l.bf16 %v17534_v55  ;;  %v17536_v15 = vld [vmem:[#allocation154_spill] sm:$0xff] }
 0x6d2   : > { %8667 = vmatprep.mubr.msk.f32.mxu0 %vm1107_vm1, %v17519_v43  ;;  %9402 = vmatpush1.bf16.msra.mxu1 %v9401_v32  ;;  %v10249_v18 = vunpack.i.h.bf16 %v17536_v15  ;;  %v17551_v55 = vld [vmem:[#allocation50_spill] sm:$0xff] }
 0x6d3   : > { %9403 = vmatprep.subr.bf16.mxu1 %v17485_v21  ;;  %v9428_v37 = vpack.c.bf16 %v10239_v8, %v10238_v61 }
 0x6d4   : > { %v2219_v5 = vpop.f32.mrb[40].mxu0 }
 0x6d5   : > { %8668 = vmatmul.mubr.msk.f32.gmra.mrb[130].mxu0 %vm1107_vm1, %v17519_v43  ;;  %v2221_v14 = vpop.f32.mrb[41].mxu0  ;;  %9050 = vmatprep.mubr.msk.f32.mxu1 %vm1107_vm1, %v2219_v5  ;;  %v10248_v43 = vunpack.i.l.bf16 %v17536_v15  ;;  %v17538_v5 = vld [vmem:[#allocation156_spill] sm:$0xff] }
 0x6d6   : > { %8669 = vmatprep.mubr.msk.f32.mxu0 %vm1107_vm1, %v17521_v6  ;;  %9405 = vmatpush1.bf16.msra.mxu1 %v9404_v50  ;;  %v10259_v14 = vunpack.i.h.bf16 %v17538_v5 }
 0x6d7   : > { %9406 = vmatprep.subr.bf16.mxu1 %v17485_v21  ;;  %v9431_v58 = vpack.c.bf16 %v10249_v18, %v10248_v43 }
 0x6d8   : > { %v2224_v3 = vpop.f32.mrb[42].mxu0 }
 0x6d9   : > { %8670 = vmatmul.mubr.msk.f32.gmra.mrb[132].mxu0 %vm1107_vm1, %v17521_v6  ;;  %v2226_v27 = vpop.f32.mrb[43].mxu0  ;;  %9051 = vmatmul.mubr.msk.f32.gmra.mrb[70].mxu1 %vm1107_vm1, %v2224_v3  ;;  %v10258_v6 = vunpack.i.l.bf16 %v17538_v5  ;;  %v17540_v3 = vld [vmem:[#allocation165_spill] sm:$0xff]  ;;  %v17555_v5 = vld [vmem:[#allocation60_spill] sm:$0xff] }
 0x6da   : > { %8671 = vmatprep.mubr.msk.f32.mxu0 %vm1107_vm1, %v17523_v11  ;;  %9408 = vmatpush1.bf16.msra.mxu1 %v9407_v2  ;;  %v10269_v27 = vunpack.i.h.bf16 %v17540_v3 }
 0x6db   : > { %9409 = vmatprep.subr.bf16.mxu1 %v17485_v21  ;;  %v9434_v38 = vpack.c.bf16 %v10259_v14, %v10258_v6 }
 0x6dc   : > { %v2229_v46 = vpop.f32.mrb[44].mxu0 }
 0x6dd   : > { %8672 = vmatmul.mubr.msk.f32.gmra.mrb[134].mxu0 %vm1107_vm1, %v17523_v11  ;;  %v2231_v1 = vpop.f32.mrb[45].mxu0  ;;  %9053 = vmatprep.mubr.msk.f32.mxu1 %vm1107_vm1, %v2229_v46  ;;  %v10268_v11 = vunpack.i.l.bf16 %v17540_v3  ;;  %v17542_v46 = vld [vmem:[#allocation182_spill] sm:$0xff] }
 0x6de   : > { %8673 = vmatprep.mubr.msk.f32.mxu0 %vm1107_vm1, %v17525_v45  ;;  %9411 = vmatpush1.bf16.msra.mxu1 %v9410_v10  ;;  %v10289_v1 = vunpack.i.h.bf16 %v17542_v46 }
 0x6df   : > { %9412 = vmatprep.subr.bf16.mxu1 %v17485_v21  ;;  %v9437_v41 = vpack.c.bf16 %v10269_v27, %v10268_v11 }
 0x6e0   : > { %v2234_v62 = vpop.f32.mrb[46].mxu0 }
 0x6e1   : > { %8674 = vmatmul.mubr.msk.f32.gmra.mrb[136].mxu0 %vm1107_vm1, %v17525_v45  ;;  %v2236_v42 = vpop.f32.mrb[47].mxu0  ;;  %9054 = vmatmul.mubr.msk.f32.gmra.mrb[72].mxu1 %vm1107_vm1, %v2234_v62  ;;  %v10288_v45 = vunpack.i.l.bf16 %v17542_v46  ;;  %v17559_v46 = vld [vmem:[#allocation70_spill] sm:$0xff] }
 0x6e2   : > { %8675 = vmatprep.mubr.msk.f32.mxu0 %vm1107_vm1, %v17527_v44  ;;  %9414 = vmatpush1.bf16.msra.mxu1 %v9413_v48 }
 0x6e3   : > { %9415 = vmatprep.subr.bf16.mxu1 %v17485_v21  ;;  %v9440_v63 = vpack.c.bf16 %v10289_v1, %v10288_v45 }
 0x6e4   : > { %v2239_v39 = vpop.f32.mrb[48].mxu0 }
 0x6e5   : > { %8676 = vmatmul.mubr.msk.f32.gmra.mrb[138].mxu0 %vm1107_vm1, %v17527_v44  ;;  %v2241_v25 = vpop.f32.mrb[49].mxu0  ;;  %9056 = vmatprep.mubr.msk.f32.mxu1 %vm1107_vm1, %v2239_v39  ;;  %v17544_v44 = vld [vmem:[#allocation148_spill] sm:$0xff]  ;;  %v17546_v39 = vld [vmem:[#allocation123_spill] sm:$0xff] }
 0x6e6   : > { %8677 = vmatprep.mubr.msk.f32.mxu0 %vm1107_vm1, %v17529_v20  ;;  %9417 = vmatpush1.bf16.msra.mxu1 %v9416_v19  ;;  %v17545_v19 = vld [vmem:[#allocation44_spill] sm:$0xff]  ;;  %v10094_v25 = vunpack.i.h.bf16 %v17546_v39 }
 0x6e7   : > { %9418 = vmatprep.subr.bf16.mxu1 %v17485_v21  ;;  %v9849_v13 = vunpack.i.h.bf16 %v17545_v19  ;;  %v9848_v28 = vunpack.i.l.bf16 %v17545_v19  ;;  %v17562_v19 = vld [vmem:[#allocation162_spill] sm:$0xff] }
 0x6e8   : > { %v2244_v23 = vpop.f32.mrb[50].mxu0 }
 0x6e9   : > { %8678 = vmatmul.mubr.msk.f32.gmra.mrb[140].mxu0 %vm1107_vm1, %v17529_v20  ;;  %v2246_v31 = vpop.f32.mrb[51].mxu0  ;;  %9057 = vmatmul.mubr.msk.f32.gmra.mrb[74].mxu1 %vm1107_vm1, %v2244_v23  ;;  %v10093_v20 = vunpack.i.l.bf16 %v17546_v39  ;;  %v9541_v24 = vpack.c.bf16 %v9849_v13, %v9848_v28  ;;  %v10254_v13 = vunpack.i.h.bf16 %v17562_v19  ;;  %v10253_v28 = vunpack.i.l.bf16 %v17562_v19  ;;  %v17563_v39 = vld [vmem:[#allocation82_spill] sm:$0xff] }
 0x6ea   : > { %8679 = vmatprep.mubr.msk.f32.mxu0 %vm1107_vm1, %v17531_v40  ;;  %9420 = vmatpush1.bf16.msra.mxu1 %v9419_v56 }
 0x6eb   : > { %9421 = vmatprep.subr.bf16.mxu1 %v17485_v21  ;;  %v9544_v23 = vpack.c.bf16 %v10094_v25, %v10093_v20 }
 0x6ec   : > { %v2249_v59 = vpop.f32.mrb[52].mxu0 }
 0x6ed   : > { %8680 = vmatmul.mubr.msk.f32.gmra.mrb[142].mxu0 %vm1107_vm1, %v17531_v40  ;;  %v2251_v53 = vpop.f32.mrb[53].mxu0  ;;  %9059 = vmatprep.mubr.msk.f32.mxu1 %vm1107_vm1, %v2249_v59  ;;  %v17548_v40 = vld [vmem:[#allocation36_spill] sm:$0xff]  ;;  %v17550_v59 = vld [vmem:[#allocation127_spill] sm:$0xff] }
 0x6ee   : > { %8681 = vmatprep.mubr.msk.f32.mxu0 %vm1107_vm1, %v17533_v34  ;;  %9423 = vmatpush1.bf16.msra.mxu1 %v9422_v49  ;;  %v17549_v49 = vld [vmem:[#allocation53_spill] sm:$0xff]  ;;  %v10124_v53 = vunpack.i.h.bf16 %v17550_v59 }
 0x6ef   : > { %9424 = vmatprep.subr.bf16.mxu1 %v17485_v21  ;;  %v9879_v22 = vunpack.i.h.bf16 %v17549_v49  ;;  %v9878_v7 = vunpack.i.l.bf16 %v17549_v49  ;;  %v17566_v49 = vld [vmem:[#allocation175_spill] sm:$0xff] }
 0x6f0   : > { %v2254_v32 = vpop.f32.mrb[54].mxu0 }
 0x6f1   : > { %8682 = vmatmul.mubr.msk.f32.gmra.mrb[144].mxu0 %vm1107_vm1, %v17533_v34  ;;  %v2256_v9 = vpop.f32.mrb[55].mxu0  ;;  %9060 = vmatmul.mubr.msk.f32.gmra.mrb[76].mxu1 %vm1107_vm1, %v2254_v32  ;;  %v10123_v34 = vunpack.i.l.bf16 %v17550_v59  ;;  %v9547_v8 = vpack.c.bf16 %v9879_v22, %v9878_v7  ;;  %v10274_v22 = vunpack.i.h.bf16 %v17566_v49  ;;  %v10273_v7 = vunpack.i.l.bf16 %v17566_v49  ;;  %v17567_v59 = vld [vmem:[#allocation89_spill] sm:$0xff] }
 0x6f2   : > { %8683 = vmatprep.mubr.msk.f32.mxu0 %vm1107_vm1, %v17535_v35  ;;  %9426 = vmatpush1.bf16.msra.mxu1 %v9425_v0 }
 0x6f3   : > { %9427 = vmatprep.subr.bf16.mxu1 %v17485_v21  ;;  %v9550_v32 = vpack.c.bf16 %v10124_v53, %v10123_v34 }
 0x6f4   : > { %v2259_v50 = vpop.f32.mrb[56].mxu0 }
 0x6f5   : > { %8684 = vmatmul.mubr.msk.f32.gmra.mrb[146].mxu0 %vm1107_vm1, %v17535_v35  ;;  %v2261_v30 = vpop.f32.mrb[57].mxu0  ;;  %9062 = vmatprep.mubr.msk.f32.mxu1 %vm1107_vm1, %v2259_v50  ;;  %v17552_v35 = vld [vmem:[#allocation46_spill] sm:$0xff]  ;;  %v17554_v50 = vld [vmem:[#allocation133_spill] sm:$0xff] }
 0x6f6   : > { %8685 = vmatprep.mubr.msk.f32.mxu0 %vm1107_vm1, %v17537_v52  ;;  %9429 = vmatpush1.bf16.msra.mxu1 %v9428_v37  ;;  %v17553_v37 = vld [vmem:[#allocation61_spill] sm:$0xff]  ;;  %v10154_v30 = vunpack.i.h.bf16 %v17554_v50 }
 0x6f7   : > { %9430 = vmatprep.subr.bf16.mxu1 %v17485_v21  ;;  %v9909_v15 = vunpack.i.h.bf16 %v17553_v37  ;;  %v9908_v18 = vunpack.i.l.bf16 %v17553_v37  ;;  %v17570_v37 = vld [vmem:[#allocation183_spill] sm:$0xff] }
 0x6f8   : > { %v2264_v2 = vpop.f32.mrb[58].mxu0 }
 0x6f9   : > { %8686 = vmatmul.mubr.msk.f32.gmra.mrb[148].mxu0 %vm1107_vm1, %v17537_v52  ;;  %v2266_v54 = vpop.f32.mrb[59].mxu0  ;;  %9063 = vmatmul.mubr.msk.f32.gmra.mrb[78].mxu1 %vm1107_vm1, %v2264_v2  ;;  %v10153_v52 = vunpack.i.l.bf16 %v17554_v50  ;;  %v9553_v14 = vpack.c.bf16 %v9909_v15, %v9908_v18  ;;  %v10294_v15 = vunpack.i.h.bf16 %v17570_v37  ;;  %v10293_v18 = vunpack.i.l.bf16 %v17570_v37  ;;  %v17571_v50 = vld [vmem:[#allocation95_spill] sm:$0xff] }
 0x6fa   : > { %8687 = vmatprep.mubr.msk.f32.mxu0 %vm1107_vm1, %v17539_v47  ;;  %9432 = vmatpush1.bf16.msra.mxu1 %v9431_v58 }
 0x6fb   : > { %9433 = vmatprep.subr.bf16.mxu1 %v17485_v21  ;;  %v9556_v2 = vpack.c.bf16 %v10154_v30, %v10153_v52  ;;  %v9580_v52 = vpack.c.bf16 %v10294_v15, %v10293_v18 }
 0x6fc   : > { %v2269_v10 = vpop.f32.mrb[60].mxu0 }
 0x6fd   : > { %8688 = vmatmul.mubr.msk.f32.gmra.mrb[150].mxu0 %vm1107_vm1, %v17539_v47  ;;  %v2271_v60 = vpop.f32.mrb[61].mxu0  ;;  %9065 = vmatprep.mubr.msk.f32.mxu1 %vm1107_vm1, %v2269_v10  ;;  %v17556_v47 = vld [vmem:[#allocation56_spill] sm:$0xff]  ;;  %v17558_v10 = vld [vmem:[#allocation153_spill] sm:$0xff] }
 0x6fe   : > { %8689 = vmatprep.mubr.msk.f32.mxu0 %vm1107_vm1, %v17541_v36  ;;  %9435 = vmatpush1.bf16.msra.mxu1 %v9434_v38  ;;  %v17557_v38 = vld [vmem:[#allocation71_spill] sm:$0xff]  ;;  %v10234_v60 = vunpack.i.h.bf16 %v17558_v10 }
 0x6ff   : > { %9436 = vmatprep.subr.bf16.mxu1 %v17485_v21  ;;  %v9939_v3 = vunpack.i.h.bf16 %v17557_v38  ;;  %v9938_v27 = vunpack.i.l.bf16 %v17557_v38  ;;  %v17576_v38 = vld [vmem:[#allocation114_spill] sm:$0xff] }
 0x700   : > { %v2274_v48 = vpop.f32.mrb[62].mxu0 }
 0x701   : > { %8690 = vmatmul.mubr.msk.f32.gmra.mrb[152].mxu0 %vm1107_vm1, %v17541_v36  ;;  %v2276_v12 = vpop.f32.mrb[63].mxu0  ;;  %9066 = vmatmul.mubr.msk.f32.gmra.mrb[80].mxu1 %vm1107_vm1, %v2274_v48  ;;  %v10233_v36 = vunpack.i.l.bf16 %v17558_v10  ;;  %v9559_v1 = vpack.c.bf16 %v9939_v3, %v9938_v27  ;;  %v17577_v3 = vld [vmem:[#allocation108_spill] sm:$0xff] }
 0x702   : > { %8691 = vmatprep.mubr.msk.f32.mxu0 %vm1107_vm1, %v17543_v17  ;;  %9438 = vmatpush1.bf16.msra.mxu1 %v9437_v41  ;;  %v17579_v27 = vld [vmem:[#allocation116_spill] sm:$0xff] }
 0x703   : > { %9439 = vmatprep.subr.bf16.mxu1 %v17485_v21  ;;  %v9562_v48 = vpack.c.bf16 %v10234_v60, %v10233_v36  ;;  %v17581_v36 = vld [vmem:[#allocation121_spill] sm:$0xff] }
 0x704   : > { %v2279_v62 = vpop.f32.mrb[64].mxu0 }
 0x705   : > { %8692 = vmatmul.mubr.msk.f32.gmra.mrb[154].mxu0 %vm1107_vm1, %v17543_v17  ;;  %v2281_v42 = vpop.f32.mrb[65].mxu0  ;;  %9068 = vmatprep.mubr.msk.f32.mxu1 %vm1107_vm1, %v2279_v62  ;;  %v17560_v17 = vld [vmem:[#allocation64_spill] sm:$0xff] }
 0x706   : > { %8693 = vmatprep.mubr.msk.f32.mxu0 %vm1107_vm1, %v17544_v44  ;;  %9441 = vmatpush1.bf16.msra.mxu1 %v9440_v63  ;;  %v17561_v63 = vld [vmem:[#allocation152_spill] sm:$0xff] }
 0x707   : > { %v10244_v62 = vunpack.i.h.bf16 %v17561_v63  ;;  %v10243_v42 = vunpack.i.l.bf16 %v17561_v63 }
 0x708   : > { %v2284_v26 = vpop.f32.mrb[66].mxu0 }
 0x709   : > { %8694 = vmatmul.mubr.msk.f32.gmra.mrb[156].mxu0 %vm1107_vm1, %v17544_v44  ;;  %v2286_v56 = vpop.f32.mrb[67].mxu0  ;;  %9069 = vmatmul.mubr.msk.f32.gmra.mrb[82].mxu1 %vm1107_vm1, %v2284_v26  ;;  %v9565_v25 = vpack.c.bf16 %v10244_v62, %v10243_v42 }
 0x70a   : > { %8760 = vmatprep.mubr.msk.f32.mxu0 %vm1107_vm1, %v17547_v29  ;;  %v9568_v56 = vpack.c.bf16 %v10254_v13, %v10253_v28  ;;  %v17583_v13 = vld [vmem:[#allocation151_spill] sm:$0xff] }
 0x70c   : > { %v2289_v16 = vpop.f32.mrb[68].mxu0 }
 0x70d   : > { %8761 = vmatmul.mubr.msk.f32.vlgmr.msra.gmra.mrb[158].mxu0 %vm1107_vm1, %v17547_v29  ;;  %v2291_v31 = vpop.f32.mrb[69].mxu0  ;;  %9071 = vmatprep.mubr.msk.f32.mxu1 %vm1107_vm1, %v2289_v16  ;;  %v17565_v16 = vld [vmem:[#allocation160_spill] sm:$0xff] }
 0x70e   : > { %9543 = vmatpush3.bf16.xpose.msk.msra.mxu0 %vm12434_vm2, %v9541_v24  ;;  %8762 = vmatprep.mubr.msk.f32.mxu0 %vm1107_vm1, %v17548_v40  ;;  %v17564_v24 = vld [vmem:[#allocation74_spill] sm:$0xff]  ;;  %v10263_v31 = vunpack.i.l.bf16 %v17565_v16 }
 0x70f   : > { %9546 = vmatprep.subr.msk.bf16.mxu0 %vm12434_vm2, %v9544_v23  ;;  %v10264_v23 = vunpack.i.h.bf16 %v17565_v16 }
 0x710   : > { %v2294_v51 = vpop.f32.mrb[70].mxu0 }
 0x711   : > { %8763 = vmatmul.mubr.msk.f32.gmra.mrb[160].mxu0 %vm1107_vm1, %v17548_v40  ;;  %v2296_v0 = vpop.f32.mrb[71].mxu0  ;;  %9072 = vmatmul.mubr.msk.f32.gmra.mrb[84].mxu1 %vm1107_vm1, %v2294_v51  ;;  %v9571_v53 = vpack.c.bf16 %v10264_v23, %v10263_v31 }
 0x712   : > { %8764 = vmatprep.mubr.msk.f32.mxu0 %vm1107_vm1, %v17551_v55  ;;  %v9574_v0 = vpack.c.bf16 %v10274_v22, %v10273_v7 }
 0x714   : > { %v2299_v61 = vpop.f32.mrb[72].mxu0 }
 0x715   : > { %8765 = vmatmul.mubr.msk.f32.gmra.mrb[162].mxu0 %vm1107_vm1, %v17551_v55  ;;  %v2301_v9 = vpop.f32.mrb[73].mxu0  ;;  %9074 = vmatprep.mubr.msk.f32.mxu1 %vm1107_vm1, %v2299_v61  ;;  %v17569_v61 = vld [vmem:[#allocation170_spill] sm:$0xff] }
 0x716   : > { %9549 = vmatpush3.bf16.xpose.msk.msra.mxu0 %vm12434_vm2, %v9547_v8  ;;  %8766 = vmatprep.mubr.msk.f32.mxu0 %vm1107_vm1, %v17552_v35  ;;  %v17568_v8 = vld [vmem:[#allocation84_spill] sm:$0xff]  ;;  %v10278_v9 = vunpack.i.l.bf16 %v17569_v61 }
 0x717   : > { %9552 = vmatprep.subr.msk.bf16.mxu0 %vm12434_vm2, %v9550_v32  ;;  %v10279_v32 = vunpack.i.h.bf16 %v17569_v61 }
 0x718   : > { %v2304_v43 = vpop.f32.mrb[74].mxu0 }
 0x719   : > { %8767 = vmatmul.mubr.msk.f32.gmra.mrb[164].mxu0 %vm1107_vm1, %v17552_v35  ;;  %v2306_v58 = vpop.f32.mrb[75].mxu0  ;;  %9075 = vmatmul.mubr.msk.f32.gmra.mrb[86].mxu1 %vm1107_vm1, %v2304_v43  ;;  %v9577_v30 = vpack.c.bf16 %v10279_v32, %v10278_v9  ;;  %v17587_v32 = vld [vmem:[#allocation172_spill] sm:$0xff] }
 0x71a   : > { %8768 = vmatprep.mubr.msk.f32.mxu0 %vm1107_vm1, %v17555_v5  ;;  %v17572_v58 = vld [vmem:[#allocation86_spill] sm:$0xff] }
 0x71c   : > { %v2309_v6 = vpop.f32.mrb[76].mxu0 }
 0x71d   : > { %8769 = vmatmul.mubr.msk.f32.gmra.mrb[166].mxu0 %vm1107_vm1, %v17555_v5  ;;  %v2311_v54 = vpop.f32.mrb[77].mxu0  ;;  %9077 = vmatprep.mubr.msk.f32.mxu1 %vm1107_vm1, %v2309_v6  ;;  %v17573_v5 = vld [vmem:[#allocation187_spill] sm:$0xff] }
 0x71e   : > { %9555 = vmatpush3.bf16.xpose.msk.msra.mxu0 %vm12434_vm2, %v9553_v14  ;;  %8770 = vmatprep.mubr.msk.f32.mxu0 %vm1107_vm1, %v17556_v47  ;;  %v10299_v14 = vunpack.i.h.bf16 %v17573_v5  ;;  %v10298_v6 = vunpack.i.l.bf16 %v17573_v5 }
 0x71f   : > { %9558 = vmatprep.subr.msk.bf16.mxu0 %vm12434_vm2, %v9556_v2  ;;  %v17574_v2 = vld [vmem:[#allocation103_spill] sm:$0xff] }
 0x720   : > { %v2314_v11 = vpop.f32.mrb[78].mxu0  ;;  %v9583_v54 = vpack.c.bf16 %v10299_v14, %v10298_v6  ;;  %v17589_v14 = vld [vmem:[#allocation184_spill] sm:$0xff] }
 0x721   : > { %8771 = vmatmul.mubr.msk.f32.gmra.mrb[168].mxu0 %vm1107_vm1, %v17556_v47  ;;  %v2316_v41 = vpop.f32.mrb[79].mxu0  ;;  %9078 = vmatmul.mubr.msk.f32.gmra.mrb[88].mxu1 %vm1107_vm1, %v2314_v11  ;;  %v17575_v47 = vld [vmem:[#allocation100_spill] sm:$0xff] }
 0x722   : > { %8772 = vmatprep.mubr.msk.f32.mxu0 %vm1107_vm1, %v17559_v46  ;;  %v17580_v11 = vld [vmem:[#allocation128_spill] sm:$0xff] }
 0x724   : > { %v2319_v45 = vpop.f32.mrb[80].mxu0 }
 0x725   : > { %8773 = vmatmul.mubr.msk.f32.gmra.mrb[170].mxu0 %vm1107_vm1, %v17559_v46  ;;  %v2321_v12 = vpop.f32.mrb[81].mxu0  ;;  %9080 = vmatprep.mubr.msk.f32.mxu1 %vm1107_vm1, %v2319_v45 }
 0x726   : > { %9561 = vmatpush3.bf16.xpose.msk.msra.mxu0 %vm12434_vm2, %v9559_v1  ;;  %8774 = vmatprep.mubr.msk.f32.mxu0 %vm1107_vm1, %v17560_v17 }
 0x727   : > { %9564 = vmatprep.subr.msk.bf16.mxu0 %vm12434_vm2, %v9562_v48 }
 0x728   : > { %v2324_v44 = vpop.f32.mrb[82].mxu0 }
 0x729   : > { %8775 = vmatmul.mubr.msk.f32.gmra.mrb[172].mxu0 %vm1107_vm1, %v17560_v17  ;;  %v2326_v26 = vpop.f32.mrb[83].mxu0  ;;  %9081 = vmatmul.mubr.msk.f32.gmra.mrb[90].mxu1 %vm1107_vm1, %v2324_v44  ;;  %v17582_v17 = vld [vmem:[#allocation136_spill] sm:$0xff] }
 0x72a   : > { %8776 = vmatprep.mubr.msk.f32.mxu0 %vm1107_vm1, %v17563_v39 }
 0x72c   : > { %v2329_v20 = vpop.f32.mrb[84].mxu0 }
 0x72d   : > { %8777 = vmatmul.mubr.msk.f32.gmra.mrb[174].mxu0 %vm1107_vm1, %v17563_v39  ;;  %v2331_v29 = vpop.f32.mrb[85].mxu0  ;;  %9083 = vmatprep.mubr.msk.f32.mxu1 %vm1107_vm1, %v2329_v20 }
 0x72e   : > { %9567 = vmatpush3.bf16.xpose.msk.msra.mxu0 %vm12434_vm2, %v9565_v25  ;;  %8778 = vmatprep.mubr.msk.f32.mxu0 %vm1107_vm1, %v17564_v24 }
 0x72f   : > { %9570 = vmatprep.subr.msk.bf16.mxu0 %vm12434_vm2, %v9568_v56  ;;  %v17584_v56 = vld [vmem:[#allocation155_spill] sm:$0xff] }
 0x730   : > { %v2334_v40 = vpop.f32.mrb[86].mxu0 }
 0x731   : > { %8779 = vmatmul.mubr.msk.f32.gmra.mrb[176].mxu0 %vm1107_vm1, %v17564_v24  ;;  %v2336_v51 = vpop.f32.mrb[87].mxu0  ;;  %9084 = vmatmul.mubr.msk.f32.gmra.mrb[92].mxu1 %vm1107_vm1, %v2334_v40  ;;  %v17585_v40 = vld [vmem:[#allocation157_spill] sm:$0xff] }
 0x732   : > { %8780 = vmatprep.mubr.msk.f32.mxu0 %vm1107_vm1, %v17567_v59 }
 0x734   : > { %v2339_v34 = vpop.f32.mrb[88].mxu0 }
 0x735   : > { %8781 = vmatmul.mubr.msk.f32.gmra.mrb[178].mxu0 %vm1107_vm1, %v17567_v59  ;;  %v2341_v55 = vpop.f32.mrb[89].mxu0  ;;  %9086 = vmatprep.mubr.msk.f32.mxu1 %vm1107_vm1, %v2339_v34 }
 0x736   : > { %9573 = vmatpush3.bf16.xpose.msk.msra.mxu0 %vm12434_vm2, %v9571_v53  ;;  %8782 = vmatprep.mubr.msk.f32.mxu0 %vm1107_vm1, %v17568_v8  ;;  %v17586_v53 = vld [vmem:[#allocation167_spill] sm:$0xff] }
 0x737   : > { %9576 = vmatprep.subr.msk.bf16.mxu0 %vm12434_vm2, %v9574_v0 }
 0x738   : > { %v2344_v35 = vpop.f32.mrb[90].mxu0 }
 0x739   : > { %8783 = vmatmul.mubr.msk.f32.gmra.mrb[180].mxu0 %vm1107_vm1, %v17568_v8  ;;  %v2346_v43 = vpop.f32.mrb[91].mxu0  ;;  %9087 = vmatmul.mubr.msk.f32.gmra.mrb[94].mxu1 %vm1107_vm1, %v2344_v35 }
 0x73a   : > { %8784 = vmatprep.mubr.msk.f32.mxu0 %vm1107_vm1, %v17571_v50  ;;  %v17588_v43 = vld [vmem:[#allocation180_spill] sm:$0xff] }
 0x73d   : > { %8785 = vmatmul.mubr.msk.f32.gmra.mrb[182].mxu0 %vm1107_vm1, %v17571_v50 }
 0x73e   : > { %9579 = vmatpush3.bf16.xpose.msk.msra.mxu0 %vm12434_vm2, %v9577_v30  ;;  %8786 = vmatprep.mubr.msk.f32.mxu0 %vm1107_vm1, %v17572_v58 }
 0x73f   : > { %9582 = vmatprep.subr.msk.bf16.mxu0 %vm12434_vm2, %v9580_v52 }
 0x741   : > { %8787 = vmatmul.mubr.msk.f32.gmra.mrb[184].mxu0 %vm1107_vm1, %v17572_v58 }
 0x742   : > { %8788 = vmatprep.mubr.msk.f32.mxu0 %vm1107_vm1, %v17574_v2 }
 0x745   : > { %8789 = vmatmul.mubr.msk.f32.gmra.mrb[186].mxu0 %vm1107_vm1, %v17574_v2 }
 0x746   : > { %9585 = vmatpush3.bf16.xpose.msk.msra.mxu0 %vm12434_vm2, %v9583_v54  ;;  %8790 = vmatprep.mubr.msk.f32.mxu0 %vm1107_vm1, %v17575_v47 }
 0x747   : > { %9586 = vmatprep.subr.bf16.mxu0 %v17485_v21 }
 0x749   : > { %8791 = vmatmul.mubr.msk.f32.gmra.mrb[188].mxu0 %vm1107_vm1, %v17575_v47 }
 0x74a   : > { %8792 = vmatprep.mubr.msk.f32.mxu0 %vm1107_vm1, %v17576_v38 }
 0x74d   : > { %8793 = vmatmul.mubr.msk.f32.gmra.mrb[190].mxu0 %vm1107_vm1, %v17576_v38 }
 0x74e   : > { %8794 = vmatprep.mubr.msk.f32.mxu0 %vm1107_vm1, %v17577_v3 }
 0x751   : > { %8795 = vmatmul.mubr.msk.f32.gmra.mrb[192].mxu0 %vm1107_vm1, %v17577_v3  ;;  %v17590_v3 = vld [vmem:[#allocation185_spill] sm:$0xff] }
 0x752   : > { %8796 = vmatprep.mubr.msk.f32.mxu0 %vm1107_vm1, %v17578_v57 }
 0x755   : > { %8797 = vmatmul.mubr.msk.f32.gmra.mrb[194].mxu0 %vm1107_vm1, %v17578_v57 }
 0x756   : > { %8798 = vmatprep.mubr.msk.f32.mxu0 %vm1107_vm1, %v17579_v27 }
 0x759   : > { %8799 = vmatmul.mubr.msk.f32.gmra.mrb[196].mxu0 %vm1107_vm1, %v17579_v27 }
 0x75a   : > { %8800 = vmatprep.mubr.msk.f32.mxu0 %vm1107_vm1, %v17580_v11 }
 0x75c   : > { %v2349_v10 = vpop.f32.mrb[92].mxu0 }
 0x75d   : > { %v2351_v60 = vpop.f32.mrb[93].mxu0  ;;  %9089 = vmatprep.mubr.msk.f32.mxu1 %vm1107_vm1, %v2349_v10  ;;  %8801 = vmatmul.mubr.msk.f32.gmra.mrb[198].mxu0 %vm1107_vm1, %v17580_v11 }
 0x75e   : > { %8802 = vmatprep.mubr.msk.f32.mxu0 %vm1107_vm1, %v17581_v36 }
 0x760   : > { %v2354_v41 = vpop.f32.mrb[64].mxu1  ;;  %v3034_v46 = vpop.f32.mrb[94].mxu0 }
 0x761   : > { %v13882_v1 = vmul.f32 0.35355338, %v3034_v46  ;;  %v2356_v45 = vpop.f32.mrb[65].mxu1  ;;  %9090 = vmatmul.mubr.msk.f32.gmra.mrb[96].mxu1 %vm1107_vm1, %v2354_v41  ;;  %v3036_v48 = vpop.f32.mrb[95].mxu0  ;;  %8803 = vmatmul.mubr.msk.f32.gmra.mrb[200].mxu0 %vm1107_vm1, %v17581_v36  ;;  %v17591_v36 = vld [vmem:[#allocation186_spill] sm:$0xff] }
 0x762   : > { %v13887_v12 = vmul.f32 0.35355338, %v3036_v48  ;;  %8804 = vmatprep.mubr.msk.f32.mxu0 %vm1107_vm1, %v17582_v17 }
 0x764   : > { %v3289_v63 = vmax.f32 %v13882_v1, %v13887_v12  ;;  %v3040_v62 = vpop.f32.mrb[96].mxu0 }
 0x765   : > { %v13893_v42 = vmul.f32 0.35355338, %v3040_v62  ;;  %v3042_v44 = vpop.f32.mrb[97].mxu0  ;;  %8805 = vmatmul.mubr.msk.f32.gmra.mrb[202].mxu0 %vm1107_vm1, %v17582_v17 }
 0x766   : > { %v13897_v19 = vmul.f32 0.35355338, %v3042_v44  ;;  %8806 = vmatprep.mubr.msk.f32.mxu0 %vm1107_vm1, %v17583_v13  ;;  %3290 = vmax.xlane.f32.xlu1 %v3289_v63  ;;  %v17592_v63 = vld [vmem:[#allocation189_spill] sm:$0xff] }
 0x768   : > { %v3292_v28 = vmax.f32 %v13893_v42, %v13897_v19  ;;  %v3046_v26 = vpop.f32.mrb[98].mxu0 }
 0x769   : > { %v13903_v39 = vmul.f32 0.35355338, %v3046_v26  ;;  %v3048_v25 = vpop.f32.mrb[99].mxu0  ;;  %8807 = vmatmul.mubr.msk.f32.gmra.mrb[204].mxu0 %vm1107_vm1, %v17583_v13 }
 0x76a   : > { %v13907_v20 = vmul.f32 0.35355338, %v3048_v25  ;;  %8808 = vmatprep.mubr.msk.f32.mxu0 %vm1107_vm1, %v17584_v56  ;;  %3293 = vmax.xlane.f32.xlu0 %v3292_v28  ;;  %v17593_v25 = vld [vmem:[#allocation188_spill] sm:$0xff] }
 0x76c   : > { %v3295_v29 = vmax.f32 %v13903_v39, %v13907_v20  ;;  %v3052_v24 = vpop.f32.mrb[100].mxu0 }
 0x76d   : > { %v13913_v16 = vmul.f32 0.35355338, %v3052_v24  ;;  %v3054_v23 = vpop.f32.mrb[101].mxu0  ;;  %8809 = vmatmul.mubr.msk.f32.gmra.mrb[206].mxu0 %vm1107_vm1, %v17584_v56 }
 0x76e   : > { %v13917_v31 = vmul.f32 0.35355338, %v3054_v23  ;;  %8810 = vmatprep.mubr.msk.f32.mxu0 %vm1107_vm1, %v17585_v40  ;;  %3296 = vmax.xlane.f32.xlu0 %v3295_v29 }
 0x770   : > { %v3298_v49 = vmax.f32 %v13913_v16, %v13917_v31  ;;  %v3058_v22 = vpop.f32.mrb[102].mxu0 }
 0x771   : > { %v13923_v7 = vmul.f32 0.35355338, %v3058_v22  ;;  %v3060_v51 = vpop.f32.mrb[103].mxu0  ;;  %8811 = vmatmul.mubr.msk.f32.gmra.mrb[208].mxu0 %vm1107_vm1, %v17585_v40 }
 0x772   : > { %v13927_v59 = vmul.f32 0.35355338, %v3060_v51  ;;  %8812 = vmatprep.mubr.msk.f32.mxu0 %vm1107_vm1, %v17586_v53  ;;  %3299 = vmax.xlane.f32.xlu1 %v3298_v49 }
 0x774   : > { %v3301_v34 = vmax.f32 %v13923_v7, %v13927_v59  ;;  %v3064_v0 = vpop.f32.mrb[104].mxu0 }
 0x775   : > { %v13933_v55 = vmul.f32 0.35355338, %v3064_v0  ;;  %v3066_v8 = vpop.f32.mrb[105].mxu0  ;;  %8813 = vmatmul.mubr.msk.f32.gmra.mrb[210].mxu0 %vm1107_vm1, %v17586_v53  ;;  %v17594_v0 = vld [vmem:[#allocation14_spill] sm:$0xff] }
 0x776   : > { %v13937_v61 = vmul.f32 0.35355338, %v3066_v8  ;;  %8814 = vmatprep.mubr.msk.f32.mxu0 %vm1107_vm1, %v17587_v32  ;;  %3302 = vmax.xlane.f32.xlu0 %v3301_v34 }
 0x778   : > { %v3304_v9 = vmax.f32 %v13933_v55, %v13937_v61  ;;  %v3070_v35 = vpop.f32.mrb[106].mxu0 }
 0x779   : > { %v13943_v37 = vmul.f32 0.35355338, %v3070_v35  ;;  %v3072_v15 = vpop.f32.mrb[107].mxu0  ;;  %8815 = vmatmul.mubr.msk.f32.gmra.mrb[212].mxu0 %vm1107_vm1, %v17587_v32 }
 0x77a   : > { %v13947_v18 = vmul.f32 0.35355338, %v3072_v15  ;;  %8816 = vmatprep.mubr.msk.f32.mxu0 %vm1107_vm1, %v17588_v43  ;;  %3305 = vmax.xlane.f32.xlu0 %v3304_v9  ;;  %v6187_v9 = vpop.permute.xlu0 %6186 }
 0x77c   : > { %v3307_v50 = vmax.f32 %v13943_v37, %v13947_v18  ;;  %v3076_v30 = vpop.f32.mrb[108].mxu0 }
 0x77d   : > { %v13953_v52 = vmul.f32 0.35355338, %v3076_v30  ;;  %v3078_v58 = vpop.f32.mrb[109].mxu0  ;;  %8817 = vmatmul.mubr.msk.f32.gmra.mrb[214].mxu0 %vm1107_vm1, %v17588_v43 }
 0x77e   : > { %v13957_v5 = vmul.f32 0.35355338, %v3078_v58  ;;  %8818 = vmatprep.mubr.msk.f32.mxu0 %vm1107_vm1, %v17589_v14  ;;  %3308 = vmax.xlane.f32.xlu1 %v3307_v50 }
 0x780   : > { %v3310_v6 = vmax.f32 %v13953_v52, %v13957_v5  ;;  %v3082_v2 = vpop.f32.mrb[110].mxu0 }
 0x781   : > { %v13963_v54 = vmul.f32 0.35355338, %v3082_v2  ;;  %v3084_v47 = vpop.f32.mrb[111].mxu0  ;;  %8819 = vmatmul.mubr.msk.f32.gmra.mrb[216].mxu0 %vm1107_vm1, %v17589_v14 }
 0x782   : > { %v13967_v38 = vmul.f32 0.35355338, %v3084_v47  ;;  %8820 = vmatprep.mubr.msk.f32.mxu0 %vm1107_vm1, %v17590_v3  ;;  %3311 = vmax.xlane.f32.xlu0 %v3310_v6 }
 0x784   : > { %v3313_v57 = vmax.f32 %v13963_v54, %v13967_v38  ;;  %v3088_v27 = vpop.f32.mrb[112].mxu0 }
 0x785   : > { %v13973_v11 = vmul.f32 0.35355338, %v3088_v27  ;;  %v3090_v10 = vpop.f32.mrb[113].mxu0  ;;  %8821 = vmatmul.mubr.msk.f32.gmra.mrb[218].mxu0 %vm1107_vm1, %v17590_v3 }
 0x786   : > { %v13977_v60 = vmul.f32 0.35355338, %v3090_v10  ;;  %8822 = vmatprep.mubr.msk.f32.mxu0 %vm1107_vm1, %v17591_v36  ;;  %3314 = vmax.xlane.f32.xlu0 %v3313_v57 }
 0x788   : > { %v3316_v41 = vmax.f32 %v13973_v11, %v13977_v60  ;;  %v3094_v46 = vpop.f32.mrb[114].mxu0 }
 0x789   : > { %v13983_v45 = vmul.f32 0.35355338, %v3094_v46  ;;  %v3096_v48 = vpop.f32.mrb[115].mxu0  ;;  %8823 = vmatmul.mubr.msk.f32.gmra.mrb[220].mxu0 %vm1107_vm1, %v17591_v36 }
 0x78a   : > { %v13987_v17 = vmul.f32 0.35355338, %v3096_v48  ;;  %8889 = vmatprep.mubr.msk.f32.mxu0 %vm1107_vm1, %v17592_v63  ;;  %3317 = vmax.xlane.f32.xlu0 %v3316_v41 }
 0x78c   : > { %v3319_v62 = vmax.f32 %v13983_v45, %v13987_v17  ;;  %v3100_v44 = vpop.f32.mrb[116].mxu0 }
 0x78d   : > { %v13993_v13 = vmul.f32 0.35355338, %v3100_v44  ;;  %v3102_v28 = vpop.f32.mrb[117].mxu0  ;;  %8890 = vmatmul.mubr.msk.f32.vlgmr.msra.gmra.mrb[222].mxu0 %vm1107_vm1, %v17592_v63 }
 0x78e   : > { %v13997_v26 = vmul.f32 0.35355338, %v3102_v28  ;;  %8891 = vmatprep.mubr.msk.f32.mxu0 %vm1107_vm1, %v17593_v25  ;;  %3320 = vmax.xlane.f32.xlu0 %v3319_v62 }
 0x790   : > { %v3322_v56 = vmax.f32 %v13993_v13, %v13997_v26  ;;  %v3106_v29 = vpop.f32.mrb[118].mxu0 }
 0x791   : > { %v14003_v24 = vmul.f32 0.35355338, %v3106_v29  ;;  %v3108_v23 = vpop.f32.mrb[119].mxu0  ;;  %8892 = vmatmul.mubr.msk.f32.gmra.mrb[224].mxu0 %vm1107_vm1, %v17593_v25 }
 0x792   : > { %v14007_v40 = vmul.f32 0.35355338, %v3108_v23  ;;  %8893 = vmatprep.mubr.msk.f32.mxu0 %vm1107_vm1, %v13379_v4  ;;  %3323 = vmax.xlane.f32.xlu0 %v3322_v56 }
 0x794   : > { %v3325_v49 = vmax.f32 %v14003_v24, %v14007_v40  ;;  %v3112_v22 = vpop.f32.mrb[120].mxu0 }
 0x795   : > { %v14013_v51 = vmul.f32 0.35355338, %v3112_v22  ;;  %v3114_v53 = vpop.f32.mrb[121].mxu0  ;;  %8894 = vmatmul.mubr.msk.f32.gmra.mrb[226].mxu0 %vm1107_vm1, %v13379_v4 }
 0x796   : > { %v14017_v34 = vmul.f32 0.35355338, %v3114_v53  ;;  %8895 = vmatprep.mubr.msk.f32.mxu0 %vm1107_vm1, %v17594_v0  ;;  %3326 = vmax.xlane.f32.xlu0 %v3325_v49 }
 0x798   : > { %v3328_v8 = vmax.f32 %v14013_v51, %v14017_v34  ;;  %v3118_v32 = vpop.f32.mrb[122].mxu0 }
 0x799   : > { %v14023_v35 = vmul.f32 0.35355338, %v3118_v32  ;;  %v3120_v15 = vpop.f32.mrb[123].mxu0  ;;  %8896 = vmatmul.mubr.msk.f32.gmra.mrb[228].mxu0 %vm1107_vm1, %v17594_v0 }
 0x79a   : > { %v14027_v43 = vmul.f32 0.35355338, %v3120_v15  ;;  %3329 = vmax.xlane.f32.xlu0 %v3328_v8  ;;  %8897 = vmatprep.mubr.msk.f32.mxu0 %vm1107_vm1, %v6187_v9 }
 0x79c   : > { %v3331_v4 = vmax.f32 %v14023_v35, %v14027_v43  ;;  %v3124_v50 = vpop.f32.mrb[124].mxu0 }
 0x79d   : > { %v14032_v30 = vmul.f32 0.35355338, %v3124_v50  ;;  %v3126_v58 = vpop.f32.mrb[125].mxu0  ;;  %8898 = vmatmul.mubr.msk.f32.gmra.mrb[230].mxu0 %vm1107_vm1, %v6187_v9 }
 0x79e   : > { %v14035_v14 = vmul.f32 0.35355338, %v3126_v58  ;;  %3332 = vmax.xlane.f32.xlu1 %v3331_v4  ;;  %8899 = vmatprep.mubr.msk.f32.mxu0 %vm1107_vm1, %v13457_v33 }
 0x7a0   : > { %v3334_v6 = vmax.f32 %v14032_v30, %v14035_v14  ;;  %v3130_v2 = vpop.f32.mrb[126].mxu0 }
 0x7a1   : > { %v14041_v47 = vmul.f32 0.35355338, %v3130_v2  ;;  %v3132_v3 = vpop.f32.mrb[127].mxu0  ;;  %8900 = vmatmul.mubr.msk.f32.gmra.mrb[232].mxu0 %vm1107_vm1, %v13457_v33 }
 0x7a2   : > { %v14045_v57 = vmul.f32 0.35355338, %v3132_v3  ;;  %3335 = vmax.xlane.f32.xlu0 %v3334_v6 }
 0x7a4   : > { %v3337_v27 = vmax.f32 %v14041_v47, %v14045_v57  ;;  %v3136_v10 = vpop.f32.mrb[128].mxu0 }
 0x7a5   : > { %v14049_v36 = vmul.f32 0.35355338, %v3136_v10  ;;  %v3138_v41 = vpop.f32.mrb[129].mxu0 }
 0x7a6   : > { %v14051_v46 = vmul.f32 0.35355338, %v3138_v41  ;;  %3338 = vmax.xlane.f32.xlu0 %v3337_v27 }
 0x7a8   : > { %v3340_v48 = vmax.f32 %v14049_v36, %v14051_v46  ;;  %v3142_v63 = vpop.f32.mrb[130].mxu0 }
 0x7a9   : > { %v14055_v62 = vmul.f32 0.35355338, %v3142_v63  ;;  %v3144_v33 = vpop.f32.mrb[131].mxu0 }
 0x7aa   : > { %v14057_v44 = vmul.f32 0.35355338, %v3144_v33  ;;  %3341 = vmax.xlane.f32.xlu1 %v3340_v48 }
 0x7ac   : > { %v3343_v28 = vmax.f32 %v14055_v62, %v14057_v44  ;;  %v3148_v25 = vpop.f32.mrb[132].mxu0 }
 0x7ad   : > { %v14061_v56 = vmul.f32 0.35355338, %v3148_v25  ;;  %v3150_v29 = vpop.f32.mrb[133].mxu0 }
 0x7ae   : > { %v14063_v23 = vmul.f32 0.35355338, %v3150_v29  ;;  %3344 = vmax.xlane.f32.xlu0 %v3343_v28 }
 0x7b0   : > { %v3346_v49 = vmax.f32 %v14061_v56, %v14063_v23  ;;  %v3154_v22 = vpop.f32.mrb[134].mxu0 }
 0x7b1   : > { %v14067_v53 = vmul.f32 0.35355338, %v3154_v22  ;;  %v3156_v0 = vpop.f32.mrb[135].mxu0 }
 0x7b2   : > { %v14069_v8 = vmul.f32 0.35355338, %v3156_v0  ;;  %3347 = vmax.xlane.f32.xlu0 %v3346_v49 }
 0x7b4   : > { %v3349_v32 = vmax.f32 %v14067_v53, %v14069_v8  ;;  %v3160_v9 = vpop.f32.mrb[136].mxu0 }
 0x7b5   : > { %v14073_v15 = vmul.f32 0.35355338, %v3160_v9  ;;  %v3162_v4 = vpop.f32.mrb[137].mxu0 }
 0x7b6   : > { %v14075_v50 = vmul.f32 0.35355338, %v3162_v4  ;;  %3350 = vmax.xlane.f32.xlu1 %v3349_v32 }
 0x7b8   : > { %v3352_v58 = vmax.f32 %v14073_v15, %v14075_v50  ;;  %v3166_v6 = vpop.f32.mrb[138].mxu0 }
 0x7b9   : > { %v14079_v2 = vmul.f32 0.35355338, %v3166_v6  ;;  %v3168_v3 = vpop.f32.mrb[139].mxu0 }
 0x7ba   : > { %v14081_v27 = vmul.f32 0.35355338, %v3168_v3  ;;  %3353 = vmax.xlane.f32.xlu0 %v3352_v58 }
 0x7bc   : > { %v3355_v10 = vmax.f32 %v14079_v2, %v14081_v27  ;;  %v3172_v41 = vpop.f32.mrb[140].mxu0 }
 0x7bd   : > { %v14085_v48 = vmul.f32 0.35355338, %v3172_v41  ;;  %v3174_v63 = vpop.f32.mrb[141].mxu0 }
 0x7be   : > { %v14087_v33 = vmul.f32 0.35355338, %v3174_v63  ;;  %3356 = vmax.xlane.f32.xlu0 %v3355_v10 }
 0x7c0   : > { %v3358_v28 = vmax.f32 %v14085_v48, %v14087_v33  ;;  %v3178_v25 = vpop.f32.mrb[142].mxu0 }
 0x7c1   : > { %v14091_v29 = vmul.f32 0.35355338, %v3178_v25  ;;  %v3180_v49 = vpop.f32.mrb[143].mxu0 }
 0x7c2   : > { %v14093_v22 = vmul.f32 0.35355338, %v3180_v49  ;;  %3359 = vmax.xlane.f32.xlu0 %v3358_v28 }
 0x7c3   : > { %17595 = vst [vmem:[#allocation177_spill] sm:$0xff] %v14091_v29 }
 0x7c4   : > { %17596 = vst [vmem:[#allocation179_spill] sm:$0xff] %v14093_v22  ;;  %v3361_v0 = vmax.f32 %v14091_v29, %v14093_v22  ;;  %v3184_v32 = vpop.f32.mrb[144].mxu0 }
 0x7c5   : > { %v14097_v9 = vmul.f32 0.35355338, %v3184_v32  ;;  %v3186_v4 = vpop.f32.mrb[145].mxu0 }
 0x7c6   : > { %v14099_v58 = vmul.f32 0.35355338, %v3186_v4  ;;  %3362 = vmax.xlane.f32.xlu0 %v3361_v0 }
 0x7c7   : > { %17597 = vst [vmem:[#allocation181_spill] sm:$0xff] %v14097_v9 }
 0x7c8   : > { %17598 = vst [vmem:[#allocation40_spill] sm:$0xff] %v14099_v58  ;;  %v3364_v6 = vmax.f32 %v14097_v9, %v14099_v58  ;;  %v3190_v3 = vpop.f32.mrb[146].mxu0 }
 0x7c9   : > { %v14103_v10 = vmul.f32 0.35355338, %v3190_v3  ;;  %v3192_v41 = vpop.f32.mrb[147].mxu0 }
 0x7ca   : > { %v14105_v63 = vmul.f32 0.35355338, %v3192_v41  ;;  %3365 = vmax.xlane.f32.xlu0 %v3364_v6 }
 0x7cb   : > { %17599 = vst [vmem:[#allocation120_spill] sm:$0xff] %v14103_v10 }
 0x7cc   : > { %17600 = vst [vmem:[#allocation107_spill] sm:$0xff] %v14105_v63  ;;  %v3367_v28 = vmax.f32 %v14103_v10, %v14105_v63  ;;  %v3196_v25 = vpop.f32.mrb[148].mxu0 }
 0x7cd   : > { %v14109_v49 = vmul.f32 0.35355338, %v3196_v25  ;;  %v3198_v32 = vpop.f32.mrb[149].mxu0 }
 0x7ce   : > { %v14111_v4 = vmul.f32 0.35355338, %v3198_v32  ;;  %3368 = vmax.xlane.f32.xlu0 %v3367_v28 }
 0x7cf   : > { %17601 = vst [vmem:[#allocation51_spill] sm:$0xff] %v14109_v49 }
 0x7d0   : > { %17602 = vst [vmem:[#allocation124_spill] sm:$0xff] %v14111_v4  ;;  %v3370_v0 = vmax.f32 %v14109_v49, %v14111_v4  ;;  %v3202_v21 = vpop.f32.mrb[150].mxu0 }
 0x7d1   : > { %v14115_v3 = vmul.f32 0.35355338, %v3202_v21  ;;  %v3204_v58 = vpop.f32.mrb[151].mxu0 }
 0x7d2   : > { %v14117_v41 = vmul.f32 0.35355338, %v3204_v58  ;;  %3371 = vmax.xlane.f32.xlu0 %v3370_v0 }
 0x7d3   : > { %17603 = vst [vmem:[#allocation58_spill] sm:$0xff] %v14115_v3 }
 0x7d4   : > { %17604 = vst [vmem:[#allocation132_spill] sm:$0xff] %v14117_v41  ;;  %v3373_v6 = vmax.f32 %v14115_v3, %v14117_v41  ;;  %v3208_v63 = vpop.f32.mrb[152].mxu0 }
 0x7d5   : > { %v14121_v25 = vmul.f32 0.35355338, %v3208_v63  ;;  %v3210_v10 = vpop.f32.mrb[153].mxu0 }
 0x7d6   : > { %v14123_v32 = vmul.f32 0.35355338, %v3210_v10  ;;  %3374 = vmax.xlane.f32.xlu0 %v3373_v6 }
 0x7d7   : > { %17605 = vst [vmem:[#allocation67_spill] sm:$0xff] %v14121_v25 }
 0x7d8   : > { %17606 = vst [vmem:[#allocation137_spill] sm:$0xff] %v14123_v32  ;;  %v3376_v28 = vmax.f32 %v14121_v25, %v14123_v32  ;;  %v3214_v4 = vpop.f32.mrb[154].mxu0 }
 0x7d9   : > { %v14127_v21 = vmul.f32 0.35355338, %v3214_v4  ;;  %v3216_v49 = vpop.f32.mrb[155].mxu0 }
 0x7da   : > { %v14129_v58 = vmul.f32 0.35355338, %v3216_v49  ;;  %3377 = vmax.xlane.f32.xlu0 %v3376_v28 }
 0x7db   : > { %17607 = vst [vmem:[#allocation76_spill] sm:$0xff] %v14127_v21 }
 0x7dc   : > { %17608 = vst [vmem:[#allocation141_spill] sm:$0xff] %v14129_v58  ;;  %v3379_v0 = vmax.f32 %v14127_v21, %v14129_v58  ;;  %v3220_v41 = vpop.f32.mrb[156].mxu0 }
 0x7dd   : > { %v14133_v63 = vmul.f32 0.35355338, %v3220_v41  ;;  %v3222_v3 = vpop.f32.mrb[157].mxu0 }
 0x7de   : > { %v14135_v10 = vmul.f32 0.35355338, %v3222_v3  ;;  %3380 = vmax.xlane.f32.xlu1 %v3379_v0 }
 0x7df   : > { %17609 = vst [vmem:[#allocation81_spill] sm:$0xff] %v14133_v63 }
 0x7e0   : > { %17610 = vst [vmem:[#allocation145_spill] sm:$0xff] %v14135_v10  ;;  %v3382_v6 = vmax.f32 %v14133_v63, %v14135_v10  ;;  %v14139_v32 = vpop.f32.mrb[158].mxu0 }
 0x7e1   : > { %17611 = vst [vmem:[#allocation91_spill] sm:$0xff] %v14139_v32  ;;  %v14141_v4 = vpop.f32.mrb[159].mxu0 }
 0x7e2   : > { %17612 = vst [vmem:[#allocation149_spill] sm:$0xff] %v14141_v4  ;;  %3383 = vmax.xlane.f32.xlu1 %v3382_v6 }
 0x7e4   : > { %v14143_v49 = vpop.f32.mrb[160].mxu0 }
 0x7e5   : > { %17613 = vst [vmem:[#allocation99_spill] sm:$0xff] %v14143_v49  ;;  %v14145_v28 = vpop.f32.mrb[161].mxu0 }
 0x7e6   : > { %17614 = vst [vmem:[#allocation112_spill] sm:$0xff] %v14145_v28 }
 0x7e8   : > { %v14147_v58 = vpop.f32.mrb[162].mxu0 }
 0x7e9   : > { %17615 = vst [vmem:[#allocation159_spill] sm:$0xff] %v14147_v58  ;;  %v14149_v41 = vpop.f32.mrb[163].mxu0 }
 0x7ea   : > { %17616 = vst [vmem:[#allocation158_spill] sm:$0xff] %v14149_v41 }
 0x7ec   : > { %v14151_v21 = vpop.f32.mrb[164].mxu0 }
 0x7ed   : > { %17617 = vst [vmem:[#allocation161_spill] sm:$0xff] %v14151_v21  ;;  %v14153_v3 = vpop.f32.mrb[165].mxu0 }
 0x7ee   : > { %17618 = vst [vmem:[#allocation164_spill] sm:$0xff] %v14153_v3 }
 0x7f0   : > { %v14155_v0 = vpop.f32.mrb[166].mxu0 }
 0x7f1   : > { %17619 = vst [vmem:[#allocation163_spill] sm:$0xff] %v14155_v0  ;;  %v14157_v10 = vpop.f32.mrb[167].mxu0 }
 0x7f2   : > { %17620 = vst [vmem:[#allocation168_spill] sm:$0xff] %v14157_v10 }
 0x7f3   : > { %v3291_v32 = vpop.xlane.xlu1 %3290 }
 0x7f4   : > { %v3385_v4 = vsub.f32 %v13882_v1, %v3291_v32  ;;  %v3386_v6 = vsub.f32 %v13887_v12, %v3291_v32  ;;  %v14161_v49 = vpop.f32.mrb[168].mxu0 }
 0x7f5   : > { %17621 = vst [vmem:[#allocation166_spill] sm:$0xff] %v14161_v49  ;;  %v14163_v28 = vpop.f32.mrb[169].mxu0 }
 0x7f6   : > { %17622 = vst [vmem:[#allocation171_spill] sm:$0xff] %v14163_v28  ;;  %v3449_v58 = vmul.f32 1.442695, %v3385_v4  ;;  %v3451_v63 = vmul.f32 1.442695, %v3386_v6 }
 0x7f7   : > { %v3294_v41 = vpop.xlane.xlu0 %3293 }
 0x7f8   : > { %10654 = vpow2.f32 %v3449_v58  ;;  %v3387_v21 = vsub.f32 %v13893_v42, %v3294_v41  ;;  %v3388_v3 = vsub.f32 %v13897_v19, %v3294_v41  ;;  %v14167_v0 = vpop.f32.mrb[170].mxu0 }
 0x7f9   : > { %17623 = vst [vmem:[#allocation169_spill] sm:$0xff] %v14167_v0  ;;  %10656 = vpow2.f32 %v3451_v63  ;;  %v14169_v10 = vpop.f32.mrb[171].mxu0 }
 0x7fa   : > { %17624 = vst [vmem:[#allocation190_spill] sm:$0xff] %v14169_v10  ;;  %v3453_v1 = vmul.f32 1.442695, %v3387_v21  ;;  %v3455_v25 = vmul.f32 1.442695, %v3388_v3 }
 0x7fb   : > { %v3297_v12 = vpop.xlane.xlu0 %3296 }
 0x7fc   : > { %10658 = vpow2.f32 %v3453_v1  ;;  %v3389_v32 = vsub.f32 %v13903_v39, %v3297_v12  ;;  %v3390_v4 = vsub.f32 %v13907_v20, %v3297_v12  ;;  %v14173_v6 = vpop.f32.mrb[172].mxu0 }
 0x7fd   : > { %17625 = vst [vmem:[#allocation173_spill] sm:$0xff] %v14173_v6  ;;  %10660 = vpow2.f32 %v3455_v25  ;;  %v14175_v58 = vpop.f32.mrb[173].mxu0 }
 0x7fe   : > { %17626 = vst [vmem:[#allocation192_spill] sm:$0xff] %v14175_v58  ;;  %v3457_v42 = vmul.f32 1.442695, %v3389_v32  ;;  %v3459_v19 = vmul.f32 1.442695, %v3390_v4 }
 0x7ff   : > { %v3300_v41 = vpop.xlane.xlu1 %3299 }
 0x800   : > { %10662 = vpow2.f32 %v3457_v42  ;;  %v3391_v63 = vsub.f32 %v13913_v16, %v3300_v41  ;;  %v3392_v21 = vsub.f32 %v13917_v31, %v3300_v41  ;;  %v14179_v3 = vpop.f32.mrb[174].mxu0 }
 0x801   : > { %17627 = vst [vmem:[#allocation191_spill] sm:$0xff] %v14179_v3  ;;  %10664 = vpow2.f32 %v3459_v19  ;;  %v14181_v1 = vpop.f32.mrb[175].mxu0 }
 0x802   : > { %17628 = vst [vmem:[#allocation176_spill] sm:$0xff] %v14181_v1  ;;  %v14183_v39 = vpop.eup %10654  ;;  %v3461_v20 = vmul.f32 1.442695, %v3391_v63  ;;  %v3463_v12 = vmul.f32 1.442695, %v3392_v21 }
 0x803   : > { %v14185_v25 = vpop.eup %10656  ;;  %v3303_v10 = vpop.xlane.xlu0 %3302 }
 0x804   : > { %10666 = vpow2.f32 %v3461_v20  ;;  %v3393_v32 = vsub.f32 %v13923_v7, %v3303_v10  ;;  %v3394_v4 = vsub.f32 %v13927_v59, %v3303_v10  ;;  %v14189_v16 = vpop.f32.mrb[176].mxu0  ;;  %v3577_v42 = vadd.f32 %v14185_v25, %v14183_v39 }
 0x805   : > { %17629 = vst [vmem:[#allocation15_spill] sm:$0xff] %v14189_v16  ;;  %10668 = vpow2.f32 %v3463_v12  ;;  %v14191_v31 = vpop.f32.mrb[177].mxu0 }
 0x806   : > { %17630 = vst [vmem:[#allocation41_spill] sm:$0xff] %v14191_v31  ;;  %v14195_v19 = vpop.eup %10658  ;;  %v3465_v41 = vmul.f32 1.442695, %v3393_v32  ;;  %v3467_v63 = vmul.f32 1.442695, %v3394_v4  ;;  %3578 = vadd.xlane.f32.xlu1 %v3577_v42 }
 0x807   : > { %v14197_v21 = vpop.eup %10660  ;;  %v3306_v20 = vpop.xlane.xlu0 %3305 }
 0x808   : > { %10670 = vpow2.f32 %v3465_v41  ;;  %v3395_v7 = vsub.f32 %v13933_v55, %v3306_v20  ;;  %v3396_v59 = vsub.f32 %v13937_v61, %v3306_v20  ;;  %v14201_v10 = vpop.f32.mrb[178].mxu0  ;;  %v3580_v1 = vadd.f32 %v14197_v21, %v14195_v19 }
 0x809   : > { %17631 = vst [vmem:[#allocation122_spill] sm:$0xff] %v14201_v10  ;;  %10672 = vpow2.f32 %v3467_v63  ;;  %v14203_v12 = vpop.f32.mrb[179].mxu0 }
 0x80a   : > { %17632 = vst [vmem:[#allocation39_spill] sm:$0xff] %v14203_v12  ;;  %v14207_v3 = vpop.eup %10662  ;;  %v3469_v32 = vmul.f32 1.442695, %v3395_v7  ;;  %v3471_v4 = vmul.f32 1.442695, %v3396_v59  ;;  %3581 = vadd.xlane.f32.xlu1 %v3580_v1 }
 0x80b   : > { %v14209_v0 = vpop.eup %10664  ;;  %v3309_v42 = vpop.xlane.xlu1 %3308 }
 0x80c   : > { %10674 = vpow2.f32 %v3469_v32  ;;  %v3397_v55 = vsub.f32 %v13943_v37, %v3309_v42  ;;  %v3398_v61 = vsub.f32 %v13947_v18, %v3309_v42  ;;  %v14213_v41 = vpop.f32.mrb[180].mxu0  ;;  %v3583_v20 = vadd.f32 %v14209_v0, %v14207_v3 }
 0x80d   : > { %17633 = vst [vmem:[#allocation37_spill] sm:$0xff] %v14213_v41  ;;  %10676 = vpow2.f32 %v3471_v4  ;;  %v14215_v63 = vpop.f32.mrb[181].mxu0 }
 0x80e   : > { %17634 = vst [vmem:[#allocation49_spill] sm:$0xff] %v14215_v63  ;;  %v14219_v12 = vpop.eup %10666  ;;  %v3473_v7 = vmul.f32 1.442695, %v3397_v55  ;;  %v3475_v59 = vmul.f32 1.442695, %v3398_v61  ;;  %3584 = vadd.xlane.f32.xlu1 %v3583_v20 }
 0x80f   : > { %v14221_v10 = vpop.eup %10668  ;;  %v3312_v1 = vpop.xlane.xlu0 %3311 }
 0x810   : > { %10678 = vpow2.f32 %v3473_v7  ;;  %v3399_v37 = vsub.f32 %v13953_v52, %v3312_v1  ;;  %v3400_v18 = vsub.f32 %v13957_v5, %v3312_v1  ;;  %v14225_v32 = vpop.f32.mrb[182].mxu0  ;;  %v3586_v42 = vadd.f32 %v14221_v10, %v14219_v12 }
 0x811   : > { %17635 = vst [vmem:[#allocation126_spill] sm:$0xff] %v14225_v32  ;;  %10680 = vpow2.f32 %v3475_v59  ;;  %v14227_v4 = vpop.f32.mrb[183].mxu0 }
 0x812   : > { %17636 = vst [vmem:[#allocation48_spill] sm:$0xff] %v14227_v4  ;;  %v14231_v63 = vpop.eup %10670  ;;  %v3477_v55 = vmul.f32 1.442695, %v3399_v37  ;;  %v3479_v61 = vmul.f32 1.442695, %v3400_v18  ;;  %3587 = vadd.xlane.f32.xlu1 %v3586_v42 }
 0x813   : > { %v14233_v41 = vpop.eup %10672  ;;  %v3315_v20 = vpop.xlane.xlu0 %3314 }
 0x814   : > { %10682 = vpow2.f32 %v3477_v55  ;;  %v3401_v52 = vsub.f32 %v13963_v54, %v3315_v20  ;;  %v3402_v5 = vsub.f32 %v13967_v38, %v3315_v20  ;;  %v14237_v7 = vpop.f32.mrb[184].mxu0  ;;  %v3589_v1 = vadd.f32 %v14233_v41, %v14231_v63 }
 0x815   : > { %17637 = vst [vmem:[#allocation47_spill] sm:$0xff] %v14237_v7  ;;  %10684 = vpow2.f32 %v3479_v61  ;;  %v14239_v59 = vpop.f32.mrb[185].mxu0 }
 0x816   : > { %17638 = vst [vmem:[#allocation59_spill] sm:$0xff] %v14239_v59  ;;  %v14243_v4 = vpop.eup %10674  ;;  %v3481_v37 = vmul.f32 1.442695, %v3401_v52  ;;  %v3483_v18 = vmul.f32 1.442695, %v3402_v5  ;;  %3590 = vadd.xlane.f32.xlu1 %v3589_v1 }
 0x817   : > { %v14245_v32 = vpop.eup %10676  ;;  %v3318_v42 = vpop.xlane.xlu0 %3317 }
 0x818   : > { %10686 = vpow2.f32 %v3481_v37  ;;  %v3403_v54 = vsub.f32 %v13973_v11, %v3318_v42  ;;  %v3404_v38 = vsub.f32 %v13977_v60, %v3318_v42  ;;  %v14249_v55 = vpop.f32.mrb[186].mxu0  ;;  %v3592_v20 = vadd.f32 %v14245_v32, %v14243_v4 }
 0x819   : > { %17639 = vst [vmem:[#allocation134_spill] sm:$0xff] %v14249_v55  ;;  %10688 = vpow2.f32 %v3483_v18  ;;  %v14251_v61 = vpop.f32.mrb[187].mxu0 }
 0x81a   : > { %17640 = vst [vmem:[#allocation57_spill] sm:$0xff] %v14251_v61  ;;  %v14255_v59 = vpop.eup %10678  ;;  %v3485_v52 = vmul.f32 1.442695, %v3403_v54  ;;  %v3487_v5 = vmul.f32 1.442695, %v3404_v38  ;;  %3593 = vadd.xlane.f32.xlu1 %v3592_v20 }
 0x81b   : > { %v14257_v7 = vpop.eup %10680  ;;  %v3321_v1 = vpop.xlane.xlu0 %3320 }
 0x81c   : > { %10690 = vpow2.f32 %v3485_v52  ;;  %v3405_v11 = vsub.f32 %v13983_v45, %v3321_v1  ;;  %v3406_v60 = vsub.f32 %v13987_v17, %v3321_v1  ;;  %v14261_v37 = vpop.f32.mrb[188].mxu0  ;;  %v3595_v42 = vadd.f32 %v14257_v7, %v14255_v59 }
 0x81d   : > { %17641 = vst [vmem:[#allocation55_spill] sm:$0xff] %v14261_v37  ;;  %10692 = vpow2.f32 %v3487_v5  ;;  %v14263_v18 = vpop.f32.mrb[189].mxu0 }
 0x81e   : > { %17642 = vst [vmem:[#allocation68_spill] sm:$0xff] %v14263_v18  ;;  %v14267_v61 = vpop.eup %10682  ;;  %v3489_v54 = vmul.f32 1.442695, %v3405_v11  ;;  %v3491_v38 = vmul.f32 1.442695, %v3406_v60  ;;  %3596 = vadd.xlane.f32.xlu1 %v3595_v42 }
 0x81f   : > { %v14269_v55 = vpop.eup %10684  ;;  %v3324_v20 = vpop.xlane.xlu0 %3323 }
 0x820   : > { %10694 = vpow2.f32 %v3489_v54  ;;  %v3407_v45 = vsub.f32 %v13993_v13, %v3324_v20  ;;  %v3408_v17 = vsub.f32 %v13997_v26, %v3324_v20  ;;  %v14273_v52 = vpop.f32.mrb[190].mxu0  ;;  %v3598_v1 = vadd.f32 %v14269_v55, %v14267_v61 }
 0x821   : > { %17643 = vst [vmem:[#allocation138_spill] sm:$0xff] %v14273_v52  ;;  %10696 = vpow2.f32 %v3491_v38  ;;  %v14275_v5 = vpop.f32.mrb[191].mxu0 }
 0x822   : > { %17644 = vst [vmem:[#allocation66_spill] sm:$0xff] %v14275_v5  ;;  %v14279_v18 = vpop.eup %10686  ;;  %v3493_v11 = vmul.f32 1.442695, %v3407_v45  ;;  %v3495_v60 = vmul.f32 1.442695, %v3408_v17  ;;  %3599 = vadd.xlane.f32.xlu0 %v3598_v1 }
 0x823   : > { %v14281_v37 = vpop.eup %10688  ;;  %v3327_v42 = vpop.xlane.xlu0 %3326 }
 0x824   : > { %10698 = vpow2.f32 %v3493_v11  ;;  %v3409_v13 = vsub.f32 %v14003_v24, %v3327_v42  ;;  %v3410_v26 = vsub.f32 %v14007_v40, %v3327_v42  ;;  %v14285_v54 = vpop.f32.mrb[192].mxu0  ;;  %v3601_v20 = vadd.f32 %v14281_v37, %v14279_v18 }
 0x825   : > { %17645 = vst [vmem:[#allocation63_spill] sm:$0xff] %v14285_v54  ;;  %10700 = vpow2.f32 %v3495_v60  ;;  %v14287_v38 = vpop.f32.mrb[193].mxu0 }
 0x826   : > { %17646 = vst [vmem:[#allocation79_spill] sm:$0xff] %v14287_v38  ;;  %v14291_v5 = vpop.eup %10690  ;;  %v3497_v45 = vmul.f32 1.442695, %v3409_v13  ;;  %v3499_v17 = vmul.f32 1.442695, %v3410_v26  ;;  %3602 = vadd.xlane.f32.xlu0 %v3601_v20 }
 0x827   : > { %v14293_v52 = vpop.eup %10692  ;;  %v3330_v1 = vpop.xlane.xlu0 %3329 }
 0x828   : > { %10702 = vpow2.f32 %v3497_v45  ;;  %v3411_v24 = vsub.f32 %v14013_v51, %v3330_v1  ;;  %v3412_v40 = vsub.f32 %v14017_v34, %v3330_v1  ;;  %v14297_v11 = vpop.f32.mrb[194].mxu0  ;;  %v3604_v42 = vadd.f32 %v14293_v52, %v14291_v5 }
 0x829   : > { %17647 = vst [vmem:[#allocation142_spill] sm:$0xff] %v14297_v11  ;;  %10704 = vpow2.f32 %v3499_v17  ;;  %v14299_v60 = vpop.f32.mrb[195].mxu0 }
 0x82a   : > { %17648 = vst [vmem:[#allocation78_spill] sm:$0xff] %v14299_v60  ;;  %v14303_v38 = vpop.eup %10694  ;;  %v3501_v13 = vmul.f32 1.442695, %v3411_v24  ;;  %v3503_v26 = vmul.f32 1.442695, %v3412_v40  ;;  %3605 = vadd.xlane.f32.xlu1 %v3604_v42 }
 0x82b   : > { %v14305_v54 = vpop.eup %10696  ;;  %v3333_v20 = vpop.xlane.xlu1 %3332 }
 0x82c   : > { %10706 = vpow2.f32 %v3501_v13  ;;  %v3413_v51 = vsub.f32 %v14023_v35, %v3333_v20  ;;  %v3414_v34 = vsub.f32 %v14027_v43, %v3333_v20  ;;  %v14309_v45 = vpop.f32.mrb[196].mxu0  ;;  %v3607_v1 = vadd.f32 %v14305_v54, %v14303_v38 }
 0x82d   : > { %17649 = vst [vmem:[#allocation73_spill] sm:$0xff] %v14309_v45  ;;  %10708 = vpow2.f32 %v3503_v26  ;;  %v14311_v17 = vpop.f32.mrb[197].mxu0 }
 0x82e   : > { %17650 = vst [vmem:[#allocation83_spill] sm:$0xff] %v14311_v17  ;;  %v14315_v60 = vpop.eup %10698  ;;  %v3505_v24 = vmul.f32 1.442695, %v3413_v51  ;;  %v3507_v40 = vmul.f32 1.442695, %v3414_v34  ;;  %3608 = vadd.xlane.f32.xlu0 %v3607_v1 }
 0x82f   : > { %v14317_v11 = vpop.eup %10700  ;;  %v3336_v42 = vpop.xlane.xlu0 %3335 }
 0x830   : > { %10710 = vpow2.f32 %v3505_v24  ;;  %v3415_v35 = vsub.f32 %v14032_v30, %v3336_v42  ;;  %v3416_v43 = vsub.f32 %v14035_v14, %v3336_v42  ;;  %v14321_v13 = vpop.f32.mrb[198].mxu0  ;;  %v3610_v20 = vadd.f32 %v14317_v11, %v14315_v60 }
 0x831   : > { %17651 = vst [vmem:[#allocation146_spill] sm:$0xff] %v14321_v13  ;;  %10712 = vpow2.f32 %v3507_v40  ;;  %v14323_v26 = vpop.f32.mrb[199].mxu0 }
 0x832   : > { %17652 = vst [vmem:[#allocation87_spill] sm:$0xff] %v14323_v26  ;;  %v14327_v17 = vpop.eup %10702  ;;  %v3509_v51 = vmul.f32 1.442695, %v3415_v35  ;;  %v3511_v34 = vmul.f32 1.442695, %v3416_v43  ;;  %3611 = vadd.xlane.f32.xlu1 %v3610_v20 }
 0x833   : > { %v14329_v45 = vpop.eup %10704 }
 0x834   : > { %10714 = vpow2.f32 %v3509_v51  ;;  %v14331_v1 = vpop.f32.mrb[200].mxu0  ;;  %v3613_v14 = vadd.f32 %v14329_v45, %v14327_v17 }
 0x835   : > { %17653 = vst [vmem:[#allocation77_spill] sm:$0xff] %v14331_v1  ;;  %10716 = vpow2.f32 %v3511_v34  ;;  %v14333_v30 = vpop.f32.mrb[201].mxu0 }
 0x836   : > { %17654 = vst [vmem:[#allocation94_spill] sm:$0xff] %v14333_v30  ;;  %v14337_v24 = vpop.eup %10706  ;;  %3614 = vadd.xlane.f32.xlu0 %v3613_v14 }
 0x837   : > { %v14339_v40 = vpop.eup %10708  ;;  %v3342_v6 = vpop.xlane.xlu1 %3341 }
 0x838   : > { %v14341_v42 = vpop.f32.mrb[202].mxu0  ;;  %v3616_v43 = vadd.f32 %v14339_v40, %v14337_v24  ;;  %v3419_v28 = vsub.f32 %v14049_v36, %v3342_v6 }
 0x839   : > { %17655 = vst [vmem:[#allocation178_spill] sm:$0xff] %v14341_v42  ;;  %v14343_v35 = vpop.f32.mrb[203].mxu0 }
 0x83a   : > { %17656 = vst [vmem:[#allocation92_spill] sm:$0xff] %v14343_v35  ;;  %v14347_v20 = vpop.eup %10710  ;;  %3617 = vadd.xlane.f32.xlu1 %v3616_v43 }
 0x83b   : > { %v14349_v51 = vpop.eup %10712 }
 0x83c   : > { %v14351_v34 = vpop.f32.mrb[204].mxu0  ;;  %v3619_v1 = vadd.f32 %v14349_v51, %v14347_v20 }
 0x83d   : > { %17657 = vst [vmem:[#allocation85_spill] sm:$0xff] %v14351_v34  ;;  %v14353_v30 = vpop.f32.mrb[205].mxu0 }
 0x83e   : > { %17658 = vst [vmem:[#allocation101_spill] sm:$0xff] %v14353_v30  ;;  %v14357_v14 = vpop.eup %10714  ;;  %3620 = vadd.xlane.f32.xlu0 %v3619_v1 }
 0x83f   : > { %v14359_v42 = vpop.eup %10716 }
 0x840   : > { %v14361_v35 = vpop.f32.mrb[206].mxu0  ;;  %v3622_v13 = vadd.f32 %v14359_v42, %v14357_v14 }
 0x841   : > { %17659 = vst [vmem:[#allocation110_spill] sm:$0xff] %v14361_v35  ;;  %v14363_v26 = vpop.f32.mrb[207].mxu0 }
 0x842   : > { %17660 = vst [vmem:[#allocation102_spill] sm:$0xff] %v14363_v26  ;;  %3623 = vadd.xlane.f32.xlu1 %v3622_v13  ;;  %v17669_v26 = vld [vmem:[#allocation29_spill] sm:$0xff] }
 0x844   : > { %v14367_v43 = vpop.f32.mrb[208].mxu0 }
 0x845   : > { %17661 = vst [vmem:[#allocation42_spill] sm:$0xff] %v14367_v43  ;;  %v14369_v34 = vpop.f32.mrb[209].mxu0  ;;  %v17671_v43 = vld [vmem:[#allocation30_spill] sm:$0xff] }
 0x846   : > { %17662 = vst [vmem:[#allocation97_spill] sm:$0xff] %v14369_v34 }
 0x848   : > { %v14371_v30 = vpop.f32.mrb[210].mxu0 }
 0x849   : > { %17663 = vst [vmem:[#allocation52_spill] sm:$0xff] %v14371_v30  ;;  %v14373_v31 = vpop.f32.mrb[211].mxu0 }
 0x84a   : > { %17664 = vst [vmem:[#allocation109_spill] sm:$0xff] %v14373_v31  ;;  %v3339_v31 = vpop.xlane.xlu0 %3338 }
 0x84c   : > { %v14375_v16 = vpop.f32.mrb[212].mxu0 }
 0x84d   : > { %17665 = vst [vmem:[#allocation62_spill] sm:$0xff] %v14375_v16  ;;  %v14377_v58 = vpop.f32.mrb[213].mxu0 }
 0x84e   : > { %17666 = vst [vmem:[#allocation104_spill] sm:$0xff] %v14377_v58  ;;  %v3417_v58 = vsub.f32 %v14041_v47, %v3339_v31 }
 0x850   : > { %v14379_v1 = vpop.f32.mrb[214].mxu0 }
 0x851   : > { %17667 = vst [vmem:[#allocation69_spill] sm:$0xff] %v14379_v1  ;;  %v14381_v35 = vpop.f32.mrb[215].mxu0 }
 0x852   : > { %17668 = vst [vmem:[#allocation115_spill] sm:$0xff] %v14381_v35  ;;  %v3418_v35 = vsub.f32 %v14045_v57, %v3339_v31 }
 0x853   : > { %6192 = vrot.lane.b32.xlu1 %v17669_v26, %s11279_s18 }
 0x854   : > { %v14385_v13 = vpop.f32.mrb[216].mxu0  ;;  %6190 = vrot.lane.b32.xlu0 %v17671_v43, %s11279_s18 }
 0x855   : > { %17670 = vst [vmem:[#allocation75_spill] sm:$0xff] %v14385_v13  ;;  %v14389_v34 = vpop.f32.mrb[217].mxu0  ;;  %v3513_v13 = vmul.f32 1.442695, %v3417_v58 }
 0x856   : > { %17672 = vst [vmem:[#allocation113_spill] sm:$0xff] %v14389_v34  ;;  %v3515_v34 = vmul.f32 1.442695, %v3418_v35 }
 0x857   : > { %10718 = vpow2.f32 %v3513_v13 }
 0x858   : > { %v14391_v30 = vpop.f32.mrb[218].mxu0  ;;  %10720 = vpow2.f32 %v3515_v34 }
 0x859   : > { %17673 = vst [vmem:[#allocation90_spill] sm:$0xff] %v14391_v30  ;;  %v14393_v16 = vpop.f32.mrb[219].mxu0  ;;  %v3420_v30 = vsub.f32 %v14051_v46, %v3342_v6 }
 0x85a   : > { %17674 = vst [vmem:[#allocation125_spill] sm:$0xff] %v14393_v16  ;;  %v3517_v16 = vmul.f32 1.442695, %v3419_v28 }
 0x85c   : > { %v14396_v1 = vpop.f32.mrb[220].mxu0  ;;  %10722 = vpow2.f32 %v3517_v16  ;;  %v3345_v16 = vpop.xlane.xlu0 %3344 }
 0x85d   : > { %17675 = vst [vmem:[#allocation96_spill] sm:$0xff] %v14396_v1  ;;  %v14399_v26 = vpop.f32.mrb[221].mxu0  ;;  %v3519_v1 = vmul.f32 1.442695, %v3420_v30 }
 0x85e   : > { %17676 = vst [vmem:[#allocation119_spill] sm:$0xff] %v14399_v26 }
 0x85f   : > { %10724 = vpow2.f32 %v3519_v1 }
 0x860   : > { %v14402_v43 = vpop.f32.mrb[222].mxu0 }
 0x861   : > { %17677 = vst [vmem:[#allocation106_spill] sm:$0xff] %v14402_v43  ;;  %v14405_v49 = vpop.f32.mrb[223].mxu0  ;;  %v14419_v46 = vpop.eup %10718  ;;  %v3422_v43 = vsub.f32 %v14057_v44, %v3345_v16 }
 0x862   : > { %17678 = vst [vmem:[#allocation131_spill] sm:$0xff] %v14405_v49  ;;  %v14421_v6 = vpop.eup %10720 }
 0x863   : > { %v3625_v1 = vadd.f32 %v14421_v6, %v14419_v46 }
 0x864   : > { %v14407_v47 = vpop.f32.mrb[224].mxu0 }
 0x865   : > { %17679 = vst [vmem:[#allocation111_spill] sm:$0xff] %v14407_v47  ;;  %v14409_v57 = vpop.f32.mrb[225].mxu0  ;;  %v14443_v47 = vpop.xlane.xlu1 %3350 }
 0x866   : > { %17680 = vst [vmem:[#allocation130_spill] sm:$0xff] %v14409_v57  ;;  %v14427_v30 = vpop.eup %10722  ;;  %v3348_v57 = vpop.xlane.xlu0 %3347 }
 0x867   : > { %17687 = vst [vmem:[#allocation154_spill] sm:$0xff] %v14427_v30  ;;  %v3423_v22 = vsub.f32 %v14061_v56, %v3348_v57 }
 0x868   : > { %v14411_v31 = vpop.f32.mrb[226].mxu0 }
 0x869   : > { %17681 = vst [vmem:[#allocation118_spill] sm:$0xff] %v14411_v31  ;;  %v14413_v36 = vpop.f32.mrb[227].mxu0  ;;  %v14431_v13 = vpop.eup %10724  ;;  %v17691_v31 = vld [vmem:[#allocation3_spill] sm:$0xff] }
 0x86a   : > { %17682 = vst [vmem:[#allocation139_spill] sm:$0xff] %v14413_v36  ;;  %17688 = vst [vmem:[#allocation140_spill] sm:$0xff] %v14431_v13 }
 0x86c   : > { %v14415_v58 = vpop.f32.mrb[228].mxu0 }
 0x86d   : > { %17683 = vst [vmem:[#allocation129_spill] sm:$0xff] %v14415_v58  ;;  %v14417_v35 = vpop.f32.mrb[229].mxu0  ;;  %v3628_v58 = vadd.f32 %v14431_v13, %v14427_v30 }
 0x86e   : > { %17684 = vst [vmem:[#allocation135_spill] sm:$0xff] %v14417_v35 }
 0x870   : > { %v14423_v28 = vpop.f32.mrb[230].mxu0 }
 0x871   : > { %17685 = vst [vmem:[#allocation150_spill] sm:$0xff] %v14423_v28  ;;  %v14425_v34 = vpop.f32.mrb[231].mxu0  ;;  %v14439_v28 = vpop.xlane.xlu0 %3353 }
 0x872   : > { %17686 = vst [vmem:[#allocation143_spill] sm:$0xff] %v14425_v34 }
 0x873   : > { %3626 = vadd.xlane.f32.xlu0 %v3625_v1  ;;  %v14449_v1 = vpop.xlane.xlu1 %3380 }
 0x874   : > { %v14433_v26 = vpop.f32.mrb[232].mxu0  ;;  %17692 = vst [vmem:[#allocation165_spill] sm:$0xff] %v14449_v1  ;;  %v3424_v1 = vsub.f32 %v14063_v23, %v3348_v57 }
 0x875   : > { %17689 = vst [vmem:[#allocation156_spill] sm:$0xff] %v14433_v26  ;;  %v14435_v35 = vpop.f32.mrb[233].mxu0  ;;  %v14441_v34 = vpop.xlane.xlu0 %3356 }
 0x876   : > { %17690 = vst [vmem:[#allocation147_spill] sm:$0xff] %v14435_v35  ;;  %v17693_v35 = vld [vmem:[#allocation4_spill] sm:$0xff] }
 0x877   : > { %3629 = vadd.xlane.f32.xlu1 %v3628_v58  ;;  %v3421_v58 = vsub.f32 %v14055_v62, %v3345_v16  ;;  %v14456_v49 = vpop.xlane.xlu1 %3383  ;;  %v3527_v62 = vmul.f32 1.442695, %v3424_v1 }
 0x879   : > { %v14445_v36 = vpop.xlane.xlu0 %3359  ;;  %v3521_v9 = vmul.f32 1.442695, %v3421_v58 }
 0x87d   : > { %v14453_v26 = vpop.xlane.xlu0 %3362 }
 0x87e   : > { %17694 = vst [vmem:[#allocation144_spill] sm:$0xff] %v14453_v26 }
 0x881   : > { %v14460_v29 = vpop.xlane.xlu0 %3365 }
 0x885   : > { %v14463_v26 = vpop.xlane.xlu0 %3368 }
 0x888   : > { %6196 = vrot.lane.b32.xlu1 %v17691_v31, %s11279_s18  ;;  %v3523_v31 = vmul.f32 1.442695, %v3422_v43 }
 0x889   : > { %6194 = vrot.lane.b32.xlu0 %v17693_v35, %s11279_s18  ;;  %v3525_v35 = vmul.f32 1.442695, %v3423_v22  ;;  %v14465_v16 = vpop.xlane.xlu0 %3371 }
 0x893   : > { %v3579_v30 = vpop.xlane.xlu1 %3578 }
 0x894   : > { %10726 = vrcp.f32 %v3579_v30 }
 0x895   : > { %10728 = vpow2.f32 %v3521_v9 }
 0x897   : > { %v3582_v13 = vpop.xlane.xlu1 %3581 }
 0x898   : > { %10730 = vrcp.f32 %v3582_v13 }
 0x899   : > { %10732 = vpow2.f32 %v3523_v31 }
 0x89a   : > { %10734 = vpow2.f32 %v3525_v35  ;;  %v14477_v35 = vpop.xlane.xlu0 %3374 }
 0x89b   : > { %v3585_v44 = vpop.xlane.xlu1 %3584 }
 0x89c   : > { %10736 = vrcp.f32 %v3585_v44 }
 0x89d   : > { %10738 = vpow2.f32 %v3527_v62 }
 0x89e   : > { %v10727_v56 = vpop.eup %10726 }
 0x89f   : > { %v3588_v58 = vpop.xlane.xlu1 %3587  ;;  %v3706_v43 = vmul.f32 %v10727_v56, %v14185_v25  ;;  %v3705_v23 = vmul.f32 %v10727_v56, %v14183_v39  ;;  %v14469_v22 = vpop.eup %10728 }
 0x8a0   : > { %10740 = vrcp.f32 %v3588_v58 }
 0x8a1   : > { %3929 = vmatprep.mubr.f32.mxu1 %v3706_v43  ;;  %v14487_v43 = vpop.xlane.xlu0 %3377 }
 0x8a2   : > { %v10731_v9 = vpop.eup %10730  ;;  %3930 = vmatmul.mubr.f32.vlgmr.msra.gmra.mrb[98].mxu1 %v3705_v23 }
 0x8a3   : > { %v14471_v57 = vpop.eup %10732  ;;  %v3591_v30 = vpop.xlane.xlu1 %3590  ;;  %v3708_v13 = vmul.f32 %v10731_v9, %v14197_v21  ;;  %v3707_v1 = vmul.f32 %v10731_v9, %v14195_v19 }
 0x8a4   : > { %10742 = vrcp.f32 %v3591_v30  ;;  %v14475_v31 = vpop.eup %10734  ;;  %v3631_v25 = vadd.f32 %v14471_v57, %v14469_v22 }
 0x8a5   : > { %3934 = vmatprep.mubr.f32.mxu1 %v3708_v13 }
 0x8a6   : > { %v10737_v39 = vpop.eup %10736  ;;  %3935 = vmatmul.mubr.f32.gmra.mrb[100].mxu1 %v3707_v1 }
 0x8a7   : > { %v14481_v62 = vpop.eup %10738  ;;  %v3594_v44 = vpop.xlane.xlu1 %3593  ;;  %v3710_v56 = vmul.f32 %v10737_v39, %v14209_v0  ;;  %v3709_v21 = vmul.f32 %v10737_v39, %v14207_v3 }
 0x8a8   : > { %10744 = vrcp.f32 %v3594_v44  ;;  %3632 = vadd.xlane.f32.xlu0 %v3631_v25  ;;  %v3634_v58 = vadd.f32 %v14481_v62, %v14475_v31 }
 0x8a9   : > { %3939 = vmatprep.mubr.f32.mxu1 %v3710_v56 }
 0x8aa   : > { %v10741_v19 = vpop.eup %10740  ;;  %3940 = vmatmul.mubr.f32.gmra.mrb[102].mxu1 %v3709_v21 }
 0x8ab   : > { %v3597_v23 = vpop.xlane.xlu1 %3596  ;;  %v3712_v9 = vmul.f32 %v10741_v19, %v14221_v10  ;;  %v3711_v30 = vmul.f32 %v10741_v19, %v14219_v12 }
 0x8ac   : > { %10746 = vrcp.f32 %v3597_v23  ;;  %3635 = vadd.xlane.f32.xlu1 %v3634_v58 }
 0x8ad   : > { %3944 = vmatprep.mubr.f32.mxu1 %v3712_v9  ;;  %v17696_v9 = vld [vmem:[#allocation6_spill] sm:$0xff] }
 0x8ae   : > { %v10743_v0 = vpop.eup %10742  ;;  %3945 = vmatmul.mubr.f32.gmra.mrb[104].mxu1 %v3711_v30 }
 0x8af   : > { %v3600_v3 = vpop.xlane.xlu0 %3599  ;;  %v3714_v13 = vmul.f32 %v10743_v0, %v14233_v41  ;;  %v3713_v1 = vmul.f32 %v10743_v0, %v14231_v63 }
 0x8b0   : > { %10748 = vrcp.f32 %v3600_v3 }
 0x8b1   : > { %3949 = vmatprep.mubr.f32.mxu1 %v3714_v13  ;;  %v3425_v13 = vsub.f32 %v14067_v53, %v14443_v47  ;;  %v3428_v53 = vsub.f32 %v14075_v50, %v14439_v28 }
 0x8b2   : > { %v10745_v39 = vpop.eup %10744  ;;  %3950 = vmatmul.mubr.f32.gmra.mrb[106].mxu1 %v3713_v1 }
 0x8b3   : > { %v3603_v25 = vpop.xlane.xlu0 %3602  ;;  %v3716_v44 = vmul.f32 %v10745_v39, %v14245_v32  ;;  %v3715_v10 = vmul.f32 %v10745_v39, %v14243_v4  ;;  %v17695_v4 = vld [vmem:[#allocation5_spill] sm:$0xff] }
 0x8b4   : > { %10750 = vrcp.f32 %v3603_v25 }
 0x8b5   : > { %3954 = vmatprep.mubr.f32.mxu1 %v3716_v44  ;;  %v3529_v44 = vmul.f32 1.442695, %v3425_v13 }
 0x8b6   : > { %v10747_v12 = vpop.eup %10746  ;;  %3955 = vmatmul.mubr.f32.gmra.mrb[108].mxu1 %v3715_v10 }
 0x8b7   : > { %v3606_v56 = vpop.xlane.xlu1 %3605  ;;  %v3718_v21 = vmul.f32 %v10747_v12, %v14257_v7  ;;  %v3717_v41 = vmul.f32 %v10747_v12, %v14255_v59 }
 0x8b8   : > { %10752 = vrcp.f32 %v3606_v56  ;;  %v3535_v56 = vmul.f32 1.442695, %v3428_v53 }
 0x8b9   : > { %3959 = vmatprep.mubr.f32.mxu1 %v3718_v21 }
 0x8ba   : > { %v10749_v63 = vpop.eup %10748  ;;  %3960 = vmatmul.mubr.f32.gmra.mrb[110].mxu1 %v3717_v41 }
 0x8bb   : > { %v3609_v19 = vpop.xlane.xlu0 %3608  ;;  %v3720_v58 = vmul.f32 %v10749_v63, %v14269_v55  ;;  %v3719_v32 = vmul.f32 %v10749_v63, %v14267_v61 }
 0x8bc   : > { %10754 = vrcp.f32 %v3609_v19 }
 0x8bd   : > { %6200 = vrot.lane.b32.xlu1 %v17695_v4, %s11279_s18  ;;  %3964 = vmatprep.mubr.f32.mxu1 %v3720_v58 }
 0x8be   : > { %v10751_v23 = vpop.eup %10750  ;;  %6198 = vrot.lane.b32.xlu0 %v17696_v9, %s11279_s18  ;;  %3965 = vmatmul.mubr.f32.gmra.mrb[112].mxu1 %v3719_v32 }
 0x8bf   : > { %v3612_v7 = vpop.xlane.xlu1 %3611  ;;  %v3722_v59 = vmul.f32 %v10751_v23, %v14281_v37  ;;  %v3721_v30 = vmul.f32 %v10751_v23, %v14279_v18  ;;  %v3426_v37 = vsub.f32 %v14069_v8, %v14443_v47 }
 0x8c0   : > { %10756 = vrcp.f32 %v3612_v7 }
 0x8c1   : > { %3969 = vmatprep.mubr.f32.mxu1 %v3722_v59  ;;  %v3531_v10 = vmul.f32 1.442695, %v3426_v37  ;;  %v17698_v59 = vld [vmem:[#allocation9_spill] sm:$0xff] }
 0x8c2   : > { %v10753_v55 = vpop.eup %10752  ;;  %3970 = vmatmul.mubr.f32.gmra.mrb[114].mxu1 %v3721_v30 }
 0x8c3   : > { %v3615_v61 = vpop.xlane.xlu0 %3614  ;;  %v3724_v0 = vmul.f32 %v10753_v55, %v14293_v52  ;;  %v3723_v3 = vmul.f32 %v10753_v55, %v14291_v5  ;;  %v3427_v52 = vsub.f32 %v14073_v15, %v14439_v28  ;;  %v3431_v55 = vsub.f32 %v14085_v48, %v14445_v36 }
 0x8c4   : > { %10758 = vrcp.f32 %v3615_v61 }
 0x8c5   : > { %3974 = vmatprep.mubr.f32.mxu1 %v3724_v0  ;;  %v3432_v0 = vsub.f32 %v14087_v33, %v14445_v36  ;;  %v3541_v13 = vmul.f32 1.442695, %v3431_v55 }
 0x8c6   : > { %v10755_v1 = vpop.eup %10754  ;;  %3975 = vmatmul.mubr.f32.gmra.mrb[116].mxu1 %v3723_v3 }
 0x8c7   : > { %v3618_v18 = vpop.xlane.xlu1 %3617  ;;  %v3726_v39 = vmul.f32 %v10755_v1, %v14305_v54  ;;  %v3725_v25 = vmul.f32 %v10755_v1, %v14303_v38  ;;  %v3533_v54 = vmul.f32 1.442695, %v3427_v52  ;;  %v3543_v1 = vmul.f32 1.442695, %v3432_v0  ;;  %v17699_v52 = vld [vmem:[#allocation140_spill] sm:$0xff]  ;;  %v17709_v0 = vld [vmem:[#allocation13_spill] sm:$0xff] }
 0x8c8   : > { %10760 = vrcp.f32 %v3618_v18 }
 0x8c9   : > { %3979 = vmatprep.mubr.f32.mxu1 %v3726_v39 }
 0x8ca   : > { %v10757_v5 = vpop.eup %10756  ;;  %3980 = vmatmul.mubr.f32.gmra.mrb[118].mxu1 %v3725_v25 }
 0x8cb   : > { %v3621_v12 = vpop.xlane.xlu0 %3620  ;;  %v3728_v8 = vmul.f32 %v10757_v5, %v14317_v11  ;;  %v3727_v47 = vmul.f32 %v10757_v5, %v14315_v60 }
 0x8cc   : > { %10762 = vrcp.f32 %v3621_v12 }
 0x8cd   : > { %10764 = vpow2.f32 %v3529_v44  ;;  %3984 = vmatprep.mubr.f32.mxu1 %v3728_v8  ;;  %v17702_v8 = vld [vmem:[#allocation11_spill] sm:$0xff] }
 0x8ce   : > { %v10759_v38 = vpop.eup %10758  ;;  %10766 = vpow2.f32 %v3531_v10  ;;  %3985 = vmatmul.mubr.f32.gmra.mrb[120].mxu1 %v3727_v47  ;;  %v17700_v10 = vld [vmem:[#allocation154_spill] sm:$0xff]  ;;  %v17703_v47 = vld [vmem:[#allocation144_spill] sm:$0xff] }
 0x8cf   : > { %v3624_v15 = vpop.xlane.xlu1 %3623  ;;  %v6191_v21 = vpop.permute.xlu0 %6190  ;;  %v3730_v41 = vmul.f32 %v10759_v38, %v14329_v45  ;;  %v3729_v50 = vmul.f32 %v10759_v38, %v14327_v17 }
 0x8d0   : > { %10768 = vrcp.f32 %v3624_v15  ;;  %8901 = vmatprep.mubr.msk.f32.mxu0 %vm1107_vm1, %v6191_v21 }
 0x8d1   : > { %10770 = vpow2.f32 %v3533_v54  ;;  %3989 = vmatprep.mubr.f32.mxu1 %v3730_v41  ;;  %8902 = vmatmul.mubr.msk.f32.gmra.mrb[234].mxu0 %vm1107_vm1, %v6191_v21  ;;  %v17704_v54 = vld [vmem:[#allocation177_spill] sm:$0xff] }
 0x8d2   : > { %v10761_v11 = vpop.eup %10760  ;;  %10772 = vpow2.f32 %v3535_v56  ;;  %3990 = vmatmul.mubr.f32.gmra.mrb[122].mxu1 %v3729_v50  ;;  %v3433_v38 = vsub.f32 %v17704_v54, %v17703_v47  ;;  %v17705_v56 = vld [vmem:[#allocation179_spill] sm:$0xff]  ;;  %v17706_v41 = vld [vmem:[#allocation181_spill] sm:$0xff] }
 0x8d3   : > { %v6193_v60 = vpop.permute.xlu1 %6192  ;;  %v3732_v28 = vmul.f32 %v10761_v11, %v14339_v40  ;;  %v3731_v63 = vmul.f32 %v10761_v11, %v14337_v24  ;;  %v3434_v15 = vsub.f32 %v17705_v56, %v17703_v47  ;;  %v3435_v50 = vsub.f32 %v17706_v41, %v14460_v29 }
 0x8d4   : > { %8903 = vmatprep.mubr.msk.f32.mxu0 %vm1107_vm1, %v6193_v60  ;;  %v3545_v21 = vmul.f32 1.442695, %v3433_v38 }
 0x8d5   : > { %3994 = vmatprep.mubr.f32.mxu1 %v3732_v28  ;;  %8904 = vmatmul.mubr.msk.f32.gmra.mrb[236].mxu0 %vm1107_vm1, %v6193_v60  ;;  %v3547_v11 = vmul.f32 1.442695, %v3434_v15  ;;  %v17707_v60 = vld [vmem:[#allocation40_spill] sm:$0xff] }
 0x8d6   : > { %v10763_v45 = vpop.eup %10762  ;;  %3995 = vmatmul.mubr.f32.gmra.mrb[124].mxu1 %v3731_v63  ;;  %v3436_v28 = vsub.f32 %v17707_v60, %v14460_v29 }
 0x8d7   : > { %v14527_v17 = vpop.eup %10764  ;;  %v3734_v19 = vmul.f32 %v10763_v45, %v14349_v51  ;;  %v3733_v58 = vmul.f32 %v10763_v45, %v14347_v20  ;;  %v17697_v51 = vld [vmem:[#allocation7_spill] sm:$0xff]  ;;  %v3549_v45 = vmul.f32 1.442695, %v3435_v50 }
 0x8d8   : > { %v14531_v32 = vpop.eup %10766 }
 0x8d9   : > { %3999 = vmatprep.mubr.f32.mxu1 %v3734_v19  ;;  %v3637_v24 = vadd.f32 %v14531_v32, %v14527_v17  ;;  %v3551_v19 = vmul.f32 1.442695, %v3436_v28 }
 0x8da   : > { %v10769_v4 = vpop.eup %10768  ;;  %4000 = vmatmul.mubr.f32.gmra.mrb[126].mxu1 %v3733_v58 }
 0x8db   : > { %v14533_v40 = vpop.eup %10770  ;;  %v3736_v23 = vmul.f32 %v10769_v4, %v14359_v42  ;;  %v3735_v9 = vmul.f32 %v10769_v4, %v14357_v14  ;;  %v3429_v42 = vsub.f32 %v14079_v2, %v14441_v34  ;;  %v3430_v14 = vsub.f32 %v14081_v27, %v14441_v34 }
 0x8dc   : > { %v14539_v7 = vpop.eup %10772 }
 0x8dd   : > { %3638 = vadd.xlane.f32.xlu0 %v3637_v24  ;;  %4004 = vmatprep.mubr.f32.mxu1 %v3736_v23  ;;  %v3640_v20 = vadd.f32 %v14539_v7, %v14533_v40  ;;  %v3537_v30 = vmul.f32 1.442695, %v3429_v42  ;;  %v3539_v61 = vmul.f32 1.442695, %v3430_v14 }
 0x8de   : > { %4005 = vmatmul.mubr.f32.gmra.mrb[128].mxu1 %v3735_v9 }
 0x8e1   : > { %3641 = vadd.xlane.f32.xlu1 %v3640_v20 }
 0x8f2   : > { %6204 = vrot.lane.b32.xlu1 %v17697_v51, %s11279_s18 }
 0x8f3   : > { %6202 = vrot.lane.b32.xlu0 %v17698_v59, %s11279_s18 }
 0x900   : > { %v3627_v3 = vpop.xlane.xlu0 %3626 }
 0x901   : > { %10774 = vrcp.f32 %v3627_v3  ;;  %v17710_v3 = vld [vmem:[#allocation120_spill] sm:$0xff] }
 0x902   : > { %10776 = vpow2.f32 %v3537_v30 }
 0x903   : > { %10778 = vpow2.f32 %v3539_v61 }
 0x904   : > { %v3630_v37 = vpop.xlane.xlu1 %3629  ;;  %v6195_v18 = vpop.permute.xlu0 %6194 }
 0x905   : > { %10780 = vrcp.f32 %v3630_v37  ;;  %8905 = vmatprep.mubr.msk.f32.mxu0 %vm1107_vm1, %v6195_v18  ;;  %v17712_v37 = vld [vmem:[#allocation51_spill] sm:$0xff] }
 0x906   : > { %10782 = vpow2.f32 %v3541_v13  ;;  %8906 = vmatmul.mubr.msk.f32.gmra.mrb[238].mxu0 %vm1107_vm1, %v6195_v18  ;;  %v3439_v18 = vsub.f32 %v17712_v37, %v14465_v16 }
 0x907   : > { %10784 = vpow2.f32 %v3543_v1 }
 0x908   : > { %v6197_v2 = vpop.permute.xlu1 %6196 }
 0x909   : > { %8907 = vmatprep.mubr.msk.f32.mxu0 %vm1107_vm1, %v6197_v2 }
 0x90a   : > { %8908 = vmatmul.mubr.msk.f32.gmra.mrb[240].mxu0 %vm1107_vm1, %v6197_v2 }
 0x90b   : > { %v10775_v27 = vpop.eup %10774 }
 0x90c   : > { %v14559_v48 = vpop.eup %10776  ;;  %v3738_v33 = vmul.f32 %v10775_v27, %v14421_v6  ;;  %v3737_v36 = vmul.f32 %v10775_v27, %v14419_v46  ;;  %v17701_v6 = vld [vmem:[#allocation10_spill] sm:$0xff]  ;;  %v17713_v27 = vld [vmem:[#allocation124_spill] sm:$0xff] }
 0x90d   : > { %v14563_v34 = vpop.eup %10778 }
 0x90e   : > { %4009 = vmatprep.mubr.f32.mxu1 %v3738_v33  ;;  %v3643_v44 = vadd.f32 %v14563_v34, %v14559_v48  ;;  %v3440_v33 = vsub.f32 %v17713_v27, %v14465_v16 }
 0x90f   : > { %v10781_v39 = vpop.eup %10780  ;;  %4010 = vmatmul.mubr.f32.gmra.mrb[130].mxu1 %v3737_v36 }
 0x910   : > { %v14565_v25 = vpop.eup %10782  ;;  %v3740_v5 = vmul.f32 %v10781_v39, %v17699_v52  ;;  %v3739_v53 = vmul.f32 %v10781_v39, %v17700_v10  ;;  %v3557_v39 = vmul.f32 1.442695, %v3439_v18  ;;  %v17719_v18 = vld [vmem:[#allocation137_spill] sm:$0xff] }
 0x911   : > { %v14571_v12 = vpop.eup %10784 }
 0x912   : > { %3644 = vadd.xlane.f32.xlu0 %v3643_v44  ;;  %4014 = vmatprep.mubr.f32.mxu1 %v3740_v5  ;;  %v3646_v46 = vadd.f32 %v14571_v12, %v14565_v25  ;;  %v3559_v44 = vmul.f32 1.442695, %v3440_v33 }
 0x913   : > { %4015 = vmatmul.mubr.f32.gmra.mrb[132].mxu1 %v3739_v53 }
 0x916   : > { %3647 = vadd.xlane.f32.xlu1 %v3646_v46 }
 0x927   : > { %6208 = vrot.lane.b32.xlu1 %v17701_v6, %s11279_s18 }
 0x928   : > { %6206 = vrot.lane.b32.xlu0 %v17702_v8, %s11279_s18 }
 0x935   : > { %v3633_v63 = vpop.xlane.xlu0 %3632 }
 0x936   : > { %10786 = vrcp.f32 %v3633_v63 }
 0x937   : > { %10788 = vpow2.f32 %v3545_v21 }
 0x938   : > { %10790 = vpow2.f32 %v3547_v11 }
 0x939   : > { %v3636_v58 = vpop.xlane.xlu1 %3635  ;;  %v6199_v4 = vpop.permute.xlu0 %6198 }
 0x93a   : > { %10792 = vrcp.f32 %v3636_v58  ;;  %8909 = vmatprep.mubr.msk.f32.mxu0 %vm1107_vm1, %v6199_v4 }
 0x93b   : > { %10794 = vpow2.f32 %v3549_v45  ;;  %8910 = vmatmul.mubr.msk.f32.gmra.mrb[242].mxu0 %vm1107_vm1, %v6199_v4 }
 0x93c   : > { %10796 = vpow2.f32 %v3551_v19 }
 0x93d   : > { %v6201_v24 = vpop.permute.xlu1 %6200 }
 0x93e   : > { %8911 = vmatprep.mubr.msk.f32.mxu0 %vm1107_vm1, %v6201_v24 }
 0x93f   : > { %8912 = vmatmul.mubr.msk.f32.gmra.mrb[244].mxu0 %vm1107_vm1, %v6201_v24  ;;  %v17714_v24 = vld [vmem:[#allocation16_spill] sm:$0xff] }
 0x940   : > { %v10787_v29 = vpop.eup %10786 }
 0x941   : > { %v14591_v23 = vpop.eup %10788  ;;  %v3742_v9 = vmul.f32 %v10787_v29, %v14471_v57  ;;  %v3741_v20 = vmul.f32 %v10787_v29, %v14469_v22  ;;  %v17708_v57 = vld [vmem:[#allocation12_spill] sm:$0xff] }
 0x942   : > { %v14595_v51 = vpop.eup %10790 }
 0x943   : > { %4019 = vmatprep.mubr.f32.mxu1 %v3742_v9  ;;  %v3649_v14 = vadd.f32 %v14595_v51, %v14591_v23  ;;  %v17715_v9 = vld [vmem:[#allocation17_spill] sm:$0xff] }
 0x944   : > { %v10793_v59 = vpop.eup %10792  ;;  %4020 = vmatmul.mubr.f32.gmra.mrb[134].mxu1 %v3741_v20 }
 0x945   : > { %v14597_v42 = vpop.eup %10794  ;;  %v3744_v30 = vmul.f32 %v10793_v59, %v14481_v62  ;;  %v3743_v55 = vmul.f32 %v10793_v59, %v14475_v31  ;;  %v3437_v62 = vsub.f32 %v17710_v3, %v14463_v26  ;;  %v17711_v31 = vld [vmem:[#allocation107_spill] sm:$0xff] }
 0x946   : > { %v14603_v61 = vpop.eup %10796  ;;  %v3438_v13 = vsub.f32 %v17711_v31, %v14463_v26  ;;  %v17718_v31 = vld [vmem:[#allocation67_spill] sm:$0xff] }
 0x947   : > { %3650 = vadd.xlane.f32.xlu0 %v3649_v14  ;;  %4024 = vmatprep.mubr.f32.mxu1 %v3744_v30  ;;  %v3652_v22 = vadd.f32 %v14603_v61, %v14597_v42  ;;  %v3553_v1 = vmul.f32 1.442695, %v3437_v62  ;;  %v17716_v30 = vld [vmem:[#allocation58_spill] sm:$0xff] }
 0x948   : > { %4025 = vmatmul.mubr.f32.gmra.mrb[136].mxu1 %v3743_v55  ;;  %v3555_v2 = vmul.f32 1.442695, %v3438_v13  ;;  %v3441_v55 = vsub.f32 %v17716_v30, %v14477_v35  ;;  %v3443_v13 = vsub.f32 %v17718_v31, %v14487_v43 }
 0x94a   : > { %v3561_v62 = vmul.f32 1.442695, %v3441_v55 }
 0x94b   : > { %3653 = vadd.xlane.f32.xlu1 %v3652_v22 }
 0x95c   : > { %6212 = vrot.lane.b32.xlu1 %v17708_v57, %s11279_s18  ;;  %v17717_v57 = vld [vmem:[#allocation132_spill] sm:$0xff] }
 0x95d   : > { %6210 = vrot.lane.b32.xlu0 %v17709_v0, %s11279_s18  ;;  %v3442_v0 = vsub.f32 %v17717_v57, %v14477_v35  ;;  %v17720_v57 = vld [vmem:[#allocation18_spill] sm:$0xff] }
 0x95f   : > { %v3563_v37 = vmul.f32 1.442695, %v3442_v0  ;;  %v17721_v0 = vld [vmem:[#allocation20_spill] sm:$0xff] }
 0x96a   : > { %v3639_v36 = vpop.xlane.xlu0 %3638 }
 0x96b   : > { %10798 = vrcp.f32 %v3639_v36  ;;  %v3565_v36 = vmul.f32 1.442695, %v3443_v13 }
 0x96c   : > { %10800 = vpow2.f32 %v3553_v1 }
 0x96d   : > { %10802 = vpow2.f32 %v3555_v2  ;;  %v3444_v2 = vsub.f32 %v17719_v18, %v14487_v43 }
 0x96e   : > { %v3642_v52 = vpop.xlane.xlu1 %3641  ;;  %v6203_v5 = vpop.permute.xlu0 %6202 }
 0x96f   : > { %10804 = vrcp.f32 %v3642_v52  ;;  %8913 = vmatprep.mubr.msk.f32.mxu0 %vm1107_vm1, %v6203_v5  ;;  %v3567_v35 = vmul.f32 1.442695, %v3444_v2 }
 0x970   : > { %10806 = vpow2.f32 %v3557_v39  ;;  %8914 = vmatmul.mubr.msk.f32.gmra.mrb[246].mxu0 %vm1107_vm1, %v6203_v5 }
 0x971   : > { %10808 = vpow2.f32 %v3559_v44 }
 0x972   : > { %v6205_v26 = vpop.permute.xlu1 %6204 }
 0x973   : > { %8915 = vmatprep.mubr.msk.f32.mxu0 %vm1107_vm1, %v6205_v26 }
 0x974   : > { %8916 = vmatmul.mubr.msk.f32.gmra.mrb[248].mxu0 %vm1107_vm1, %v6205_v26 }
 0x975   : > { %v10799_v16 = vpop.eup %10798  ;;  %v14623_v10 = vpop.f32.mrb[98].mxu1 }
 0x976   : > { %v14625_v53 = vpop.eup %10800  ;;  %v3933_v46 = vpop.f32.mrb[99].mxu1  ;;  %v3746_v6 = vmul.f32 %v10799_v16, %v14531_v32  ;;  %v3745_v8 = vmul.f32 %v10799_v16, %v14527_v17 }
 0x977   : > { %v14629_v47 = vpop.eup %10802 }
 0x978   : > { %4029 = vmatprep.mubr.f32.mxu1 %v3746_v6  ;;  %v3655_v21 = vadd.f32 %v14629_v47, %v14625_v53 }
 0x979   : > { %v10805_v54 = vpop.eup %10804  ;;  %v14631_v38 = vpop.f32.mrb[100].mxu1  ;;  %4030 = vmatmul.mubr.f32.gmra.mrb[138].mxu1 %v3745_v8 }
 0x97a   : > { %v14633_v56 = vpop.eup %10806  ;;  %v3938_v15 = vpop.f32.mrb[101].mxu1  ;;  %v3748_v41 = vmul.f32 %v10805_v54, %v14539_v7  ;;  %v3747_v50 = vmul.f32 %v10805_v54, %v14533_v40 }
 0x97b   : > { %v14639_v32 = vpop.eup %10808 }
 0x97c   : > { %3656 = vadd.xlane.f32.xlu0 %v3655_v21  ;;  %4034 = vmatprep.mubr.f32.mxu1 %v3748_v41  ;;  %v3658_v60 = vadd.f32 %v14639_v32, %v14633_v56 }
 0x97d   : > { %v14641_v17 = vpop.f32.mrb[102].mxu1  ;;  %4035 = vmatmul.mubr.f32.gmra.mrb[140].mxu1 %v3747_v50 }
 0x97e   : > { %v3943_v11 = vpop.f32.mrb[103].mxu1 }
 0x980   : > { %3659 = vadd.xlane.f32.xlu1 %v3658_v60 }
 0x981   : > { %v14645_v28 = vpop.f32.mrb[104].mxu1 }
 0x982   : > { %v3948_v63 = vpop.f32.mrb[105].mxu1 }
 0x985   : > { %v14647_v45 = vpop.f32.mrb[106].mxu1 }
 0x986   : > { %v3953_v7 = vpop.f32.mrb[107].mxu1 }
 0x989   : > { %v14649_v19 = vpop.f32.mrb[108].mxu1 }
 0x98a   : > { %v3958_v40 = vpop.f32.mrb[109].mxu1 }
 0x98d   : > { %v14651_v58 = vpop.f32.mrb[110].mxu1 }
 0x98e   : > { %v3963_v4 = vpop.f32.mrb[111].mxu1 }
 0x991   : > { %6216 = vrot.lane.b32.xlu1 %v17714_v24, %s11279_s18  ;;  %v14655_v29 = vpop.f32.mrb[112].mxu1 }
 0x992   : > { %6214 = vrot.lane.b32.xlu0 %v17715_v9, %s11279_s18  ;;  %v3968_v20 = vpop.f32.mrb[113].mxu1 }
 0x995   : > { %v14659_v59 = vpop.f32.mrb[114].mxu1 }
 0x996   : > { %v3973_v14 = vpop.f32.mrb[115].mxu1 }
 0x999   : > { %v14663_v22 = vpop.f32.mrb[116].mxu1 }
 0x99a   : > { %v3978_v3 = vpop.f32.mrb[117].mxu1 }
 0x99d   : > { %v14669_v1 = vpop.f32.mrb[118].mxu1 }
 0x99e   : > { %v3983_v27 = vpop.f32.mrb[119].mxu1 }
 0x99f   : > { %v3645_v33 = vpop.xlane.xlu0 %3644  ;;  %v17726_v27 = vld [vmem:[#allocation145_spill] sm:$0xff] }
 0x9a0   : > { %10810 = vrcp.f32 %v3645_v33  ;;  %v3448_v33 = vsub.f32 %v17726_v27, %v14456_v49  ;;  %v17733_v27 = vmov 0.0|0.0  }
 0x9a1   : > { %10812 = vpow2.f32 %v3561_v62  ;;  %v14673_v39 = vpop.f32.mrb[120].mxu1  ;;  %v17724_v62 = vld [vmem:[#allocation141_spill] sm:$0xff] }
 0x9a2   : > { %10814 = vpow2.f32 %v3563_v37  ;;  %v3988_v44 = vpop.f32.mrb[121].mxu1  ;;  %v17725_v37 = vld [vmem:[#allocation81_spill] sm:$0xff] }
 0x9a3   : > { %v3648_v52 = vpop.xlane.xlu1 %3647  ;;  %v6207_v5 = vpop.permute.xlu0 %6206  ;;  %v3447_v18 = vsub.f32 %v17725_v37, %v14456_v49  ;;  %v3575_v44 = vmul.f32 1.442695, %v3448_v33  ;;  %v8203_v37 = vld [vmem:[%s16802_s5 + $0x8] sm:$0xff]  ;;  %v17734_v33 = vld [vmem:[#allocation25_spill] sm:$0xff] }
 0x9a4   : > { %10816 = vrcp.f32 %v3648_v52  ;;  %v14675_v26 = vpop.f32.mrb[234].mxu0  ;;  %8917 = vmatprep.mubr.msk.f32.mxu0 %vm1107_vm1, %v6207_v5  ;;  %9092 = vmatprep.subr.mxu1 %v8203_v37 }
 0x9a5   : > { %10818 = vpow2.f32 %v3565_v36  ;;  %v14678_v16 = vpop.f32.mrb[122].mxu1  ;;  %v14680_v43 = vpop.f32.mrb[235].mxu0  ;;  %8918 = vmatmul.mubr.msk.f32.gmra.mrb[250].mxu0 %vm1107_vm1, %v6207_v5  ;;  %9093 = vmatpush3.msra.mxu1 %v8203_v37 }
 0x9a6   : > { %10820 = vpow2.f32 %v3567_v35  ;;  %v3993_v46 = vpop.f32.mrb[123].mxu1  ;;  %v3573_v35 = vmul.f32 1.442695, %v3447_v18  ;;  %v17732_v18 = vld [vmem:[#allocation23_spill] sm:$0xff]  ;;  %9490 = vmatprep.subr.bf16.mxu1 %v17733_v27 }
 0x9a7   : > { %v6209_v6 = vpop.permute.xlu1 %6208 }
 0x9a8   : > { %v14683_v8 = vpop.f32.mrb[236].mxu0  ;;  %8919 = vmatprep.mubr.msk.f32.mxu0 %vm1107_vm1, %v6209_v6 }
 0x9a9   : > { %v14686_v54 = vpop.f32.mrb[124].mxu1  ;;  %v14688_v15 = vpop.f32.mrb[237].mxu0  ;;  %8920 = vmatmul.mubr.msk.f32.gmra.mrb[252].mxu0 %vm1107_vm1, %v6209_v6 }
 0x9aa   : > { %v10811_v21 = vpop.eup %10810  ;;  %v3998_v41 = vpop.f32.mrb[125].mxu1 }
 0x9ab   : > { %v14691_v50 = vpop.eup %10812  ;;  %v3750_v11 = vmul.f32 %v10811_v21, %v14563_v34  ;;  %v3749_v60 = vmul.f32 %v10811_v21, %v14559_v48 }
 0x9ac   : > { %v14695_v63 = vpop.eup %10814 }
 0x9ad   : > { %v14697_v7 = vpop.f32.mrb[126].mxu1  ;;  %4039 = vmatprep.mubr.f32.mxu1 %v3750_v11  ;;  %v3661_v9 = vadd.f32 %v14695_v63, %v14691_v50 }
 0x9ae   : > { %v10817_v40 = vpop.eup %10816  ;;  %v4003_v4 = vpop.f32.mrb[127].mxu1  ;;  %4040 = vmatmul.mubr.f32.gmra.mrb[142].mxu1 %v3749_v60 }
 0x9af   : > { %v14699_v24 = vpop.eup %10818  ;;  %v3752_v20 = vmul.f32 %v10817_v40, %v14571_v12  ;;  %v3751_v14 = vmul.f32 %v10817_v40, %v14565_v25  ;;  %v17722_v12 = vld [vmem:[#allocation165_spill] sm:$0xff]  ;;  %v17723_v25 = vld [vmem:[#allocation76_spill] sm:$0xff] }
 0x9b0   : > { %v14705_v34 = vpop.eup %10820  ;;  %v3445_v3 = vsub.f32 %v17723_v25, %v17722_v12  ;;  %v3446_v31 = vsub.f32 %v17724_v62, %v17722_v12  ;;  %v17727_v62 = vld [vmem:[#allocation26_spill] sm:$0xff] }
 0x9b1   : > { %3662 = vadd.xlane.f32.xlu0 %v3661_v9  ;;  %v14707_v48 = vpop.f32.mrb[128].mxu1  ;;  %4044 = vmatprep.mubr.f32.mxu1 %v3752_v20  ;;  %v3664_v55 = vadd.f32 %v14705_v34, %v14699_v24 }
 0x9b2   : > { %v4008_v30 = vpop.f32.mrb[129].mxu1  ;;  %4045 = vmatmul.mubr.f32.gmra.mrb[144].mxu1 %v3751_v14  ;;  %v3569_v13 = vmul.f32 1.442695, %v3445_v3  ;;  %v3571_v2 = vmul.f32 1.442695, %v3446_v31  ;;  %v17728_v31 = vld [vmem:[#allocation22_spill] sm:$0xff] }
 0x9b5   : > { %3665 = vadd.xlane.f32.xlu1 %v3664_v55 }
 0x9c6   : > { %6220 = vrot.lane.b32.xlu1 %v17720_v57, %s11279_s18 }
 0x9c7   : > { %6218 = vrot.lane.b32.xlu0 %v17721_v0, %s11279_s18 }
 0x9d4   : > { %v3651_v36 = vpop.xlane.xlu0 %3650 }
 0x9d5   : > { %10822 = vrcp.f32 %v3651_v36 }
 0x9d6   : > { %10824 = vpow2.f32 %v3569_v13  ;;  %v17731_v13 = vld [vmem:[#allocation24_spill] sm:$0xff] }
 0x9d7   : > { %10826 = vpow2.f32 %v3571_v2 }
 0x9d8   : > { %v3654_v52 = vpop.xlane.xlu1 %3653  ;;  %v6211_v5 = vpop.permute.xlu0 %6210 }
 0x9d9   : > { %10828 = vrcp.f32 %v3654_v52  ;;  %v14723_v46 = vpop.f32.mrb[238].mxu0  ;;  %8921 = vmatprep.mubr.msk.f32.mxu0 %vm1107_vm1, %v6211_v5 }
 0x9da   : > { %10830 = vpow2.f32 %v3573_v35  ;;  %v14726_v6 = vpop.f32.mrb[239].mxu0  ;;  %8922 = vmatmul.mubr.msk.f32.gmra.mrb[254].mxu0 %vm1107_vm1, %v6211_v5  ;;  %v17736_v5 = vld [vmem:[#allocation28_spill] sm:$0xff] }
 0x9db   : > { %10832 = vpow2.f32 %v3575_v44 }
 0x9dc   : > { %v6213_v49 = vpop.permute.xlu1 %6212 }
 0x9dd   : > { %v14729_v21 = vpop.f32.mrb[240].mxu0  ;;  %8923 = vmatprep.mubr.msk.f32.mxu0 %vm1107_vm1, %v6213_v49 }
 0x9de   : > { %v14732_v41 = vpop.f32.mrb[241].mxu0  ;;  %8924 = vmatmul.mubr.msk.f32.gmra.mrb[0].mxu0 %vm1107_vm1, %v6213_v49 }
 0x9df   : > { %v10823_v11 = vpop.eup %10822 }
 0x9e0   : > { %v14735_v60 = vpop.eup %10824  ;;  %v3754_v40 = vmul.f32 %v10823_v11, %v14595_v51  ;;  %v3753_v4 = vmul.f32 %v10823_v11, %v14591_v23 }
 0x9e1   : > { %v14739_v9 = vpop.eup %10826 }
 0x9e2   : > { %v14741_v20 = vpop.f32.mrb[130].mxu1  ;;  %4049 = vmatprep.mubr.f32.mxu1 %v3754_v40  ;;  %v3667_v57 = vadd.f32 %v14739_v9, %v14735_v60 }
 0x9e3   : > { %v10829_v14 = vpop.eup %10828  ;;  %v4013_v30 = vpop.f32.mrb[131].mxu1  ;;  %4050 = vmatmul.mubr.f32.gmra.mrb[146].mxu1 %v3753_v4 }
 0x9e4   : > { %v14743_v55 = vpop.eup %10830  ;;  %v3756_v0 = vmul.f32 %v10829_v14, %v14603_v61  ;;  %v3755_v12 = vmul.f32 %v10829_v14, %v14597_v42  ;;  %v17729_v42 = vld [vmem:[#allocation31_spill] sm:$0xff]  ;;  %v17730_v61 = vld [vmem:[#allocation21_spill] sm:$0xff] }
 0x9e5   : > { %v14749_v51 = vpop.eup %10832  ;;  %v17739_v14 = vld [vmem:[#allocation27_spill] sm:$0xff] }
 0x9e6   : > { %3668 = vadd.xlane.f32.xlu0 %v3667_v57  ;;  %v14751_v23 = vpop.f32.mrb[132].mxu1  ;;  %4054 = vmatprep.mubr.f32.mxu1 %v3756_v0  ;;  %v3670_v3 = vadd.f32 %v14749_v51, %v14743_v55 }
 0x9e7   : > { %v4018_v25 = vpop.f32.mrb[133].mxu1  ;;  %4055 = vmatmul.mubr.f32.gmra.mrb[148].mxu1 %v3755_v12 }
 0x9e8   : > { %v17740_v25 = vld [vmem:[#allocation32_spill] sm:$0xff] }
 0x9ea   : > { %3671 = vadd.xlane.f32.xlu1 %v3670_v3 }
 0x9fb   : > { %6230 = vrot.lane.b32.xlu1 %v17727_v62, %s11279_s18 }
 0x9fc   : > { %6222 = vrot.lane.b32.xlu0 %v17728_v31, %s11279_s18 }
 0x9ff   : > { %6240 = vrot.lane.b32.xlu1 %v17729_v42, %s11279_s18 }
 0xa00   : > { %6224 = vrot.lane.b32.xlu0 %v17730_v61, %s11279_s18 }
 0xa04   : > { %6226 = vrot.lane.b32.xlu0 %v17731_v13, %s11279_s18  ;;  %v17742_v13 = vld [vmem:[#allocation112_spill] sm:$0xff] }
 0xa05   : > { %v14803_v37 = vmul.f32 0.35355338, %v17742_v13  ;;  %v17757_v13 = vld [vmem:[#allocation91_spill] sm:$0xff] }
 0xa08   : > { %6228 = vrot.lane.b32.xlu0 %v17732_v18, %s11279_s18 }
 0xa09   : > { %v3657_v2 = vpop.xlane.xlu0 %3656 }
 0xa0a   : > { %10834 = vrcp.f32 %v3657_v2  ;;  %v17743_v2 = vld [vmem:[#allocation166_spill] sm:$0xff] }
 0xa0c   : > { %6232 = vrot.lane.b32.xlu0 %v17734_v33, %s11279_s18  ;;  %v14808_v33 = vmul.f32 0.35355338, %v17743_v2  ;;  %v17758_v2 = vld [vmem:[#allocation149_spill] sm:$0xff] }
 0xa0d   : > { %v3660_v36 = vpop.xlane.xlu1 %3659  ;;  %v6215_v35 = vpop.permute.xlu0 %6214 }
 0xa0e   : > { %10836 = vrcp.f32 %v3660_v36  ;;  %v14773_v44 = vpop.f32.mrb[242].mxu0  ;;  %8925 = vmatprep.mubr.msk.f32.mxu0 %vm1107_vm1, %v6215_v35 }
 0xa0f   : > { %v14776_v52 = vpop.f32.mrb[243].mxu0  ;;  %8926 = vmatmul.mubr.msk.f32.gmra.mrb[2].mxu0 %vm1107_vm1, %v6215_v35  ;;  %v17745_v35 = vld [vmem:[#allocation173_spill] sm:$0xff] }
 0xa10   : > { %17735 = vst [vmem:[#allocation182_spill] sm:$0xff] %v14776_v52  ;;  %6234 = vrot.lane.b32.xlu0 %v17736_v5, %s11279_s18  ;;  %v14816_v5 = vmul.f32 0.35355338, %v17745_v35  ;;  %v17759_v35 = vld [vmem:[#allocation47_spill] sm:$0xff] }
 0xa11   : > { %v6217_v49 = vpop.permute.xlu1 %6216 }
 0xa12   : > { %v14781_v11 = vpop.f32.mrb[244].mxu0  ;;  %8927 = vmatprep.mubr.msk.f32.mxu0 %vm1107_vm1, %v6217_v49  ;;  %17746 = vst [vmem:[#allocation44_spill] sm:$0xff] %v14816_v5 }
 0xa13   : > { %17737 = vst [vmem:[#allocation174_spill] sm:$0xff] %v14781_v11  ;;  %v14784_v40 = vpop.f32.mrb[245].mxu0  ;;  %8928 = vmatmul.mubr.msk.f32.gmra.mrb[4].mxu0 %vm1107_vm1, %v6217_v49  ;;  %v17747_v49 = vld [vmem:[#allocation192_spill] sm:$0xff] }
 0xa14   : > { %17738 = vst [vmem:[#allocation148_spill] sm:$0xff] %v14784_v40  ;;  %v10835_v4 = vpop.eup %10834  ;;  %6236 = vrot.lane.b32.xlu0 %v17739_v14, %s11279_s18 }
 0xa15   : > { %v3758_v30 = vmul.f32 %v10835_v4, %v14629_v47  ;;  %v3757_v57 = vmul.f32 %v10835_v4, %v14625_v53  ;;  %v17741_v47 = vld [vmem:[#allocation99_spill] sm:$0xff]  ;;  %v14819_v4 = vmul.f32 0.35355338, %v17747_v49  ;;  %v14846_v49 = vmul.f32 0.35355338, %v17759_v35  ;;  %v17767_v35 = vld [vmem:[#allocation57_spill] sm:$0xff] }
 0xa16   : > { %v14800_v53 = vmul.f32 0.35355338, %v17741_v47 }
 0xa17   : > { %v14791_v0 = vpop.f32.mrb[134].mxu1  ;;  %4059 = vmatprep.mubr.f32.mxu1 %v3758_v30  ;;  %17748 = vst [vmem:[#allocation123_spill] sm:$0xff] %v14819_v4  ;;  %v5043_v14 = vmax.f32 %v14816_v5, %v14819_v4  ;;  %v17749_v30 = vld [vmem:[#allocation15_spill] sm:$0xff]  ;;  %17760 = vst [vmem:[#allocation50_spill] sm:$0xff] %v14846_v49 }
 0xa18   : > { %v10837_v12 = vpop.eup %10836  ;;  %6238 = vrot.lane.b32.xlu0 %v17740_v25, %s11279_s18  ;;  %v4023_v3 = vpop.f32.mrb[135].mxu1  ;;  %4060 = vmatmul.mubr.f32.gmra.mrb[150].mxu1 %v3757_v57  ;;  %v5025_v18 = vmax.f32 %v14800_v53, %v14803_v37  ;;  %v14824_v57 = vmul.f32 0.35355338, %v17749_v30 }
 0xa19   : > { %v3760_v62 = vmul.f32 %v10837_v12, %v14639_v32  ;;  %v3759_v31 = vmul.f32 %v10837_v12, %v14633_v56  ;;  %v17744_v32 = vld [vmem:[#allocation171_spill] sm:$0xff]  ;;  %v17751_v12 = vld [vmem:[#allocation41_spill] sm:$0xff] }
 0xa1a   : > { %v14811_v36 = vmul.f32 0.35355338, %v17744_v32  ;;  %17750 = vst [vmem:[#allocation43_spill] sm:$0xff] %v14824_v57  ;;  %v14827_v25 = vmul.f32 0.35355338, %v17751_v12 }
 0xa1b   : > { %v14797_v42 = vpop.f32.mrb[136].mxu1  ;;  %4064 = vmatprep.mubr.f32.mxu1 %v3760_v62  ;;  %v17753_v62 = vld [vmem:[#allocation37_spill] sm:$0xff]  ;;  %v14841_v32 = vmul.f32 0.35355338, %v17758_v2 }
 0xa1c   : > { %v4028_v61 = vpop.f32.mrb[137].mxu1  ;;  %4065 = vmatmul.mubr.f32.gmra.mrb[152].mxu1 %v3759_v31  ;;  %v5037_v56 = vmax.f32 %v14808_v33, %v14811_v36  ;;  %17752 = vst [vmem:[#allocation36_spill] sm:$0xff] %v14827_v25  ;;  %v5049_v3 = vmax.f32 %v14824_v57, %v14827_v25  ;;  %v14832_v31 = vmul.f32 0.35355338, %v17753_v62  ;;  %v14865_v25 = vmul.f32 0.35355338, %v17767_v35 }
 0xa1d   : > { %v17755_v61 = vld [vmem:[#allocation49_spill] sm:$0xff]  ;;  %v17770_v57 = vld [vmem:[#allocation164_spill] sm:$0xff]  ;;  %v17771_v35 = vld [vmem:[#allocation163_spill] sm:$0xff] }
 0xa1e   : > { %17754 = vst [vmem:[#allocation53_spill] sm:$0xff] %v14832_v31  ;;  %v14835_v47 = vmul.f32 0.35355338, %v17755_v61  ;;  %v17764_v61 = vld [vmem:[#allocation158_spill] sm:$0xff]  ;;  %17768 = vst [vmem:[#allocation133_spill] sm:$0xff] %v14865_v25 }
 0xa20   : > { %17756 = vst [vmem:[#allocation127_spill] sm:$0xff] %v14835_v47 }
 0xa23   : > { %5026 = vmax.xlane.f32.xlu1 %v5025_v18  ;;  %v14838_v18 = vmul.f32 0.35355338, %v17757_v13  ;;  %v14857_v13 = vmul.f32 0.35355338, %v17764_v61  ;;  %v14873_v61 = vmul.f32 0.35355338, %v17770_v57 }
 0xa25   : > { %v5022_v12 = vmax.f32 %v14838_v18, %v14841_v32 }
 0xa27   : > { %5038 = vmax.xlane.f32.xlu1 %v5037_v56  ;;  %v5055_v56 = vmax.f32 %v14832_v31, %v14835_v47  ;;  %v17765_v47 = vld [vmem:[#allocation134_spill] sm:$0xff] }
 0xa28   : > { %v14862_v31 = vmul.f32 0.35355338, %v17765_v47 }
 0xa2a   : > { %17766 = vst [vmem:[#allocation61_spill] sm:$0xff] %v14862_v31 }
 0xa2b   : > { %5044 = vmax.xlane.f32.xlu1 %v5043_v14  ;;  %v17761_v14 = vld [vmem:[#allocation59_spill] sm:$0xff] }
 0xa2c   : > { %v14849_v30 = vmul.f32 0.35355338, %v17761_v14  ;;  %v17769_v14 = vld [vmem:[#allocation161_spill] sm:$0xff] }
 0xa2e   : > { %17762 = vst [vmem:[#allocation46_spill] sm:$0xff] %v14849_v30  ;;  %v5061_v2 = vmax.f32 %v14846_v49, %v14849_v30  ;;  %v5064_v30 = vmax.f32 %v14862_v31, %v14865_v25 }
 0xa2f   : > { %5050 = vmax.xlane.f32.xlu1 %v5049_v3  ;;  %v17763_v3 = vld [vmem:[#allocation159_spill] sm:$0xff] }
 0xa30   : > { %v14854_v62 = vmul.f32 0.35355338, %v17763_v3  ;;  %v14870_v3 = vmul.f32 0.35355338, %v17769_v14  ;;  %v17773_v14 = vld [vmem:[#allocation169_spill] sm:$0xff] }
 0xa31   : > { %v14888_v5 = vmul.f32 0.35355338, %v17773_v14 }
 0xa32   : > { %v5031_v47 = vmax.f32 %v14870_v3, %v14873_v61 }
 0xa33   : > { %5056 = vmax.xlane.f32.xlu1 %v5055_v56  ;;  %v5028_v56 = vmax.f32 %v14854_v62, %v14857_v13  ;;  %17774 = vst [vmem:[#allocation60_spill] sm:$0xff] %v14888_v5 }
 0xa37   : > { %5023 = vmax.xlane.f32.xlu0 %v5022_v12  ;;  %5062 = vmax.xlane.f32.xlu1 %v5061_v2  ;;  %v14880_v12 = vmul.f32 0.35355338, %v17771_v35  ;;  %v17772_v2 = vld [vmem:[#allocation168_spill] sm:$0xff] }
 0xa38   : > { %v14883_v49 = vmul.f32 0.35355338, %v17772_v2 }
 0xa3a   : > { %v5034_v57 = vmax.f32 %v14880_v12, %v14883_v49 }
 0xa3b   : > { %5029 = vmax.xlane.f32.xlu0 %v5028_v56  ;;  %5065 = vmax.xlane.f32.xlu1 %v5064_v30  ;;  %v17775_v56 = vld [vmem:[#allocation190_spill] sm:$0xff] }
 0xa3c   : > { %v14891_v30 = vmul.f32 0.35355338, %v17775_v56  ;;  %v17781_v56 = vld [vmem:[#allocation176_spill] sm:$0xff] }
 0xa3d   : > { %v14905_v40 = vmul.f32 0.35355338, %v17781_v56 }
 0xa3e   : > { %v3663_v4 = vpop.xlane.xlu0 %3662  ;;  %17776 = vst [vmem:[#allocation56_spill] sm:$0xff] %v14891_v30 }
 0xa3f   : > { %10838 = vrcp.f32 %v3663_v4  ;;  %5032 = vmax.xlane.f32.xlu0 %v5031_v47  ;;  %v5040_v4 = vmax.f32 %v14888_v5, %v14891_v30  ;;  %v17779_v47 = vld [vmem:[#allocation191_spill] sm:$0xff]  ;;  %17782 = vst [vmem:[#allocation64_spill] sm:$0xff] %v14905_v40 }
 0xa40   : > { %v14902_v14 = vmul.f32 0.35355338, %v17779_v47  ;;  %v17787_v30 = vld [vmem:[#allocation39_spill] sm:$0xff] }
 0xa41   : > { %v14919_v56 = vmul.f32 0.35355338, %v17787_v30  ;;  %v17792_v30 = vld [vmem:[#allocation48_spill] sm:$0xff] }
 0xa42   : > { %v3666_v25 = vpop.xlane.xlu1 %3665  ;;  %v6219_v31 = vpop.permute.xlu0 %6218  ;;  %17780 = vst [vmem:[#allocation70_spill] sm:$0xff] %v14902_v14  ;;  %v14933_v52 = vmul.f32 0.35355338, %v17792_v30  ;;  %v17795_v30 = vld [vmem:[#allocation55_spill] sm:$0xff] }
 0xa43   : > { %10840 = vrcp.f32 %v3666_v25  ;;  %5035 = vmax.xlane.f32.xlu0 %v5034_v57  ;;  %v14893_v35 = vpop.f32.mrb[246].mxu0  ;;  %8929 = vmatprep.mubr.msk.f32.mxu0 %vm1107_vm1, %v6219_v31  ;;  %17788 = vst [vmem:[#allocation74_spill] sm:$0xff] %v14919_v56 }
 0xa44   : > { %17777 = vst [vmem:[#allocation71_spill] sm:$0xff] %v14893_v35  ;;  %v14896_v2 = vpop.f32.mrb[247].mxu0  ;;  %8930 = vmatmul.mubr.msk.f32.gmra.mrb[6].mxu0 %vm1107_vm1, %v6219_v31  ;;  %v17785_v35 = vld [vmem:[#allocation122_spill] sm:$0xff]  ;;  %17793 = vst [vmem:[#allocation175_spill] sm:$0xff] %v14933_v52 }
 0xa45   : > { %17778 = vst [vmem:[#allocation153_spill] sm:$0xff] %v14896_v2  ;;  %v5046_v2 = vmax.f32 %v14902_v14, %v14905_v40  ;;  %v14916_v47 = vmul.f32 0.35355338, %v17785_v35  ;;  %v17790_v40 = vld [vmem:[#allocation126_spill] sm:$0xff] }
 0xa46   : > { %v6221_v11 = vpop.permute.xlu1 %6220  ;;  %v14930_v14 = vmul.f32 0.35355338, %v17790_v40  ;;  %v17794_v40 = vld [vmem:[#allocation2_spill] sm:$0xff] }
 0xa47   : > { %5041 = vmax.xlane.f32.xlu0 %v5040_v4  ;;  %v14907_v25 = vpop.f32.mrb[248].mxu0  ;;  %8931 = vmatprep.mubr.msk.f32.mxu0 %vm1107_vm1, %v6221_v11  ;;  %17786 = vst [vmem:[#allocation82_spill] sm:$0xff] %v14916_v47  ;;  %v5052_v35 = vmax.f32 %v14916_v47, %v14919_v56 }
 0xa48   : > { %17783 = vst [vmem:[#allocation152_spill] sm:$0xff] %v14907_v25  ;;  %v14910_v57 = vpop.f32.mrb[249].mxu0  ;;  %8932 = vmatmul.mubr.msk.f32.gmra.mrb[8].mxu0 %vm1107_vm1, %v6221_v11  ;;  %17791 = vst [vmem:[#allocation160_spill] sm:$0xff] %v14930_v14 }
 0xa49   : > { %17784 = vst [vmem:[#allocation162_spill] sm:$0xff] %v14910_v57  ;;  %v10839_v31 = vpop.eup %10838  ;;  %v17789_v57 = vld [vmem:[#allocation8_spill] sm:$0xff] }
 0xa4a   : > { %v3762_v4 = vmul.f32 %v10839_v31, %v14695_v63  ;;  %v3761_v25 = vmul.f32 %v10839_v31, %v14691_v50 }
 0xa4b   : > { %5047 = vmax.xlane.f32.xlu0 %v5046_v2 }
 0xa4c   : > { %10306 = vrot.lane.b32.xlu1 %v17789_v57, %s11280_s23  ;;  %v14925_v11 = vpop.f32.mrb[138].mxu1  ;;  %4069 = vmatprep.mubr.f32.mxu1 %v3762_v4  ;;  %v5058_v4 = vmax.f32 %v14930_v14, %v14933_v52 }
 0xa4d   : > { %v10841_v5 = vpop.eup %10840  ;;  %v4033_v63 = vpop.f32.mrb[139].mxu1  ;;  %4070 = vmatmul.mubr.f32.gmra.mrb[154].mxu1 %v3761_v25  ;;  %v17797_v25 = vld [vmem:[#allocation68_spill] sm:$0xff] }
 0xa4e   : > { %v3764_v50 = vmul.f32 %v10841_v5, %v14705_v34  ;;  %v3763_v2 = vmul.f32 %v10841_v5, %v14699_v24  ;;  %v14944_v63 = vmul.f32 0.35355338, %v17795_v30  ;;  %v14947_v34 = vmul.f32 0.35355338, %v17797_v25  ;;  %v17799_v24 = vld [vmem:[#allocation19_spill] sm:$0xff] }
 0xa4f   : > { %5053 = vmax.xlane.f32.xlu0 %v5052_v35  ;;  %v17800_v35 = vld [vmem:[#allocation106_spill] sm:$0xff]  ;;  %v17806_v30 = vld [vmem:[#allocation79_spill] sm:$0xff] }
 0xa50   : > { %v14937_v31 = vpop.f32.mrb[140].mxu1  ;;  %4074 = vmatprep.mubr.f32.mxu1 %v3764_v50  ;;  %17796 = vst [vmem:[#allocation89_spill] sm:$0xff] %v14944_v63  ;;  %17798 = vst [vmem:[#allocation84_spill] sm:$0xff] %v14947_v34  ;;  %v5067_v5 = vmax.f32 %v14944_v63, %v14947_v34  ;;  %v14954_v50 = vmul.f32 0.35355338, %v17800_v35 }
 0xa51   : > { %v4038_v56 = vpop.f32.mrb[141].mxu1  ;;  %4075 = vmatmul.mubr.f32.gmra.mrb[156].mxu1 %v3763_v2  ;;  %v14963_v14 = vmul.f32 0.35355338, %v17806_v30 }
 0xa52   : > { %17801 = vst [vmem:[#allocation170_spill] sm:$0xff] %v14954_v50  ;;  %v17802_v56 = vld [vmem:[#allocation131_spill] sm:$0xff] }
 0xa53   : > { %5059 = vmax.xlane.f32.xlu0 %v5058_v4  ;;  %v14957_v2 = vmul.f32 0.35355338, %v17802_v56  ;;  %v17804_v4 = vld [vmem:[#allocation63_spill] sm:$0xff]  ;;  %17807 = vst [vmem:[#allocation86_spill] sm:$0xff] %v14963_v14 }
 0xa54   : > { %v14960_v52 = vmul.f32 0.35355338, %v17804_v4 }
 0xa55   : > { %17803 = vst [vmem:[#allocation183_spill] sm:$0xff] %v14957_v2  ;;  %v6755_v25 = vmax.f32 %v14954_v50, %v14957_v2 }
 0xa56   : > { %17805 = vst [vmem:[#allocation95_spill] sm:$0xff] %v14960_v52  ;;  %v5073_v35 = vmax.f32 %v14960_v52, %v14963_v14 }
 0xa69   : > { %10301 = vrot.lane.b32.xlu0 %v17794_v40, %s11280_s23 }
 0xa6d   : > { %10311 = vrot.lane.b32.xlu0 %v17799_v24, %s11280_s23 }
 0xa70   : > { %5068 = vmax.xlane.f32.xlu1 %v5067_v5 }
 0xa73   : > { %v3669_v47 = vpop.xlane.xlu0 %3668 }
 0xa74   : > { %10842 = vrcp.f32 %v3669_v47  ;;  %6756 = vmax.xlane.f32.xlu1 %v6755_v25 }
 0xa77   : > { %v3672_v34 = vpop.xlane.xlu1 %3671  ;;  %v6223_v63 = vpop.permute.xlu0 %6222 }
 0xa78   : > { %10844 = vrcp.f32 %v3672_v34  ;;  %5074 = vmax.xlane.f32.xlu1 %v5073_v35  ;;  %v14969_v5 = vpop.f32.mrb[250].mxu0  ;;  %8933 = vmatprep.mubr.msk.f32.mxu0 %vm1107_vm1, %v6223_v63 }
 0xa79   : > { %v14972_v56 = vpop.f32.mrb[251].mxu0  ;;  %8934 = vmatmul.mubr.msk.f32.gmra.mrb[10].mxu0 %vm1107_vm1, %v6223_v63 }
 0xa7b   : > { %v6225_v4 = vpop.permute.xlu0 %6224 }
 0xa7c   : > { %v14975_v30 = vpop.f32.mrb[252].mxu0  ;;  %8935 = vmatprep.mubr.msk.f32.mxu0 %vm1107_vm1, %v6225_v4 }
 0xa7d   : > { %v14978_v47 = vpop.f32.mrb[253].mxu0  ;;  %8936 = vmatmul.mubr.msk.f32.gmra.mrb[12].mxu0 %vm1107_vm1, %v6225_v4 }
 0xa7e   : > { %v10843_v25 = vpop.eup %10842 }
 0xa7f   : > { %v6227_v34 = vpop.permute.xlu0 %6226  ;;  %v3766_v35 = vmul.f32 %v10843_v25, %v14739_v9  ;;  %v3765_v14 = vmul.f32 %v10843_v25, %v14735_v60  ;;  %v6231_v9 = vpop.permute.xlu1 %6230  ;;  %v17808_v60 = vld [vmem:[#allocation138_spill] sm:$0xff] }
 0xa80   : > { %8937 = vmatprep.mubr.msk.f32.mxu0 %vm1107_vm1, %v6227_v34  ;;  %v14994_v25 = vmul.f32 0.35355338, %v17808_v60 }
 0xa81   : > { %v14984_v52 = vpop.f32.mrb[142].mxu1  ;;  %4079 = vmatprep.mubr.f32.mxu1 %v3766_v35  ;;  %8938 = vmatmul.mubr.msk.f32.gmra.mrb[14].mxu0 %vm1107_vm1, %v6227_v34  ;;  %v17810_v34 = vld [vmem:[#allocation66_spill] sm:$0xff] }
 0xa82   : > { %v10845_v63 = vpop.eup %10844  ;;  %v4043_v2 = vpop.f32.mrb[143].mxu1  ;;  %4080 = vmatmul.mubr.f32.gmra.mrb[158].mxu1 %v3765_v14  ;;  %17809 = vst [vmem:[#allocation187_spill] sm:$0xff] %v14994_v25  ;;  %v14997_v35 = vmul.f32 0.35355338, %v17810_v34 }
 0xa83   : > { %v6229_v50 = vpop.permute.xlu0 %6228  ;;  %v3768_v57 = vmul.f32 %v10845_v63, %v14749_v51  ;;  %v3767_v4 = vmul.f32 %v10845_v63, %v14743_v55  ;;  %v17812_v51 = vld [vmem:[#allocation34_spill] sm:$0xff] }
 0xa84   : > { %8939 = vmatprep.mubr.msk.f32.mxu0 %vm1107_vm1, %v6229_v50  ;;  %17811 = vst [vmem:[#allocation103_spill] sm:$0xff] %v14997_v35 }
 0xa85   : > { %v14990_v40 = vpop.f32.mrb[144].mxu1  ;;  %4084 = vmatprep.mubr.f32.mxu1 %v3768_v57  ;;  %8940 = vmatmul.mubr.msk.f32.gmra.mrb[16].mxu0 %vm1107_vm1, %v6229_v50  ;;  %v5070_v57 = vmax.f32 %v14994_v25, %v14997_v35 }
 0xa86   : > { %v4048_v14 = vpop.f32.mrb[145].mxu1  ;;  %4085 = vmatmul.mubr.f32.gmra.mrb[160].mxu1 %v3767_v4  ;;  %8941 = vmatprep.mubr.msk.f32.mxu0 %vm1107_vm1, %v6231_v9 }
 0xa87   : > { %9094 = vmatprep.mubr.msk.f32.mxu1 %vm1107_vm1, %v14623_v10  ;;  %v6233_v55 = vpop.permute.xlu0 %6232 }
 0xa89   : > { %10321 = vrot.lane.b32.xlu1 %v17812_v51, %s11280_s23  ;;  %8942 = vmatmul.mubr.msk.f32.gmra.mrb[18].mxu0 %vm1107_vm1, %v6231_v9 }
 0xa8a   : > { %9095 = vmatmul.mubr.msk.f32.vlgmr.msra.gmra.mrb[66].mxu1 %vm1107_vm1, %v14631_v38  ;;  %8943 = vmatprep.mubr.msk.f32.mxu0 %vm1107_vm1, %v6233_v55 }
 0xa8b   : > { %9097 = vmatprep.mubr.msk.f32.mxu1 %vm1107_vm1, %v14641_v17  ;;  %v6235_v50 = vpop.permute.xlu0 %6234  ;;  %v6241_v17 = vpop.permute.xlu1 %6240 }
 0xa8c   : > { %5071 = vmax.xlane.f32.xlu0 %v5070_v57 }
 0xa8d   : > { %8944 = vmatmul.mubr.msk.f32.gmra.mrb[20].mxu0 %vm1107_vm1, %v6233_v55  ;;  %v17828_v55 = vld [vmem:[#allocation130_spill] sm:$0xff] }
 0xa8e   : > { %9098 = vmatmul.mubr.msk.f32.gmra.mrb[68].mxu1 %vm1107_vm1, %v14645_v28  ;;  %8945 = vmatprep.mubr.msk.f32.mxu0 %vm1107_vm1, %v6235_v50  ;;  %v17813_v28 = vld [vmem:[#allocation33_spill] sm:$0xff]  ;;  %v15104_v57 = vmul.f32 0.35355338, %v17828_v55 }
 0xa8f   : > { %9100 = vmatprep.mubr.msk.f32.mxu1 %vm1107_vm1, %v14647_v45  ;;  %v6237_v10 = vpop.permute.xlu0 %6236  ;;  %v17814_v45 = vld [vmem:[#allocation142_spill] sm:$0xff] }
 0xa90   : > { %17829 = vst [vmem:[#allocation136_spill] sm:$0xff] %v15104_v57 }
 0xa91   : > { %8946 = vmatmul.mubr.msk.f32.gmra.mrb[22].mxu0 %vm1107_vm1, %v6235_v50 }
 0xa92   : > { %9101 = vmatmul.mubr.msk.f32.gmra.mrb[70].mxu1 %vm1107_vm1, %v14649_v19  ;;  %8947 = vmatprep.mubr.msk.f32.mxu0 %vm1107_vm1, %v6237_v10  ;;  %v15050_v19 = vmul.f32 0.35355338, %v17814_v45 }
 0xa93   : > { %9103 = vmatprep.mubr.msk.f32.mxu1 %vm1107_vm1, %v14651_v58  ;;  %v6239_v38 = vpop.permute.xlu0 %6238  ;;  %v17816_v58 = vld [vmem:[#allocation78_spill] sm:$0xff] }
 0xa94   : > { %17815 = vst [vmem:[#allocation100_spill] sm:$0xff] %v15050_v19 }
 0xa95   : > { %8948 = vmatmul.mubr.msk.f32.gmra.mrb[24].mxu0 %vm1107_vm1, %v6237_v10 }
 0xa96   : > { %9104 = vmatmul.mubr.msk.f32.gmra.mrb[72].mxu1 %vm1107_vm1, %v14655_v29  ;;  %8949 = vmatprep.mubr.msk.f32.mxu0 %vm1107_vm1, %v6239_v38  ;;  %v15053_v29 = vmul.f32 0.35355338, %v17816_v58 }
 0xa97   : > { %9106 = vmatprep.mubr.msk.f32.mxu1 %vm1107_vm1, %v14659_v59 }
 0xa98   : > { %17817 = vst [vmem:[#allocation114_spill] sm:$0xff] %v15053_v29  ;;  %v5076_v59 = vmax.f32 %v15050_v19, %v15053_v29 }
 0xa99   : > { %8950 = vmatmul.mubr.msk.f32.gmra.mrb[26].mxu0 %vm1107_vm1, %v6239_v38 }
 0xa9a   : > { %9107 = vmatmul.mubr.msk.f32.gmra.mrb[74].mxu1 %vm1107_vm1, %v14663_v22  ;;  %8951 = vmatprep.mubr.msk.f32.mxu0 %vm1107_vm1, %v6241_v17  ;;  %v17818_v22 = vld [vmem:[#allocation118_spill] sm:$0xff] }
 0xa9b   : > { %9109 = vmatprep.mubr.msk.f32.mxu1 %vm1107_vm1, %v14669_v1  ;;  %v15062_v1 = vmul.f32 0.35355338, %v17818_v22 }
 0xa9d   : > { %8952 = vmatmul.mubr.msk.f32.gmra.mrb[28].mxu0 %vm1107_vm1, %v6241_v17  ;;  %17819 = vst [vmem:[#allocation108_spill] sm:$0xff] %v15062_v1  ;;  %v17830_v17 = vld [vmem:[#allocation38_spill] sm:$0xff] }
 0xa9e   : > { %9110 = vmatmul.mubr.msk.f32.gmra.mrb[76].mxu1 %vm1107_vm1, %v14673_v39  ;;  %v17820_v39 = vld [vmem:[#allocation139_spill] sm:$0xff] }
 0xa9f   : > { %9112 = vmatprep.mubr.msk.f32.mxu1 %vm1107_vm1, %v14678_v16  ;;  %v15065_v16 = vmul.f32 0.35355338, %v17820_v39 }
 0xaa1   : > { %17821 = vst [vmem:[#allocation117_spill] sm:$0xff] %v15065_v16  ;;  %v6761_v63 = vmax.f32 %v15062_v1, %v15065_v16 }
 0xaa2   : > { %10316 = vrot.lane.b32.xlu0 %v17813_v28, %s11280_s23  ;;  %9113 = vmatmul.mubr.msk.f32.gmra.mrb[78].mxu1 %vm1107_vm1, %v14686_v54 }
 0xaa3   : > { %9115 = vmatprep.mubr.msk.f32.mxu1 %vm1107_vm1, %v14697_v7 }
 0xaa6   : > { %9116 = vmatmul.mubr.msk.f32.gmra.mrb[80].mxu1 %vm1107_vm1, %v14707_v48  ;;  %v17822_v48 = vld [vmem:[#allocation73_spill] sm:$0xff] }
 0xaa7   : > { %9118 = vmatprep.mubr.msk.f32.mxu1 %vm1107_vm1, %v14741_v20  ;;  %v15076_v20 = vmul.f32 0.35355338, %v17822_v48 }
 0xaa9   : > { %17823 = vst [vmem:[#allocation116_spill] sm:$0xff] %v15076_v20 }
 0xaaa   : > { %9119 = vmatmul.mubr.msk.f32.gmra.mrb[82].mxu1 %vm1107_vm1, %v14751_v23  ;;  %v17824_v23 = vld [vmem:[#allocation83_spill] sm:$0xff] }
 0xaab   : > { %9121 = vmatprep.mubr.msk.f32.mxu1 %vm1107_vm1, %v14791_v0  ;;  %v15079_v2 = vmul.f32 0.35355338, %v17824_v23 }
 0xaad   : > { %5077 = vmax.xlane.f32.xlu1 %v5076_v59  ;;  %v15069_v54 = vpop.f32.mrb[254].mxu0  ;;  %17825 = vst [vmem:[#allocation128_spill] sm:$0xff] %v15079_v2  ;;  %v5079_v4 = vmax.f32 %v15076_v20, %v15079_v2  ;;  %v17837_v2 = vld [vmem:[#allocation87_spill] sm:$0xff] }
 0xaae   : > { %9122 = vmatmul.mubr.msk.f32.gmra.mrb[84].mxu1 %vm1107_vm1, %v14797_v42  ;;  %v15073_v7 = vpop.f32.mrb[255].mxu0  ;;  %v15147_v20 = vmul.f32 0.35355338, %v17837_v2  ;;  %v17844_v2 = vld [vmem:[#allocation143_spill] sm:$0xff] }
 0xaaf   : > { %9124 = vmatprep.mubr.msk.f32.mxu1 %vm1107_vm1, %v14925_v11 }
 0xab0   : > { %v15098_v60 = vpop.xlane.xlu1 %5026  ;;  %17838 = vst [vmem:[#allocation172_spill] sm:$0xff] %v15147_v20 }
 0xab1   : > { %6762 = vmax.xlane.f32.xlu1 %v6761_v63  ;;  %v15085_v0 = vpop.f32.mrb[0].mxu0  ;;  %v17832_v63 = vld [vmem:[#allocation35_spill] sm:$0xff] }
 0xab2   : > { %9125 = vmatmul.mubr.msk.f32.gmra.mrb[86].mxu1 %vm1107_vm1, %v14937_v31  ;;  %v15089_v42 = vpop.f32.mrb[1].mxu0  ;;  %v17826_v31 = vld [vmem:[#allocation111_spill] sm:$0xff] }
 0xab3   : > { %9127 = vmatprep.mubr.msk.f32.mxu1 %vm1107_vm1, %v14984_v52  ;;  %v15101_v14 = vmul.f32 0.35355338, %v17826_v31 }
 0xab4   : > { %v15109_v10 = vpop.xlane.xlu1 %5038 }
 0xab5   : > { %5080 = vmax.xlane.f32.xlu1 %v5079_v4  ;;  %17827 = vst [vmem:[#allocation121_spill] sm:$0xff] %v15101_v14  ;;  %v6758_v52 = vmax.f32 %v15101_v14, %v15104_v57 }
 0xab6   : > { %v4051_v9 = vpop.f32.mrb[146].mxu1  ;;  %9128 = vmatmul.mubr.msk.f32.gmra.mrb[88].mxu1 %vm1107_vm1, %v14990_v40 }
 0xab7   : > { %v4053_v11 = vpop.f32.mrb[147].mxu1  ;;  %9130 = vmatprep.mubr.msk.f32.mxu1 %vm1107_vm1, %v4051_v9 }
 0xab8   : > { %v15113_v38 = vpop.xlane.xlu1 %5044 }
 0xaba   : > { %v4056_v34 = vpop.f32.mrb[148].mxu1 }
 0xabb   : > { %v4058_v50 = vpop.f32.mrb[149].mxu1  ;;  %9131 = vmatmul.mubr.msk.f32.gmra.mrb[90].mxu1 %vm1107_vm1, %v4056_v34 }
 0xabc   : > { %v15119_v58 = vpop.xlane.xlu1 %5050  ;;  %v17835_v50 = vld [vmem:[#allocation146_spill] sm:$0xff] }
 0xac0   : > { %v15125_v39 = vpop.xlane.xlu1 %5056 }
 0xac1   : > { %6759 = vmax.xlane.f32.xlu0 %v6758_v52  ;;  %v15144_v52 = vmul.f32 0.35355338, %v17835_v50  ;;  %v17842_v50 = vld [vmem:[#allocation150_spill] sm:$0xff] }
 0xac3   : > { %17836 = vst [vmem:[#allocation167_spill] sm:$0xff] %v15144_v52 }
 0xac4   : > { %v15111_v40 = vpop.xlane.xlu0 %5023  ;;  %v15129_v23 = vpop.xlane.xlu1 %5062 }
 0xac5   : > { %17831 = vst [vmem:[#allocation151_spill] sm:$0xff] %v15129_v23  ;;  %v15158_v23 = vmul.f32 0.35355338, %v17842_v50 }
 0xac6   : > { %10331 = vrot.lane.b32.xlu1 %v17830_v17, %s11280_s23 }
 0xac7   : > { %17843 = vst [vmem:[#allocation186_spill] sm:$0xff] %v15158_v23 }
 0xac8   : > { %v15117_v45 = vpop.xlane.xlu0 %5029  ;;  %v15137_v11 = vpop.xlane.xlu1 %5065 }
 0xac9   : > { %17833 = vst [vmem:[#allocation155_spill] sm:$0xff] %v15137_v11 }
 0xacc   : > { %v15121_v59 = vpop.xlane.xlu0 %5032  ;;  %v10307_v55 = vpop.permute.xlu1 %10306 }
 0xacd   : > { %v10309_v14 = vunpack.i.h.bf16 %v10307_v55  ;;  %v10308_v35 = vunpack.i.l.bf16 %v10307_v55 }
 0xad0   : > { %v15123_v22 = vpop.xlane.xlu0 %5035 }
 0xad4   : > { %v15127_v48 = vpop.xlane.xlu0 %5041 }
 0xad7   : > { %10326 = vrot.lane.b32.xlu0 %v17832_v63, %s11280_s23  ;;  %v15161_v63 = vmul.f32 0.35355338, %v17844_v2 }
 0xad8   : > { %v15133_v4 = vpop.xlane.xlu0 %5047 }
 0xad9   : > { %17845 = vst [vmem:[#allocation189_spill] sm:$0xff] %v15161_v63  ;;  %v6767_v50 = vmax.f32 %v15158_v23, %v15161_v63 }
 0xadc   : > { %v15135_v9 = vpop.xlane.xlu0 %5053 }
 0xae0   : > { %v15139_v34 = vpop.xlane.xlu0 %5059 }
 0xae1   : > { %17834 = vst [vmem:[#allocation157_spill] sm:$0xff] %v15139_v34  ;;  %v5082_v34 = vmax.f32 %v15144_v52, %v15147_v20  ;;  %v17854_v52 = vld [vmem:[#allocation156_spill] sm:$0xff] }
 0xae2   : > { %v15141_v31 = vpop.f32.mrb[2].mxu0  ;;  %v15183_v63 = vmul.f32 0.35355338, %v17854_v52  ;;  %v17858_v52 = vld [vmem:[#allocation65_spill] sm:$0xff] }
 0xae3   : > { %v15149_v29 = vpop.f32.mrb[3].mxu0 }
 0xae4   : > { %17839 = vst [vmem:[#allocation180_spill] sm:$0xff] %v15149_v29  ;;  %v10302_v19 = vpop.permute.xlu0 %10301  ;;  %v17848_v29 = vld [vmem:[#allocation94_spill] sm:$0xff]  ;;  %17855 = vst [vmem:[#allocation3_spill] sm:$0xff] %v15183_v63 }
 0xae5   : > { %v10304_v16 = vunpack.i.h.bf16 %v10302_v19  ;;  %v10303_v1 = vunpack.i.l.bf16 %v10302_v19  ;;  %v9494_v19 = vpack.c.bf16 %v10309_v14, %v10308_v35  ;;  %v15168_v20 = vmul.f32 0.35355338, %v17848_v29  ;;  %v17852_v14 = vld [vmem:[#allocation135_spill] sm:$0xff] }
 0xae6   : > { %v15151_v57 = vpop.f32.mrb[4].mxu0 }
 0xae7   : > { %17840 = vst [vmem:[#allocation184_spill] sm:$0xff] %v15151_v57  ;;  %v9491_v25 = vpack.c.bf16 %v10304_v16, %v10303_v1  ;;  %v15153_v11 = vpop.f32.mrb[5].mxu0  ;;  %v17846_v16 = vld [vmem:[#allocation77_spill] sm:$0xff]  ;;  %17849 = vst [vmem:[#allocation14_spill] sm:$0xff] %v15168_v20 }
 0xae8   : > { %17841 = vst [vmem:[#allocation185_spill] sm:$0xff] %v15153_v11  ;;  %v10312_v17 = vpop.permute.xlu0 %10311  ;;  %v15165_v11 = vmul.f32 0.35355338, %v17846_v16 }
 0xae9   : > { %9492 = vmatpush1.bf16.msra.mxu1 %v9491_v25  ;;  %v10314_v57 = vunpack.i.h.bf16 %v10312_v17  ;;  %v10313_v55 = vunpack.i.l.bf16 %v10312_v17  ;;  %v17850_v25 = vld [vmem:[#allocation129_spill] sm:$0xff]  ;;  %v15178_v17 = vmul.f32 0.35355338, %v17852_v14 }
 0xaea   : > { %5083 = vmax.xlane.f32.xlu1 %v5082_v34  ;;  %9493 = vmatprep.subr.bf16.mxu1 %v17733_v27  ;;  %17847 = vst [vmem:[#allocation188_spill] sm:$0xff] %v15165_v11  ;;  %v15175_v35 = vmul.f32 0.35355338, %v17850_v25  ;;  %v5085_v29 = vmax.f32 %v15165_v11, %v15168_v20  ;;  %v17860_v25 = vld [vmem:[#allocation45_spill] sm:$0xff]  ;;  %v5119_v20 = vsub.f32 %v14841_v32, %v15111_v40 }
 0xaeb   : > { %v4061_v1 = vpop.f32.mrb[150].mxu1  ;;  %17853 = vst [vmem:[#allocation30_spill] sm:$0xff] %v15178_v17  ;;  %v9497_v34 = vpack.c.bf16 %v10314_v57, %v10313_v55 }
 0xaec   : > { %v4063_v2 = vpop.f32.mrb[151].mxu1  ;;  %9133 = vmatprep.mubr.msk.f32.mxu1 %vm1107_vm1, %v4061_v1  ;;  %17851 = vst [vmem:[#allocation29_spill] sm:$0xff] %v15175_v35  ;;  %v6764_v57 = vmax.f32 %v15175_v35, %v15178_v17 }
 0xaed   : > { %9495 = vmatpush1.bf16.msra.mxu1 %v9494_v19  ;;  %v17856_v2 = vld [vmem:[#allocation147_spill] sm:$0xff] }
 0xaee   : > { %6768 = vmax.xlane.f32.xlu1 %v6767_v50  ;;  %9496 = vmatprep.subr.bf16.mxu1 %v17733_v27  ;;  %v15186_v1 = vmul.f32 0.35355338, %v17856_v2 }
 0xaef   : > { %v4066_v16 = vpop.f32.mrb[152].mxu1 }
 0xaf0   : > { %17857 = vst [vmem:[#allocation4_spill] sm:$0xff] %v15186_v1  ;;  %v4068_v19 = vpop.f32.mrb[153].mxu1  ;;  %9134 = vmatmul.mubr.msk.f32.gmra.mrb[92].mxu1 %vm1107_vm1, %v4066_v16  ;;  %v6770_v55 = vmax.f32 %v15183_v63, %v15186_v1  ;;  %v5118_v1 = vsub.f32 %v14838_v18, %v15111_v40 }
 0xaf1   : > { %9498 = vmatpush1.bf16.msra.mxu1 %v9497_v34  ;;  %v17862_v34 = vld [vmem:[#allocation54_spill] sm:$0xff]  ;;  %v5120_v19 = vsub.f32 %v14800_v53, %v15098_v60 }
 0xaf2   : > { %5086 = vmax.xlane.f32.xlu1 %v5085_v29  ;;  %9499 = vmatprep.subr.bf16.mxu1 %v17733_v27 }
 0xaf3   : > { %v5186_v23 = vmul.f32 1.442695, %v5120_v19 }
 0xaf5   : > { %10846 = vpow2.f32 %v5186_v23  ;;  %v17867_v23 = vld [vmem:[#allocation178_spill] sm:$0xff] }
 0xaf6   : > { %6765 = vmax.xlane.f32.xlu0 %v6764_v57  ;;  %6771 = vmax.xlane.f32.xlu1 %v6770_v55  ;;  %v5121_v55 = vsub.f32 %v14803_v37, %v15098_v60 }
 0xafd   : > { %v15196_v50 = vpop.xlane.xlu1 %5068 }
 0xafe   : > { %17859 = vst [vmem:[#allocation5_spill] sm:$0xff] %v15196_v50 }
 0xb01   : > { %v15200_v14 = vpop.xlane.xlu1 %6756 }
 0xb02   : > { %17861 = vst [vmem:[#allocation6_spill] sm:$0xff] %v15200_v14  ;;  %v5184_v14 = vmul.f32 1.442695, %v5119_v20  ;;  %v15230_v20 = vmul.f32 0.35355338, %v14680_v43 }
 0xb03   : > { %v15246_v43 = vmul.f32 0.35355338, %v14688_v15 }
 0xb04   : > { %17866 = vst [vmem:[#allocation154_spill] sm:$0xff] %v15230_v20 }
 0xb05   : > { %v15204_v16 = vpop.xlane.xlu1 %5074  ;;  %17872 = vst [vmem:[#allocation177_spill] sm:$0xff] %v15246_v43 }
 0xb06   : > { %17863 = vst [vmem:[#allocation7_spill] sm:$0xff] %v15204_v16  ;;  %v5188_v16 = vmul.f32 1.442695, %v5121_v55 }
 0xb07   : > { %10346 = vrot.lane.b32.xlu1 %v17858_v52, %s11280_s23 }
 0xb08   : > { %10848 = vpow2.f32 %v5188_v16 }
 0xb09   : > { %v10322_v11 = vpop.permute.xlu1 %10321 }
 0xb0a   : > { %v10324_v50 = vunpack.i.h.bf16 %v10322_v11  ;;  %v10323_v37 = vunpack.i.l.bf16 %v10322_v11 }
 0xb0c   : > { %10336 = vrot.lane.b32.xlu0 %v17860_v25, %s11280_s23  ;;  %v9503_v32 = vpack.c.bf16 %v10324_v50, %v10323_v37  ;;  %v17875_v37 = vld [vmem:[#allocation101_spill] sm:$0xff] }
 0xb10   : > { %10341 = vrot.lane.b32.xlu0 %v17862_v34, %s11280_s23 }
 0xb17   : > { %v15206_v29 = vpop.f32.mrb[6].mxu0 }
 0xb18   : > { %v15208_v2 = vpop.f32.mrb[7].mxu0 }
 0xb19   : > { %v15212_v57 = vpop.xlane.xlu0 %5071 }
 0xb1a   : > { %17864 = vst [vmem:[#allocation9_spill] sm:$0xff] %v15212_v57  ;;  %v5182_v57 = vmul.f32 1.442695, %v5118_v1  ;;  %v15235_v1 = vmul.f32 0.35355338, %v17867_v23  ;;  %v17878_v23 = vld [vmem:[#allocation80_spill] sm:$0xff] }
 0xb1b   : > { %v15218_v63 = vpop.f32.mrb[8].mxu0 }
 0xb1c   : > { %v15222_v17 = vpop.f32.mrb[9].mxu0  ;;  %10850 = vpow2.f32 %v5182_v57  ;;  %17868 = vst [vmem:[#allocation10_spill] sm:$0xff] %v15235_v1 }
 0xb1d   : > { %v10317_v35 = vpop.permute.xlu0 %10316  ;;  %10852 = vpow2.f32 %v5184_v14  ;;  %v15248_v14 = vpop.eup %10846 }
 0xb1e   : > { %v10319_v53 = vunpack.i.h.bf16 %v10317_v35  ;;  %v10318_v52 = vunpack.i.l.bf16 %v10317_v35  ;;  %v15227_v35 = vmul.f32 0.35355338, %v14675_v26  ;;  %v15243_v26 = vmul.f32 0.35355338, %v14683_v8  ;;  %v15250_v16 = vpop.eup %10848  ;;  %v17873_v8 = vld [vmem:[#allocation85_spill] sm:$0xff] }
 0xb1f   : > { %v15261_v15 = vmul.f32 0.35355338, %v17873_v8  ;;  %v17881_v8 = vld [vmem:[#allocation72_spill] sm:$0xff] }
 0xb20   : > { %v9500_v60 = vpack.c.bf16 %v10319_v53, %v10318_v52  ;;  %v4071_v25 = vpop.f32.mrb[154].mxu1  ;;  %17865 = vst [vmem:[#allocation140_spill] sm:$0xff] %v15227_v35  ;;  %v17869_v52 = vld [vmem:[#allocation92_spill] sm:$0xff]  ;;  %v6773_v50 = vmax.f32 %v15227_v35, %v15230_v20  ;;  %17871 = vst [vmem:[#allocation144_spill] sm:$0xff] %v15243_v26  ;;  %v6776_v55 = vmax.f32 %v15243_v26, %v15246_v43 }
 0xb21   : > { %v4073_v18 = vpop.f32.mrb[155].mxu1  ;;  %9136 = vmatprep.mubr.msk.f32.mxu1 %vm1107_vm1, %v4071_v25  ;;  %v15238_v25 = vmul.f32 0.35355338, %v17869_v52  ;;  %17874 = vst [vmem:[#allocation179_spill] sm:$0xff] %v15261_v15 }
 0xb22   : > { %9501 = vmatpush1.bf16.msra.mxu1 %v9500_v60  ;;  %v15264_v60 = vmul.f32 0.35355338, %v17875_v37  ;;  %v5313_v18 = vadd.f32 %v15250_v16, %v15248_v14 }
 0xb23   : > { %9502 = vmatprep.subr.bf16.mxu1 %v17733_v27  ;;  %17870 = vst [vmem:[#allocation11_spill] sm:$0xff] %v15238_v25  ;;  %v5088_v57 = vmax.f32 %v15235_v1, %v15238_v25 }
 0xb24   : > { %v4076_v40 = vpop.f32.mrb[156].mxu1  ;;  %17876 = vst [vmem:[#allocation181_spill] sm:$0xff] %v15264_v60 }
 0xb25   : > { %v4078_v11 = vpop.f32.mrb[157].mxu1  ;;  %9137 = vmatmul.mubr.msk.f32.gmra.mrb[94].mxu1 %vm1107_vm1, %v4076_v40  ;;  %v5091_v40 = vmax.f32 %v15261_v15, %v15264_v60 }
 0xb26   : > { %9504 = vmatpush1.bf16.msra.mxu1 %v9503_v32  ;;  %v15252_v19 = vpop.eup %10850 }
 0xb27   : > { %9505 = vmatprep.subr.bf16.mxu1 %v17733_v27  ;;  %v15258_v53 = vpop.eup %10852 }
 0xb28   : > { %v5310_v32 = vadd.f32 %v15258_v53, %v15252_v19 }
 0xb2b   : > { %6774 = vmax.xlane.f32.xlu1 %v6773_v50 }
 0xb2f   : > { %5089 = vmax.xlane.f32.xlu0 %v5088_v57  ;;  %6777 = vmax.xlane.f32.xlu1 %v6776_v55 }
 0xb33   : > { %5314 = vadd.xlane.f32.xlu1 %v5313_v18  ;;  %5311 = vadd.xlane.f32.xlu0 %v5310_v32 }
 0xb37   : > { %5092 = vmax.xlane.f32.xlu0 %v5091_v40 }
 0xb3a   : > { %v15272_v11 = vpop.xlane.xlu1 %5077 }
 0xb3b   : > { %17877 = vst [vmem:[#allocation40_spill] sm:$0xff] %v15272_v11  ;;  %v5122_v11 = vsub.f32 %v14854_v62, %v15117_v45 }
 0xb3e   : > { %v15276_v52 = vpop.xlane.xlu1 %6762 }
 0xb3f   : > { %17879 = vst [vmem:[#allocation12_spill] sm:$0xff] %v15276_v52  ;;  %v5123_v52 = vsub.f32 %v14857_v13, %v15117_v45 }
 0xb41   : > { %v5192_v13 = vmul.f32 1.442695, %v5123_v52  ;;  %v17890_v52 = vld [vmem:[#allocation110_spill] sm:$0xff] }
 0xb42   : > { %v15278_v50 = vpop.xlane.xlu1 %5080 }
 0xb43   : > { %17880 = vst [vmem:[#allocation13_spill] sm:$0xff] %v15278_v50 }
 0xb44   : > { %10356 = vrot.lane.b32.xlu1 %v17878_v23, %s11280_s23 }
 0xb46   : > { %v10332_v32 = vpop.permute.xlu1 %10331 }
 0xb47   : > { %v10334_v60 = vunpack.i.h.bf16 %v10332_v32  ;;  %v10333_v15 = vunpack.i.l.bf16 %v10332_v32 }
 0xb4c   : > { %v15280_v57 = vpop.f32.mrb[10].mxu0 }
 0xb4d   : > { %v15282_v55 = vpop.f32.mrb[11].mxu0  ;;  %10351 = vrot.lane.b32.xlu0 %v17881_v8, %s11280_s23 }
 0xb4e   : > { %v15286_v37 = vpop.xlane.xlu0 %6759 }
 0xb50   : > { %v15288_v18 = vpop.f32.mrb[12].mxu0 }
 0xb51   : > { %v15290_v40 = vpop.f32.mrb[13].mxu0 }
 0xb52   : > { %v10327_v25 = vpop.permute.xlu0 %10326 }
 0xb53   : > { %v10329_v1 = vunpack.i.h.bf16 %v10327_v25  ;;  %v10328_v43 = vunpack.i.l.bf16 %v10327_v25  ;;  %v5124_v25 = vsub.f32 %v14870_v3, %v15121_v59 }
 0xb54   : > { %v15292_v26 = vpop.f32.mrb[14].mxu0 }
 0xb55   : > { %17882 = vst [vmem:[#allocation120_spill] sm:$0xff] %v15292_v26  ;;  %v9506_v20 = vpack.c.bf16 %v10329_v1, %v10328_v43  ;;  %v4081_v35 = vpop.f32.mrb[158].mxu1  ;;  %v15294_v50 = vpop.f32.mrb[15].mxu0  ;;  %v5125_v1 = vsub.f32 %v14873_v61, %v15121_v59  ;;  %v9509_v43 = vpack.c.bf16 %v10334_v60, %v10333_v15  ;;  %v5194_v45 = vmul.f32 1.442695, %v5124_v25 }
 0xb56   : > { %v4083_v23 = vpop.f32.mrb[159].mxu1  ;;  %9139 = vmatprep.mubr.msk.f32.mxu1 %vm1107_vm1, %v4081_v35  ;;  %v15321_v15 = vmul.f32 0.35355338, %v14723_v46  ;;  %v15324_v60 = vmul.f32 0.35355338, %v14726_v6 }
 0xb57   : > { %9507 = vmatpush1.bf16.msra.mxu1 %v9506_v20  ;;  %v5190_v23 = vmul.f32 1.442695, %v5122_v11  ;;  %v5196_v3 = vmul.f32 1.442695, %v5125_v1  ;;  %v15329_v25 = vmul.f32 0.35355338, %v17890_v52 }
 0xb58   : > { %v15303_v26 = vpop.f32.mrb[16].mxu0  ;;  %9508 = vmatprep.subr.bf16.mxu1 %v17733_v27  ;;  %17887 = vst [vmem:[#allocation17_spill] sm:$0xff] %v15321_v15  ;;  %17888 = vst [vmem:[#allocation58_spill] sm:$0xff] %v15324_v60  ;;  %v15342_v46 = vmul.f32 0.35355338, %v14732_v41 }
 0xb59   : > { %17883 = vst [vmem:[#allocation107_spill] sm:$0xff] %v15303_v26  ;;  %v4086_v32 = vpop.f32.mrb[160].mxu1  ;;  %v15308_v62 = vpop.f32.mrb[17].mxu0  ;;  %10854 = vpow2.f32 %v5190_v23  ;;  %17891 = vst [vmem:[#allocation67_spill] sm:$0xff] %v15329_v25  ;;  %v6779_v23 = vmax.f32 %v15321_v15, %v15324_v60  ;;  %v17901_v15 = vld [vmem:[#allocation42_spill] sm:$0xff] }
 0xb5a   : > { %v4088_v35 = vpop.f32.mrb[161].mxu1  ;;  %9140 = vmatmul.mubr.msk.f32.gmra.mrb[96].mxu1 %vm1107_vm1, %v4086_v32  ;;  %10856 = vpow2.f32 %v5192_v13  ;;  %17896 = vst [vmem:[#allocation165_spill] sm:$0xff] %v15342_v46 }
 0xb5b   : > { %9510 = vmatpush1.bf16.msra.mxu1 %v9509_v43  ;;  %10858 = vpow2.f32 %v5194_v45  ;;  %v17893_v43 = vld [vmem:[#allocation102_spill] sm:$0xff]  ;;  %v15339_v35 = vmul.f32 0.35355338, %v14729_v21 }
 0xb5c   : > { %v15311_v20 = vpop.f32.mrb[18].mxu0  ;;  %9511 = vmatprep.subr.bf16.mxu1 %v17733_v27  ;;  %10860 = vpow2.f32 %v5196_v3  ;;  %v15334_v32 = vmul.f32 0.35355338, %v17893_v43 }
 0xb5d   : > { %v15314_v26 = vpop.f32.mrb[19].mxu0  ;;  %17895 = vst [vmem:[#allocation20_spill] sm:$0xff] %v15339_v35  ;;  %v6782_v21 = vmax.f32 %v15339_v35, %v15342_v46 }
 0xb5e   : > { %17884 = vst [vmem:[#allocation51_spill] sm:$0xff] %v15314_v26  ;;  %17894 = vst [vmem:[#allocation18_spill] sm:$0xff] %v15334_v32  ;;  %v5094_v43 = vmax.f32 %v15329_v25, %v15334_v32 }
 0xb60   : > { %v15316_v61 = vpop.f32.mrb[20].mxu0 }
 0xb61   : > { %17885 = vst [vmem:[#allocation124_spill] sm:$0xff] %v15316_v61  ;;  %v15318_v59 = vpop.f32.mrb[21].mxu0 }
 0xb62   : > { %17886 = vst [vmem:[#allocation16_spill] sm:$0xff] %v15318_v59 }
 0xb63   : > { %v15344_v6 = vpop.eup %10854 }
 0xb64   : > { %v15326_v11 = vpop.f32.mrb[22].mxu0  ;;  %v15348_v45 = vpop.eup %10856 }
 0xb65   : > { %17889 = vst [vmem:[#allocation132_spill] sm:$0xff] %v15326_v11  ;;  %v15331_v1 = vpop.f32.mrb[23].mxu0  ;;  %v15352_v52 = vpop.eup %10858  ;;  %v5316_v32 = vadd.f32 %v15348_v45, %v15344_v6  ;;  %v17911_v11 = vld [vmem:[#allocation88_spill] sm:$0xff] }
 0xb66   : > { %17892 = vst [vmem:[#allocation137_spill] sm:$0xff] %v15331_v1  ;;  %v15358_v60 = vpop.eup %10860 }
 0xb67   : > { %v5319_v46 = vadd.f32 %v15358_v60, %v15352_v52 }
 0xb68   : > { %6780 = vmax.xlane.f32.xlu1 %v6779_v23  ;;  %v15346_v13 = vpop.f32.mrb[24].mxu0 }
 0xb69   : > { %17897 = vst [vmem:[#allocation76_spill] sm:$0xff] %v15346_v13  ;;  %v15350_v3 = vpop.f32.mrb[25].mxu0  ;;  %v15365_v13 = vmul.f32 0.35355338, %v17901_v15 }
 0xb6a   : > { %17898 = vst [vmem:[#allocation141_spill] sm:$0xff] %v15350_v3  ;;  %v17903_v3 = vld [vmem:[#allocation97_spill] sm:$0xff] }
 0xb6b   : > { %17902 = vst [vmem:[#allocation26_spill] sm:$0xff] %v15365_v13  ;;  %v15368_v1 = vmul.f32 0.35355338, %v17903_v3 }
 0xb6c   : > { %6783 = vmax.xlane.f32.xlu1 %v6782_v21  ;;  %v15360_v41 = vpop.f32.mrb[26].mxu0  ;;  %5095 = vmax.xlane.f32.xlu0 %v5094_v43 }
 0xb6d   : > { %17899 = vst [vmem:[#allocation81_spill] sm:$0xff] %v15360_v41  ;;  %v15362_v23 = vpop.f32.mrb[27].mxu0  ;;  %17904 = vst [vmem:[#allocation22_spill] sm:$0xff] %v15368_v1  ;;  %v5097_v43 = vmax.f32 %v15365_v13, %v15368_v1  ;;  %v17909_v41 = vld [vmem:[#allocation93_spill] sm:$0xff] }
 0xb6e   : > { %17900 = vst [vmem:[#allocation145_spill] sm:$0xff] %v15362_v23 }
 0xb70   : > { %v15374_v35 = vpop.f32.mrb[28].mxu0  ;;  %5317 = vadd.xlane.f32.xlu0 %v5316_v32  ;;  %5320 = vadd.xlane.f32.xlu1 %v5319_v46 }
 0xb71   : > { %17905 = vst [vmem:[#allocation31_spill] sm:$0xff] %v15374_v35  ;;  %v15376_v21 = vpop.f32.mrb[29].mxu0 }
 0xb72   : > { %17906 = vst [vmem:[#allocation21_spill] sm:$0xff] %v15376_v21 }
 0xb74   : > { %5098 = vmax.xlane.f32.xlu0 %v5097_v43 }
 0xb77   : > { %v15380_v15 = vpop.xlane.xlu1 %5083 }
 0xb78   : > { %17907 = vst [vmem:[#allocation24_spill] sm:$0xff] %v15380_v15 }
 0xb7b   : > { %v15382_v3 = vpop.xlane.xlu1 %6768 }
 0xb7f   : > { %v15384_v23 = vpop.xlane.xlu1 %5086 }
 0xb80   : > { %17908 = vst [vmem:[#allocation23_spill] sm:$0xff] %v15384_v23 }
 0xb81   : > { %10366 = vrot.lane.b32.xlu1 %v17909_v41, %s11280_s23 }
 0xb83   : > { %v15388_v25 = vpop.xlane.xlu0 %6765  ;;  %v15390_v35 = vpop.xlane.xlu1 %6771 }
 0xb84   : > { %17910 = vst [vmem:[#allocation25_spill] sm:$0xff] %v15390_v35 }
 0xb87   : > { %v10337_v32 = vpop.permute.xlu0 %10336  ;;  %v10347_v13 = vpop.permute.xlu1 %10346 }
 0xb88   : > { %v10339_v46 = vunpack.i.h.bf16 %v10337_v32  ;;  %v10338_v21 = vunpack.i.l.bf16 %v10337_v32  ;;  %v10349_v41 = vunpack.i.h.bf16 %v10347_v13  ;;  %v10348_v61 = vunpack.i.l.bf16 %v10347_v13 }
 0xb89   : > { %v5128_v32 = vsub.f32 %v14808_v33, %v15109_v10  ;;  %v15406_v33 = vmul.f32 0.35355338, %v14773_v44 }
 0xb8a   : > { %10361 = vrot.lane.b32.xlu0 %v17911_v11, %s11280_s23  ;;  %v9512_v43 = vpack.c.bf16 %v10339_v46, %v10338_v21  ;;  %v9518_v35 = vpack.c.bf16 %v10349_v41, %v10348_v61  ;;  %v5129_v21 = vsub.f32 %v14811_v36, %v15109_v10  ;;  %v5126_v46 = vsub.f32 %v14880_v12, %v15123_v22  ;;  %v17913_v36 = vld [vmem:[#allocation182_spill] sm:$0xff]  ;;  %v17915_v12 = vld [vmem:[#allocation52_spill] sm:$0xff] }
 0xb8b   : > { %v10342_v1 = vpop.permute.xlu0 %10341  ;;  %17912 = vst [vmem:[#allocation28_spill] sm:$0xff] %v15406_v33  ;;  %v15409_v10 = vmul.f32 0.35355338, %v17913_v36  ;;  %v15412_v61 = vmul.f32 0.35355338, %v17915_v12  ;;  %v17919_v41 = vld [vmem:[#allocation174_spill] sm:$0xff] }
 0xb8c   : > { %v10344_v15 = vunpack.i.h.bf16 %v10342_v1  ;;  %v10343_v59 = vunpack.i.l.bf16 %v10342_v1  ;;  %9513 = vmatpush1.bf16.msra.mxu1 %v9512_v43  ;;  %v5202_v1 = vmul.f32 1.442695, %v5128_v32  ;;  %v5204_v13 = vmul.f32 1.442695, %v5129_v21  ;;  %v17921_v32 = vld [vmem:[#allocation148_spill] sm:$0xff] }
 0xb8d   : > { %9514 = vmatprep.subr.bf16.mxu1 %v17733_v27  ;;  %17914 = vst [vmem:[#allocation27_spill] sm:$0xff] %v15409_v10  ;;  %17916 = vst [vmem:[#allocation32_spill] sm:$0xff] %v15412_v61  ;;  %v15420_v43 = vmul.f32 0.35355338, %v17919_v41  ;;  %v15423_v21 = vmul.f32 0.35355338, %v17921_v32 }
 0xb8e   : > { %v9515_v23 = vpack.c.bf16 %v10344_v15, %v10343_v59  ;;  %v5127_v59 = vsub.f32 %v14883_v49, %v15123_v22  ;;  %10862 = vpow2.f32 %v5202_v1  ;;  %v17917_v49 = vld [vmem:[#allocation109_spill] sm:$0xff]  ;;  %v17925_v12 = vld [vmem:[#allocation104_spill] sm:$0xff] }
 0xb8f   : > { %10864 = vpow2.f32 %v5204_v13  ;;  %v15415_v22 = vmul.f32 0.35355338, %v17917_v49  ;;  %17920 = vst [vmem:[#allocation112_spill] sm:$0xff] %v15420_v43  ;;  %17922 = vst [vmem:[#allocation166_spill] sm:$0xff] %v15423_v21  ;;  %v6788_v13 = vmax.f32 %v15420_v43, %v15423_v21  ;;  %v15441_v49 = vmul.f32 0.35355338, %v17925_v12 }
 0xb90   : > { %9516 = vmatpush1.bf16.msra.mxu1 %v9515_v23  ;;  %v5198_v23 = vmul.f32 1.442695, %v5126_v46  ;;  %v5200_v15 = vmul.f32 1.442695, %v5127_v59  ;;  %v17930_v12 = vld [vmem:[#allocation105_spill] sm:$0xff] }
 0xb91   : > { %9517 = vmatprep.subr.bf16.mxu1 %v17733_v27  ;;  %17918 = vst [vmem:[#allocation99_spill] sm:$0xff] %v15415_v22  ;;  %v5100_v1 = vmax.f32 %v15412_v61, %v15415_v22  ;;  %17926 = vst [vmem:[#allocation173_spill] sm:$0xff] %v15441_v49 }
 0xb92   : > { %10866 = vpow2.f32 %v5198_v23 }
 0xb93   : > { %10868 = vpow2.f32 %v5200_v15  ;;  %v17923_v15 = vld [vmem:[#allocation62_spill] sm:$0xff] }
 0xb94   : > { %9519 = vmatpush1.bf16.msra.mxu1 %v9518_v35  ;;  %v6785_v35 = vmax.f32 %v15406_v33, %v15409_v10  ;;  %v15438_v36 = vmul.f32 0.35355338, %v17923_v15 }
 0xb95   : > { %9520 = vmatprep.subr.bf16.mxu1 %v17733_v27 }
 0xb96   : > { %17924 = vst [vmem:[#allocation171_spill] sm:$0xff] %v15438_v36  ;;  %v5103_v32 = vmax.f32 %v15438_v36, %v15441_v49 }
 0xb98   : > { %v15425_v44 = vpop.eup %10862 }
 0xb99   : > { %v15427_v46 = vpop.eup %10864 }
 0xb9c   : > { %v15429_v59 = vpop.eup %10866 }
 0xb9d   : > { %v15435_v23 = vpop.eup %10868 }
 0xb9e   : > { %v5322_v41 = vadd.f32 %v15435_v23, %v15429_v59 }
 0xba5   : > { %6786 = vmax.xlane.f32.xlu1 %v6785_v35  ;;  %v5325_v35 = vadd.f32 %v15427_v46, %v15425_v44 }
 0xba9   : > { %5101 = vmax.xlane.f32.xlu0 %v5100_v1  ;;  %6789 = vmax.xlane.f32.xlu1 %v6788_v13 }
 0xbad   : > { %5326 = vadd.xlane.f32.xlu1 %v5325_v35  ;;  %5323 = vadd.xlane.f32.xlu0 %v5322_v41  ;;  %v17932_v35 = vld [vmem:[#allocation98_spill] sm:$0xff] }
 0xbb1   : > { %5104 = vmax.xlane.f32.xlu0 %v5103_v32 }
 0xbb8   : > { %v15449_v1 = vpop.xlane.xlu1 %6774 }
 0xbb9   : > { %17927 = vst [vmem:[#allocation192_spill] sm:$0xff] %v15449_v1 }
 0xbbc   : > { %v15451_v13 = vpop.xlane.xlu1 %6777  ;;  %v15453_v15 = vpop.xlane.xlu0 %5089 }
 0xbbd   : > { %17928 = vst [vmem:[#allocation15_spill] sm:$0xff] %v15451_v13  ;;  %17929 = vst [vmem:[#allocation41_spill] sm:$0xff] %v15453_v15  ;;  %v17933_v15 = vld [vmem:[#allocation44_spill] sm:$0xff]  ;;  %v17934_v13 = vld [vmem:[#allocation123_spill] sm:$0xff] }
 0xbbe   : > { %10376 = vrot.lane.b32.xlu1 %v17930_v12, %s11280_s23  ;;  %v5132_v12 = vsub.f32 %v17933_v15, %v15113_v38 }
 0xbc0   : > { %v5312_v22 = vpop.xlane.xlu0 %5311  ;;  %v15457_v61 = vpop.xlane.xlu1 %5314 }
 0xbc1   : > { %10870 = vrcp.f32 %v5312_v22 }
 0xbc4   : > { %v15459_v21 = vpop.xlane.xlu0 %5092  ;;  %v10357_v41 = vpop.permute.xlu1 %10356 }
 0xbc5   : > { %17931 = vst [vmem:[#allocation37_spill] sm:$0xff] %v15459_v21  ;;  %v10359_v43 = vunpack.i.h.bf16 %v10357_v41  ;;  %v10358_v10 = vunpack.i.l.bf16 %v10357_v41  ;;  %v5133_v21 = vsub.f32 %v17934_v13, %v15113_v38  ;;  %v17935_v41 = vld [vmem:[#allocation60_spill] sm:$0xff] }
 0xbc6   : > { %v17938_v13 = vld [vmem:[#allocation64_spill] sm:$0xff] }
 0xbc7   : > { %10371 = vrot.lane.b32.xlu0 %v17932_v35, %s11280_s23  ;;  %v9524_v22 = vpack.c.bf16 %v10359_v43, %v10358_v10  ;;  %v17937_v43 = vld [vmem:[#allocation70_spill] sm:$0xff] }
 0xbc8   : > { %v10352_v32 = vpop.permute.xlu0 %10351 }
 0xbc9   : > { %v10354_v49 = vunpack.i.h.bf16 %v10352_v32  ;;  %v10353_v36 = vunpack.i.l.bf16 %v10352_v32  ;;  %v5210_v32 = vmul.f32 1.442695, %v5132_v12  ;;  %v5135_v12 = vsub.f32 %v17938_v13, %v15133_v4 }
 0xbcb   : > { %v9521_v33 = vpack.c.bf16 %v10354_v49, %v10353_v36  ;;  %v15468_v1 = vpop.eup %10870  ;;  %v5130_v36 = vsub.f32 %v17935_v41, %v15127_v48  ;;  %v17936_v49 = vld [vmem:[#allocation56_spill] sm:$0xff]  ;;  %10872 = vpow2.f32 %v5210_v32 }
 0xbcc   : > { %v5439_v35 = vmul.f32 %v15468_v1, %v15258_v53  ;;  %v5131_v15 = vsub.f32 %v17936_v49, %v15127_v48  ;;  %v5134_v53 = vsub.f32 %v17937_v43, %v15133_v4  ;;  %v17945_v49 = vld [vmem:[#allocation115_spill] sm:$0xff] }
 0xbcd   : > { %9522 = vmatpush1.bf16.msra.mxu1 %v9521_v33  ;;  %v5212_v33 = vmul.f32 1.442695, %v5133_v21  ;;  %v5206_v38 = vmul.f32 1.442695, %v5130_v36  ;;  %v17941_v21 = vld [vmem:[#allocation153_spill] sm:$0xff] }
 0xbce   : > { %9523 = vmatprep.subr.bf16.mxu1 %v17733_v27  ;;  %5662 = vmatprep.mubr.f32.mxu1 %v5439_v35  ;;  %v5208_v10 = vmul.f32 1.442695, %v5131_v15  ;;  %v15485_v26 = vmul.f32 0.35355338, %v17941_v21  ;;  %v5214_v48 = vmul.f32 1.442695, %v5134_v53 }
 0xbcf   : > { %10874 = vpow2.f32 %v5212_v33  ;;  %v5216_v35 = vmul.f32 1.442695, %v5135_v12  ;;  %v17943_v36 = vld [vmem:[#allocation69_spill] sm:$0xff]  ;;  %v15493_v15 = vmul.f32 0.35355338, %v17945_v49  ;;  %v17947_v53 = vld [vmem:[#allocation90_spill] sm:$0xff] }
 0xbd0   : > { %10876 = vpow2.f32 %v5206_v38  ;;  %17942 = vst [vmem:[#allocation91_spill] sm:$0xff] %v15485_v26  ;;  %v15490_v33 = vmul.f32 0.35355338, %v17943_v36  ;;  %v15504_v13 = vmul.f32 0.35355338, %v17947_v53  ;;  %v17949_v12 = vld [vmem:[#allocation125_spill] sm:$0xff] }
 0xbd1   : > { %9525 = vmatpush1.bf16.msra.mxu1 %v9524_v22  ;;  %10878 = vpow2.f32 %v5208_v10  ;;  %v17939_v22 = vld [vmem:[#allocation71_spill] sm:$0xff]  ;;  %17946 = vst [vmem:[#allocation47_spill] sm:$0xff] %v15493_v15  ;;  %v17953_v49 = vld [vmem:[#allocation113_spill] sm:$0xff] }
 0xbd2   : > { %9526 = vmatprep.subr.bf16.mxu1 %v17733_v27  ;;  %v15482_v41 = vmul.f32 0.35355338, %v17939_v22  ;;  %17944 = vst [vmem:[#allocation149_spill] sm:$0xff] %v15490_v33  ;;  %10880 = vpow2.f32 %v5214_v48  ;;  %v5106_v43 = vmax.f32 %v15490_v33, %v15493_v15  ;;  %17948 = vst [vmem:[#allocation59_spill] sm:$0xff] %v15504_v13  ;;  %v15507_v22 = vmul.f32 0.35355338, %v17949_v12 }
 0xbd3   : > { %10882 = vpow2.f32 %v5216_v35  ;;  %v17951_v48 = vld [vmem:[#allocation75_spill] sm:$0xff]  ;;  %v15522_v15 = vmul.f32 0.35355338, %v14969_v5  ;;  %v15525_v12 = vmul.f32 0.35355338, %v14972_v56 }
 0xbd4   : > { %17940 = vst [vmem:[#allocation49_spill] sm:$0xff] %v15482_v41  ;;  %v6791_v38 = vmax.f32 %v15482_v41, %v15485_v26  ;;  %17950 = vst [vmem:[#allocation159_spill] sm:$0xff] %v15507_v22  ;;  %v15514_v35 = vmul.f32 0.35355338, %v17951_v48  ;;  %v5112_v53 = vmax.f32 %v15504_v13, %v15507_v22  ;;  %v17957_v48 = vld [vmem:[#allocation152_spill] sm:$0xff]  ;;  %v17959_v22 = vld [vmem:[#allocation162_spill] sm:$0xff] }
 0xbd5   : > { %v15487_v32 = vpop.eup %10872  ;;  %17955 = vst [vmem:[#allocation57_spill] sm:$0xff] %v15522_v15  ;;  %17956 = vst [vmem:[#allocation161_spill] sm:$0xff] %v15525_v12  ;;  %v15537_v13 = vmul.f32 0.35355338, %v17959_v22  ;;  %v6797_v5 = vmax.f32 %v15522_v15, %v15525_v12 }
 0xbd6   : > { %17952 = vst [vmem:[#allocation158_spill] sm:$0xff] %v15514_v35 }
 0xbd7   : > { %17960 = vst [vmem:[#allocation163_spill] sm:$0xff] %v15537_v13 }
 0xbd9   : > { %v15497_v4 = vpop.eup %10874 }
 0xbda   : > { %v15499_v10 = vpop.eup %10876  ;;  %v5331_v21 = vadd.f32 %v15497_v4, %v15487_v32 }
 0xbdb   : > { %v15511_v36 = vpop.eup %10878 }
 0xbdc   : > { %v5328_v33 = vadd.f32 %v15511_v36, %v15499_v10 }
 0xbe2   : > { %6792 = vmax.xlane.f32.xlu1 %v6791_v38  ;;  %v15517_v38 = vmul.f32 0.35355338, %v17953_v49  ;;  %v15534_v49 = vmul.f32 0.35355338, %v17957_v48 }
 0xbe4   : > { %17954 = vst [vmem:[#allocation134_spill] sm:$0xff] %v15517_v38  ;;  %17958 = vst [vmem:[#allocation164_spill] sm:$0xff] %v15534_v49 }
 0xbe6   : > { %5332 = vadd.xlane.f32.xlu1 %v5331_v21  ;;  %5107 = vmax.xlane.f32.xlu0 %v5106_v43  ;;  %v15529_v43 = vpop.eup %10880  ;;  %v5109_v21 = vmax.f32 %v15514_v35, %v15517_v38  ;;  %v15549_v38 = vmul.f32 0.35355338, %v14978_v47 }
 0xbe7   : > { %v15541_v56 = vpop.eup %10882 }
 0xbe8   : > { %17962 = vst [vmem:[#allocation169_spill] sm:$0xff] %v15549_v38  ;;  %v5334_v22 = vadd.f32 %v15541_v56, %v15529_v43 }
 0xbea   : > { %5113 = vmax.xlane.f32.xlu1 %v5112_v53  ;;  %5329 = vadd.xlane.f32.xlu0 %v5328_v33  ;;  %v6794_v33 = vmax.f32 %v15534_v49, %v15537_v13  ;;  %v15546_v53 = vmul.f32 0.35355338, %v14975_v30 }
 0xbec   : > { %17961 = vst [vmem:[#allocation168_spill] sm:$0xff] %v15546_v53  ;;  %v6800_v48 = vmax.f32 %v15546_v53, %v15549_v38 }
 0xbee   : > { %6798 = vmax.xlane.f32.xlu1 %v6797_v5  ;;  %5110 = vmax.xlane.f32.xlu0 %v5109_v21 }
 0xbf2   : > { %6795 = vmax.xlane.f32.xlu0 %v6794_v33  ;;  %5335 = vadd.xlane.f32.xlu1 %v5334_v22 }
 0xbf5   : > { %v15555_v35 = vpop.xlane.xlu1 %6780 }
 0xbf6   : > { %6801 = vmax.xlane.f32.xlu1 %v6800_v48  ;;  %v17965_v48 = vld [vmem:[#allocation2_spill] sm:$0xff] }
 0xbf9   : > { %v15557_v21 = vpop.xlane.xlu1 %6783  ;;  %v15559_v5 = vpop.xlane.xlu0 %5095 }
 0xbfa   : > { %17963 = vst [vmem:[#allocation190_spill] sm:$0xff] %v15557_v21  ;;  %v15588_v21 = vmul.f32 0.35355338, %v15069_v54 }
 0xbfc   : > { %17973 = vst [vmem:[#allocation39_spill] sm:$0xff] %v15588_v21 }
 0xbfd   : > { %v5318_v30 = vpop.xlane.xlu0 %5317  ;;  %v5321_v12 = vpop.xlane.xlu1 %5320 }
 0xc01   : > { %v15561_v15 = vpop.xlane.xlu0 %5098  ;;  %v10367_v47 = vpop.permute.xlu1 %10366 }
 0xc02   : > { %17964 = vst [vmem:[#allocation191_spill] sm:$0xff] %v15561_v15  ;;  %v10369_v33 = vunpack.i.h.bf16 %v10367_v47  ;;  %v10368_v22 = vunpack.i.l.bf16 %v10367_v47  ;;  %v17966_v15 = vld [vmem:[#allocation8_spill] sm:$0xff] }
 0xc04   : > { %v9530_v53 = vpack.c.bf16 %v10369_v33, %v10368_v22  ;;  %v17971_v33 = vld [vmem:[#allocation119_spill] sm:$0xff] }
 0xc05   : > { %v10362_v13 = vpop.permute.xlu0 %10361  ;;  %v15579_v22 = vmul.f32 0.35355338, %v17971_v33 }
 0xc06   : > { %v10364_v49 = vunpack.i.h.bf16 %v10362_v13  ;;  %v10363_v26 = vunpack.i.l.bf16 %v10362_v13  ;;  %v17967_v13 = vld [vmem:[#allocation43_spill] sm:$0xff] }
 0xc07   : > { %10391 = vrot.lane.b32.xlu1 %v17799_v24, %s11281_s27  ;;  %v5136_v41 = vsub.f32 %v17967_v13, %v15119_v58  ;;  %v17968_v24 = vld [vmem:[#allocation36_spill] sm:$0xff]  ;;  %17972 = vst [vmem:[#allocation122_spill] sm:$0xff] %v15579_v22 }
 0xc08   : > { %v9527_v38 = vpack.c.bf16 %v10364_v49, %v10363_v26  ;;  %10381 = vrot.lane.b32.xlu0 %v17965_v48, %s11281_s27  ;;  %v5137_v47 = vsub.f32 %v17968_v24, %v15119_v58  ;;  %v15591_v58 = vmul.f32 0.35355338, %v15073_v7  ;;  %v15597_v24 = vmul.f32 0.35355338, %v15089_v42 }
 0xc09   : > { %v5218_v26 = vmul.f32 1.442695, %v5136_v41  ;;  %v15594_v41 = vmul.f32 0.35355338, %v15085_v0 }
 0xc0a   : > { %9528 = vmatpush1.bf16.msra.mxu1 %v9527_v38  ;;  %v5220_v49 = vmul.f32 1.442695, %v5137_v47  ;;  %v17969_v38 = vld [vmem:[#allocation96_spill] sm:$0xff]  ;;  %17974 = vst [vmem:[#allocation126_spill] sm:$0xff] %v15591_v58  ;;  %17976 = vst [vmem:[#allocation55_spill] sm:$0xff] %v15597_v24 }
 0xc0b   : > { %9529 = vmatprep.subr.bf16.mxu1 %v17733_v27  ;;  %10884 = vpow2.f32 %v5218_v26  ;;  %v15576_v48 = vmul.f32 0.35355338, %v17969_v38  ;;  %17975 = vst [vmem:[#allocation48_spill] sm:$0xff] %v15594_v41  ;;  %v6803_v26 = vmax.f32 %v15588_v21, %v15591_v58  ;;  %v6806_v54 = vmax.f32 %v15594_v41, %v15597_v24  ;;  %v17979_v24 = vld [vmem:[#allocation127_spill] sm:$0xff] }
 0xc0c   : > { %10386 = vrot.lane.b32.xlu0 %v17966_v15, %s11281_s27  ;;  %10886 = vpow2.f32 %v5220_v49  ;;  %v5141_v41 = vsub.f32 %v17979_v24, %v15125_v39 }
 0xc0d   : > { %17970 = vst [vmem:[#allocation176_spill] sm:$0xff] %v15576_v48  ;;  %v5115_v13 = vmax.f32 %v15576_v48, %v15579_v22  ;;  %10888 = vrcp.f32 %v15457_v61 }
 0xc0e   : > { %9531 = vmatpush1.bf16.msra.mxu1 %v9530_v53  ;;  %10890 = vrcp.f32 %v5318_v30  ;;  %v17980_v30 = vld [vmem:[#allocation82_spill] sm:$0xff] }
 0xc0f   : > { %9532 = vmatprep.subr.bf16.mxu1 %v17733_v27  ;;  %10892 = vrcp.f32 %v5321_v12  ;;  %v17981_v12 = vld [vmem:[#allocation74_spill] sm:$0xff] }
 0xc15   : > { %v15581_v15 = vpop.eup %10884 }
 0xc16   : > { %v15583_v53 = vpop.eup %10886 }
 0xc17   : > { %v5337_v47 = vadd.f32 %v15583_v53, %v15581_v15  ;;  %v10889_v61 = vpop.eup %10888 }
 0xc2b   : > { %5116 = vmax.xlane.f32.xlu0 %v5115_v13  ;;  %5338 = vadd.xlane.f32.xlu1 %v5337_v47 }
 0xc2f   : > { %6804 = vmax.xlane.f32.xlu0 %v6803_v26  ;;  %6807 = vmax.xlane.f32.xlu1 %v6806_v54 }
 0xc32   : > { %v15605_v7 = vpop.xlane.xlu1 %6786 }
 0xc36   : > { %v15607_v0 = vpop.xlane.xlu1 %6789  ;;  %v15609_v49 = vpop.xlane.xlu0 %5101 }
 0xc3a   : > { %v5324_v42 = vpop.xlane.xlu0 %5323  ;;  %v5327_v38 = vpop.xlane.xlu1 %5326 }
 0xc3b   : > { %10894 = vrcp.f32 %v5324_v42 }
 0xc3c   : > { %10896 = vrcp.f32 %v5327_v38 }
 0xc3e   : > { %v15611_v33 = vpop.xlane.xlu0 %5104  ;;  %v10377_v13 = vpop.permute.xlu1 %10376 }
 0xc3f   : > { %17977 = vst [vmem:[#allocation68_spill] sm:$0xff] %v15611_v33  ;;  %v10379_v54 = vunpack.i.h.bf16 %v10377_v13  ;;  %v10378_v21 = vunpack.i.l.bf16 %v10377_v13  ;;  %v17978_v33 = vld [vmem:[#allocation53_spill] sm:$0xff]  ;;  %v5138_v13 = vsub.f32 %v17980_v30, %v15135_v9  ;;  %v17983_v30 = vld [vmem:[#allocation180_spill] sm:$0xff] }
 0xc40   : > { %10401 = vrot.lane.b32.xlu1 %v17812_v51, %s11281_s27  ;;  %v5140_v51 = vsub.f32 %v17978_v33, %v15125_v39  ;;  %v5228_v33 = vmul.f32 1.442695, %v5141_v41  ;;  %v5440_v39 = vmul.f32 %v10889_v61, %v15248_v14 }
 0xc41   : > { %v9536_v48 = vpack.c.bf16 %v10379_v54, %v10378_v21  ;;  %v5441_v21 = vmul.f32 %v10889_v61, %v15250_v16 }
 0xc42   : > { %v10372_v47 = vpop.permute.xlu0 %10371 }
 0xc43   : > { %v10374_v58 = vunpack.i.h.bf16 %v10372_v47  ;;  %v10373_v26 = vunpack.i.l.bf16 %v10372_v47  ;;  %v5226_v47 = vmul.f32 1.442695, %v5140_v51 }
 0xc45   : > { %v9533_v22 = vpack.c.bf16 %v10374_v58, %v10373_v26  ;;  %10396 = vrot.lane.b32.xlu0 %v17813_v28, %s11281_s27  ;;  %v5438_v28 = vmul.f32 %v15468_v1, %v15252_v19  ;;  %v10891_v58 = vpop.eup %10890  ;;  %v5222_v26 = vmul.f32 1.442695, %v5138_v13  ;;  %10898 = vpow2.f32 %v5226_v47  ;;  %v17985_v13 = vld [vmem:[#allocation184_spill] sm:$0xff] }
 0xc46   : > { %v5443_v24 = vmul.f32 %v10891_v58, %v15348_v45  ;;  %v10893_v42 = vpop.eup %10892  ;;  %10900 = vpow2.f32 %v5228_v33 }
 0xc47   : > { %9534 = vmatpush1.bf16.msra.mxu1 %v9533_v22  ;;  %v5139_v22 = vsub.f32 %v17981_v12, %v15135_v9  ;;  %10902 = vpow2.f32 %v5222_v26  ;;  %v5442_v9 = vmul.f32 %v10891_v58, %v15344_v6  ;;  %v5445_v16 = vmul.f32 %v10893_v42, %v15358_v60  ;;  %v10895_v19 = vpop.eup %10894 }
 0xc48   : > { %9535 = vmatprep.subr.bf16.mxu1 %v17733_v27  ;;  %v5444_v1 = vmul.f32 %v10893_v42, %v15352_v52  ;;  %v5447_v14 = vmul.f32 %v10895_v19, %v15435_v23  ;;  %v10897_v41 = vpop.eup %10896  ;;  %v5446_v38 = vmul.f32 %v10895_v19, %v15429_v59  ;;  %v15648_v23 = vmul.f32 0.35355338, %v15141_v31  ;;  %v17990_v42 = vld [vmem:[#allocation35_spill] sm:$0xff] }
 0xc49   : > { %v5449_v6 = vmul.f32 %v10897_v41, %v15427_v46  ;;  %v5448_v52 = vmul.f32 %v10897_v41, %v15425_v44  ;;  %v15653_v59 = vmul.f32 0.35355338, %v17983_v30  ;;  %v17986_v46 = vld [vmem:[#allocation185_spill] sm:$0xff] }
 0xc4a   : > { %17982 = vst [vmem:[#allocation19_spill] sm:$0xff] %v15648_v23  ;;  %v15659_v12 = vmul.f32 0.35355338, %v17986_v46  ;;  %v17994_v46 = vld [vmem:[#allocation157_spill] sm:$0xff] }
 0xc4b   : > { %9537 = vmatpush1.bf16.msra.mxu1 %v9536_v48  ;;  %v5224_v48 = vmul.f32 1.442695, %v5139_v22  ;;  %17984 = vst [vmem:[#allocation106_spill] sm:$0xff] %v15653_v59  ;;  %v6809_v31 = vmax.f32 %v15648_v23, %v15653_v59 }
 0xc4d   : > { %10904 = vpow2.f32 %v5224_v48 }
 0xc4e   : > { %5663 = vmatmul.mubr.f32.vlgmr.msra.gmra.mrb[162].mxu1 %v5438_v28  ;;  %v15656_v28 = vmul.f32 0.35355338, %v17985_v13 }
 0xc4f   : > { %5667 = vmatprep.mubr.f32.mxu1 %v5441_v21  ;;  %v15636_v45 = vpop.eup %10898 }
 0xc50   : > { %v15639_v54 = vpop.eup %10900  ;;  %v6812_v44 = vmax.f32 %v15656_v28, %v15659_v12 }
 0xc51   : > { %v15642_v61 = vpop.eup %10902  ;;  %v5343_v51 = vadd.f32 %v15639_v54, %v15636_v45 }
 0xc52   : > { %5668 = vmatmul.mubr.f32.gmra.mrb[164].mxu1 %v5440_v39  ;;  %v17988_v39 = vld [vmem:[#allocation38_spill] sm:$0xff] }
 0xc53   : > { %5672 = vmatprep.mubr.f32.mxu1 %v5443_v24 }
 0xc56   : > { %5673 = vmatmul.mubr.f32.gmra.mrb[166].mxu1 %v5442_v9 }
 0xc57   : > { %5677 = vmatprep.mubr.f32.mxu1 %v5445_v16  ;;  %v15644_v60 = vpop.eup %10904 }
 0xc58   : > { %v5340_v22 = vadd.f32 %v15644_v60, %v15642_v61 }
 0xc5a   : > { %5678 = vmatmul.mubr.f32.gmra.mrb[168].mxu1 %v5444_v1  ;;  %v17991_v1 = vld [vmem:[#allocation151_spill] sm:$0xff] }
 0xc5b   : > { %5682 = vmatprep.mubr.f32.mxu1 %v5447_v14  ;;  %v17992_v14 = vld [vmem:[#allocation50_spill] sm:$0xff] }
 0xc5c   : > { %v5144_v41 = vsub.f32 %v17992_v14, %v17991_v1 }
 0xc5e   : > { %5683 = vmatmul.mubr.f32.gmra.mrb[170].mxu1 %v5446_v38  ;;  %v5234_v14 = vmul.f32 1.442695, %v5144_v41 }
 0xc5f   : > { %5687 = vmatprep.mubr.f32.mxu1 %v5449_v6 }
 0xc62   : > { %5688 = vmatmul.mubr.f32.gmra.mrb[172].mxu1 %v5448_v52 }
 0xc64   : > { %5344 = vadd.xlane.f32.xlu1 %v5343_v51  ;;  %5341 = vadd.xlane.f32.xlu0 %v5340_v22  ;;  %v17993_v51 = vld [vmem:[#allocation46_spill] sm:$0xff]  ;;  %v17995_v22 = vld [vmem:[#allocation160_spill] sm:$0xff] }
 0xc65   : > { %v5145_v30 = vsub.f32 %v17993_v51, %v17991_v1 }
 0xc67   : > { %v5236_v1 = vmul.f32 1.442695, %v5145_v30 }
 0xc68   : > { %6813 = vmax.xlane.f32.xlu1 %v6812_v44  ;;  %6810 = vmax.xlane.f32.xlu0 %v6809_v31  ;;  %v5142_v31 = vsub.f32 %v17995_v22, %v17994_v46 }
 0xc6f   : > { %v15667_v21 = vpop.xlane.xlu1 %6792 }
 0xc73   : > { %v5333_v58 = vpop.xlane.xlu1 %5332  ;;  %v15669_v47 = vpop.xlane.xlu0 %5107 }
 0xc74   : > { %10906 = vrcp.f32 %v5333_v58 }
 0xc77   : > { %v15671_v33 = vpop.xlane.xlu1 %5113  ;;  %v5330_v26 = vpop.xlane.xlu0 %5329 }
 0xc78   : > { %17987 = vst [vmem:[#allocation131_spill] sm:$0xff] %v15671_v33  ;;  %10908 = vrcp.f32 %v5330_v26 }
 0xc79   : > { %10411 = vrot.lane.b32.xlu1 %v17988_v39, %s11281_s27  ;;  %v17996_v39 = vld [vmem:[#allocation175_spill] sm:$0xff] }
 0xc7b   : > { %v15675_v48 = vpop.xlane.xlu1 %6798  ;;  %v15677_v24 = vpop.xlane.xlu0 %5110 }
 0xc7c   : > { %17989 = vst [vmem:[#allocation63_spill] sm:$0xff] %v15677_v24  ;;  %v5230_v24 = vmul.f32 1.442695, %v5142_v31  ;;  %v15722_v31 = vmul.f32 0.35355338, %v15222_v17 }
 0xc7e   : > { %10406 = vrot.lane.b32.xlu0 %v17990_v42, %s11281_s27  ;;  %v10907_v19 = vpop.eup %10906  ;;  %v5143_v42 = vsub.f32 %v17996_v39, %v17994_v46  ;;  %v15719_v46 = vmul.f32 0.35355338, %v15218_v63  ;;  %v17999_v63 = vld [vmem:[#allocation45_spill] sm:$0xff] }
 0xc7f   : > { %v5336_v9 = vpop.xlane.xlu1 %5335  ;;  %v15681_v16 = vpop.xlane.xlu0 %6795  ;;  %v5453_v33 = vmul.f32 %v10907_v19, %v15497_v4  ;;  %v18001_v39 = vld [vmem:[#allocation61_spill] sm:$0xff] }
 0xc80   : > { %10910 = vrcp.f32 %v5336_v9 }
 0xc81   : > { %10912 = vpow2.f32 %v5234_v14 }
 0xc82   : > { %v10909_v52 = vpop.eup %10908  ;;  %10914 = vpow2.f32 %v5236_v1 }
 0xc83   : > { %v15685_v38 = vpop.xlane.xlu1 %6801  ;;  %v10382_v6 = vpop.permute.xlu0 %10381  ;;  %v5451_v58 = vmul.f32 %v10909_v52, %v15511_v36  ;;  %v5450_v26 = vmul.f32 %v10909_v52, %v15499_v10  ;;  %v5232_v36 = vmul.f32 1.442695, %v5143_v42  ;;  %v5452_v10 = vmul.f32 %v10907_v19, %v15487_v32 }
 0xc84   : > { %v10384_v13 = vunpack.i.h.bf16 %v10382_v6  ;;  %v10383_v44 = vunpack.i.l.bf16 %v10382_v6  ;;  %10916 = vpow2.f32 %v5230_v24 }
 0xc85   : > { %5692 = vmatprep.mubr.f32.mxu1 %v5451_v58  ;;  %10918 = vpow2.f32 %v5232_v36  ;;  %v6818_v58 = vmax.f32 %v15719_v46, %v15722_v31  ;;  %v18005_v36 = vld [vmem:[#allocation89_spill] sm:$0xff] }
 0xc86   : > { %v9587_v59 = vpack.c.bf16 %v10384_v13, %v10383_v44  ;;  %5693 = vmatmul.mubr.f32.gmra.mrb[174].mxu1 %v5450_v26  ;;  %v15711_v13 = vmul.f32 0.35355338, %v15206_v29  ;;  %v18000_v26 = vld [vmem:[#allocation155_spill] sm:$0xff] }
 0xc87   : > { %v10387_v23 = vpop.permute.xlu0 %10386  ;;  %v10392_v9 = vpop.permute.xlu1 %10391  ;;  %5697 = vmatprep.mubr.f32.mxu1 %v5453_v33  ;;  %v5146_v42 = vsub.f32 %v18001_v39, %v18000_v26 }
 0xc88   : > { %v10389_v51 = vunpack.i.h.bf16 %v10387_v23  ;;  %v10388_v22 = vunpack.i.l.bf16 %v10387_v23  ;;  %9588 = vmatpush1.bf16.msra.mxu0 %v9587_v59  ;;  %v10394_v41 = vunpack.i.h.bf16 %v10392_v9  ;;  %v10393_v6 = vunpack.i.l.bf16 %v10392_v9  ;;  %17997 = vst [vmem:[#allocation79_spill] sm:$0xff] %v15711_v13  ;;  %v18003_v9 = vld [vmem:[#allocation133_spill] sm:$0xff] }
 0xc89   : > { %9589 = vmatprep.subr.bf16.mxu0 %v17733_v27 }
 0xc8a   : > { %v9590_v52 = vpack.c.bf16 %v10389_v51, %v10388_v22  ;;  %5698 = vmatmul.mubr.f32.gmra.mrb[176].mxu1 %v5452_v10  ;;  %v10911_v4 = vpop.eup %10910  ;;  %v9593_v23 = vpack.c.bf16 %v10394_v41, %v10393_v6  ;;  %v5147_v51 = vsub.f32 %v18003_v9, %v18000_v26  ;;  %v18004_v22 = vld [vmem:[#allocation5_spill] sm:$0xff]  ;;  %v5238_v10 = vmul.f32 1.442695, %v5146_v42  ;;  %v18006_v41 = vld [vmem:[#allocation84_spill] sm:$0xff]  ;;  %v18009_v26 = vld [vmem:[#allocation183_spill] sm:$0xff] }
 0xc8b   : > { %v5455_v59 = vmul.f32 %v10911_v4, %v15541_v56  ;;  %v5454_v33 = vmul.f32 %v10911_v4, %v15529_v43  ;;  %v15702_v32 = vpop.eup %10912  ;;  %v15716_v43 = vmul.f32 0.35355338, %v15208_v2  ;;  %v5149_v6 = vsub.f32 %v18006_v41, %v18004_v22 }
 0xc8c   : > { %9591 = vmatpush1.bf16.msra.mxu0 %v9590_v52  ;;  %v15704_v19 = vpop.eup %10914 }
 0xc8d   : > { %9592 = vmatprep.subr.bf16.mxu0 %v17733_v27  ;;  %5702 = vmatprep.mubr.f32.mxu1 %v5455_v59  ;;  %v5349_v56 = vadd.f32 %v15704_v19, %v15702_v32  ;;  %17998 = vst [vmem:[#allocation138_spill] sm:$0xff] %v15716_v43  ;;  %v6815_v29 = vmax.f32 %v15711_v13, %v15716_v43 }
 0xc8e   : > { %5703 = vmatmul.mubr.f32.gmra.mrb[178].mxu1 %v5454_v33  ;;  %v15706_v24 = vpop.eup %10916 }
 0xc8f   : > { %v15708_v30 = vpop.eup %10918 }
 0xc90   : > { %9594 = vmatpush1.bf16.msra.mxu0 %v9593_v23  ;;  %v5346_v44 = vadd.f32 %v15708_v30, %v15706_v24  ;;  %v5240_v23 = vmul.f32 1.442695, %v5147_v51 }
 0xc91   : > { %9595 = vmatprep.subr.bf16.mxu0 %v17733_v27 }
 0xc9d   : > { %5350 = vadd.xlane.f32.xlu1 %v5349_v56  ;;  %5347 = vadd.xlane.f32.xlu0 %v5346_v44  ;;  %v18007_v56 = vld [vmem:[#allocation6_spill] sm:$0xff] }
 0xc9e   : > { %v18008_v44 = vld [vmem:[#allocation170_spill] sm:$0xff]  ;;  %v6852_v39 = vsub.f32 %v18009_v26, %v18007_v56 }
 0xca1   : > { %6819 = vmax.xlane.f32.xlu1 %v6818_v58  ;;  %6816 = vmax.xlane.f32.xlu0 %v6815_v29  ;;  %v6851_v29 = vsub.f32 %v18008_v44, %v18007_v56 }
 0xca3   : > { %v6915_v51 = vmul.f32 1.442695, %v6851_v29 }
 0xcb2   : > { %10421 = vrot.lane.b32.xlu1 %v17862_v34, %s11281_s27  ;;  %v5148_v34 = vsub.f32 %v18005_v36, %v18004_v22 }
 0xcb4   : > { %v5242_v33 = vmul.f32 1.442695, %v5148_v34  ;;  %v6917_v34 = vmul.f32 1.442695, %v6852_v39 }
 0xcb7   : > { %10416 = vrot.lane.b32.xlu0 %v17999_v63, %s11281_s27 }
 0xcb8   : > { %v5339_v17 = vpop.xlane.xlu1 %5338  ;;  %v15734_v2 = vpop.xlane.xlu0 %5116 }
 0xcb9   : > { %10920 = vrcp.f32 %v5339_v17  ;;  %v5244_v17 = vmul.f32 1.442695, %v5149_v6 }
 0xcba   : > { %10922 = vpow2.f32 %v5238_v10 }
 0xcbb   : > { %10924 = vpow2.f32 %v5240_v23  ;;  %v15767_v23 = vmul.f32 0.35355338, %v15280_v57  ;;  %v15784_v57 = vmul.f32 0.35355338, %v15290_v40 }
 0xcbc   : > { %v15738_v14 = vpop.xlane.xlu1 %6807  ;;  %v15740_v1 = vpop.xlane.xlu0 %6804  ;;  %10926 = vpow2.f32 %v5242_v33 }
 0xcbd   : > { %18002 = vst [vmem:[#allocation66_spill] sm:$0xff] %v15740_v1  ;;  %10928 = vpow2.f32 %v5244_v17  ;;  %18011 = vst [vmem:[#allocation33_spill] sm:$0xff] %v15767_v23  ;;  %v18013_v17 = vld [vmem:[#allocation65_spill] sm:$0xff]  ;;  %v18024_v1 = vld [vmem:[#allocation108_spill] sm:$0xff] }
 0xcbe   : > { %10930 = vpow2.f32 %v6915_v51  ;;  %v18018_v51 = vld [vmem:[#allocation7_spill] sm:$0xff] }
 0xcbf   : > { %10932 = vpow2.f32 %v6917_v34  ;;  %v18019_v34 = vld [vmem:[#allocation95_spill] sm:$0xff] }
 0xcc0   : > { %v10402_v52 = vpop.permute.xlu1 %10401  ;;  %v10397_v4 = vpop.permute.xlu0 %10396 }
 0xcc1   : > { %v10399_v59 = vunpack.i.h.bf16 %v10397_v4  ;;  %v10398_v58 = vunpack.i.l.bf16 %v10397_v4  ;;  %v10404_v9 = vunpack.i.h.bf16 %v10402_v52  ;;  %v10403_v42 = vunpack.i.l.bf16 %v10402_v52 }
 0xcc3   : > { %v10921_v63 = vpop.eup %10920  ;;  %v9596_v36 = vpack.c.bf16 %v10399_v59, %v10398_v58  ;;  %v9599_v10 = vpack.c.bf16 %v10404_v9, %v10403_v42  ;;  %v15770_v59 = vmul.f32 0.35355338, %v15282_v55  ;;  %v15781_v58 = vmul.f32 0.35355338, %v15288_v18  ;;  %v18015_v9 = vld [vmem:[#allocation9_spill] sm:$0xff]  ;;  %v18016_v42 = vld [vmem:[#allocation187_spill] sm:$0xff] }
 0xcc4   : > { %v5457_v22 = vmul.f32 %v10921_v63, %v15583_v53  ;;  %v5456_v41 = vmul.f32 %v10921_v63, %v15581_v15  ;;  %v15756_v6 = vpop.eup %10922 }
 0xcc5   : > { %9597 = vmatpush1.bf16.msra.mxu0 %v9596_v36  ;;  %v15758_v53 = vpop.eup %10924  ;;  %18012 = vst [vmem:[#allocation142_spill] sm:$0xff] %v15770_v59  ;;  %v6821_v29 = vmax.f32 %v15767_v23, %v15770_v59  ;;  %v6824_v63 = vmax.f32 %v15781_v58, %v15784_v57  ;;  %v5150_v36 = vsub.f32 %v18016_v42, %v18015_v9  ;;  %v18022_v42 = vld [vmem:[#allocation136_spill] sm:$0xff] }
 0xcc6   : > { %5707 = vmatprep.mubr.f32.mxu1 %v5457_v22  ;;  %9598 = vmatprep.subr.bf16.mxu0 %v17733_v27  ;;  %v15760_v15 = vpop.eup %10926  ;;  %v5352_v56 = vadd.f32 %v15758_v53, %v15756_v6  ;;  %v18017_v22 = vld [vmem:[#allocation103_spill] sm:$0xff]  ;;  %v6854_v23 = vsub.f32 %v18022_v42, %v15286_v37 }
 0xcc7   : > { %5708 = vmatmul.mubr.f32.gmra.mrb[180].mxu1 %v5456_v41  ;;  %v15762_v52 = vpop.eup %10928  ;;  %v5151_v41 = vsub.f32 %v18017_v22, %v18015_v9 }
 0xcc8   : > { %v15764_v4 = vpop.eup %10930  ;;  %v5355_v33 = vadd.f32 %v15762_v52, %v15760_v15  ;;  %v6921_v42 = vmul.f32 1.442695, %v6854_v23 }
 0xcc9   : > { %9600 = vmatpush1.bf16.msra.mxu0 %v9599_v10  ;;  %18010 = vst [vmem:[#allocation34_spill] sm:$0xff] %v15764_v4  ;;  %v15776_v44 = vpop.eup %10932  ;;  %v5248_v59 = vmul.f32 1.442695, %v5151_v41  ;;  %v18025_v41 = vld [vmem:[#allocation117_spill] sm:$0xff] }
 0xcca   : > { %9601 = vmatprep.subr.bf16.mxu0 %v17733_v27  ;;  %v7043_v55 = vadd.f32 %v15776_v44, %v15764_v4 }
 0xcd6   : > { %5356 = vadd.xlane.f32.xlu1 %v5355_v33  ;;  %5353 = vadd.xlane.f32.xlu0 %v5352_v56  ;;  %v18020_v33 = vld [vmem:[#allocation86_spill] sm:$0xff] }
 0xcd7   : > { %v5153_v56 = vsub.f32 %v18020_v33, %v18018_v51 }
 0xcda   : > { %7044 = vadd.xlane.f32.xlu1 %v7043_v55  ;;  %6822 = vmax.xlane.f32.xlu0 %v6821_v29 }
 0xcde   : > { %6825 = vmax.xlane.f32.xlu1 %v6824_v63  ;;  %v5246_v63 = vmul.f32 1.442695, %v5150_v36  ;;  %v18023_v36 = vld [vmem:[#allocation12_spill] sm:$0xff] }
 0xcef   : > { %10431 = vrot.lane.b32.xlu1 %v17881_v8, %s11281_s27  ;;  %v5152_v8 = vsub.f32 %v18019_v34, %v18018_v51 }
 0xcf0   : > { %10426 = vrot.lane.b32.xlu0 %v18013_v17, %s11281_s27  ;;  %v18021_v17 = vld [vmem:[#allocation121_spill] sm:$0xff] }
 0xcf1   : > { %v5345_v18 = vpop.xlane.xlu1 %5344  ;;  %v5342_v26 = vpop.xlane.xlu0 %5341  ;;  %v5250_v22 = vmul.f32 1.442695, %v5152_v8 }
 0xcf2   : > { %10934 = vrcp.f32 %v5345_v18  ;;  %v6853_v18 = vsub.f32 %v18021_v17, %v15286_v37  ;;  %v6855_v17 = vsub.f32 %v18024_v1, %v18023_v36  ;;  %v6856_v37 = vsub.f32 %v18025_v41, %v18023_v36 }
 0xcf3   : > { %10936 = vrcp.f32 %v5342_v26 }
 0xcf4   : > { %10938 = vpow2.f32 %v5246_v63  ;;  %v6925_v1 = vmul.f32 1.442695, %v6856_v37  ;;  %v15840_v63 = vmul.f32 0.35355338, %v15294_v50 }
 0xcf5   : > { %v15794_v40 = vpop.xlane.xlu1 %6813  ;;  %v15796_v39 = vpop.xlane.xlu0 %6810  ;;  %10940 = vpow2.f32 %v5248_v59 }
 0xcf6   : > { %18014 = vst [vmem:[#allocation78_spill] sm:$0xff] %v15796_v39  ;;  %v5252_v39 = vmul.f32 1.442695, %v5153_v56  ;;  %10942 = vpow2.f32 %v5250_v22  ;;  %18030 = vst [vmem:[#allocation83_spill] sm:$0xff] %v15840_v63 }
 0xcf8   : > { %10944 = vpow2.f32 %v5252_v39 }
 0xcf9   : > { %v10407_v10 = vpop.permute.xlu0 %10406  ;;  %v10412_v29 = vpop.permute.xlu1 %10411 }
 0xcfa   : > { %v10409_v55 = vunpack.i.h.bf16 %v10407_v10  ;;  %v10408_v26 = vunpack.i.l.bf16 %v10407_v10  ;;  %v10414_v43 = vunpack.i.h.bf16 %v10412_v29  ;;  %v10413_v34 = vunpack.i.l.bf16 %v10412_v29  ;;  %v18029_v29 = vld [vmem:[#allocation120_spill] sm:$0xff] }
 0xcfb   : > { %v6919_v10 = vmul.f32 1.442695, %v6853_v18 }
 0xcfc   : > { %v10935_v4 = vpop.eup %10934  ;;  %v9602_v13 = vpack.c.bf16 %v10409_v55, %v10408_v26  ;;  %v15837_v55 = vmul.f32 0.35355338, %v18029_v29 }
 0xcfd   : > { %v10937_v9 = vpop.eup %10936  ;;  %v5461_v8 = vmul.f32 %v10935_v4, %v15639_v54  ;;  %10946 = vpow2.f32 %v6919_v10 }
 0xcfe   : > { %v5459_v51 = vmul.f32 %v10937_v9, %v15644_v60  ;;  %v5458_v33 = vmul.f32 %v10937_v9, %v15642_v61  ;;  %9603 = vmatpush1.bf16.msra.mxu0 %v9602_v13  ;;  %v9605_v60 = vpack.c.bf16 %v10414_v43, %v10413_v34  ;;  %v6923_v61 = vmul.f32 1.442695, %v6855_v17  ;;  %v15820_v54 = vpop.eup %10938  ;;  %v18032_v34 = vld [vmem:[#allocation107_spill] sm:$0xff] }
 0xcff   : > { %9604 = vmatprep.subr.bf16.mxu0 %v17733_v27  ;;  %v5460_v13 = vmul.f32 %v10935_v4, %v15636_v45  ;;  %10948 = vpow2.f32 %v6921_v42  ;;  %v15822_v23 = vpop.eup %10940  ;;  %v6827_v22 = vmax.f32 %v15837_v55, %v15840_v63  ;;  %v18047_v63 = vld [vmem:[#allocation30_spill] sm:$0xff] }
 0xd00   : > { %5712 = vmatprep.mubr.f32.mxu1 %v5459_v51  ;;  %10950 = vpow2.f32 %v6923_v61  ;;  %v15824_v43 = vpop.eup %10942  ;;  %v5358_v45 = vadd.f32 %v15822_v23, %v15820_v54  ;;  %v15851_v51 = vmul.f32 0.35355338, %v18032_v34  ;;  %v18036_v61 = vld [vmem:[#allocation80_spill] sm:$0xff] }
 0xd01   : > { %5713 = vmatmul.mubr.f32.gmra.mrb[182].mxu1 %v5458_v33  ;;  %10952 = vpow2.f32 %v6925_v1  ;;  %v15854_v33 = vmul.f32 0.35355338, %v15308_v62 }
 0xd02   : > { %5717 = vmatprep.mubr.f32.mxu1 %v5461_v8  ;;  %9606 = vmatpush1.bf16.msra.mxu0 %v9605_v60  ;;  %v15826_v59 = vpop.eup %10944 }
 0xd03   : > { %9607 = vmatprep.subr.bf16.mxu0 %v17733_v27  ;;  %v5361_v18 = vadd.f32 %v15826_v59, %v15824_v43  ;;  %v6830_v36 = vmax.f32 %v15851_v51, %v15854_v33 }
 0xd05   : > { %5718 = vmatmul.mubr.f32.gmra.mrb[184].mxu1 %v5460_v13 }
 0xd07   : > { %v15828_v39 = vpop.eup %10946 }
 0xd08   : > { %18026 = vst [vmem:[#allocation118_spill] sm:$0xff] %v15828_v39 }
 0xd09   : > { %v15832_v4 = vpop.eup %10948 }
 0xd0a   : > { %18027 = vst [vmem:[#allocation139_spill] sm:$0xff] %v15832_v4  ;;  %v15834_v56 = vpop.eup %10950  ;;  %v7046_v26 = vadd.f32 %v15832_v4, %v15828_v39 }
 0xd0b   : > { %18028 = vst [vmem:[#allocation73_spill] sm:$0xff] %v15834_v56  ;;  %v15846_v9 = vpop.eup %10952 }
 0xd0c   : > { %18031 = vst [vmem:[#allocation111_spill] sm:$0xff] %v15846_v9  ;;  %v7049_v50 = vadd.f32 %v15846_v9, %v15834_v56 }
 0xd0f   : > { %5359 = vadd.xlane.f32.xlu0 %v5358_v45 }
 0xd13   : > { %5362 = vadd.xlane.f32.xlu1 %v5361_v18  ;;  %7047 = vadd.xlane.f32.xlu0 %v7046_v26 }
 0xd17   : > { %7050 = vadd.xlane.f32.xlu1 %v7049_v50  ;;  %6828 = vmax.xlane.f32.xlu0 %v6827_v22  ;;  %v18039_v50 = vld [vmem:[#allocation40_spill] sm:$0xff] }
 0xd1b   : > { %6831 = vmax.xlane.f32.xlu1 %v6830_v36  ;;  %v18040_v36 = vld [vmem:[#allocation100_spill] sm:$0xff] }
 0xd21   : > { %v15860_v17 = vpop.f32.mrb[162].mxu1 }
 0xd22   : > { %18033 = vst [vmem:[#allocation130_spill] sm:$0xff] %v15860_v17  ;;  %v5666_v10 = vpop.f32.mrb[163].mxu1 }
 0xd23   : > { %v5154_v10 = vsub.f32 %v18040_v36, %v18039_v50 }
 0xd25   : > { %v15862_v41 = vpop.f32.mrb[164].mxu1  ;;  %v5254_v4 = vmul.f32 1.442695, %v5154_v10 }
 0xd26   : > { %18034 = vst [vmem:[#allocation146_spill] sm:$0xff] %v15862_v41  ;;  %v5671_v37 = vpop.f32.mrb[165].mxu1  ;;  %v18044_v41 = vld [vmem:[#allocation116_spill] sm:$0xff] }
 0xd29   : > { %v15864_v42 = vpop.f32.mrb[166].mxu1 }
 0xd2a   : > { %18035 = vst [vmem:[#allocation87_spill] sm:$0xff] %v15864_v42  ;;  %v5351_v8 = vpop.xlane.xlu1 %5350  ;;  %v5348_v62 = vpop.xlane.xlu0 %5347  ;;  %v18043_v42 = vld [vmem:[#allocation13_spill] sm:$0xff] }
 0xd2b   : > { %10954 = vrcp.f32 %v5351_v8  ;;  %v5676_v60 = vpop.f32.mrb[167].mxu1 }
 0xd2c   : > { %10956 = vrcp.f32 %v5348_v62  ;;  %10441 = vrot.lane.b32.xlu1 %v17911_v11, %s11281_s27  ;;  %v18041_v62 = vld [vmem:[#allocation114_spill] sm:$0xff] }
 0xd2d   : > { %10436 = vrot.lane.b32.xlu0 %v18036_v61, %s11281_s27  ;;  %v15870_v13 = vpop.f32.mrb[168].mxu1  ;;  %v5155_v60 = vsub.f32 %v18041_v62, %v18039_v50  ;;  %v18046_v50 = vld [vmem:[#allocation29_spill] sm:$0xff]  ;;  %10958 = vpow2.f32 %v5254_v4 }
 0xd2e   : > { %18037 = vst [vmem:[#allocation150_spill] sm:$0xff] %v15870_v13  ;;  %v15872_v1 = vpop.xlane.xlu1 %6819  ;;  %v15874_v45 = vpop.xlane.xlu0 %6816  ;;  %v6857_v62 = vsub.f32 %v18046_v50, %v15388_v25 }
 0xd2f   : > { %v5681_v29 = vpop.f32.mrb[169].mxu1 }
 0xd30   : > { %v5156_v29 = vsub.f32 %v18044_v41, %v18043_v42  ;;  %v6858_v41 = vsub.f32 %v18047_v63, %v15388_v25  ;;  %v6927_v10 = vmul.f32 1.442695, %v6857_v62  ;;  %v18049_v25 = vld [vmem:[#allocation189_spill] sm:$0xff] }
 0xd31   : > { %v15876_v18 = vpop.f32.mrb[170].mxu1  ;;  %v6860_v63 = vsub.f32 %v18049_v25, %v15382_v3 }
 0xd32   : > { %18038 = vst [vmem:[#allocation143_spill] sm:$0xff] %v15876_v18  ;;  %v10422_v26 = vpop.permute.xlu1 %10421  ;;  %v10417_v22 = vpop.permute.xlu0 %10416 }
 0xd33   : > { %v5686_v34 = vpop.f32.mrb[171].mxu1  ;;  %v10419_v37 = vunpack.i.h.bf16 %v10417_v22  ;;  %v10418_v11 = vunpack.i.l.bf16 %v10417_v22  ;;  %v10424_v17 = vunpack.i.h.bf16 %v10422_v26  ;;  %v10423_v18 = vunpack.i.l.bf16 %v10422_v26 }
 0xd34   : > { %v18045_v34 = vld [vmem:[#allocation128_spill] sm:$0xff]  ;;  %v6933_v4 = vmul.f32 1.442695, %v6860_v63 }
 0xd35   : > { %v10955_v8 = vpop.eup %10954  ;;  %v15882_v61 = vpop.f32.mrb[172].mxu1  ;;  %v9608_v56 = vpack.c.bf16 %v10419_v37, %v10418_v11  ;;  %v5157_v39 = vsub.f32 %v18045_v34, %v18043_v42  ;;  %v9611_v42 = vpack.c.bf16 %v10424_v17, %v10423_v18 }
 0xd36   : > { %18042 = vst [vmem:[#allocation77_spill] sm:$0xff] %v15882_v61  ;;  %v10957_v13 = vpop.eup %10956  ;;  %v5691_v9 = vpop.f32.mrb[173].mxu1  ;;  %v5256_v61 = vmul.f32 1.442695, %v5155_v60  ;;  %v5465_v26 = vmul.f32 %v10955_v8, %v15704_v19  ;;  %v6929_v19 = vmul.f32 1.442695, %v6858_v41 }
 0xd37   : > { %v5463_v36 = vmul.f32 %v10957_v13, %v15708_v30  ;;  %v5462_v22 = vmul.f32 %v10957_v13, %v15706_v24  ;;  %9609 = vmatpush1.bf16.msra.mxu0 %v9608_v56  ;;  %v5258_v9 = vmul.f32 1.442695, %v5156_v29  ;;  %v5260_v30 = vmul.f32 1.442695, %v5157_v39  ;;  %v18048_v24 = vld [vmem:[#allocation186_spill] sm:$0xff]  ;;  %v15902_v17 = vpop.eup %10958  ;;  %v18053_v29 = vld [vmem:[#allocation51_spill] sm:$0xff] }
 0xd38   : > { %9610 = vmatprep.subr.bf16.mxu0 %v17733_v27  ;;  %v6859_v13 = vsub.f32 %v18048_v24, %v15382_v3  ;;  %v5464_v56 = vmul.f32 %v10955_v8, %v15702_v32  ;;  %10960 = vpow2.f32 %v5256_v61  ;;  %v15919_v61 = vmul.f32 0.35355338, %v15311_v20  ;;  %v18055_v41 = vld [vmem:[#allocation124_spill] sm:$0xff] }
 0xd39   : > { %5722 = vmatprep.mubr.f32.mxu1 %v5463_v36  ;;  %10962 = vpow2.f32 %v5258_v9  ;;  %v15922_v34 = vmul.f32 0.35355338, %v18053_v29  ;;  %v18056_v20 = vld [vmem:[#allocation16_spill] sm:$0xff]  ;;  %v18060_v29 = vld [vmem:[#allocation98_spill] sm:$0xff] }
 0xd3a   : > { %5723 = vmatmul.mubr.f32.gmra.mrb[186].mxu1 %v5462_v22  ;;  %10964 = vpow2.f32 %v5260_v30  ;;  %v6931_v39 = vmul.f32 1.442695, %v6859_v13  ;;  %v15936_v9 = vmul.f32 0.35355338, %v18056_v20 }
 0xd3b   : > { %5727 = vmatprep.mubr.f32.mxu1 %v5465_v26  ;;  %9612 = vmatpush1.bf16.msra.mxu0 %v9611_v42  ;;  %10966 = vpow2.f32 %v6927_v10  ;;  %v6833_v62 = vmax.f32 %v15919_v61, %v15922_v34  ;;  %v15933_v26 = vmul.f32 0.35355338, %v18055_v41 }
 0xd3c   : > { %9613 = vmatprep.subr.bf16.mxu0 %v17733_v27  ;;  %10968 = vpow2.f32 %v6929_v19 }
 0xd3d   : > { %10970 = vpow2.f32 %v6931_v39  ;;  %v6836_v30 = vmax.f32 %v15933_v26, %v15936_v9 }
 0xd3e   : > { %5728 = vmatmul.mubr.f32.gmra.mrb[188].mxu1 %v5464_v56  ;;  %10972 = vpow2.f32 %v6933_v4 }
 0xd42   : > { %v15904_v18 = vpop.eup %10960 }
 0xd43   : > { %v15906_v32 = vpop.eup %10962  ;;  %v5364_v11 = vadd.f32 %v15904_v18, %v15902_v17 }
 0xd44   : > { %v15908_v37 = vpop.eup %10964 }
 0xd45   : > { %v15910_v3 = vpop.eup %10966  ;;  %v5367_v36 = vadd.f32 %v15908_v37, %v15906_v32 }
 0xd46   : > { %18050 = vst [vmem:[#allocation94_spill] sm:$0xff] %v15910_v3  ;;  %v15914_v8 = vpop.eup %10968 }
 0xd47   : > { %18051 = vst [vmem:[#allocation129_spill] sm:$0xff] %v15914_v8  ;;  %v15916_v60 = vpop.eup %10970  ;;  %v7052_v22 = vadd.f32 %v15914_v8, %v15910_v3 }
 0xd48   : > { %18052 = vst [vmem:[#allocation135_spill] sm:$0xff] %v15916_v60  ;;  %v15928_v50 = vpop.eup %10972 }
 0xd49   : > { %18054 = vst [vmem:[#allocation156_spill] sm:$0xff] %v15928_v50  ;;  %v7055_v42 = vadd.f32 %v15928_v50, %v15916_v60  ;;  %v18069_v50 = vld [vmem:[#allocation25_spill] sm:$0xff] }
 0xd4c   : > { %5365 = vadd.xlane.f32.xlu0 %v5364_v11 }
 0xd50   : > { %5368 = vadd.xlane.f32.xlu1 %v5367_v36  ;;  %7053 = vadd.xlane.f32.xlu0 %v7052_v22  ;;  %v18061_v36 = vld [vmem:[#allocation93_spill] sm:$0xff] }
 0xd54   : > { %7056 = vadd.xlane.f32.xlu1 %v7055_v42  ;;  %6834 = vmax.xlane.f32.xlu0 %v6833_v62 }
 0xd58   : > { %6837 = vmax.xlane.f32.xlu1 %v6836_v30 }
 0xd59   : > { %v15942_v24 = vpop.f32.mrb[174].mxu1 }
 0xd5a   : > { %18057 = vst [vmem:[#allocation147_spill] sm:$0xff] %v15942_v24  ;;  %v5696_v13 = vpop.f32.mrb[175].mxu1  ;;  %v18065_v24 = vld [vmem:[#allocation172_spill] sm:$0xff] }
 0xd5d   : > { %v15944_v10 = vpop.f32.mrb[176].mxu1 }
 0xd5e   : > { %18058 = vst [vmem:[#allocation54_spill] sm:$0xff] %v15944_v10  ;;  %v5701_v56 = vpop.f32.mrb[177].mxu1 }
 0xd61   : > { %v15946_v19 = vpop.f32.mrb[178].mxu1 }
 0xd62   : > { %18059 = vst [vmem:[#allocation178_spill] sm:$0xff] %v15946_v19  ;;  %v5706_v39 = vpop.f32.mrb[179].mxu1  ;;  %v18063_v19 = vld [vmem:[#allocation167_spill] sm:$0xff] }
 0xd63   : > { %v5357_v25 = vpop.xlane.xlu1 %5356  ;;  %v5354_v63 = vpop.xlane.xlu0 %5353 }
 0xd64   : > { %10974 = vrcp.f32 %v5357_v25 }
 0xd65   : > { %10976 = vrcp.f32 %v5354_v63 }
 0xd67   : > { %v7045_v4 = vpop.xlane.xlu1 %7044  ;;  %v15948_v11 = vpop.xlane.xlu0 %6822 }
 0xd68   : > { %10978 = vrcp.f32 %v7045_v4  ;;  %v18062_v4 = vld [vmem:[#allocation24_spill] sm:$0xff] }
 0xd69   : > { %10451 = vrot.lane.b32.xlu1 %v18060_v29, %s11281_s27  ;;  %v5158_v10 = vsub.f32 %v18063_v19, %v18062_v4  ;;  %v5159_v60 = vsub.f32 %v18065_v24, %v18062_v4  ;;  %v18070_v24 = vld [vmem:[#allocation3_spill] sm:$0xff] }
 0xd6a   : > { %10446 = vrot.lane.b32.xlu0 %v18061_v36, %s11281_s27 }
 0xd6b   : > { %v15954_v22 = vpop.xlane.xlu1 %6825  ;;  %v10427_v62 = vpop.permute.xlu0 %10426 }
 0xd6c   : > { %v10429_v41 = vunpack.i.h.bf16 %v10427_v62  ;;  %v10428_v20 = vunpack.i.l.bf16 %v10427_v62 }
 0xd6e   : > { %v10975_v42 = vpop.eup %10974  ;;  %v9614_v13 = vpack.c.bf16 %v10429_v41, %v10428_v20  ;;  %v18066_v20 = vld [vmem:[#allocation23_spill] sm:$0xff] }
 0xd6f   : > { %v10977_v30 = vpop.eup %10976  ;;  %v10432_v56 = vpop.permute.xlu1 %10431  ;;  %v5469_v41 = vmul.f32 %v10975_v42, %v15762_v52  ;;  %v5468_v52 = vmul.f32 %v10975_v42, %v15760_v15  ;;  %v18076_v42 = vld [vmem:[#allocation179_spill] sm:$0xff] }
 0xd70   : > { %v10434_v25 = vunpack.i.h.bf16 %v10432_v56  ;;  %v10433_v63 = vunpack.i.l.bf16 %v10432_v56  ;;  %v5467_v39 = vmul.f32 %v10977_v30, %v15758_v53  ;;  %9615 = vmatpush1.bf16.msra.mxu0 %v9614_v13  ;;  %v5466_v29 = vmul.f32 %v10977_v30, %v15756_v6  ;;  %v18067_v56 = vld [vmem:[#allocation188_spill] sm:$0xff]  ;;  %v18068_v6 = vld [vmem:[#allocation14_spill] sm:$0xff] }
 0xd71   : > { %9616 = vmatprep.subr.bf16.mxu0 %v17733_v27  ;;  %v5160_v53 = vsub.f32 %v18067_v56, %v18066_v20  ;;  %v5161_v30 = vsub.f32 %v18068_v6, %v18066_v20  ;;  %v5262_v13 = vmul.f32 1.442695, %v5158_v10  ;;  %v18073_v10 = vld [vmem:[#allocation140_spill] sm:$0xff] }
 0xd72   : > { %v15960_v36 = vpop.eup %10978  ;;  %v9617_v62 = vpack.c.bf16 %v10434_v25, %v10433_v63  ;;  %5732 = vmatprep.mubr.f32.mxu1 %v5467_v39  ;;  %v6861_v25 = vsub.f32 %v18070_v24, %v18069_v50  ;;  %v5264_v63 = vmul.f32 1.442695, %v5159_v60  ;;  %v18071_v39 = vld [vmem:[#allocation4_spill] sm:$0xff] }
 0xd73   : > { %18064 = vst [vmem:[#allocation92_spill] sm:$0xff] %v15960_v36  ;;  %5733 = vmatmul.mubr.f32.gmra.mrb[190].mxu1 %v5466_v29  ;;  %v7172_v19 = vmul.f32 %v15960_v36, %v15776_v44  ;;  %v6862_v4 = vsub.f32 %v18071_v39, %v18069_v50  ;;  %v5266_v29 = vmul.f32 1.442695, %v5160_v53  ;;  %v5268_v44 = vmul.f32 1.442695, %v5161_v30  ;;  %v18075_v50 = vld [vmem:[#allocation37_spill] sm:$0xff] }
 0xd74   : > { %5737 = vmatprep.mubr.f32.mxu1 %v5469_v41  ;;  %9618 = vmatpush1.bf16.msra.mxu0 %v9617_v62  ;;  %10980 = vpow2.f32 %v5262_v13  ;;  %v6935_v20 = vmul.f32 1.442695, %v6861_v25  ;;  %v18072_v41 = vld [vmem:[#allocation192_spill] sm:$0xff]  ;;  %v18074_v62 = vld [vmem:[#allocation154_spill] sm:$0xff]  ;;  %v5164_v53 = vsub.f32 %v18076_v42, %v18075_v50  ;;  %v18077_v30 = vld [vmem:[#allocation181_spill] sm:$0xff] }
 0xd75   : > { %7395 = vmatprep.mubr.f32.mxu0 %v7172_v19  ;;  %9619 = vmatprep.subr.bf16.mxu0 %v17733_v27  ;;  %v6863_v56 = vsub.f32 %v18073_v10, %v18072_v41  ;;  %10982 = vpow2.f32 %v5264_v63  ;;  %v6937_v6 = vmul.f32 1.442695, %v6862_v4  ;;  %v6864_v19 = vsub.f32 %v18074_v62, %v18072_v41  ;;  %v18079_v63 = vld [vmem:[#allocation15_spill] sm:$0xff]  ;;  %v18080_v39 = vld [vmem:[#allocation144_spill] sm:$0xff] }
 0xd76   : > { %10984 = vpow2.f32 %v5266_v29  ;;  %v5165_v13 = vsub.f32 %v18077_v30, %v18075_v50  ;;  %v6865_v4 = vsub.f32 %v18080_v39, %v18079_v63  ;;  %v5274_v29 = vmul.f32 1.442695, %v5164_v53  ;;  %v18086_v50 = vld [vmem:[#allocation132_spill] sm:$0xff]  ;;  %v18087_v53 = vld [vmem:[#allocation137_spill] sm:$0xff] }
 0xd77   : > { %5738 = vmatmul.mubr.f32.gmra.mrb[192].mxu1 %v5468_v52  ;;  %10986 = vpow2.f32 %v5268_v44  ;;  %v6939_v15 = vmul.f32 1.442695, %v6863_v56  ;;  %v6941_v60 = vmul.f32 1.442695, %v6864_v19  ;;  %v16007_v42 = vmul.f32 0.35355338, %v18086_v50 }
 0xd78   : > { %10988 = vpow2.f32 %v6935_v20  ;;  %v18082_v20 = vld [vmem:[#allocation177_spill] sm:$0xff]  ;;  %v5276_v10 = vmul.f32 1.442695, %v5165_v13  ;;  %v6943_v19 = vmul.f32 1.442695, %v6865_v4  ;;  %v18089_v4 = vld [vmem:[#allocation67_spill] sm:$0xff] }
 0xd79   : > { %10990 = vpow2.f32 %v6937_v6  ;;  %v6866_v41 = vsub.f32 %v18082_v20, %v18079_v63  ;;  %v16010_v30 = vmul.f32 0.35355338, %v18087_v53  ;;  %v18090_v20 = vld [vmem:[#allocation18_spill] sm:$0xff]  ;;  %v18093_v53 = vld [vmem:[#allocation141_spill] sm:$0xff] }
 0xd7a   : > { %10992 = vpow2.f32 %v6939_v15 }
 0xd7b   : > { %10994 = vpow2.f32 %v6941_v60  ;;  %v6945_v15 = vmul.f32 1.442695, %v6866_v41  ;;  %v5167_v41 = vsub.f32 %v18090_v20, %v15559_v5 }
 0xd7c   : > { %10996 = vpow2.f32 %v5274_v29  ;;  %v5166_v29 = vsub.f32 %v18089_v4, %v15559_v5  ;;  %v18095_v4 = vld [vmem:[#allocation17_spill] sm:$0xff]  ;;  %v18096_v5 = vld [vmem:[#allocation58_spill] sm:$0xff] }
 0xd7d   : > { %10998 = vpow2.f32 %v5276_v10  ;;  %v6839_v10 = vmax.f32 %v16007_v42, %v16010_v30  ;;  %v5280_v20 = vmul.f32 1.442695, %v5167_v41  ;;  %v18102_v41 = vld [vmem:[#allocation20_spill] sm:$0xff] }
 0xd7e   : > { %v15986_v24 = vpop.eup %10980  ;;  %11000 = vpow2.f32 %v6943_v19 }
 0xd7f   : > { %v15988_v25 = vpop.eup %10982  ;;  %11002 = vpow2.f32 %v6945_v15  ;;  %v6868_v15 = vsub.f32 %v18096_v5, %v15555_v35  ;;  %v18103_v5 = vld [vmem:[#allocation165_spill] sm:$0xff] }
 0xd80   : > { %v15990_v52 = vpop.eup %10984  ;;  %v5370_v6 = vadd.f32 %v15988_v25, %v15986_v24 }
 0xd81   : > { %18078 = vst [vmem:[#allocation85_spill] sm:$0xff] %v15990_v52  ;;  %v15994_v44 = vpop.eup %10986 }
 0xd82   : > { %18081 = vst [vmem:[#allocation101_spill] sm:$0xff] %v15994_v44  ;;  %v15998_v56 = vpop.eup %10988  ;;  %v5373_v13 = vadd.f32 %v15994_v44, %v15990_v52 }
 0xd83   : > { %18083 = vst [vmem:[#allocation72_spill] sm:$0xff] %v15998_v56  ;;  %v16002_v62 = vpop.eup %10990 }
 0xd84   : > { %18084 = vst [vmem:[#allocation110_spill] sm:$0xff] %v16002_v62  ;;  %v16004_v60 = vpop.eup %10992  ;;  %v7058_v63 = vadd.f32 %v16002_v62, %v15998_v56  ;;  %v16028_v56 = vmul.f32 0.35355338, %v18093_v53 }
 0xd85   : > { %18085 = vst [vmem:[#allocation102_spill] sm:$0xff] %v16004_v60  ;;  %v16016_v39 = vpop.eup %10994 }
 0xd86   : > { %18088 = vst [vmem:[#allocation42_spill] sm:$0xff] %v16016_v39  ;;  %18094 = vst [vmem:[#allocation88_spill] sm:$0xff] %v16028_v56  ;;  %v7061_v19 = vadd.f32 %v16016_v39, %v16004_v60  ;;  %v16036_v62 = vpop.eup %10996  ;;  %v6949_v60 = vmul.f32 1.442695, %v6868_v15  ;;  %v18105_v15 = vld [vmem:[#allocation81_spill] sm:$0xff] }
 0xd87   : > { %18097 = vst [vmem:[#allocation182_spill] sm:$0xff] %v16036_v62  ;;  %v16040_v53 = vpop.eup %10998 }
 0xd88   : > { %18098 = vst [vmem:[#allocation52_spill] sm:$0xff] %v16040_v53 }
 0xd89   : > { %5371 = vadd.xlane.f32.xlu0 %v5370_v6  ;;  %v18091_v6 = vld [vmem:[#allocation76_spill] sm:$0xff] }
 0xd8a   : > { %v16025_v50 = vmul.f32 0.35355338, %v18091_v6 }
 0xd8c   : > { %18092 = vst [vmem:[#allocation97_spill] sm:$0xff] %v16025_v50  ;;  %v6842_v6 = vmax.f32 %v16025_v50, %v16028_v56 }
 0xd8d   : > { %5374 = vadd.xlane.f32.xlu1 %v5373_v13  ;;  %7059 = vadd.xlane.f32.xlu0 %v7058_v63  ;;  %v6867_v13 = vsub.f32 %v18095_v4, %v15555_v35  ;;  %v5278_v63 = vmul.f32 1.442695, %v5166_v29  ;;  %v16042_v4 = vpop.eup %11000  ;;  %v5379_v29 = vadd.f32 %v16040_v53, %v16036_v62  ;;  %v18101_v35 = vld [vmem:[#allocation190_spill] sm:$0xff] }
 0xd8e   : > { %18099 = vst [vmem:[#allocation109_spill] sm:$0xff] %v16042_v4 }
 0xd8f   : > { %v6947_v3 = vmul.f32 1.442695, %v6867_v13  ;;  %11004 = vpow2.f32 %v5278_v63  ;;  %v6870_v13 = vsub.f32 %v18103_v5, %v18101_v35 }
 0xd90   : > { %11006 = vpow2.f32 %v5280_v20  ;;  %v16055_v20 = vmul.f32 0.35355338, %v18105_v15 }
 0xd91   : > { %7062 = vadd.xlane.f32.xlu1 %v7061_v19  ;;  %6840 = vmax.xlane.f32.xlu0 %v6839_v10  ;;  %v16046_v10 = vpop.eup %11002  ;;  %v6869_v19 = vsub.f32 %v18102_v41, %v18101_v35  ;;  %11008 = vpow2.f32 %v6947_v3  ;;  %v18109_v3 = vld [vmem:[#allocation28_spill] sm:$0xff]  ;;  %v18110_v35 = vld [vmem:[#allocation27_spill] sm:$0xff] }
 0xd92   : > { %18100 = vst [vmem:[#allocation174_spill] sm:$0xff] %v16046_v10  ;;  %11010 = vpow2.f32 %v6949_v60  ;;  %18106 = vst [vmem:[#allocation62_spill] sm:$0xff] %v16055_v20  ;;  %v7064_v53 = vadd.f32 %v16046_v10, %v16042_v4  ;;  %v6871_v60 = vsub.f32 %v18109_v3, %v15605_v7  ;;  %v6872_v5 = vsub.f32 %v18110_v35, %v15605_v7  ;;  %v18113_v3 = vld [vmem:[#allocation112_spill] sm:$0xff]  ;;  %v18114_v7 = vld [vmem:[#allocation166_spill] sm:$0xff] }
 0xd93   : > { %v6951_v8 = vmul.f32 1.442695, %v6869_v19 }
 0xd94   : > { %v6955_v4 = vmul.f32 1.442695, %v6871_v60 }
 0xd95   : > { %6843 = vmax.xlane.f32.xlu1 %v6842_v6  ;;  %v18107_v6 = vld [vmem:[#allocation145_spill] sm:$0xff] }
 0xd96   : > { %v16058_v39 = vmul.f32 0.35355338, %v18107_v6 }
 0xd98   : > { %18108 = vst [vmem:[#allocation104_spill] sm:$0xff] %v16058_v39  ;;  %v6845_v6 = vmax.f32 %v16055_v20, %v16058_v39  ;;  %v18117_v39 = vld [vmem:[#allocation49_spill] sm:$0xff] }
 0xd99   : > { %5380 = vadd.xlane.f32.xlu1 %v5379_v29  ;;  %v6953_v29 = vmul.f32 1.442695, %v6870_v13  ;;  %v16066_v15 = vpop.eup %11004  ;;  %v6874_v13 = vsub.f32 %v18114_v7, %v15607_v0  ;;  %v6875_v60 = vsub.f32 %v18117_v39, %v15667_v21  ;;  %v18119_v7 = vld [vmem:[#allocation31_spill] sm:$0xff]  ;;  %v18122_v39 = vld [vmem:[#allocation105_spill] sm:$0xff] }
 0xd9a   : > { %v16052_v63 = vpop.f32.mrb[180].mxu1  ;;  %18111 = vst [vmem:[#allocation44_spill] sm:$0xff] %v16066_v15 }
 0xd9b   : > { %18104 = vst [vmem:[#allocation148_spill] sm:$0xff] %v16052_v63  ;;  %v5711_v62 = vpop.f32.mrb[181].mxu1 }
 0xd9c   : > { %v5360_v41 = vpop.xlane.xlu0 %5359  ;;  %v16070_v62 = vpop.eup %11006 }
 0xd9d   : > { %11012 = vrcp.f32 %v5360_v41  ;;  %7065 = vadd.xlane.f32.xlu1 %v7064_v53  ;;  %18112 = vst [vmem:[#allocation123_spill] sm:$0xff] %v16070_v62  ;;  %v6873_v41 = vsub.f32 %v18113_v3, %v15607_v0  ;;  %v6957_v53 = vmul.f32 1.442695, %v6872_v5  ;;  %v16078_v35 = vpop.eup %11008  ;;  %v5382_v10 = vadd.f32 %v16070_v62, %v16066_v15  ;;  %v18118_v0 = vld [vmem:[#allocation91_spill] sm:$0xff]  ;;  %v18120_v62 = vld [vmem:[#allocation21_spill] sm:$0xff] }
 0xd9e   : > { %11014 = vpow2.f32 %v6951_v8  ;;  %18115 = vst [vmem:[#allocation60_spill] sm:$0xff] %v16078_v35  ;;  %v16082_v8 = vpop.eup %11010  ;;  %v6876_v5 = vsub.f32 %v18118_v0, %v15667_v21  ;;  %v16093_v15 = vmul.f32 0.35355338, %v18119_v7  ;;  %v16096_v36 = vmul.f32 0.35355338, %v18120_v62  ;;  %v18123_v0 = vld [vmem:[#allocation164_spill] sm:$0xff] }
 0xd9f   : > { %18116 = vst [vmem:[#allocation56_spill] sm:$0xff] %v16082_v8  ;;  %v6877_v7 = vsub.f32 %v18123_v0, %v15681_v16 }
 0xda0   : > { %v5363_v63 = vpop.xlane.xlu1 %5362  ;;  %v16072_v19 = vpop.xlane.xlu0 %7047  ;;  %18121 = vst [vmem:[#allocation70_spill] sm:$0xff] %v16096_v36 }
 0xda1   : > { %11016 = vrcp.f32 %v5363_v63  ;;  %6846 = vmax.xlane.f32.xlu1 %v6845_v6  ;;  %v6959_v63 = vmul.f32 1.442695, %v6873_v41  ;;  %v6963_v41 = vmul.f32 1.442695, %v6875_v60 }
 0xda2   : > { %11018 = vpow2.f32 %v6953_v29  ;;  %v6961_v29 = vmul.f32 1.442695, %v6874_v13 }
 0xda3   : > { %11020 = vpow2.f32 %v6955_v4  ;;  %v7067_v4 = vadd.f32 %v16082_v8, %v16078_v35  ;;  %v18124_v35 = vld [vmem:[#allocation163_spill] sm:$0xff] }
 0xda4   : > { %v16086_v20 = vpop.xlane.xlu1 %7050  ;;  %v16088_v3 = vpop.xlane.xlu0 %6828  ;;  %11022 = vpow2.f32 %v6957_v53  ;;  %v6878_v60 = vsub.f32 %v18124_v35, %v15681_v16  ;;  %v18127_v16 = vld [vmem:[#allocation57_spill] sm:$0xff] }
 0xda5   : > { %5383 = vadd.xlane.f32.xlu1 %v5382_v10  ;;  %11024 = vpow2.f32 %v6959_v63  ;;  %v18126_v63 = vld [vmem:[#allocation10_spill] sm:$0xff]  ;;  %v6879_v35 = vsub.f32 %v18127_v16, %v15675_v48 }
 0xda6   : > { %11026 = vpow2.f32 %v6961_v29 }
 0xda7   : > { %v11013_v6 = vpop.eup %11012  ;;  %10456 = vrot.lane.b32.xlu0 %v18122_v39, %s11281_s27  ;;  %v6965_v39 = vmul.f32 1.442695, %v6876_v5  ;;  %11028 = vpow2.f32 %v6963_v41 }
 0xda8   : > { %v16102_v10 = vpop.xlane.xlu1 %6831  ;;  %v10437_v53 = vpop.permute.xlu0 %10436  ;;  %v5471_v13 = vmul.f32 %v11013_v6, %v15822_v23  ;;  %v5470_v21 = vmul.f32 %v11013_v6, %v15820_v54  ;;  %v6848_v23 = vmax.f32 %v16093_v15, %v16096_v36  ;;  %v18125_v54 = vld [vmem:[#allocation41_spill] sm:$0xff]  ;;  %v6969_v36 = vmul.f32 1.442695, %v6878_v60 }
 0xda9   : > { %v10439_v62 = vunpack.i.h.bf16 %v10437_v53  ;;  %7068 = vadd.xlane.f32.xlu1 %v7067_v4  ;;  %v16108_v52 = vpop.eup %11014  ;;  %v10438_v8 = vunpack.i.l.bf16 %v10437_v53  ;;  %v5162_v6 = vsub.f32 %v18126_v63, %v18125_v54  ;;  %v6967_v53 = vmul.f32 1.442695, %v6877_v7  ;;  %v18128_v63 = vld [vmem:[#allocation161_spill] sm:$0xff] }
 0xdaa   : > { %5742 = vmatprep.mubr.f32.mxu1 %v5471_v13  ;;  %11030 = vpow2.f32 %v6965_v39  ;;  %v6971_v60 = vmul.f32 1.442695, %v6879_v35 }
 0xdab   : > { %v11017_v44 = vpop.eup %11016  ;;  %5743 = vmatmul.mubr.f32.gmra.mrb[194].mxu1 %v5470_v21  ;;  %v9620_v4 = vpack.c.bf16 %v10439_v62, %v10438_v8  ;;  %v6880_v21 = vsub.f32 %v18128_v63, %v15675_v48  ;;  %v5270_v7 = vmul.f32 1.442695, %v5162_v6  ;;  %v18130_v62 = vld [vmem:[#allocation191_spill] sm:$0xff]  ;;  %v18131_v48 = vld [vmem:[#allocation26_spill] sm:$0xff]  ;;  %11032 = vpow2.f32 %v6967_v53 }
 0xdac   : > { %v16116_v0 = vpop.eup %11018  ;;  %v10442_v56 = vpop.permute.xlu1 %10441  ;;  %v5473_v29 = vmul.f32 %v11017_v44, %v15826_v59  ;;  %v5472_v5 = vmul.f32 %v11017_v44, %v15824_v43  ;;  %v18129_v59 = vld [vmem:[#allocation11_spill] sm:$0xff]  ;;  %v5168_v39 = vsub.f32 %v18131_v48, %v18130_v62  ;;  %11034 = vpow2.f32 %v6969_v36  ;;  %v18134_v6 = vld [vmem:[#allocation22_spill] sm:$0xff]  ;;  %v18135_v36 = vld [vmem:[#allocation32_spill] sm:$0xff] }
 0xdad   : > { %v10444_v13 = vunpack.i.h.bf16 %v10442_v56  ;;  %v10443_v50 = vunpack.i.l.bf16 %v10442_v56  ;;  %6849 = vmax.xlane.f32.xlu1 %v6848_v23  ;;  %9621 = vmatpush1.bf16.msra.mxu0 %v9620_v4  ;;  %v16124_v8 = vpop.eup %11020  ;;  %v5163_v41 = vsub.f32 %v18129_v59, %v18125_v54  ;;  %v7070_v44 = vadd.f32 %v16116_v0, %v16108_v52  ;;  %v18132_v23 = vld [vmem:[#allocation168_spill] sm:$0xff] }
 0xdae   : > { %5747 = vmatprep.mubr.f32.mxu1 %v5473_v29  ;;  %9622 = vmatprep.subr.bf16.mxu0 %v17733_v27  ;;  %v16131_v56 = vpop.eup %11022  ;;  %v6881_v4 = vsub.f32 %v18132_v23, %v15685_v38  ;;  %v6973_v54 = vmul.f32 1.442695, %v6880_v21  ;;  %11036 = vpow2.f32 %v5270_v7  ;;  %v5282_v63 = vmul.f32 1.442695, %v5168_v39  ;;  %v18136_v59 = vld [vmem:[#allocation48_spill] sm:$0xff]  ;;  %v18138_v7 = vld [vmem:[#allocation99_spill] sm:$0xff] }
 0xdaf   : > { %v9623_v43 = vpack.c.bf16 %v10444_v13, %v10443_v50  ;;  %5748 = vmatmul.mubr.f32.gmra.mrb[196].mxu1 %v5472_v5  ;;  %v18133_v50 = vld [vmem:[#allocation169_spill] sm:$0xff]  ;;  %v16139_v5 = vpop.eup %11024  ;;  %v5272_v16 = vmul.f32 1.442695, %v5163_v41  ;;  %v5169_v13 = vsub.f32 %v18134_v6, %v18130_v62  ;;  %v7073_v35 = vadd.f32 %v16131_v56, %v16124_v8  ;;  %v18137_v62 = vld [vmem:[#allocation55_spill] sm:$0xff]  ;;  %v18139_v6 = vld [vmem:[#allocation68_spill] sm:$0xff] }
 0xdb0   : > { %v6882_v29 = vsub.f32 %v18133_v50, %v15685_v38  ;;  %v16146_v53 = vpop.eup %11026  ;;  %v5170_v21 = vsub.f32 %v18135_v36, %v15609_v49  ;;  %11038 = vpow2.f32 %v6971_v60  ;;  %v6975_v38 = vmul.f32 1.442695, %v6881_v4 }
 0xdb1   : > { %7071 = vadd.xlane.f32.xlu1 %v7070_v44  ;;  %9624 = vmatpush1.bf16.msra.mxu0 %v9623_v43  ;;  %v6885_v41 = vsub.f32 %v18136_v59, %v15738_v14  ;;  %v16152_v43 = vpop.eup %11028  ;;  %11040 = vpow2.f32 %v6973_v54  ;;  %v6886_v48 = vsub.f32 %v18137_v62, %v15738_v14  ;;  %v5284_v23 = vmul.f32 1.442695, %v5169_v13 }
 0xdb2   : > { %9625 = vmatprep.subr.bf16.mxu0 %v17733_v27  ;;  %v6977_v44 = vmul.f32 1.442695, %v6882_v29  ;;  %11042 = vpow2.f32 %v5272_v16  ;;  %v5171_v39 = vsub.f32 %v18138_v7, %v15609_v49  ;;  %v7076_v60 = vadd.f32 %v16146_v53, %v16139_v5 }
 0xdb3   : > { %11044 = vpow2.f32 %v5282_v63  ;;  %v5286_v50 = vmul.f32 1.442695, %v5170_v21  ;;  %v6983_v54 = vmul.f32 1.442695, %v6885_v41  ;;  %v6889_v14 = vsub.f32 %v15656_v28, %v15794_v40  ;;  %v18141_v63 = vld [vmem:[#allocation173_spill] sm:$0xff] }
 0xdb4   : > { %v16160_v4 = vpop.eup %11030  ;;  %11046 = vpow2.f32 %v6975_v38  ;;  %v6985_v29 = vmul.f32 1.442695, %v6886_v48  ;;  %v6890_v49 = vsub.f32 %v15659_v12, %v15794_v40  ;;  %v5288_v13 = vmul.f32 1.442695, %v5171_v39  ;;  %v18142_v41 = vld [vmem:[#allocation149_spill] sm:$0xff] }
 0xdb5   : > { %7074 = vadd.xlane.f32.xlu1 %v7073_v35  ;;  %v18140_v35 = vld [vmem:[#allocation171_spill] sm:$0xff]  ;;  %11048 = vpow2.f32 %v6977_v44  ;;  %v16168_v16 = vpop.eup %11032  ;;  %v5173_v21 = vsub.f32 %v18141_v63, %v18139_v6  ;;  %v7079_v38 = vadd.f32 %v16160_v4, %v16152_v43  ;;  %v5174_v44 = vsub.f32 %v18142_v41, %v15669_v47 }
 0xdb6   : > { %v5172_v36 = vsub.f32 %v18140_v35, %v18139_v6  ;;  %11050 = vpow2.f32 %v5284_v23  ;;  %v16174_v59 = vpop.eup %11034  ;;  %v6991_v62 = vmul.f32 1.442695, %v6889_v14  ;;  %v6893_v12 = vsub.f32 %v15719_v46, %v15872_v1 }
 0xdb7   : > { %11052 = vpow2.f32 %v5286_v50  ;;  %v6993_v48 = vmul.f32 1.442695, %v6890_v49  ;;  %v6894_v23 = vsub.f32 %v15722_v31, %v15872_v1  ;;  %v5292_v39 = vmul.f32 1.442695, %v5173_v21 }
 0xdb8   : > { %v5290_v28 = vmul.f32 1.442695, %v5172_v36  ;;  %11054 = vpow2.f32 %v6983_v54  ;;  %v16180_v40 = vpop.eup %11036  ;;  %v7082_v6 = vadd.f32 %v16174_v59, %v16168_v16  ;;  %v5294_v46 = vmul.f32 1.442695, %v5174_v44  ;;  %v18144_v36 = vld [vmem:[#allocation63_spill] sm:$0xff]  ;;  %v18145_v54 = vld [vmem:[#allocation158_spill] sm:$0xff] }
 0xdb9   : > { %7077 = vadd.xlane.f32.xlu1 %v7076_v60  ;;  %11056 = vpow2.f32 %v6985_v29  ;;  %v18143_v60 = vld [vmem:[#allocation47_spill] sm:$0xff]  ;;  %v5176_v14 = vsub.f32 %v18145_v54, %v18144_v36  ;;  %v6999_v31 = vmul.f32 1.442695, %v6893_v12  ;;  %v6897_v1 = vsub.f32 %v15781_v58, %v15954_v22 }
 0xdba   : > { %v16184_v7 = vpop.eup %11038  ;;  %11058 = vpow2.f32 %v5288_v13  ;;  %v5175_v50 = vsub.f32 %v18143_v60, %v15669_v47  ;;  %v7001_v47 = vmul.f32 1.442695, %v6894_v23  ;;  %v6898_v13 = vsub.f32 %v15784_v57, %v15954_v22  ;;  %v18147_v58 = vld [vmem:[#allocation131_spill] sm:$0xff] }
 0xdbb   : > { %v16190_v35 = vpop.eup %11040  ;;  %11060 = vpow2.f32 %v5290_v28  ;;  %v7007_v23 = vmul.f32 1.442695, %v6897_v1 }
 0xdbc   : > { %v16194_v29 = vpop.eup %11042  ;;  %11062 = vpow2.f32 %v6991_v62  ;;  %v5296_v21 = vmul.f32 1.442695, %v5175_v50  ;;  %v7085_v41 = vadd.f32 %v16190_v35, %v16184_v7  ;;  %v18148_v62 = vld [vmem:[#allocation59_spill] sm:$0xff]  ;;  %v7009_v50 = vmul.f32 1.442695, %v6898_v13 }
 0xdbd   : > { %7080 = vadd.xlane.f32.xlu1 %v7079_v38  ;;  %v16198_v49 = vpop.eup %11044  ;;  %11064 = vpow2.f32 %v6993_v48  ;;  %v18146_v38 = vld [vmem:[#allocation134_spill] sm:$0xff]  ;;  %v5178_v12 = vsub.f32 %v18148_v62, %v18147_v58  ;;  %v5298_v48 = vmul.f32 1.442695, %v5176_v14  ;;  %v5376_v57 = vadd.f32 %v16194_v29, %v16180_v40 }
 0xdbe   : > { %v16202_v63 = vpop.eup %11046  ;;  %11066 = vpow2.f32 %v5292_v39  ;;  %v5177_v28 = vsub.f32 %v18146_v38, %v18144_v36  ;;  %v6901_v39 = vsub.f32 %v15851_v51, %v16102_v10  ;;  %v18150_v36 = vld [vmem:[#allocation159_spill] sm:$0xff]  ;;  %v18154_v62 = vld [vmem:[#allocation122_spill] sm:$0xff] }
 0xdbf   : > { %v16208_v44 = vpop.eup %11048  ;;  %11068 = vpow2.f32 %v5294_v46  ;;  %v5179_v54 = vsub.f32 %v18150_v36, %v18147_v58  ;;  %v5302_v1 = vmul.f32 1.442695, %v5178_v12  ;;  %v5181_v12 = vsub.f32 %v18154_v62, %v15734_v2  ;;  %v18157_v36 = vld [vmem:[#allocation66_spill] sm:$0xff] }
 0xdc0   : > { %v16214_v22 = vpop.eup %11050  ;;  %11070 = vpow2.f32 %v6999_v31  ;;  %v5300_v14 = vmul.f32 1.442695, %v5177_v28  ;;  %v7088_v31 = vadd.f32 %v16208_v44, %v16202_v63 }
 0xdc1   : > { %7083 = vadd.xlane.f32.xlu1 %v7082_v6  ;;  %v16218_v60 = vpop.eup %11052  ;;  %11072 = vpow2.f32 %v7001_v47  ;;  %v6902_v6 = vsub.f32 %v15854_v33, %v16102_v10  ;;  %v5385_v47 = vadd.f32 %v16214_v22, %v16198_v49  ;;  %v7015_v33 = vmul.f32 1.442695, %v6901_v39 }
 0xdc2   : > { %v16222_v46 = vpop.eup %11054  ;;  %11074 = vpow2.f32 %v5296_v21  ;;  %v18152_v21 = vld [vmem:[#allocation176_spill] sm:$0xff]  ;;  %v5304_v58 = vmul.f32 1.442695, %v5179_v54  ;;  %v18158_v54 = vld [vmem:[#allocation39_spill] sm:$0xff] }
 0xdc3   : > { %18149 = vst [vmem:[#allocation64_spill] sm:$0xff] %v16222_v46  ;;  %v16228_v51 = vpop.eup %11056  ;;  %11076 = vpow2.f32 %v5298_v48  ;;  %v5180_v38 = vsub.f32 %v18152_v21, %v15734_v2  ;;  %v7017_v28 = vmul.f32 1.442695, %v6902_v6 }
 0xdc4   : > { %18151 = vst [vmem:[#allocation71_spill] sm:$0xff] %v16228_v51  ;;  %v16232_v13 = vpop.eup %11058  ;;  %11078 = vpow2.f32 %v7007_v23  ;;  %v7094_v48 = vadd.f32 %v16228_v51, %v16222_v46 }
 0xdc5   : > { %7086 = vadd.xlane.f32.xlu1 %v7085_v41  ;;  %v16234_v10 = vpop.eup %11060  ;;  %11080 = vpow2.f32 %v7009_v50  ;;  %v5388_v23 = vadd.f32 %v16232_v13, %v16218_v60  ;;  %v5306_v6 = vmul.f32 1.442695, %v5180_v38 }
 0xdc6   : > { %5377 = vadd.xlane.f32.xlu0 %v5376_v57  ;;  %v16238_v41 = vpop.eup %11062  ;;  %11082 = vpow2.f32 %v5300_v14  ;;  %v6883_v14 = vsub.f32 %v18158_v54, %v18157_v36 }
 0xdc7   : > { %18153 = vst [vmem:[#allocation153_spill] sm:$0xff] %v16238_v41  ;;  %v16244_v57 = vpop.eup %11064  ;;  %11084 = vpow2.f32 %v5302_v1  ;;  %v18160_v1 = vld [vmem:[#allocation126_spill] sm:$0xff] }
 0xdc8   : > { %18155 = vst [vmem:[#allocation69_spill] sm:$0xff] %v16244_v57  ;;  %v16248_v39 = vpop.eup %11066  ;;  %11086 = vpow2.f32 %v7015_v33  ;;  %v7100_v21 = vadd.f32 %v16244_v57, %v16238_v41 }
 0xdc9   : > { %7089 = vadd.xlane.f32.xlu1 %v7088_v31  ;;  %v16250_v50 = vpop.eup %11068  ;;  %11088 = vpow2.f32 %v7017_v28  ;;  %v5308_v31 = vmul.f32 1.442695, %v5181_v12  ;;  %v5391_v38 = vadd.f32 %v16248_v39, %v16234_v10  ;;  %v18163_v28 = vld [vmem:[#allocation19_spill] sm:$0xff] }
 0xdca   : > { %5386 = vadd.xlane.f32.xlu0 %v5385_v47  ;;  %18156 = vst [vmem:[#allocation115_spill] sm:$0xff] %v16250_v50  ;;  %v16254_v2 = vpop.eup %11070  ;;  %11090 = vpow2.f32 %v5304_v58  ;;  %v6884_v47 = vsub.f32 %v18160_v1, %v18157_v36  ;;  %v6979_v58 = vmul.f32 1.442695, %v6883_v14  ;;  %v18165_v1 = vld [vmem:[#allocation106_spill] sm:$0xff] }
 0xdcb   : > { %18159 = vst [vmem:[#allocation90_spill] sm:$0xff] %v16254_v2  ;;  %v16260_v33 = vpop.eup %11072  ;;  %11092 = vpow2.f32 %v5306_v6 }
 0xdcc   : > { %18161 = vst [vmem:[#allocation125_spill] sm:$0xff] %v16260_v33  ;;  %v16264_v62 = vpop.eup %11074  ;;  %11094 = vpow2.f32 %v5308_v31  ;;  %v6981_v36 = vmul.f32 1.442695, %v6884_v47  ;;  %v7106_v57 = vadd.f32 %v16260_v33, %v16254_v2 }
 0xdcd   : > { %7095 = vadd.xlane.f32.xlu1 %v7094_v48  ;;  %v18162_v48 = vld [vmem:[#allocation78_spill] sm:$0xff]  ;;  %v16268_v54 = vpop.eup %11076  ;;  %11096 = vpow2.f32 %v6979_v58 }
 0xdce   : > { %5389 = vadd.xlane.f32.xlu0 %v5388_v23  ;;  %v6887_v23 = vsub.f32 %v18163_v28, %v18162_v48  ;;  %v16270_v12 = vpop.eup %11078  ;;  %v6888_v41 = vsub.f32 %v18165_v1, %v18162_v48  ;;  %11098 = vpow2.f32 %v6981_v36  ;;  %v18174_v36 = vld [vmem:[#allocation33_spill] sm:$0xff] }
 0xdcf   : > { %18164 = vst [vmem:[#allocation75_spill] sm:$0xff] %v16270_v12  ;;  %v16276_v46 = vpop.eup %11080 }
 0xdd0   : > { %18166 = vst [vmem:[#allocation113_spill] sm:$0xff] %v16276_v46  ;;  %v16282_v6 = vpop.eup %11082  ;;  %v6987_v14 = vmul.f32 1.442695, %v6887_v23  ;;  %v6989_v1 = vmul.f32 1.442695, %v6888_v41  ;;  %v7112_v33 = vadd.f32 %v16276_v46, %v16270_v12 }
 0xdd1   : > { %7101 = vadd.xlane.f32.xlu1 %v7100_v21  ;;  %v5394_v21 = vadd.f32 %v16264_v62, %v16250_v50  ;;  %v16286_v28 = vpop.eup %11084 }
 0xdd2   : > { %5392 = vadd.xlane.f32.xlu0 %v5391_v38  ;;  %v18168_v38 = vld [vmem:[#allocation79_spill] sm:$0xff]  ;;  %18169 = vst [vmem:[#allocation162_spill] sm:$0xff] %v16286_v28  ;;  %v16288_v48 = vpop.eup %11086  ;;  %11100 = vpow2.f32 %v6987_v14 }
 0xdd3   : > { %v6891_v31 = vsub.f32 %v18168_v38, %v15874_v45  ;;  %18170 = vst [vmem:[#allocation2_spill] sm:$0xff] %v16288_v48  ;;  %v16294_v23 = vpop.eup %11088 }
 0xdd4   : > { %v16278_v51 = vpop.f32.mrb[182].mxu1  ;;  %18172 = vst [vmem:[#allocation8_spill] sm:$0xff] %v16294_v23  ;;  %v16300_v38 = vpop.eup %11090  ;;  %v7118_v12 = vadd.f32 %v16294_v23, %v16288_v48 }
 0xdd5   : > { %18167 = vst [vmem:[#allocation152_spill] sm:$0xff] %v16278_v51  ;;  %v5716_v47 = vpop.f32.mrb[183].mxu1  ;;  %7107 = vadd.xlane.f32.xlu1 %v7106_v57  ;;  %v18171_v51 = vld [vmem:[#allocation138_spill] sm:$0xff]  ;;  %v5397_v57 = vadd.f32 %v16282_v6, %v16268_v54  ;;  %v6995_v58 = vmul.f32 1.442695, %v6891_v31  ;;  %v16308_v46 = vpop.eup %11092  ;;  %v5400_v14 = vadd.f32 %v16300_v38, %v16286_v28 }
 0xdd6   : > { %5395 = vadd.xlane.f32.xlu0 %v5394_v21  ;;  %v6892_v2 = vsub.f32 %v18171_v51, %v15874_v45  ;;  %v6895_v45 = vsub.f32 %v18174_v36, %v15948_v11  ;;  %v18175_v47 = vld [vmem:[#allocation142_spill] sm:$0xff]  ;;  %18176 = vst [vmem:[#allocation36_spill] sm:$0xff] %v16308_v46 }
 0xdd8   : > { %v16296_v50 = vpop.f32.mrb[184].mxu1  ;;  %v6997_v51 = vmul.f32 1.442695, %v6892_v2  ;;  %v6899_v2 = vsub.f32 %v15837_v55, %v16088_v3 }
 0xdd9   : > { %18173 = vst [vmem:[#allocation43_spill] sm:$0xff] %v16296_v50  ;;  %v5721_v21 = vpop.f32.mrb[185].mxu1  ;;  %7113 = vadd.xlane.f32.xlu1 %v7112_v33  ;;  %v5366_v41 = vpop.xlane.xlu0 %5365  ;;  %v6896_v50 = vsub.f32 %v18175_v47, %v15948_v11 }
 0xdda   : > { %11102 = vrcp.f32 %v5366_v41  ;;  %5398 = vadd.xlane.f32.xlu0 %v5397_v57  ;;  %v16312_v33 = vpop.eup %11094  ;;  %v18178_v57 = vld [vmem:[#allocation83_spill] sm:$0xff]  ;;  %v7011_v48 = vmul.f32 1.442695, %v6899_v2 }
 0xddb   : > { %11104 = vpow2.f32 %v6989_v1  ;;  %18177 = vst [vmem:[#allocation96_spill] sm:$0xff] %v16312_v33  ;;  %v7003_v1 = vmul.f32 1.442695, %v6895_v45  ;;  %v7005_v11 = vmul.f32 1.442695, %v6896_v50  ;;  %v6900_v41 = vsub.f32 %v18178_v57, %v16088_v3  ;;  %v16320_v36 = vpop.eup %11096 }
 0xddc   : > { %11106 = vpow2.f32 %v6995_v58  ;;  %v5403_v58 = vadd.f32 %v16312_v33, %v16308_v46  ;;  %v16324_v47 = vpop.eup %11098 }
 0xddd   : > { %v5369_v31 = vpop.xlane.xlu1 %5368  ;;  %7119 = vadd.xlane.f32.xlu1 %v7118_v12  ;;  %v16314_v21 = vpop.xlane.xlu0 %7053  ;;  %v7013_v3 = vmul.f32 1.442695, %v6900_v41  ;;  %v7091_v57 = vadd.f32 %v16324_v47, %v16320_v36 }
 0xdde   : > { %11108 = vrcp.f32 %v5369_v31  ;;  %5401 = vadd.xlane.f32.xlu0 %v5400_v14  ;;  %v16330_v50 = vpop.eup %11100 }
 0xddf   : > { %11110 = vpow2.f32 %v6997_v51 }
 0xde0   : > { %11112 = vpow2.f32 %v7003_v1 }
 0xde1   : > { %v16326_v12 = vpop.xlane.xlu1 %7056  ;;  %v6835_v45 = vpop.xlane.xlu0 %6834  ;;  %11114 = vpow2.f32 %v7005_v11 }
 0xde2   : > { %v6903_v55 = vsub.f32 %v15919_v61, %v6835_v45  ;;  %v6904_v51 = vsub.f32 %v15922_v34, %v6835_v45  ;;  %5404 = vadd.xlane.f32.xlu0 %v5403_v58  ;;  %11116 = vpow2.f32 %v7011_v48 }
 0xde3   : > { %11118 = vpow2.f32 %v7013_v3 }
 0xde4   : > { %v11103_v14 = vpop.eup %11102  ;;  %v7019_v31 = vmul.f32 1.442695, %v6903_v55  ;;  %v7021_v46 = vmul.f32 1.442695, %v6904_v51 }
 0xde5   : > { %v16334_v23 = vpop.eup %11104  ;;  %v6838_v33 = vpop.xlane.xlu1 %6837  ;;  %v5475_v2 = vmul.f32 %v11103_v14, %v15904_v18  ;;  %v5474_v61 = vmul.f32 %v11103_v14, %v15902_v17 }
 0xde6   : > { %v10447_v1 = vpop.permute.xlu0 %10446  ;;  %v6905_v34 = vsub.f32 %v15933_v26, %v6838_v33  ;;  %v6906_v11 = vsub.f32 %v15936_v9, %v6838_v33  ;;  %7092 = vadd.xlane.f32.xlu0 %v7091_v57  ;;  %v16340_v58 = vpop.eup %11106  ;;  %11120 = vpow2.f32 %v7019_v31  ;;  %v7097_v17 = vadd.f32 %v16334_v23, %v16330_v50 }
 0xde7   : > { %v10449_v41 = vunpack.i.h.bf16 %v10447_v1  ;;  %v10448_v45 = vunpack.i.l.bf16 %v10447_v1  ;;  %5752 = vmatprep.mubr.f32.mxu1 %v5475_v2  ;;  %11122 = vpow2.f32 %v7021_v46 }
 0xde8   : > { %v11109_v55 = vpop.eup %11108  ;;  %v7023_v51 = vmul.f32 1.442695, %v6905_v34  ;;  %v7025_v28 = vmul.f32 1.442695, %v6906_v11  ;;  %5753 = vmatmul.mubr.f32.gmra.mrb[198].mxu1 %v5474_v61 }
 0xde9   : > { %v16344_v18 = vpop.eup %11110  ;;  %v9626_v26 = vpack.c.bf16 %v10449_v41, %v10448_v45  ;;  %v10452_v9 = vpop.permute.xlu1 %10451  ;;  %v5477_v48 = vmul.f32 %v11109_v55, %v15908_v37  ;;  %v5476_v33 = vmul.f32 %v11109_v55, %v15906_v32 }
 0xdea   : > { %11124 = vpow2.f32 %v7023_v51  ;;  %v10454_v3 = vunpack.i.h.bf16 %v10452_v9  ;;  %v10453_v14 = vunpack.i.l.bf16 %v10452_v9  ;;  %7098 = vadd.xlane.f32.xlu0 %v7097_v17  ;;  %v16348_v31 = vpop.eup %11112  ;;  %v7103_v46 = vadd.f32 %v16344_v18, %v16340_v58  ;;  %v8300_v9 = vld [vmem:[%s16802_s5 + $0x10] sm:$0xff] }
 0xdeb   : > { %11126 = vpow2.f32 %v7025_v28  ;;  %9627 = vmatpush1.bf16.msra.mxu0 %v9626_v26  ;;  %5757 = vmatprep.mubr.f32.mxu1 %v5477_v48  ;;  %v16353_v1 = vpop.eup %11114 }
 0xdec   : > { %v9629_v57 = vpack.c.bf16 %v10454_v3, %v10453_v14  ;;  %5758 = vmatmul.mubr.f32.gmra.mrb[200].mxu1 %v5476_v33  ;;  %9628 = vmatprep.subr.bf16.mxu0 %v17733_v27  ;;  %v16355_v32 = vpop.eup %11116  ;;  %v7109_v37 = vadd.f32 %v16353_v1, %v16348_v31 }
 0xded   : > { %v16360_v28 = vpop.eup %11118  ;;  %9142 = vmatprep.subr.mxu1 %v8300_v9 }
 0xdee   : > { %7104 = vadd.xlane.f32.xlu0 %v7103_v46  ;;  %v7115_v11 = vadd.f32 %v16360_v28, %v16355_v32  ;;  %9143 = vmatpush3.msra.mxu1 %v8300_v9 }
 0xdef   : > { %9630 = vmatpush1.bf16.msra.mxu0 %v9629_v57 }
 0xdf0   : > { %9631 = vmatprep.subr.bf16.mxu0 %v17733_v27  ;;  %v16362_v2 = vpop.eup %11120 }
 0xdf1   : > { %18179 = vst [vmem:[#allocation119_spill] sm:$0xff] %v16362_v2  ;;  %v16364_v61 = vpop.eup %11122 }
 0xdf2   : > { %7110 = vadd.xlane.f32.xlu0 %v7109_v37  ;;  %v7121_v27 = vadd.f32 %v16364_v61, %v16362_v2 }
 0xdf4   : > { %v16366_v34 = vpop.eup %11124 }
 0xdf5   : > { %18180 = vst [vmem:[#allocation53_spill] sm:$0xff] %v16366_v34  ;;  %v16370_v41 = vpop.eup %11126 }
 0xdf6   : > { %18181 = vst [vmem:[#allocation127_spill] sm:$0xff] %v16370_v41  ;;  %7116 = vadd.xlane.f32.xlu0 %v7115_v11  ;;  %v7124_v45 = vadd.f32 %v16370_v41, %v16366_v34  ;;  %v18183_v34 = vld [vmem:[#allocation88_spill] sm:$0xff] }
 0xdf8   : > { %7125 = vadd.xlane.f32.xlu1 %v7124_v45 }
 0xdfa   : > { %7122 = vadd.xlane.f32.xlu0 %v7121_v27 }
 0xe0d   : > { %v16376_v55 = vpop.f32.mrb[186].mxu1 }
 0xe0e   : > { %v5726_v51 = vpop.f32.mrb[187].mxu1 }
 0xe11   : > { %v16378_v17 = vpop.f32.mrb[188].mxu1 }
 0xe12   : > { %v5731_v26 = vpop.f32.mrb[189].mxu1 }
 0xe16   : > { %v5372_v48 = vpop.xlane.xlu0 %5371 }
 0xe17   : > { %11128 = vrcp.f32 %v5372_v48 }
 0xe1a   : > { %v5375_v33 = vpop.xlane.xlu1 %5374  ;;  %v7060_v3 = vpop.xlane.xlu0 %7059 }
 0xe1b   : > { %11130 = vrcp.f32 %v5375_v33  ;;  %v18182_v33 = vld [vmem:[#allocation97_spill] sm:$0xff] }
 0xe1c   : > { %11132 = vrcp.f32 %v16072_v19 }
 0xe1d   : > { %11134 = vrcp.f32 %v16086_v20 }
 0xe1e   : > { %v7063_v14 = vpop.xlane.xlu1 %7062  ;;  %v6841_v57 = vpop.xlane.xlu0 %6840 }
 0xe1f   : > { %v6907_v46 = vsub.f32 %v16007_v42, %v6841_v57  ;;  %v6908_v37 = vsub.f32 %v16010_v30, %v6841_v57 }
 0xe21   : > { %v11129_v11 = vpop.eup %11128  ;;  %v7027_v45 = vmul.f32 1.442695, %v6907_v46  ;;  %v7029_v27 = vmul.f32 1.442695, %v6908_v37 }
 0xe22   : > { %v6844_v51 = vpop.xlane.xlu1 %6843  ;;  %v10457_v26 = vpop.permute.xlu0 %10456  ;;  %v5479_v9 = vmul.f32 %v11129_v11, %v15988_v25  ;;  %v5478_v48 = vmul.f32 %v11129_v11, %v15986_v24  ;;  %v18184_v25 = vld [vmem:[#allocation101_spill] sm:$0xff] }
 0xe23   : > { %11136 = vpow2.f32 %v7027_v45  ;;  %v6909_v19 = vsub.f32 %v18182_v33, %v6844_v51  ;;  %v6910_v41 = vsub.f32 %v18183_v34, %v6844_v51  ;;  %v10459_v2 = vunpack.i.h.bf16 %v10457_v26  ;;  %v18185_v11 = vld [vmem:[#allocation85_spill] sm:$0xff]  ;;  %v18186_v34 = vld [vmem:[#allocation34_spill] sm:$0xff] }
 0xe24   : > { %11138 = vpow2.f32 %v7029_v27  ;;  %v10458_v42 = vunpack.i.l.bf16 %v10457_v26  ;;  %5762 = vmatprep.mubr.f32.mxu1 %v5479_v9  ;;  %v18187_v27 = vld [vmem:[#allocation92_spill] sm:$0xff] }
 0xe25   : > { %v11131_v30 = vpop.eup %11130  ;;  %11140 = vrcp.f32 %v16314_v21  ;;  %v7031_v20 = vmul.f32 1.442695, %v6909_v19  ;;  %v7033_v57 = vmul.f32 1.442695, %v6910_v41  ;;  %5763 = vmatmul.mubr.f32.gmra.mrb[202].mxu1 %v5478_v48  ;;  %v7171_v51 = vmul.f32 %v18187_v27, %v18186_v34  ;;  %v18188_v41 = vld [vmem:[#allocation139_spill] sm:$0xff]  ;;  %v18189_v48 = vld [vmem:[#allocation118_spill] sm:$0xff] }
 0xe26   : > { %v9632_v46 = vpack.c.bf16 %v10459_v2, %v10458_v42  ;;  %v16392_v37 = vpop.xlane.xlu1 %5380  ;;  %v5481_v24 = vmul.f32 %v11131_v30, %v18184_v25  ;;  %v5480_v45 = vmul.f32 %v11131_v30, %v18185_v11  ;;  %v11133_v33 = vpop.eup %11132  ;;  %v18191_v25 = vld [vmem:[#allocation62_spill] sm:$0xff]  ;;  %v18193_v27 = vld [vmem:[#allocation73_spill] sm:$0xff] }
 0xe27   : > { %11142 = vpow2.f32 %v7031_v20  ;;  %v7174_v2 = vmul.f32 %v11133_v33, %v18188_v41  ;;  %v11135_v26 = vpop.eup %11134  ;;  %v7173_v19 = vmul.f32 %v11133_v33, %v18189_v48  ;;  %v18190_v20 = vld [vmem:[#allocation111_spill] sm:$0xff]  ;;  %v18195_v48 = vld [vmem:[#allocation129_spill] sm:$0xff] }
 0xe28   : > { %11144 = vpow2.f32 %v7033_v57  ;;  %9633 = vmatpush1.bf16.msra.mxu0 %v9632_v46  ;;  %5767 = vmatprep.mubr.f32.mxu1 %v5481_v24  ;;  %v7176_v57 = vmul.f32 %v11135_v26, %v18190_v20  ;;  %v18192_v24 = vld [vmem:[#allocation104_spill] sm:$0xff]  ;;  %v7175_v33 = vmul.f32 %v11135_v26, %v18193_v27 }
 0xe29   : > { %11146 = vrcp.f32 %v16326_v12  ;;  %5768 = vmatmul.mubr.f32.gmra.mrb[204].mxu1 %v5480_v45 }
 0xe2a   : > { %v7066_v21 = vpop.xlane.xlu1 %7065  ;;  %11148 = vrcp.f32 %v7060_v3 }
 0xe2b   : > { %7396 = vmatmul.mubr.f32.vlgmr.msra.gmra.mrb[30].mxu0 %v7171_v51  ;;  %11150 = vrcp.f32 %v7063_v14 }
 0xe2c   : > { %7400 = vmatprep.mubr.f32.mxu0 %v7174_v2 }
 0xe2d   : > { %v16400_v9 = vpop.eup %11136 }
 0xe2e   : > { %v16403_v42 = vpop.eup %11138  ;;  %v6847_v30 = vpop.xlane.xlu1 %6846 }
 0xe2f   : > { %v11141_v46 = vpop.eup %11140  ;;  %v6911_v12 = vsub.f32 %v18191_v25, %v6847_v30  ;;  %v6912_v11 = vsub.f32 %v18192_v24, %v6847_v30  ;;  %7401 = vmatmul.mubr.f32.gmra.mrb[32].mxu0 %v7173_v19  ;;  %v7127_v45 = vadd.f32 %v16403_v42, %v16400_v9  ;;  %v18197_v25 = vld [vmem:[#allocation156_spill] sm:$0xff] }
 0xe30   : > { %7405 = vmatprep.mubr.f32.mxu0 %v7176_v57  ;;  %v7178_v20 = vmul.f32 %v11141_v46, %v18195_v48  ;;  %v18196_v57 = vld [vmem:[#allocation94_spill] sm:$0xff] }
 0xe31   : > { %v16410_v34 = vpop.eup %11142  ;;  %v7035_v3 = vmul.f32 1.442695, %v6911_v12  ;;  %v7037_v51 = vmul.f32 1.442695, %v6912_v11  ;;  %7128 = vadd.xlane.f32.xlu0 %v7127_v45  ;;  %v7177_v26 = vmul.f32 %v11141_v46, %v18196_v57  ;;  %v18198_v11 = vld [vmem:[#allocation135_spill] sm:$0xff]  ;;  %v18201_v46 = vld [vmem:[#allocation72_spill] sm:$0xff] }
 0xe32   : > { %v16413_v41 = vpop.eup %11144  ;;  %v16415_v2 = vpop.xlane.xlu1 %5383 }
 0xe33   : > { %18194 = vst [vmem:[#allocation82_spill] sm:$0xff] %v16413_v41  ;;  %v11147_v30 = vpop.eup %11146  ;;  %11152 = vpow2.f32 %v7035_v3  ;;  %7406 = vmatmul.mubr.f32.gmra.mrb[34].mxu0 %v7175_v33  ;;  %v7130_v19 = vadd.f32 %v16413_v41, %v16410_v34  ;;  %v18199_v33 = vld [vmem:[#allocation110_spill] sm:$0xff] }
 0xe34   : > { %11154 = vpow2.f32 %v7037_v51  ;;  %7410 = vmatprep.mubr.f32.mxu0 %v7178_v20  ;;  %v7180_v12 = vmul.f32 %v11147_v30, %v18197_v25  ;;  %v11149_v24 = vpop.eup %11148  ;;  %v7179_v45 = vmul.f32 %v11147_v30, %v18198_v11  ;;  %v18200_v20 = vld [vmem:[#allocation70_spill] sm:$0xff] }
 0xe35   : > { %11156 = vrcp.f32 %v7066_v21  ;;  %7131 = vadd.xlane.f32.xlu1 %v7130_v19  ;;  %v7182_v3 = vmul.f32 %v11149_v24, %v18199_v33  ;;  %v11151_v48 = vpop.eup %11150  ;;  %v7181_v19 = vmul.f32 %v11149_v24, %v18201_v46  ;;  %v18204_v33 = vld [vmem:[#allocation174_spill] sm:$0xff] }
 0xe36   : > { %v7069_v14 = vpop.xlane.xlu1 %7068 }
 0xe37   : > { %7411 = vmatmul.mubr.f32.gmra.mrb[36].mxu0 %v7177_v26  ;;  %11158 = vrcp.f32 %v7069_v14  ;;  %v18202_v14 = vld [vmem:[#allocation42_spill] sm:$0xff] }
 0xe38   : > { %7415 = vmatprep.mubr.f32.mxu0 %v7180_v12  ;;  %v7184_v12 = vmul.f32 %v11151_v48, %v18202_v14 }
 0xe3a   : > { %v6850_v27 = vpop.xlane.xlu1 %6849 }
 0xe3b   : > { %v6913_v51 = vsub.f32 %v16093_v15, %v6850_v27  ;;  %v6914_v41 = vsub.f32 %v18200_v20, %v6850_v27  ;;  %7416 = vmatmul.mubr.f32.gmra.mrb[38].mxu0 %v7179_v45  ;;  %v18203_v45 = vld [vmem:[#allocation102_spill] sm:$0xff] }
 0xe3c   : > { %7420 = vmatprep.mubr.f32.mxu0 %v7182_v3  ;;  %v7183_v27 = vmul.f32 %v11151_v48, %v18203_v45 }
 0xe3d   : > { %v16426_v21 = vpop.eup %11152  ;;  %v7039_v57 = vmul.f32 1.442695, %v6913_v51  ;;  %v7041_v26 = vmul.f32 1.442695, %v6914_v41  ;;  %v18205_v51 = vld [vmem:[#allocation109_spill] sm:$0xff] }
 0xe3e   : > { %v16429_v25 = vpop.eup %11154  ;;  %v7072_v30 = vpop.xlane.xlu1 %7071 }
 0xe3f   : > { %v11157_v11 = vpop.eup %11156  ;;  %11160 = vpow2.f32 %v7039_v57  ;;  %7421 = vmatmul.mubr.f32.gmra.mrb[40].mxu0 %v7181_v19  ;;  %v7133_v15 = vadd.f32 %v16429_v25, %v16426_v21  ;;  %v18206_v57 = vld [vmem:[#allocation56_spill] sm:$0xff] }
 0xe40   : > { %11162 = vpow2.f32 %v7041_v26  ;;  %7425 = vmatprep.mubr.f32.mxu0 %v7184_v12  ;;  %v7186_v41 = vmul.f32 %v11157_v11, %v18204_v33  ;;  %v7185_v20 = vmul.f32 %v11157_v11, %v18205_v51 }
 0xe41   : > { %11164 = vrcp.f32 %v7072_v30  ;;  %7134 = vadd.xlane.f32.xlu0 %v7133_v15  ;;  %v11159_v3 = vpop.eup %11158  ;;  %v18207_v30 = vld [vmem:[#allocation60_spill] sm:$0xff] }
 0xe42   : > { %v7075_v24 = vpop.xlane.xlu1 %7074  ;;  %v7188_v14 = vmul.f32 %v11159_v3, %v18206_v57  ;;  %v7187_v12 = vmul.f32 %v11159_v3, %v18207_v30 }
 0xe43   : > { %11166 = vrcp.f32 %v7075_v24  ;;  %7426 = vmatmul.mubr.f32.gmra.mrb[42].mxu0 %v7183_v27 }
 0xe44   : > { %7430 = vmatprep.mubr.f32.mxu0 %v7186_v41 }
 0xe46   : > { %v16437_v46 = vpop.f32.mrb[190].mxu1  ;;  %v7078_v19 = vpop.xlane.xlu1 %7077 }
 0xe47   : > { %11168 = vrcp.f32 %v7078_v19  ;;  %v5736_v26 = vpop.f32.mrb[191].mxu1  ;;  %7431 = vmatmul.mubr.f32.gmra.mrb[44].mxu0 %v7185_v20 }
 0xe48   : > { %7435 = vmatprep.mubr.f32.mxu0 %v7188_v14 }
 0xe49   : > { %v16440_v48 = vpop.eup %11160 }
 0xe4a   : > { %v16443_v15 = vpop.eup %11162  ;;  %v16445_v45 = vpop.f32.mrb[192].mxu1 }
 0xe4b   : > { %v7081_v27 = vpop.xlane.xlu1 %7080  ;;  %v11165_v24 = vpop.eup %11164  ;;  %7436 = vmatmul.mubr.f32.gmra.mrb[46].mxu0 %v7187_v12  ;;  %v7136_v33 = vadd.f32 %v16443_v15, %v16440_v48 }
 0xe4c   : > { %11170 = vrcp.f32 %v7081_v27  ;;  %v5741_v11 = vpop.f32.mrb[193].mxu1  ;;  %v7190_v41 = vmul.f32 %v11165_v24, %v16116_v0  ;;  %v7189_v20 = vmul.f32 %v11165_v24, %v16108_v52 }
 0xe4d   : > { %v11167_v51 = vpop.eup %11166  ;;  %7137 = vadd.xlane.f32.xlu1 %v7136_v33 }
 0xe4e   : > { %7440 = vmatprep.mubr.f32.mxu0 %v7190_v41  ;;  %v7192_v19 = vmul.f32 %v11167_v51, %v16131_v56  ;;  %v7191_v14 = vmul.f32 %v11167_v51, %v16124_v8 }
 0xe4f   : > { %v7084_v3 = vpop.xlane.xlu1 %7083  ;;  %7441 = vmatmul.mubr.f32.gmra.mrb[48].mxu0 %v7189_v20 }
 0xe50   : > { %11172 = vrcp.f32 %v7084_v3  ;;  %7445 = vmatprep.mubr.f32.mxu0 %v7192_v19  ;;  %v18208_v19 = vld [vmem:[#allocation52_spill] sm:$0xff] }
 0xe51   : > { %v11169_v57 = vpop.eup %11168  ;;  %11174 = vrcp.f32 %v16392_v37 }
 0xe52   : > { %v7194_v30 = vmul.f32 %v11169_v57, %v16146_v53  ;;  %v7193_v12 = vmul.f32 %v11169_v57, %v16139_v5 }
 0xe53   : > { %v7087_v26 = vpop.xlane.xlu1 %7086  ;;  %7446 = vmatmul.mubr.f32.gmra.mrb[50].mxu0 %v7191_v14  ;;  %v5378_v0 = vpop.xlane.xlu0 %5377 }
 0xe54   : > { %11176 = vrcp.f32 %v7087_v26  ;;  %7450 = vmatprep.mubr.f32.mxu0 %v7194_v30  ;;  %v18210_v30 = vld [vmem:[#allocation123_spill] sm:$0xff] }
 0xe55   : > { %11178 = vrcp.f32 %v5378_v0 }
 0xe56   : > { %v11171_v52 = vpop.eup %11170 }
 0xe57   : > { %v7090_v56 = vpop.xlane.xlu1 %7089  ;;  %v7196_v27 = vmul.f32 %v11171_v52, %v16160_v4  ;;  %7451 = vmatmul.mubr.f32.gmra.mrb[52].mxu0 %v7193_v12  ;;  %v5387_v24 = vpop.xlane.xlu0 %5386  ;;  %v7195_v53 = vmul.f32 %v11171_v52, %v16152_v43  ;;  %v18211_v12 = vld [vmem:[#allocation44_spill] sm:$0xff] }
 0xe58   : > { %11180 = vrcp.f32 %v7090_v56 }
 0xe59   : > { %11182 = vrcp.f32 %v16415_v2  ;;  %7455 = vmatprep.mubr.f32.mxu0 %v7196_v27 }
 0xe5a   : > { %v11173_v8 = vpop.eup %11172  ;;  %11184 = vrcp.f32 %v5387_v24 }
 0xe5b   : > { %v7198_v37 = vmul.f32 %v11173_v8, %v16174_v59  ;;  %7456 = vmatmul.mubr.f32.gmra.mrb[54].mxu0 %v7195_v53  ;;  %v5390_v11 = vpop.xlane.xlu0 %5389  ;;  %v11175_v33 = vpop.eup %11174  ;;  %v7197_v41 = vmul.f32 %v11173_v8, %v16168_v16 }
 0xe5c   : > { %11186 = vrcp.f32 %v5390_v11  ;;  %v5485_v57 = vmul.f32 %v11175_v33, %v18208_v19 }
 0xe5d   : > { %7460 = vmatprep.mubr.f32.mxu0 %v7198_v37  ;;  %v7096_v37 = vpop.xlane.xlu1 %7095 }
 0xe5e   : > { %v11177_v5 = vpop.eup %11176 }
 0xe5f   : > { %v11179_v4 = vpop.eup %11178  ;;  %v7200_v51 = vmul.f32 %v11177_v5, %v16190_v35  ;;  %7461 = vmatmul.mubr.f32.gmra.mrb[56].mxu0 %v7197_v41  ;;  %v5393_v20 = vpop.xlane.xlu0 %5392  ;;  %v7199_v59 = vmul.f32 %v11177_v5, %v16184_v7 }
 0xe60   : > { %v5483_v2 = vmul.f32 %v11179_v4, %v16194_v29  ;;  %v5482_v3 = vmul.f32 %v11179_v4, %v16180_v40  ;;  %11188 = vrcp.f32 %v5393_v20  ;;  %v18209_v29 = vld [vmem:[#allocation182_spill] sm:$0xff]  ;;  %v18212_v20 = vld [vmem:[#allocation115_spill] sm:$0xff] }
 0xe61   : > { %7465 = vmatprep.mubr.f32.mxu0 %v7200_v51  ;;  %v5484_v26 = vmul.f32 %v11175_v33, %v18209_v29  ;;  %v18213_v29 = vld [vmem:[#allocation162_spill] sm:$0xff] }
 0xe62   : > { %v11181_v43 = vpop.eup %11180  ;;  %5772 = vmatprep.mubr.f32.mxu1 %v5483_v2  ;;  %v7102_v2 = vpop.xlane.xlu1 %7101 }
 0xe63   : > { %v11183_v14 = vpop.eup %11182  ;;  %5773 = vmatmul.mubr.f32.gmra.mrb[206].mxu1 %v5482_v3  ;;  %v7202_v16 = vmul.f32 %v11181_v43, %v16208_v44  ;;  %7466 = vmatmul.mubr.f32.gmra.mrb[58].mxu0 %v7199_v59  ;;  %v5396_v35 = vpop.xlane.xlu0 %5395  ;;  %v7201_v40 = vmul.f32 %v11181_v43, %v16202_v63 }
 0xe64   : > { %5777 = vmatprep.mubr.f32.mxu1 %v5485_v57  ;;  %v5487_v0 = vmul.f32 %v11183_v14, %v18210_v30  ;;  %v11185_v52 = vpop.eup %11184  ;;  %11190 = vrcp.f32 %v5396_v35  ;;  %v5486_v56 = vmul.f32 %v11183_v14, %v18211_v12 }
 0xe65   : > { %7470 = vmatprep.mubr.f32.mxu0 %v7202_v16  ;;  %v5489_v44 = vmul.f32 %v11185_v52, %v16214_v22  ;;  %v5488_v8 = vmul.f32 %v11185_v52, %v16198_v49 }
 0xe66   : > { %v11187_v27 = vpop.eup %11186 }
 0xe67   : > { %5778 = vmatmul.mubr.f32.gmra.mrb[208].mxu1 %v5484_v26  ;;  %7471 = vmatmul.mubr.f32.gmra.mrb[60].mxu0 %v7201_v40  ;;  %v5399_v7 = vpop.xlane.xlu0 %5398  ;;  %v5491_v63 = vmul.f32 %v11187_v27, %v16232_v13  ;;  %v5490_v33 = vmul.f32 %v11187_v27, %v16218_v60  ;;  %v7108_v40 = vpop.xlane.xlu1 %7107 }
 0xe68   : > { %5782 = vmatprep.mubr.f32.mxu1 %v5487_v0  ;;  %11192 = vrcp.f32 %v5399_v7  ;;  %v18215_v0 = vld [vmem:[#allocation71_spill] sm:$0xff] }
 0xe6a   : > { %v11189_v53 = vpop.eup %11188 }
 0xe6b   : > { %5783 = vmatmul.mubr.f32.gmra.mrb[210].mxu1 %v5486_v56  ;;  %v5402_v24 = vpop.xlane.xlu0 %5401  ;;  %v5493_v5 = vmul.f32 %v11189_v53, %v16248_v39  ;;  %v5492_v49 = vmul.f32 %v11189_v53, %v16234_v10 }
 0xe6c   : > { %5787 = vmatprep.mubr.f32.mxu1 %v5489_v44  ;;  %11194 = vrcp.f32 %v5402_v24 }
 0xe6d   : > { %11196 = vrcp.f32 %v7096_v37  ;;  %v7114_v37 = vpop.xlane.xlu1 %7113 }
 0xe6e   : > { %v11191_v22 = vpop.eup %11190 }
 0xe6f   : > { %5788 = vmatmul.mubr.f32.gmra.mrb[212].mxu1 %v5488_v8  ;;  %v5405_v11 = vpop.xlane.xlu0 %5404  ;;  %v5495_v13 = vmul.f32 %v11191_v22, %v16264_v62  ;;  %v5494_v60 = vmul.f32 %v11191_v22, %v18212_v20  ;;  %v18220_v22 = vld [vmem:[#allocation146_spill] sm:$0xff]  ;;  %v18224_v20 = vld [vmem:[#allocation143_spill] sm:$0xff] }
 0xe70   : > { %5792 = vmatprep.mubr.f32.mxu1 %v5491_v63  ;;  %11198 = vrcp.f32 %v5405_v11  ;;  %v18218_v63 = vld [vmem:[#allocation130_spill] sm:$0xff]  ;;  %v18219_v11 = vld [vmem:[#allocation69_spill] sm:$0xff] }
 0xe72   : > { %v11193_v4 = vpop.eup %11192 }
 0xe73   : > { %5793 = vmatmul.mubr.f32.gmra.mrb[214].mxu1 %v5490_v33  ;;  %v7093_v41 = vpop.xlane.xlu0 %7092  ;;  %v5497_v39 = vmul.f32 %v11193_v4, %v16282_v6  ;;  %v5496_v59 = vmul.f32 %v11193_v4, %v16268_v54  ;;  %v18214_v54 = vld [vmem:[#allocation96_spill] sm:$0xff] }
 0xe74   : > { %5797 = vmatprep.mubr.f32.mxu1 %v5493_v5  ;;  %11200 = vrcp.f32 %v7093_v41  ;;  %v18221_v41 = vld [vmem:[#allocation87_spill] sm:$0xff] }
 0xe76   : > { %v11195_v3 = vpop.eup %11194 }
 0xe77   : > { %5798 = vmatmul.mubr.f32.gmra.mrb[216].mxu1 %v5492_v49  ;;  %v7099_v51 = vpop.xlane.xlu0 %7098  ;;  %v11197_v43 = vpop.eup %11196  ;;  %v5499_v62 = vmul.f32 %v11195_v3, %v16300_v38  ;;  %v5498_v26 = vmul.f32 %v11195_v3, %v18213_v29 }
 0xe78   : > { %5802 = vmatprep.mubr.f32.mxu1 %v5495_v13  ;;  %11202 = vrcp.f32 %v7099_v51  ;;  %v7206_v52 = vmul.f32 %v11197_v43, %v18215_v0  ;;  %v18223_v51 = vld [vmem:[#allocation150_spill] sm:$0xff]  ;;  %v18234_v0 = vld [vmem:[#allocation75_spill] sm:$0xff] }
 0xe79   : > { %11204 = vrcp.f32 %v7102_v2  ;;  %v7120_v2 = vpop.xlane.xlu1 %7119 }
 0xe7a   : > { %v11199_v10 = vpop.eup %11198 }
 0xe7b   : > { %5803 = vmatmul.mubr.f32.gmra.mrb[218].mxu1 %v5494_v60  ;;  %v7105_v19 = vpop.xlane.xlu0 %7104  ;;  %v5501_v30 = vmul.f32 %v11199_v10, %v18214_v54 }
 0xe7c   : > { %5807 = vmatprep.mubr.f32.mxu1 %v5497_v39  ;;  %11206 = vrcp.f32 %v7105_v19  ;;  %v18225_v39 = vld [vmem:[#allocation125_spill] sm:$0xff] }
 0xe7d   : > { %11208 = vrcp.f32 %v7108_v40 }
 0xe7e   : > { %v11201_v57 = vpop.eup %11200  ;;  %v16482_v14 = vpop.f32.mrb[194].mxu1 }
 0xe7f   : > { %5808 = vmatmul.mubr.f32.gmra.mrb[220].mxu1 %v5496_v59  ;;  %v7203_v16 = vmul.f32 %v11201_v57, %v16320_v36  ;;  %v5746_v35 = vpop.f32.mrb[195].mxu1  ;;  %v7204_v6 = vmul.f32 %v11201_v57, %v16324_v47  ;;  %v18216_v36 = vld [vmem:[#allocation64_spill] sm:$0xff]  ;;  %v7111_v27 = vpop.xlane.xlu0 %7110  ;;  %v18226_v59 = vld [vmem:[#allocation77_spill] sm:$0xff] }
 0xe80   : > { %5812 = vmatprep.mubr.f32.mxu1 %v5499_v62  ;;  %v7205_v56 = vmul.f32 %v11197_v43, %v18216_v36  ;;  %v18217_v47 = vld [vmem:[#allocation36_spill] sm:$0xff]  ;;  %11210 = vrcp.f32 %v7111_v27  ;;  %v18230_v35 = vld [vmem:[#allocation178_spill] sm:$0xff] }
 0xe81   : > { %7475 = vmatprep.mubr.f32.mxu0 %v7204_v6  ;;  %v5500_v44 = vmul.f32 %v11199_v10, %v18217_v47  ;;  %11212 = vrcp.f32 %v7114_v37  ;;  %v18228_v10 = vld [vmem:[#allocation90_spill] sm:$0xff] }
 0xe82   : > { %v11203_v38 = vpop.eup %11202  ;;  %v16489_v7 = vpop.f32.mrb[196].mxu1  ;;  %7476 = vmatmul.mubr.f32.gmra.mrb[62].mxu0 %v7203_v16  ;;  %v18229_v16 = vld [vmem:[#allocation54_spill] sm:$0xff] }
 0xe83   : > { %5813 = vmatmul.mubr.f32.gmra.mrb[222].mxu1 %v5498_v26  ;;  %v5751_v12 = vpop.f32.mrb[197].mxu1  ;;  %7480 = vmatprep.mubr.f32.mxu0 %v7206_v52  ;;  %v7208_v24 = vmul.f32 %v11203_v38, %v16334_v23  ;;  %v11205_v8 = vpop.eup %11204  ;;  %v7207_v53 = vmul.f32 %v11203_v38, %v16330_v50  ;;  %v18222_v23 = vld [vmem:[#allocation153_spill] sm:$0xff] }
 0xe84   : > { %5817 = vmatprep.mubr.f32.mxu1 %v5501_v30  ;;  %v7210_v33 = vmul.f32 %v11205_v8, %v18219_v11  ;;  %v7209_v49 = vmul.f32 %v11205_v8, %v18222_v23  ;;  %v7117_v13 = vpop.xlane.xlu0 %7116  ;;  %v18231_v26 = vld [vmem:[#allocation113_spill] sm:$0xff]  ;;  %v18232_v30 = vld [vmem:[#allocation148_spill] sm:$0xff] }
 0xe85   : > { %11214 = vrcp.f32 %v7117_v13  ;;  %v7126_v29 = vpop.xlane.xlu1 %7125 }
 0xe86   : > { %7481 = vmatmul.mubr.f32.gmra.mrb[64].mxu0 %v7205_v56  ;;  %v11207_v5 = vpop.eup %11206  ;;  %11216 = vrcp.f32 %v7120_v2  ;;  %v18236_v56 = vld [vmem:[#allocation8_spill] sm:$0xff] }
 0xe87   : > { %5818 = vmatmul.mubr.f32.gmra.mrb[224].mxu1 %v5500_v44  ;;  %7485 = vmatprep.mubr.f32.mxu0 %v7208_v24  ;;  %v7212_v4 = vmul.f32 %v11207_v5, %v16344_v18  ;;  %v11209_v50 = vpop.eup %11208  ;;  %v7211_v60 = vmul.f32 %v11207_v5, %v16340_v58  ;;  %v18227_v18 = vld [vmem:[#allocation147_spill] sm:$0xff] }
 0xe88   : > { %9144 = vmatprep.mubr.msk.f32.mxu1 %vm1107_vm1, %v18218_v63  ;;  %v7214_v3 = vmul.f32 %v11209_v50, %v18225_v39  ;;  %v7213_v19 = vmul.f32 %v11209_v50, %v18228_v10  ;;  %v7123_v62 = vpop.xlane.xlu0 %7122 }
 0xe89   : > { %11218 = vrcp.f32 %v7123_v62 }
 0xe8a   : > { %7486 = vmatmul.mubr.f32.gmra.mrb[66].mxu0 %v7207_v53  ;;  %v11211_v43 = vpop.eup %11210  ;;  %11220 = vrcp.f32 %v7126_v29 }
 0xe8b   : > { %9145 = vmatmul.mubr.msk.f32.vlgmr.msra.gmra.mrb[66].mxu1 %vm1107_vm1, %v18220_v22  ;;  %7490 = vmatprep.mubr.f32.mxu0 %v7210_v33  ;;  %v7216_v57 = vmul.f32 %v11211_v43, %v16353_v1  ;;  %v11213_v58 = vpop.eup %11212  ;;  %v7215_v6 = vmul.f32 %v11211_v43, %v16348_v31  ;;  %v18233_v1 = vld [vmem:[#allocation152_spill] sm:$0xff]  ;;  %v18235_v31 = vld [vmem:[#allocation43_spill] sm:$0xff] }
 0xe8c   : > { %9147 = vmatprep.mubr.msk.f32.mxu1 %vm1107_vm1, %v18221_v41  ;;  %v7218_v40 = vmul.f32 %v11213_v58, %v18231_v26  ;;  %v7217_v52 = vmul.f32 %v11213_v58, %v18234_v0 }
 0xe8e   : > { %7491 = vmatmul.mubr.f32.gmra.mrb[68].mxu0 %v7209_v49 }
 0xe8f   : > { %9148 = vmatmul.mubr.msk.f32.gmra.mrb[68].mxu1 %vm1107_vm1, %v18223_v51  ;;  %7495 = vmatprep.mubr.f32.mxu0 %v7212_v4  ;;  %v11215_v54 = vpop.eup %11214  ;;  %v18241_v4 = vld [vmem:[#allocation82_spill] sm:$0xff] }
 0xe90   : > { %9150 = vmatprep.mubr.msk.f32.mxu1 %vm1107_vm1, %v18224_v20  ;;  %v7220_v38 = vmul.f32 %v11215_v54, %v16360_v28  ;;  %v11217_v12 = vpop.eup %11216  ;;  %v7219_v36 = vmul.f32 %v11215_v54, %v16355_v32  ;;  %v18237_v28 = vld [vmem:[#allocation2_spill] sm:$0xff]  ;;  %v18238_v32 = vld [vmem:[#allocation119_spill] sm:$0xff] }
 0xe91   : > { %v7222_v47 = vmul.f32 %v11217_v12, %v18236_v56  ;;  %v7221_v27 = vmul.f32 %v11217_v12, %v18237_v28 }
 0xe92   : > { %7496 = vmatmul.mubr.f32.gmra.mrb[70].mxu0 %v7211_v60 }
 0xe93   : > { %9151 = vmatmul.mubr.msk.f32.gmra.mrb[70].mxu1 %vm1107_vm1, %v18226_v59  ;;  %7500 = vmatprep.mubr.f32.mxu0 %v7214_v3  ;;  %v11219_v44 = vpop.eup %11218 }
 0xe94   : > { %9153 = vmatprep.mubr.msk.f32.mxu1 %vm1107_vm1, %v18227_v18  ;;  %v7224_v24 = vmul.f32 %v11219_v44, %v16364_v61  ;;  %v11221_v8 = vpop.eup %11220 }
 0xe96   : > { %7501 = vmatmul.mubr.f32.gmra.mrb[72].mxu0 %v7213_v19 }
 0xe97   : > { %9154 = vmatmul.mubr.msk.f32.gmra.mrb[72].mxu1 %vm1107_vm1, %v18229_v16  ;;  %7505 = vmatprep.mubr.f32.mxu0 %v7216_v57 }
 0xe98   : > { %9156 = vmatprep.mubr.msk.f32.mxu1 %vm1107_vm1, %v18230_v35 }
 0xe9a   : > { %7506 = vmatmul.mubr.f32.gmra.mrb[74].mxu0 %v7215_v6 }
 0xe9b   : > { %9157 = vmatmul.mubr.msk.f32.gmra.mrb[74].mxu1 %vm1107_vm1, %v18232_v30  ;;  %7510 = vmatprep.mubr.f32.mxu0 %v7218_v40 }
 0xe9c   : > { %9159 = vmatprep.mubr.msk.f32.mxu1 %vm1107_vm1, %v18233_v1 }
 0xe9e   : > { %7511 = vmatmul.mubr.f32.gmra.mrb[76].mxu0 %v7217_v52 }
 0xe9f   : > { %9160 = vmatmul.mubr.msk.f32.gmra.mrb[76].mxu1 %vm1107_vm1, %v18235_v31  ;;  %7515 = vmatprep.mubr.f32.mxu0 %v7220_v38 }
 0xea0   : > { %9162 = vmatprep.mubr.msk.f32.mxu1 %vm1107_vm1, %v16376_v55  ;;  %v7223_v55 = vmul.f32 %v11219_v44, %v18238_v32 }
 0xea2   : > { %7516 = vmatmul.mubr.f32.gmra.mrb[78].mxu0 %v7219_v36 }
 0xea3   : > { %9163 = vmatmul.mubr.msk.f32.gmra.mrb[78].mxu1 %vm1107_vm1, %v16378_v17  ;;  %7520 = vmatprep.mubr.f32.mxu0 %v7222_v47  ;;  %v18239_v17 = vld [vmem:[#allocation127_spill] sm:$0xff] }
 0xea4   : > { %9165 = vmatprep.mubr.msk.f32.mxu1 %vm1107_vm1, %v16437_v46  ;;  %v7226_v63 = vmul.f32 %v11221_v8, %v18239_v17  ;;  %v18240_v46 = vld [vmem:[#allocation53_spill] sm:$0xff] }
 0xea5   : > { %v7225_v61 = vmul.f32 %v11221_v8, %v18240_v46 }
 0xea6   : > { %7521 = vmatmul.mubr.f32.gmra.mrb[80].mxu0 %v7221_v27 }
 0xea7   : > { %9166 = vmatmul.mubr.msk.f32.gmra.mrb[80].mxu1 %vm1107_vm1, %v16445_v45  ;;  %7525 = vmatprep.mubr.f32.mxu0 %v7224_v24 }
 0xea8   : > { %9168 = vmatprep.mubr.msk.f32.mxu1 %vm1107_vm1, %v16482_v14  ;;  %v8397_v14 = vld [vmem:[%s16802_s5 + $0x18] sm:$0xff] }
 0xea9   : > { %9192 = vmatprep.subr.mxu1 %v8397_v14 }
 0xeaa   : > { %7526 = vmatmul.mubr.f32.gmra.mrb[82].mxu0 %v7223_v55  ;;  %9193 = vmatpush3.msra.mxu1 %v8397_v14 }
 0xeab   : > { %9169 = vmatmul.mubr.msk.f32.gmra.mrb[82].mxu1 %vm1107_vm1, %v16489_v7  ;;  %7530 = vmatprep.mubr.f32.mxu0 %v7226_v63 }
 0xeae   : > { %7531 = vmatmul.mubr.f32.gmra.mrb[84].mxu0 %v7225_v61 }
 0xebb   : > { %v5754_v53 = vpop.f32.mrb[198].mxu1 }
 0xebc   : > { %v5756_v37 = vpop.f32.mrb[199].mxu1  ;;  %9171 = vmatprep.mubr.msk.f32.mxu1 %vm1107_vm1, %v5754_v53 }
 0xebe   : > { %v7129_v45 = vpop.xlane.xlu0 %7128 }
 0xebf   : > { %11222 = vrcp.f32 %v7129_v45  ;;  %v5759_v11 = vpop.f32.mrb[200].mxu1 }
 0xec0   : > { %v5761_v33 = vpop.f32.mrb[201].mxu1  ;;  %9172 = vmatmul.mubr.msk.f32.gmra.mrb[84].mxu1 %vm1107_vm1, %v5759_v11 }
 0xec2   : > { %v7132_v7 = vpop.xlane.xlu1 %7131 }
 0xec3   : > { %11224 = vrcp.f32 %v7132_v7 }
 0xec9   : > { %v11223_v5 = vpop.eup %11222 }
 0xeca   : > { %v7227_v22 = vmul.f32 %v11223_v5, %v16400_v9  ;;  %v7228_v41 = vmul.f32 %v11223_v5, %v16403_v42 }
 0xecc   : > { %7535 = vmatprep.mubr.f32.mxu0 %v7228_v41 }
 0xecd   : > { %v11225_v23 = vpop.eup %11224  ;;  %7536 = vmatmul.mubr.f32.gmra.mrb[86].mxu0 %v7227_v22 }
 0xece   : > { %v7229_v49 = vmul.f32 %v11225_v23, %v16410_v34  ;;  %v7135_v13 = vpop.xlane.xlu0 %7134  ;;  %v7230_v50 = vmul.f32 %v11225_v23, %v18241_v4 }
 0xecf   : > { %11226 = vrcp.f32 %v7135_v13 }
 0xed0   : > { %7540 = vmatprep.mubr.f32.mxu0 %v7230_v50 }
 0xed1   : > { %7541 = vmatmul.mubr.f32.gmra.mrb[88].mxu0 %v7229_v49 }
 0xed9   : > { %v11227_v51 = vpop.eup %11226 }
 0xeda   : > { %v7231_v20 = vmul.f32 %v11227_v51, %v16426_v21  ;;  %v7138_v60 = vpop.xlane.xlu1 %7137  ;;  %v7232_v2 = vmul.f32 %v11227_v51, %v16429_v25 }
 0xedb   : > { %11228 = vrcp.f32 %v7138_v60 }
 0xedc   : > { %7545 = vmatprep.mubr.f32.mxu0 %v7232_v2 }
 0xedd   : > { %7546 = vmatmul.mubr.f32.gmra.mrb[90].mxu0 %v7231_v20 }
 0xee5   : > { %v11229_v9 = vpop.eup %11228 }
 0xee6   : > { %v7233_v42 = vmul.f32 %v11229_v9, %v16440_v48  ;;  %v7234_v34 = vmul.f32 %v11229_v9, %v16443_v15 }
 0xee8   : > { %7550 = vmatprep.mubr.f32.mxu0 %v7234_v34 }
 0xee9   : > { %7551 = vmatmul.mubr.f32.gmra.mrb[92].mxu0 %v7233_v42 }
 0xef8   : > { %v5764_v39 = vpop.f32.mrb[202].mxu1 }
 0xef9   : > { %v5766_v3 = vpop.f32.mrb[203].mxu1  ;;  %9174 = vmatprep.mubr.msk.f32.mxu1 %vm1107_vm1, %v5764_v39 }
 0xefc   : > { %v5769_v43 = vpop.f32.mrb[204].mxu1 }
 0xefd   : > { %v5771_v59 = vpop.f32.mrb[205].mxu1  ;;  %9175 = vmatmul.mubr.msk.f32.gmra.mrb[86].mxu1 %vm1107_vm1, %v5769_v43 }
 0xefe   : > { %v16564_v21 = vpop.f32.mrb[30].mxu0 }
 0xeff   : > { %v7399_v25 = vpop.f32.mrb[31].mxu0 }
 0xf02   : > { %v16566_v18 = vpop.f32.mrb[32].mxu0 }
 0xf03   : > { %v7404_v10 = vpop.f32.mrb[33].mxu0 }
 0xf06   : > { %v16568_v19 = vpop.f32.mrb[34].mxu0 }
 0xf07   : > { %v7409_v48 = vpop.f32.mrb[35].mxu0 }
 0xf0a   : > { %v16570_v15 = vpop.f32.mrb[36].mxu0 }
 0xf0b   : > { %v7414_v62 = vpop.f32.mrb[37].mxu0 }
 0xf0e   : > { %v16572_v57 = vpop.f32.mrb[38].mxu0 }
 0xf0f   : > { %v7419_v58 = vpop.f32.mrb[39].mxu0 }
 0xf12   : > { %v16574_v16 = vpop.f32.mrb[40].mxu0 }
 0xf13   : > { %v7424_v35 = vpop.f32.mrb[41].mxu0 }
 0xf16   : > { %v16576_v6 = vpop.f32.mrb[42].mxu0 }
 0xf17   : > { %v7429_v29 = vpop.f32.mrb[43].mxu0 }
 0xf1a   : > { %v16578_v26 = vpop.f32.mrb[44].mxu0 }
 0xf1b   : > { %v7434_v40 = vpop.f32.mrb[45].mxu0 }
 0xf1e   : > { %v16580_v54 = vpop.f32.mrb[46].mxu0 }
 0xf1f   : > { %v7439_v30 = vpop.f32.mrb[47].mxu0 }
 0xf22   : > { %v16582_v1 = vpop.f32.mrb[48].mxu0 }
 0xf23   : > { %v7444_v0 = vpop.f32.mrb[49].mxu0 }
 0xf26   : > { %v16584_v52 = vpop.f32.mrb[50].mxu0 }
 0xf27   : > { %v7449_v38 = vpop.f32.mrb[51].mxu0 }
 0xf28   : > { %v11230_v38 = vld [vmem:[%s11338_s29 + $0x8] sm:$0xff] }
 0xf2a   : > { %v16586_v12 = vpop.f32.mrb[52].mxu0 }
 0xf2b   : > { %v7454_v31 = vpop.f32.mrb[53].mxu0 }
 0xf2c   : > { %v11231_v31 = vld [vmem:[%s11338_s29] sm:$0xff] }
 0xf2e   : > { %v16588_v36 = vpop.f32.mrb[54].mxu0 }
 0xf2f   : > { %v7459_v56 = vpop.f32.mrb[55].mxu0 }
 0xf32   : > { %v16590_v47 = vpop.f32.mrb[56].mxu0 }
 0xf33   : > { %v7464_v44 = vpop.f32.mrb[57].mxu0 }
 0xf36   : > { %v5774_v28 = vpop.f32.mrb[206].mxu1  ;;  %v16592_v27 = vpop.f32.mrb[58].mxu0 }
 0xf37   : > { %v5776_v24 = vpop.f32.mrb[207].mxu1  ;;  %9177 = vmatprep.mubr.msk.f32.mxu1 %vm1107_vm1, %v5774_v28  ;;  %v7469_v8 = vpop.f32.mrb[59].mxu0  ;;  %v11232_v28 = vld [vmem:[%s11338_s29 + $0x18] sm:$0xff] }
 0xf38   : > { %v11233_v8 = vld [vmem:[%s11338_s29 + $0x10] sm:$0xff] }
 0xf3a   : > { %v5779_v32 = vpop.f32.mrb[208].mxu1  ;;  %v16595_v55 = vpop.f32.mrb[60].mxu0 }
 0xf3b   : > { %v5781_v17 = vpop.f32.mrb[209].mxu1  ;;  %9178 = vmatmul.mubr.msk.f32.gmra.mrb[88].mxu1 %vm1107_vm1, %v5779_v32  ;;  %v7474_v63 = vpop.f32.mrb[61].mxu0 }
 0xf3e   : > { %v5784_v46 = vpop.f32.mrb[210].mxu1 }
 0xf3f   : > { %v5786_v61 = vpop.f32.mrb[211].mxu1  ;;  %9180 = vmatprep.mubr.msk.f32.mxu1 %vm1107_vm1, %v5784_v46  ;;  %v11234_v46 = vld [vmem:[%s11338_s29 + $0x28] sm:$0xff] }
 0xf42   : > { %v5789_v53 = vpop.f32.mrb[212].mxu1 }
 0xf43   : > { %v5791_v37 = vpop.f32.mrb[213].mxu1  ;;  %9181 = vmatmul.mubr.msk.f32.gmra.mrb[90].mxu1 %vm1107_vm1, %v5789_v53 }
 0xf44   : > { %v11235_v37 = vld [vmem:[%s11338_s29 + $0x20] sm:$0xff] }
 0xf46   : > { %v5794_v45 = vpop.f32.mrb[214].mxu1 }
 0xf47   : > { %v5796_v14 = vpop.f32.mrb[215].mxu1  ;;  %9183 = vmatprep.mubr.msk.f32.mxu1 %vm1107_vm1, %v5794_v45 }
 0xf4a   : > { %v5799_v11 = vpop.f32.mrb[216].mxu1 }
 0xf4b   : > { %v5801_v33 = vpop.f32.mrb[217].mxu1  ;;  %9184 = vmatmul.mubr.msk.f32.gmra.mrb[92].mxu1 %vm1107_vm1, %v5799_v11 }
 0xf4e   : > { %v5804_v7 = vpop.f32.mrb[218].mxu1 }
 0xf4f   : > { %v5806_v5 = vpop.f32.mrb[219].mxu1  ;;  %9186 = vmatprep.mubr.msk.f32.mxu1 %vm1107_vm1, %v5804_v7  ;;  %v11236_v7 = vld [vmem:[%s11338_s29 + $0x38] sm:$0xff] }
 0xf52   : > { %v5809_v22 = vpop.f32.mrb[220].mxu1 }
 0xf53   : > { %v5811_v41 = vpop.f32.mrb[221].mxu1  ;;  %9187 = vmatmul.mubr.msk.f32.gmra.mrb[94].mxu1 %vm1107_vm1, %v5809_v22 }
 0xf54   : > { %v11237_v41 = vld [vmem:[%s11338_s29 + $0x30] sm:$0xff] }
 0xf55   : > { %v7477_v49 = vpop.f32.mrb[62].mxu0 }
 0xf56   : > { %v5814_v23 = vpop.f32.mrb[222].mxu1  ;;  %v7479_v4 = vpop.f32.mrb[63].mxu0 }
 0xf57   : > { %v5816_v13 = vpop.f32.mrb[223].mxu1  ;;  %9189 = vmatprep.mubr.msk.f32.mxu1 %vm1107_vm1, %v5814_v23 }
 0xf59   : > { %v7482_v51 = vpop.f32.mrb[64].mxu0 }
 0xf5a   : > { %v5819_v50 = vpop.f32.mrb[224].mxu1  ;;  %v7484_v60 = vpop.f32.mrb[65].mxu0 }
 0xf5b   : > { %v5821_v20 = vpop.f32.mrb[225].mxu1  ;;  %9190 = vmatmul.mubr.msk.f32.gmra.mrb[96].mxu1 %vm1107_vm1, %v5819_v50  ;;  %v11238_v50 = vld [vmem:[%s11338_s29 + $0x48] sm:$0xff]  ;;  %v11239_v60 = vld [vmem:[%s11338_s29 + $0x40] sm:$0xff] }
 0xf5c   : > { %9194 = vmatprep.mubr.msk.f32.mxu1 %vm1107_vm1, %v16564_v21 }
 0xf5d   : > { %v7487_v2 = vpop.f32.mrb[66].mxu0 }
 0xf5e   : > { %v7489_v9 = vpop.f32.mrb[67].mxu0 }
 0xf5f   : > { %9195 = vmatmul.mubr.msk.f32.vlgmr.msra.gmra.mrb[66].mxu1 %vm1107_vm1, %v16566_v18 }
 0xf60   : > { %9197 = vmatprep.mubr.msk.f32.mxu1 %vm1107_vm1, %v16568_v19 }
 0xf61   : > { %v7492_v42 = vpop.f32.mrb[68].mxu0 }
 0xf62   : > { %v7494_v34 = vpop.f32.mrb[69].mxu0 }
 0xf63   : > { %9198 = vmatmul.mubr.msk.f32.gmra.mrb[68].mxu1 %vm1107_vm1, %v16570_v15 }
 0xf64   : > { %9200 = vmatprep.mubr.msk.f32.mxu1 %vm1107_vm1, %v16572_v57 }
 0xf65   : > { %v7497_v39 = vpop.f32.mrb[70].mxu0 }
 0xf66   : > { %v7499_v3 = vpop.f32.mrb[71].mxu0 }
 0xf67   : > { %9201 = vmatmul.mubr.msk.f32.gmra.mrb[70].mxu1 %vm1107_vm1, %v16574_v16 }
 0xf68   : > { %9203 = vmatprep.mubr.msk.f32.mxu1 %vm1107_vm1, %v16576_v6 }
 0xf69   : > { %v7502_v43 = vpop.f32.mrb[72].mxu0 }
 0xf6a   : > { %v7504_v59 = vpop.f32.mrb[73].mxu0 }
 0xf6b   : > { %9204 = vmatmul.mubr.msk.f32.gmra.mrb[72].mxu1 %vm1107_vm1, %v16578_v26  ;;  %v11241_v59 = vld [vmem:[%s11338_s29 + $0x50] sm:$0xff] }
 0xf6c   : > { %9206 = vmatprep.mubr.msk.f32.mxu1 %vm1107_vm1, %v16580_v54 }
 0xf6d   : > { %v7507_v21 = vpop.f32.mrb[74].mxu0 }
 0xf6e   : > { %v7509_v25 = vpop.f32.mrb[75].mxu0 }
 0xf6f   : > { %9207 = vmatmul.mubr.msk.f32.gmra.mrb[74].mxu1 %vm1107_vm1, %v16582_v1 }
 0xf70   : > { %9209 = vmatprep.mubr.msk.f32.mxu1 %vm1107_vm1, %v16584_v52  ;;  %v16657_v52 = vld [vmem:[%s16803_s6] ss:$0 sm:$0xff] }
 0xf71   : > { %v7512_v18 = vpop.f32.mrb[76].mxu0  ;;  %v981_v32 = vadd.f32 %v11233_v8, %v16657_v52  ;;  %v984_v61 = vadd.f32 %v11234_v46, %v16657_v52  ;;  %v983_v45 = vadd.f32 %v11235_v37, %v16657_v52  ;;  %v986_v5 = vadd.f32 %v11236_v7, %v16657_v52 }
 0xf72   : > { %v7514_v10 = vpop.f32.mrb[77].mxu0  ;;  %v985_v23 = vadd.f32 %v11237_v41, %v16657_v52 }
 0xf73   : > { %9210 = vmatmul.mubr.msk.f32.gmra.mrb[76].mxu1 %vm1107_vm1, %v16586_v12  ;;  %v980_v12 = vadd.f32 %v11230_v38, %v16657_v52  ;;  %v11246_v38 = vld [vmem:[%s11338_s29 + $0x88] sm:$0xff] }
 0xf74   : > { %9212 = vmatprep.mubr.msk.f32.mxu1 %vm1107_vm1, %v16588_v36  ;;  %v979_v36 = vadd.f32 %v11231_v31, %v16657_v52 }
 0xf75   : > { %v7517_v19 = vpop.f32.mrb[78].mxu0 }
 0xf76   : > { %v7519_v48 = vpop.f32.mrb[79].mxu0 }
 0xf77   : > { %9213 = vmatmul.mubr.msk.f32.gmra.mrb[78].mxu1 %vm1107_vm1, %v16590_v47 }
 0xf78   : > { %9215 = vmatprep.mubr.msk.f32.mxu1 %vm1107_vm1, %v16592_v27  ;;  %v982_v27 = vadd.f32 %v11232_v28, %v16657_v52 }
 0xf79   : > { %v7522_v15 = vpop.f32.mrb[80].mxu0 }
 0xf7a   : > { %v7524_v62 = vpop.f32.mrb[81].mxu0 }
 0xf7b   : > { %9216 = vmatmul.mubr.msk.f32.gmra.mrb[80].mxu1 %vm1107_vm1, %v16595_v55  ;;  %v11243_v62 = vld [vmem:[%s11338_s29 + $0x60] sm:$0xff] }
 0xf7c   : > { %9218 = vmatprep.mubr.msk.f32.mxu1 %vm1107_vm1, %v7477_v49 }
 0xf7d   : > { %v7527_v57 = vpop.f32.mrb[82].mxu0 }
 0xf7e   : > { %v7529_v58 = vpop.f32.mrb[83].mxu0 }
 0xf7f   : > { %9219 = vmatmul.mubr.msk.f32.gmra.mrb[82].mxu1 %vm1107_vm1, %v7482_v51  ;;  %v988_v51 = vadd.f32 %v11238_v50, %v16657_v52 }
 0xf80   : > { %9221 = vmatprep.mubr.msk.f32.mxu1 %vm1107_vm1, %v7487_v2  ;;  %v987_v2 = vadd.f32 %v11239_v60, %v16657_v52 }
 0xf81   : > { %v7532_v16 = vpop.f32.mrb[84].mxu0 }
 0xf82   : > { %v7534_v35 = vpop.f32.mrb[85].mxu0 }
 0xf83   : > { %9222 = vmatmul.mubr.msk.f32.gmra.mrb[84].mxu1 %vm1107_vm1, %v7492_v42 }
 0xf84   : > { %9224 = vmatprep.mubr.msk.f32.mxu1 %vm1107_vm1, %v7497_v39  ;;  %v11240_v39 = vld [vmem:[%s11338_s29 + $0x58] sm:$0xff] }
 0xf85   : > { %v990_v3 = vadd.f32 %v11240_v39, %v16657_v52 }
 0xf87   : > { %9225 = vmatmul.mubr.msk.f32.gmra.mrb[86].mxu1 %vm1107_vm1, %v7502_v43 }
 0xf88   : > { %9227 = vmatprep.mubr.msk.f32.mxu1 %vm1107_vm1, %v7507_v21  ;;  %v989_v21 = vadd.f32 %v11241_v59, %v16657_v52 }
 0xf8b   : > { %9228 = vmatmul.mubr.msk.f32.gmra.mrb[88].mxu1 %vm1107_vm1, %v7512_v18 }
 0xf8c   : > { %9230 = vmatprep.mubr.msk.f32.mxu1 %vm1107_vm1, %v7517_v19  ;;  %v11242_v19 = vld [vmem:[%s11338_s29 + $0x68] sm:$0xff] }
 0xf8d   : > { %v992_v48 = vadd.f32 %v11242_v19, %v16657_v52 }
 0xf8f   : > { %9231 = vmatmul.mubr.msk.f32.gmra.mrb[90].mxu1 %vm1107_vm1, %v7522_v15 }
 0xf90   : > { %9233 = vmatprep.mubr.msk.f32.mxu1 %vm1107_vm1, %v7527_v57  ;;  %v991_v57 = vadd.f32 %v11243_v62, %v16657_v52 }
 0xf93   : > { %9234 = vmatmul.mubr.msk.f32.gmra.mrb[92].mxu1 %vm1107_vm1, %v7532_v16 }
 0xfa0   : > { %v7537_v6 = vpop.f32.mrb[86].mxu0 }
 0xfa1   : > { %v7539_v29 = vpop.f32.mrb[87].mxu0  ;;  %9236 = vmatprep.mubr.msk.f32.mxu1 %vm1107_vm1, %v7537_v6  ;;  %v11244_v6 = vld [vmem:[%s11338_s29 + $0x78] sm:$0xff] }
 0xfa2   : > { %v994_v29 = vadd.f32 %v11244_v6, %v16657_v52 }
 0xfa4   : > { %v7542_v26 = vpop.f32.mrb[88].mxu0 }
 0xfa5   : > { %v7544_v40 = vpop.f32.mrb[89].mxu0  ;;  %9237 = vmatmul.mubr.msk.f32.gmra.mrb[94].mxu1 %vm1107_vm1, %v7542_v26 }
 0xfa6   : > { %v11245_v40 = vld [vmem:[%s11338_s29 + $0x70] sm:$0xff] }
 0xfb0   : > { %v7547_v54 = vpop.f32.mrb[90].mxu0 }
 0xfb1   : > { %v7549_v30 = vpop.f32.mrb[91].mxu0  ;;  %9239 = vmatprep.mubr.msk.f32.mxu1 %vm1107_vm1, %v7547_v54  ;;  %v993_v54 = vadd.f32 %v11245_v40, %v16657_v52 }
 0xfbc   : > { %v7552_v1 = vpop.f32.mrb[92].mxu0 }
 0xfbd   : > { %v7554_v0 = vpop.f32.mrb[93].mxu0  ;;  %9240 = vmatmul.mubr.msk.f32.gmra.mrb[96].mxu1 %vm1107_vm1, %v7552_v1 }
0x1032   : > { %v9196_v56 = vpop.f32.mrb[66].mxu1 }
0x1033   : > { %v9666_v47 = vadd.f32 %v9196_v56, %v980_v12  ;;  %v7720_v44 = vpop.f32.mrb[67].mxu1  ;;  %v996_v12 = vadd.f32 %v11246_v38, %v16657_v52 }
0x1034   : > { %v9667_v24 = vadd.f32 %v7720_v44, %v979_v36  ;;  %v11247_v36 = vld [vmem:[%s11338_s29 + $0x80] sm:$0xff] }
0x1035   : > { %7912 = vst.msk [vmem:[%s16668_s14 + $0x8] sm:$0xff] %vm311_vm0, %v9666_v47  ;;  %v995_v56 = vadd.f32 %v11247_v36, %v16657_v52 }
0x1036   : > { %7911 = vst.msk [vmem:[%s16668_s14] sm:$0xff] %vm311_vm0, %v9667_v24  ;;  %v9199_v55 = vpop.f32.mrb[68].mxu1 }
0x1037   : > { %v9668_v17 = vadd.f32 %v9199_v55, %v982_v27  ;;  %v7730_v63 = vpop.f32.mrb[69].mxu1  ;;  %v11248_v27 = vld [vmem:[%s11338_s29 + $0x98] sm:$0xff] }
0x1038   : > { %v9669_v53 = vadd.f32 %v7730_v63, %v981_v32  ;;  %v998_v24 = vadd.f32 %v11248_v27, %v16657_v52  ;;  %v11249_v32 = vld [vmem:[%s11338_s29 + $0x90] sm:$0xff] }
0x1039   : > { %7914 = vst.msk [vmem:[%s16668_s14 + $0x18] sm:$0xff] %vm311_vm0, %v9668_v17  ;;  %v997_v55 = vadd.f32 %v11249_v32, %v16657_v52 }
0x103a   : > { %7913 = vst.msk [vmem:[%s16668_s14 + $0x10] sm:$0xff] %vm311_vm0, %v9669_v53  ;;  %v9202_v14 = vpop.f32.mrb[70].mxu1 }
0x103b   : > { %v9670_v11 = vadd.f32 %v9202_v14, %v984_v61  ;;  %v7740_v33 = vpop.f32.mrb[71].mxu1  ;;  %v11250_v61 = vld [vmem:[%s11338_s29 + $0xa8] sm:$0xff] }
0x103c   : > { %v9671_v22 = vadd.f32 %v7740_v33, %v983_v45  ;;  %v1000_v53 = vadd.f32 %v11250_v61, %v16657_v52  ;;  %v11251_v45 = vld [vmem:[%s11338_s29 + $0xa0] sm:$0xff] }
0x103d   : > { %7916 = vst.msk [vmem:[%s16668_s14 + $0x28] sm:$0xff] %vm311_vm0, %v9670_v11  ;;  %v999_v14 = vadd.f32 %v11251_v45, %v16657_v52 }
0x103e   : > { %7915 = vst.msk [vmem:[%s16668_s14 + $0x20] sm:$0xff] %vm311_vm0, %v9671_v22  ;;  %v9205_v49 = vpop.f32.mrb[72].mxu1 }
0x103f   : > { %v9672_v13 = vadd.f32 %v9205_v49, %v986_v5  ;;  %v7750_v4 = vpop.f32.mrb[73].mxu1  ;;  %v11252_v5 = vld [vmem:[%s11338_s29 + $0xb8] sm:$0xff] }
0x1040   : > { %v9673_v20 = vadd.f32 %v7750_v4, %v985_v23  ;;  %v1002_v22 = vadd.f32 %v11252_v5, %v16657_v52  ;;  %v11253_v23 = vld [vmem:[%s11338_s29 + $0xb0] sm:$0xff] }
0x1041   : > { %7918 = vst.msk [vmem:[%s16668_s14 + $0x38] sm:$0xff] %vm311_vm0, %v9672_v13  ;;  %v1001_v49 = vadd.f32 %v11253_v23, %v16657_v52 }
0x1042   : > { %7917 = vst.msk [vmem:[%s16668_s14 + $0x30] sm:$0xff] %vm311_vm0, %v9673_v20  ;;  %v9208_v9 = vpop.f32.mrb[74].mxu1 }
0x1043   : > { %v9674_v42 = vadd.f32 %v9208_v9, %v988_v51  ;;  %v7760_v34 = vpop.f32.mrb[75].mxu1  ;;  %v11254_v51 = vld [vmem:[%s11338_s29 + $0xc8] sm:$0xff] }
0x1044   : > { %v9675_v43 = vadd.f32 %v7760_v34, %v987_v2  ;;  %v1004_v20 = vadd.f32 %v11254_v51, %v16657_v52  ;;  %v11255_v2 = vld [vmem:[%s11338_s29 + $0xc0] sm:$0xff] }
0x1045   : > { %7920 = vst.msk [vmem:[%s16668_s14 + $0x48] sm:$0xff] %vm311_vm0, %v9674_v42  ;;  %v1003_v9 = vadd.f32 %v11255_v2, %v16657_v52 }
0x1046   : > { %7919 = vst.msk [vmem:[%s16668_s14 + $0x40] sm:$0xff] %vm311_vm0, %v9675_v43  ;;  %v9211_v25 = vpop.f32.mrb[76].mxu1 }
0x1047   : > { %v9676_v18 = vadd.f32 %v9211_v25, %v990_v3  ;;  %v7770_v10 = vpop.f32.mrb[77].mxu1  ;;  %v11256_v3 = vld [vmem:[%s11338_s29 + $0xd8] sm:$0xff] }
0x1048   : > { %v9677_v15 = vadd.f32 %v7770_v10, %v989_v21  ;;  %v1006_v43 = vadd.f32 %v11256_v3, %v16657_v52  ;;  %v11257_v21 = vld [vmem:[%s11338_s29 + $0xd0] sm:$0xff] }
0x1049   : > { %7922 = vst.msk [vmem:[%s16668_s14 + $0x58] sm:$0xff] %vm311_vm0, %v9676_v18  ;;  %v1005_v25 = vadd.f32 %v11257_v21, %v16657_v52 }
0x104a   : > { %7921 = vst.msk [vmem:[%s16668_s14 + $0x50] sm:$0xff] %vm311_vm0, %v9677_v15  ;;  %v9214_v58 = vpop.f32.mrb[78].mxu1  ;;  %v11258_v15 = vld [vmem:[%s11338_s29 + $0xe8] sm:$0xff] }
0x104b   : > { %v9678_v16 = vadd.f32 %v9214_v58, %v992_v48  ;;  %v7780_v35 = vpop.f32.mrb[79].mxu1  ;;  %v1008_v62 = vadd.f32 %v11258_v15, %v16657_v52 }
0x104c   : > { %v9679_v26 = vadd.f32 %v7780_v35, %v991_v57  ;;  %v11259_v57 = vld [vmem:[%s11338_s29 + $0xe0] sm:$0xff] }
0x104d   : > { %7924 = vst.msk [vmem:[%s16668_s14 + $0x68] sm:$0xff] %vm311_vm0, %v9678_v16  ;;  %v1007_v58 = vadd.f32 %v11259_v57, %v16657_v52 }
0x104e   : > { %7923 = vst.msk [vmem:[%s16668_s14 + $0x60] sm:$0xff] %vm311_vm0, %v9679_v26  ;;  %v9217_v30 = vpop.f32.mrb[80].mxu1  ;;  %v11260_v26 = vld [vmem:[%s11338_s29 + $0xf8] sm:$0xff] }
0x104f   : > { %v9680_v1 = vadd.f32 %v9217_v30, %v994_v29  ;;  %v7790_v0 = vpop.f32.mrb[81].mxu1  ;;  %v1010_v40 = vadd.f32 %v11260_v26, %v16657_v52 }
0x1050   : > { %v9681_v31 = vadd.f32 %v7790_v0, %v993_v54  ;;  %v11261_v54 = vld [vmem:[%s11338_s29 + $0xf0] sm:$0xff] }
0x1051   : > { %7926 = vst.msk [vmem:[%s16668_s14 + $0x78] sm:$0xff] %vm311_vm0, %v9680_v1  ;;  %v1009_v30 = vadd.f32 %v11261_v54, %v16657_v52 }
0x1052   : > { %7925 = vst.msk [vmem:[%s16668_s14 + $0x70] sm:$0xff] %vm311_vm0, %v9681_v31  ;;  %v9220_v47 = vpop.f32.mrb[82].mxu1 }
0x1053   : > { %v9682_v44 = vadd.f32 %v9220_v47, %v996_v12  ;;  %v7800_v28 = vpop.f32.mrb[83].mxu1 }
0x1054   : > { %v9683_v8 = vadd.f32 %v7800_v28, %v995_v56 }
0x1055   : > { %7928 = vst.msk [vmem:[%s16668_s14 + $0x88] sm:$0xff] %vm311_vm0, %v9682_v44 }
0x1056   : > { %7927 = vst.msk [vmem:[%s16668_s14 + $0x80] sm:$0xff] %vm311_vm0, %v9683_v8  ;;  %v9223_v17 = vpop.f32.mrb[84].mxu1 }
0x1057   : > { %v9684_v63 = vadd.f32 %v9223_v17, %v998_v24  ;;  %v7810_v46 = vpop.f32.mrb[85].mxu1 }
0x1058   : > { %v9685_v37 = vadd.f32 %v7810_v46, %v997_v55 }
0x1059   : > { %7930 = vst.msk [vmem:[%s16668_s14 + $0x98] sm:$0xff] %vm311_vm0, %v9684_v63 }
0x105a   : > { %7929 = vst.msk [vmem:[%s16668_s14 + $0x90] sm:$0xff] %vm311_vm0, %v9685_v37  ;;  %v9226_v11 = vpop.f32.mrb[86].mxu1 }
0x105b   : > { %v9686_v33 = vadd.f32 %v9226_v11, %v1000_v53  ;;  %v7820_v7 = vpop.f32.mrb[87].mxu1 }
0x105c   : > { %v9687_v41 = vadd.f32 %v7820_v7, %v999_v14 }
0x105d   : > { %7932 = vst.msk [vmem:[%s16668_s14 + $0xa8] sm:$0xff] %vm311_vm0, %v9686_v33 }
0x105e   : > { %7931 = vst.msk [vmem:[%s16668_s14 + $0xa0] sm:$0xff] %vm311_vm0, %v9687_v41  ;;  %v9229_v13 = vpop.f32.mrb[88].mxu1 }
0x105f   : > { %v9688_v4 = vadd.f32 %v9229_v13, %v1002_v22  ;;  %v7830_v50 = vpop.f32.mrb[89].mxu1 }
0x1060   : > { %v9689_v60 = vadd.f32 %v7830_v50, %v1001_v49 }
0x1061   : > { %7934 = vst.msk [vmem:[%s16668_s14 + $0xb8] sm:$0xff] %vm311_vm0, %v9688_v4 }
0x1062   : > { %7933 = vst.msk [vmem:[%s16668_s14 + $0xb0] sm:$0xff] %vm311_vm0, %v9689_v60  ;;  %v9232_v42 = vpop.f32.mrb[90].mxu1 }
0x1063   : > { %v9690_v34 = vadd.f32 %v9232_v42, %v1004_v20  ;;  %v7840_v39 = vpop.f32.mrb[91].mxu1 }
0x1064   : > { %v9691_v59 = vadd.f32 %v7840_v39, %v1003_v9 }
0x1065   : > { %7936 = vst.msk [vmem:[%s16668_s14 + $0xc8] sm:$0xff] %vm311_vm0, %v9690_v34 }
0x1066   : > { %7935 = vst.msk [vmem:[%s16668_s14 + $0xc0] sm:$0xff] %vm311_vm0, %v9691_v59  ;;  %v9235_v18 = vpop.f32.mrb[92].mxu1 }
0x1067   : > { %v9692_v10 = vadd.f32 %v9235_v18, %v1006_v43  ;;  %v7850_v19 = vpop.f32.mrb[93].mxu1 }
0x1068   : > { %v9693_v48 = vadd.f32 %v7850_v19, %v1005_v25 }
0x1069   : > { %7938 = vst.msk [vmem:[%s16668_s14 + $0xd8] sm:$0xff] %vm311_vm0, %v9692_v10 }
0x106a   : > { %7937 = vst.msk [vmem:[%s16668_s14 + $0xd0] sm:$0xff] %vm311_vm0, %v9693_v48 }
0x1078   : > { %v9238_v16 = vpop.f32.mrb[94].mxu1 }
0x1079   : > { %v9694_v35 = vadd.f32 %v9238_v16, %v1008_v62  ;;  %v7860_v6 = vpop.f32.mrb[95].mxu1 }
0x107a   : > { %v9695_v29 = vadd.f32 %v7860_v6, %v1007_v58 }
0x107b   : > { %7940 = vst.msk [vmem:[%s16668_s14 + $0xe8] sm:$0xff] %vm311_vm0, %v9694_v35 }
0x107c   : > { %7939 = vst.msk [vmem:[%s16668_s14 + $0xe0] sm:$0xff] %vm311_vm0, %v9695_v29 }
0x1090   : > { %v9241_v1 = vpop.f32.mrb[96].mxu1 }
0x1091   : > { %v9696_v0 = vadd.f32 %v9241_v1, %v1010_v40  ;;  %v7870_v38 = vpop.f32.mrb[97].mxu1 }
0x1092   : > { %v9697_v12 = vadd.f32 %v7870_v38, %v1009_v30 }
0x1093   : > { %7942 = vst.msk [vmem:[%s16668_s14 + $0xf8] sm:$0xff] %vm311_vm0, %v9696_v0 }
0x1094   : > { %7941 = vst.msk [vmem:[%s16668_s14 + $0xf0] sm:$0xff] %vm311_vm0, %v9697_v12 }
0x1095 PF: > { %s17_s24 = sadd.s32 1, %s11268_s24  }
0x1096   : > { %p14_p4 = scmp.ge.s32.totalorder %s17_s24, 4  }
0x1098   :  { %16 = sbr.rel (!%p14_p4) target bundleno = 1 (0x1), region = 81 }

</bundles_post_ra>
